<compile_context>
chip_gen: v6e
topology: v6e:2x2x1
jax: 0.10.0
libtpu: 0.0.40
codegen_flags: <defaults>
</compile_context>

<pallas_src>
import jax
import jax.numpy as jnp
from jax.experimental import pallas as pl
from jax.experimental.pallas import tpu as pltpu


def _bottleneck_residual_kernel(x_ref, g1_ref, b1_ref, w1_ref, g2_ref, b2_ref,
                                w2_ref, out_ref, pad_ref):
    # x_ref  : (N, H, W, Cin)          f32   input activations (NHWC)
    # g1/b1  : (1, Cin)                f32   BN1 affine params
    # w1_ref : (Cin, Cinner)           bf16  1x1 conv weight (as a matmul)
    # g2/b2  : (1, Cinner)             f32   BN2 affine params
    # w2_ref : (9*Cinner, G)           bf16  3x3 conv weight, row = (ky*3+kx)*Cinner + c
    # out_ref: (N, H, W, G)            f32   residual-branch output only
    # pad_ref: (N, H+2, W+2, Cinner)   f32   VMEM scratch (zero-padded BN2/ReLU output)
    N, H, W, Cin = x_ref.shape
    Cinner = w1_ref.shape[1]
    G = out_ref.shape[3]
    eps = 1e-5
    m = N * H * W
    inv_m = 1.0 / m

    x = x_ref[...].reshape(m, Cin)

    # ---- BN1 (training-mode batch stats, fused single-pass reduction) + ReLU
    s1 = jnp.sum(x, axis=0, keepdims=True)
    ss1 = jnp.sum(x * x, axis=0, keepdims=True)
    mu1 = s1 * inv_m
    var1 = ss1 * inv_m - mu1 * mu1
    scale1 = g1_ref[...] * jax.lax.rsqrt(var1 + eps)
    shift1 = b1_ref[...] - mu1 * scale1
    h = jnp.maximum(x * scale1 + shift1, 0.0)

    # ---- 1x1 conv == channel matmul on the MXU (bf16 operands, f32 accum) ---
    y1 = jnp.dot(h.astype(jnp.bfloat16), w1_ref[...],
                 preferred_element_type=jnp.float32)            # (m, Cinner)

    # ---- BN2 (fused single-pass stats) + ReLU -------------------------------
    s2 = jnp.sum(y1, axis=0, keepdims=True)
    ss2 = jnp.sum(y1 * y1, axis=0, keepdims=True)
    mu2 = s2 * inv_m
    var2 = ss2 * inv_m - mu2 * mu2
    scale2 = g2_ref[...] * jax.lax.rsqrt(var2 + eps)
    shift2 = b2_ref[...] - mu2 * scale2
    h2 = jnp.maximum(y1 * scale2 + shift2, 0.0)                 # (m, Cinner) f32

    # ---- 3x3 "same" conv as a single im2col matmul --------------------------
    # Zero only the 1-pixel border strips of the scratch, then write the
    # activations into the interior once.
    zrow = jnp.zeros((N, 1, W + 2, Cinner), jnp.float32)
    zcol = jnp.zeros((N, H + 2, 1, Cinner), jnp.float32)
    pad_ref[:, 0:1, :, :] = zrow
    pad_ref[:, H + 1:H + 2, :, :] = zrow
    pad_ref[:, :, 0:1, :] = zcol
    pad_ref[:, :, W + 1:W + 2, :] = zcol
    pad_ref[:, 1:H + 1, 1:W + 1, :] = h2.reshape(N, H, W, Cinner)

    # im2col: 9 shifted windows concatenated on the channel (lane) axis, then
    # one K = 9*Cinner MXU matmul (instead of 9 tiny K = Cinner matmuls).
    taps = [pad_ref[:, ky:ky + H, kx:kx + W, :]
            for ky in range(3) for kx in range(3)]
    patches = jnp.concatenate(taps, axis=-1).reshape(m, 9 * Cinner)
    y2 = jnp.dot(patches.astype(jnp.bfloat16), w2_ref[...],
                 preferred_element_type=jnp.float32)            # (m, G)

    # Single residual-only output store (identity path handled in the wrapper).
    out_ref[...] = y2.reshape(N, H, W, G)


def bottleneck_residual_nhwc(x_nhwc, gamma1, beta1, w1_oihw, gamma2, beta2,
                             w2_oihw):
    """Residual branch only.  NHWC in -> (N, H, W, G) f32 out."""
    N, H, W, Cin = x_nhwc.shape
    Cinner = w1_oihw.shape[0]
    G = w2_oihw.shape[0]

    # Weight layout glue (done once, outside the kernel).
    w1 = jnp.transpose(w1_oihw[:, :, 0, 0], (1, 0)).astype(jnp.bfloat16)  # (Cin, Cinner)
    # OIHW -> (ky, kx, c, g) -> (9*Cinner, G); row index = (ky*3 + kx)*Cinner + c
    w2 = jnp.transpose(w2_oihw, (2, 3, 1, 0)).reshape(9 * Cinner, G).astype(jnp.bfloat16)
    g1 = gamma1.reshape(1, Cin).astype(jnp.float32)
    b1 = beta1.reshape(1, Cin).astype(jnp.float32)
    g2 = gamma2.reshape(1, Cinner).astype(jnp.float32)
    b2 = beta2.reshape(1, Cinner).astype(jnp.float32)

    grid_spec = pltpu.PrefetchScalarGridSpec(
        num_scalar_prefetch=0,
        grid=(1,),  # whole (small) batch in one step => exact batch-stat BN
        in_specs=[
            pl.BlockSpec((N, H, W, Cin), lambda i: (0, 0, 0, 0)),
            pl.BlockSpec((1, Cin), lambda i: (0, 0)),
            pl.BlockSpec((1, Cin), lambda i: (0, 0)),
            pl.BlockSpec((Cin, Cinner), lambda i: (0, 0)),
            pl.BlockSpec((1, Cinner), lambda i: (0, 0)),
            pl.BlockSpec((1, Cinner), lambda i: (0, 0)),
            pl.BlockSpec((9 * Cinner, G), lambda i: (0, 0)),
        ],
        out_specs=pl.BlockSpec((N, H, W, G), lambda i: (0, 0, 0, 0)),
        scratch_shapes=[pltpu.VMEM((N, H + 2, W + 2, Cinner), jnp.float32)],
    )

    return pl.pallas_call(
        _bottleneck_residual_kernel,
        out_shape=jax.ShapeDtypeStruct((N, H, W, G), jnp.float32),
        grid_spec=grid_spec,
        compiler_params=pltpu.CompilerParams(
            dimension_semantics=("arbitrary",),
            vmem_limit_bytes=32 * 1024 * 1024),
    )(x_nhwc.astype(jnp.float32), g1, b1, w1, g2, b2, w2)


def bottleneck_pallas(x_nchw, gamma1, beta1, w1_oihw, gamma2, beta2, w2_oihw):
    """Full BottleNeck forward.  NCHW in / NCHW out (matches the PyTorch module)."""
    x_nhwc = jnp.transpose(x_nchw, (0, 2, 3, 1)).astype(jnp.float32)
    res = bottleneck_residual_nhwc(x_nhwc, gamma1, beta1, w1_oihw,
                                   gamma2, beta2, w2_oihw)
    # Only the small residual is transposed back to NCHW; the identity path is
    # the original NCHW tensor, so the concat is the only full-size-x op here.
    return jnp.concatenate(
        [x_nchw.astype(jnp.float32), jnp.transpose(res, (0, 3, 1, 2))], axis=1)


def bottleneck_reference(x_nchw, gamma1, beta1, w1_oihw, gamma2, beta2, w2_oihw,
                         matmul_dtype=jnp.float32):
    """Pure-JAX reference.  With matmul_dtype=bf16 it mirrors the kernel's MXU
    precision (bf16 operands, f32 accumulation); with f32 it is the exact
    PyTorch (train-mode) semantics."""
    eps = 1e-5
    x = jnp.transpose(x_nchw, (0, 2, 3, 1)).astype(jnp.float32)
    mu1 = x.mean(axis=(0, 1, 2))
    var1 = x.var(axis=(0, 1, 2))
    h = jnp.maximum((x - mu1) / jnp.sqrt(var1 + eps) * gamma1 + beta1, 0.0)
    w1 = w1_oihw[:, :, 0, 0]                                    # (Cinner, Cin)
    y1 = jnp.einsum("nhwc,oc->nhwo", h.astype(matmul_dtype),
                    w1.astype(matmul_dtype),
                    preferred_element_type=jnp.float32)
    mu2 = y1.mean(axis=(0, 1, 2))
    var2 = y1.var(axis=(0, 1, 2))
    h2 = jnp.maximum((y1 - mu2) / jnp.sqrt(var2 + eps) * gamma2 + beta2, 0.0)
    w2_hwio = jnp.transpose(w2_oihw, (2, 3, 1, 0))
    y2 = jax.lax.conv_general_dilated(
        h2.astype(matmul_dtype), w2_hwio.astype(matmul_dtype),
        window_strides=(1, 1), padding="SAME",
        dimension_numbers=("NHWC", "HWIO", "NHWC"),
        preferred_element_type=jnp.float32)
    out = jnp.concatenate([x, y2], axis=-1)
    return jnp.transpose(out, (0, 3, 1, 2))


if __name__ == "__main__":
    N, Cin, H, W = 2, 4, 16, 16
    growth_rate = 8
    Cinner = 4 * growth_rate  # 32

    key = jax.random.PRNGKey(0)
    ks = jax.random.split(key, 7)
    x = jax.random.normal(ks[0], (N, Cin, H, W), jnp.float32)
    gamma1 = 1.0 + 0.1 * jax.random.normal(ks[1], (Cin,), jnp.float32)
    beta1 = 0.1 * jax.random.normal(ks[2], (Cin,), jnp.float32)
    w1 = 0.2 * jax.random.normal(ks[3], (Cinner, Cin, 1, 1), jnp.float32)          # OIHW
    gamma2 = 1.0 + 0.1 * jax.random.normal(ks[4], (Cinner,), jnp.float32)
    beta2 = 0.1 * jax.random.normal(ks[5], (Cinner,), jnp.float32)
    w2 = 0.1 * jax.random.normal(ks[6], (growth_rate, Cinner, 3, 3), jnp.float32)  # OIHW

    out = bottleneck_pallas(x, gamma1, beta1, w1, gamma2, beta2, w2)
    out = jax.block_until_ready(out)
    assert out.shape == (N, Cin + growth_rate, H, W), out.shape

    # Tight check vs. a reference that mirrors the kernel's MXU precision
    # (bf16 operands, f32 accumulation; everything else f32).
    ref_bf16 = bottleneck_reference(x, gamma1, beta1, w1, gamma2, beta2, w2,
                                    matmul_dtype=jnp.bfloat16)
    err_tight = float(jnp.max(jnp.abs(out - ref_bf16)))
    assert jnp.allclose(out, ref_bf16, atol=5e-3, rtol=5e-3), err_tight

    # Loose sanity check vs. the pure-f32 PyTorch-semantics reference; the gap
    # is only the bf16 rounding of the MXU operands.
    ref_f32 = bottleneck_reference(x, gamma1, beta1, w1, gamma2, beta2, w2,
                                   matmul_dtype=jnp.float32)
    err_f32 = float(jnp.max(jnp.abs(out - ref_f32)))
    assert jnp.allclose(out, ref_f32, atol=1e-1, rtol=1e-1), err_f32

    print("KERNEL_OK")
</pallas_src>

<mosaic_0001>
module attributes {stable_mosaic.version = 11 : i64} {
  func.func @_bottleneck_residual_kernel(%arg0: i32, %arg1: memref<2x16x16x4xf32, #tpu.memory_space<vmem>>, %arg2: memref<1x4xf32, #tpu.memory_space<vmem>>, %arg3: memref<1x4xf32, #tpu.memory_space<vmem>>, %arg4: memref<4x32xbf16, #tpu.memory_space<vmem>>, %arg5: memref<1x32xf32, #tpu.memory_space<vmem>>, %arg6: memref<1x32xf32, #tpu.memory_space<vmem>>, %arg7: memref<288x8xbf16, #tpu.memory_space<vmem>>, %arg8: memref<2x16x16x8xf32, #tpu.memory_space<vmem>>, %arg9: memref<2x18x18x32xf32, #tpu.memory_space<vmem>>) attributes {dimension_semantics = [#tpu.dimension_semantics<arbitrary>], iteration_bounds = array<i64: 1>, scalar_prefetch = 0 : i64, scratch_operands = 1 : i64, tpu.core_type = #tpu.core_type<tc>, window_params = [{pipeline_mode = #tpu.pipeline_mode<synchronous>, transform_indices = @transform_0, window_bounds = array<i64: 2, 16, 16, 4>}, {pipeline_mode = #tpu.pipeline_mode<synchronous>, transform_indices = @transform_1, window_bounds = array<i64: 1, 4>}, {pipeline_mode = #tpu.pipeline_mode<synchronous>, transform_indices = @transform_2, window_bounds = array<i64: 1, 4>}, {pipeline_mode = #tpu.pipeline_mode<synchronous>, transform_indices = @transform_3, window_bounds = array<i64: 4, 32>}, {pipeline_mode = #tpu.pipeline_mode<synchronous>, transform_indices = @transform_4, window_bounds = array<i64: 1, 32>}, {pipeline_mode = #tpu.pipeline_mode<synchronous>, transform_indices = @transform_5, window_bounds = array<i64: 1, 32>}, {pipeline_mode = #tpu.pipeline_mode<synchronous>, transform_indices = @transform_6, window_bounds = array<i64: 288, 8>}, {pipeline_mode = #tpu.pipeline_mode<synchronous>, transform_indices = @transform_7, window_bounds = array<i64: 2, 16, 16, 8>}]} {
    %c0 = arith.constant 0 : index
    %c0_0 = arith.constant 0 : index
    %c0_1 = arith.constant 0 : index
    %c0_2 = arith.constant 0 : index
    %0 = vector.load %arg1[%c0, %c0_0, %c0_1, %c0_2] : memref<2x16x16x4xf32, #tpu.memory_space<vmem>>, vector<2x16x16x4xf32>
    %1 = vector.shape_cast %0 : vector<2x16x16x4xf32> to vector<512x4xf32>
    %cst = arith.constant dense<0.000000e+00> : vector<4xf32>
    %2 = vector.multi_reduction <add>, %1, %cst [0] : vector<512x4xf32> to vector<4xf32>
    %3 = vector.shape_cast %2 : vector<4xf32> to vector<1x4xf32>
    %4 = arith.mulf %1, %1 : vector<512x4xf32>
    %cst_3 = arith.constant dense<0.000000e+00> : vector<4xf32>
    %5 = vector.multi_reduction <add>, %4, %cst_3 [0] : vector<512x4xf32> to vector<4xf32>
    %6 = vector.shape_cast %5 : vector<4xf32> to vector<1x4xf32>
    %cst_4 = arith.constant 0.001953125 : f32
    %7 = vector.broadcast %cst_4 : f32 to vector<1x4xf32>
    %8 = arith.mulf %3, %7 : vector<1x4xf32>
    %cst_5 = arith.constant 0.001953125 : f32
    %9 = vector.broadcast %cst_5 : f32 to vector<1x4xf32>
    %10 = arith.mulf %6, %9 : vector<1x4xf32>
    %11 = arith.mulf %8, %8 : vector<1x4xf32>
    %12 = arith.subf %10, %11 : vector<1x4xf32>
    %c0_6 = arith.constant 0 : index
    %c0_7 = arith.constant 0 : index
    %13 = vector.load %arg2[%c0_6, %c0_7] : memref<1x4xf32, #tpu.memory_space<vmem>>, vector<1x4xf32>
    %cst_8 = arith.constant 9.99999974E-6 : f32
    %14 = vector.broadcast %cst_8 : f32 to vector<1x4xf32>
    %15 = arith.addf %12, %14 : vector<1x4xf32>
    %16 = math.rsqrt %15 : vector<1x4xf32>
    %17 = arith.mulf %13, %16 : vector<1x4xf32>
    %c0_9 = arith.constant 0 : index
    %c0_10 = arith.constant 0 : index
    %18 = vector.load %arg3[%c0_9, %c0_10] : memref<1x4xf32, #tpu.memory_space<vmem>>, vector<1x4xf32>
    %19 = arith.mulf %8, %17 : vector<1x4xf32>
    %20 = arith.subf %18, %19 : vector<1x4xf32>
    %21 = vector.broadcast %17 : vector<1x4xf32> to vector<512x4xf32>
    %22 = arith.mulf %1, %21 : vector<512x4xf32>
    %23 = vector.broadcast %20 : vector<1x4xf32> to vector<512x4xf32>
    %24 = arith.addf %22, %23 : vector<512x4xf32>
    %cst_11 = arith.constant 0.000000e+00 : f32
    %25 = vector.broadcast %cst_11 : f32 to vector<512x4xf32>
    %26 = arith.maximumf %24, %25 : vector<512x4xf32>
    %27 = arith.truncf %26 : vector<512x4xf32> to vector<512x4xbf16>
    %c0_12 = arith.constant 0 : index
    %c0_13 = arith.constant 0 : index
    %28 = vector.load %arg4[%c0_12, %c0_13] : memref<4x32xbf16, #tpu.memory_space<vmem>>, vector<4x32xbf16>
    %cst_14 = arith.constant dense<0.000000e+00> : vector<512x32xf32>
    %29 = tpu.matmul %27, %28, %cst_14 {dimension_numbers = #tpu.dot_dimension_numbers<[1], [0], [0], [1], [0, 0, 1, 1], [], []>} : vector<512x4xbf16>, vector<4x32xbf16>, vector<512x32xf32> -> vector<512x32xf32>
    %cst_15 = arith.constant dense<0.000000e+00> : vector<32xf32>
    %30 = vector.multi_reduction <add>, %29, %cst_15 [0] : vector<512x32xf32> to vector<32xf32>
    %31 = vector.shape_cast %30 : vector<32xf32> to vector<1x32xf32>
    %32 = arith.mulf %29, %29 : vector<512x32xf32>
    %cst_16 = arith.constant dense<0.000000e+00> : vector<32xf32>
    %33 = vector.multi_reduction <add>, %32, %cst_16 [0] : vector<512x32xf32> to vector<32xf32>
    %34 = vector.shape_cast %33 : vector<32xf32> to vector<1x32xf32>
    %cst_17 = arith.constant 0.001953125 : f32
    %35 = vector.broadcast %cst_17 : f32 to vector<1x32xf32>
    %36 = arith.mulf %31, %35 : vector<1x32xf32>
    %cst_18 = arith.constant 0.001953125 : f32
    %37 = vector.broadcast %cst_18 : f32 to vector<1x32xf32>
    %38 = arith.mulf %34, %37 : vector<1x32xf32>
    %39 = arith.mulf %36, %36 : vector<1x32xf32>
    %40 = arith.subf %38, %39 : vector<1x32xf32>
    %c0_19 = arith.constant 0 : index
    %c0_20 = arith.constant 0 : index
    %41 = vector.load %arg5[%c0_19, %c0_20] : memref<1x32xf32, #tpu.memory_space<vmem>>, vector<1x32xf32>
    %cst_21 = arith.constant 9.99999974E-6 : f32
    %42 = vector.broadcast %cst_21 : f32 to vector<1x32xf32>
    %43 = arith.addf %40, %42 : vector<1x32xf32>
    %44 = math.rsqrt %43 : vector<1x32xf32>
    %45 = arith.mulf %41, %44 : vector<1x32xf32>
    %c0_22 = arith.constant 0 : index
    %c0_23 = arith.constant 0 : index
    %46 = vector.load %arg6[%c0_22, %c0_23] : memref<1x32xf32, #tpu.memory_space<vmem>>, vector<1x32xf32>
    %47 = arith.mulf %36, %45 : vector<1x32xf32>
    %48 = arith.subf %46, %47 : vector<1x32xf32>
    %49 = vector.broadcast %45 : vector<1x32xf32> to vector<512x32xf32>
    %50 = arith.mulf %29, %49 : vector<512x32xf32>
    %51 = vector.broadcast %48 : vector<1x32xf32> to vector<512x32xf32>
    %52 = arith.addf %50, %51 : vector<512x32xf32>
    %cst_24 = arith.constant 0.000000e+00 : f32
    %53 = vector.broadcast %cst_24 : f32 to vector<512x32xf32>
    %54 = arith.maximumf %52, %53 : vector<512x32xf32>
    %cst_25 = arith.constant 0.000000e+00 : f32
    %55 = vector.broadcast %cst_25 : f32 to vector<2x1x18x32xf32>
    %cst_26 = arith.constant 0.000000e+00 : f32
    %56 = vector.broadcast %cst_26 : f32 to vector<2x18x1x32xf32>
    %c0_27 = arith.constant 0 : index
    %c0_28 = arith.constant 0 : index
    %c0_29 = arith.constant 0 : index
    %c0_30 = arith.constant 0 : index
    %57 = vector.load %arg9[%c0_27, %c0_28, %c0_29, %c0_30] : memref<2x18x18x32xf32, #tpu.memory_space<vmem>>, vector<2x1x18x32xf32>
    tpu.vector_store %arg9[%c0_27, %c0_28, %c0_29, %c0_30], %55 {strides = array<i32>} : memref<2x18x18x32xf32, #tpu.memory_space<vmem>>, vector<2x1x18x32xf32>,
    %c0_31 = arith.constant 0 : index
    %c17 = arith.constant 17 : index
    %c0_32 = arith.constant 0 : index
    %c0_33 = arith.constant 0 : index
    %58 = vector.load %arg9[%c0_31, %c17, %c0_32, %c0_33] : memref<2x18x18x32xf32, #tpu.memory_space<vmem>>, vector<2x1x18x32xf32>
    tpu.vector_store %arg9[%c0_31, %c17, %c0_32, %c0_33], %55 {strides = array<i32>} : memref<2x18x18x32xf32, #tpu.memory_space<vmem>>, vector<2x1x18x32xf32>,
    %c0_34 = arith.constant 0 : index
    %c0_35 = arith.constant 0 : index
    %c0_36 = arith.constant 0 : index
    %c0_37 = arith.constant 0 : index
    %59 = vector.load %arg9[%c0_34, %c0_35, %c0_36, %c0_37] : memref<2x18x18x32xf32, #tpu.memory_space<vmem>>, vector<2x18x1x32xf32>
    tpu.vector_store %arg9[%c0_34, %c0_35, %c0_36, %c0_37], %56 {strides = array<i32>} : memref<2x18x18x32xf32, #tpu.memory_space<vmem>>, vector<2x18x1x32xf32>,
    %c0_38 = arith.constant 0 : index
    %c0_39 = arith.constant 0 : index
    %c17_40 = arith.constant 17 : index
    %c0_41 = arith.constant 0 : index
    %60 = vector.load %arg9[%c0_38, %c0_39, %c17_40, %c0_41] : memref<2x18x18x32xf32, #tpu.memory_space<vmem>>, vector<2x18x1x32xf32>
    tpu.vector_store %arg9[%c0_38, %c0_39, %c17_40, %c0_41], %56 {strides = array<i32>} : memref<2x18x18x32xf32, #tpu.memory_space<vmem>>, vector<2x18x1x32xf32>,
    %61 = vector.shape_cast %54 : vector<512x32xf32> to vector<2x16x16x32xf32>
    %c0_42 = arith.constant 0 : index
    %c1 = arith.constant 1 : index
    %c1_43 = arith.constant 1 : index
    %c0_44 = arith.constant 0 : index
    %62 = vector.load %arg9[%c0_42, %c1, %c1_43, %c0_44] : memref<2x18x18x32xf32, #tpu.memory_space<vmem>>, vector<2x16x16x32xf32>
    tpu.vector_store %arg9[%c0_42, %c1, %c1_43, %c0_44], %61 {strides = array<i32>} : memref<2x18x18x32xf32, #tpu.memory_space<vmem>>, vector<2x16x16x32xf32>,
    %c0_45 = arith.constant 0 : index
    %c0_46 = arith.constant 0 : index
    %c0_47 = arith.constant 0 : index
    %c0_48 = arith.constant 0 : index
    %63 = vector.load %arg9[%c0_45, %c0_46, %c0_47, %c0_48] : memref<2x18x18x32xf32, #tpu.memory_space<vmem>>, vector<2x16x16x32xf32>
    %c0_49 = arith.constant 0 : index
    %c0_50 = arith.constant 0 : index
    %c1_51 = arith.constant 1 : index
    %c0_52 = arith.constant 0 : index
    %64 = vector.load %arg9[%c0_49, %c0_50, %c1_51, %c0_52] : memref<2x18x18x32xf32, #tpu.memory_space<vmem>>, vector<2x16x16x32xf32>
    %c0_53 = arith.constant 0 : index
    %c0_54 = arith.constant 0 : index
    %c2 = arith.constant 2 : index
    %c0_55 = arith.constant 0 : index
    %65 = vector.load %arg9[%c0_53, %c0_54, %c2, %c0_55] : memref<2x18x18x32xf32, #tpu.memory_space<vmem>>, vector<2x16x16x32xf32>
    %c0_56 = arith.constant 0 : index
    %c1_57 = arith.constant 1 : index
    %c0_58 = arith.constant 0 : index
    %c0_59 = arith.constant 0 : index
    %66 = vector.load %arg9[%c0_56, %c1_57, %c0_58, %c0_59] : memref<2x18x18x32xf32, #tpu.memory_space<vmem>>, vector<2x16x16x32xf32>
    %c0_60 = arith.constant 0 : index
    %c1_61 = arith.constant 1 : index
    %c1_62 = arith.constant 1 : index
    %c0_63 = arith.constant 0 : index
    %67 = vector.load %arg9[%c0_60, %c1_61, %c1_62, %c0_63] : memref<2x18x18x32xf32, #tpu.memory_space<vmem>>, vector<2x16x16x32xf32>
    %c0_64 = arith.constant 0 : index
    %c1_65 = arith.constant 1 : index
    %c2_66 = arith.constant 2 : index
    %c0_67 = arith.constant 0 : index
    %68 = vector.load %arg9[%c0_64, %c1_65, %c2_66, %c0_67] : memref<2x18x18x32xf32, #tpu.memory_space<vmem>>, vector<2x16x16x32xf32>
    %c0_68 = arith.constant 0 : index
    %c2_69 = arith.constant 2 : index
    %c0_70 = arith.constant 0 : index
    %c0_71 = arith.constant 0 : index
    %69 = vector.load %arg9[%c0_68, %c2_69, %c0_70, %c0_71] : memref<2x18x18x32xf32, #tpu.memory_space<vmem>>, vector<2x16x16x32xf32>
    %c0_72 = arith.constant 0 : index
    %c2_73 = arith.constant 2 : index
    %c1_74 = arith.constant 1 : index
    %c0_75 = arith.constant 0 : index
    %70 = vector.load %arg9[%c0_72, %c2_73, %c1_74, %c0_75] : memref<2x18x18x32xf32, #tpu.memory_space<vmem>>, vector<2x16x16x32xf32>
    %c0_76 = arith.constant 0 : index
    %c2_77 = arith.constant 2 : index
    %c2_78 = arith.constant 2 : index
    %c0_79 = arith.constant 0 : index
    %71 = vector.load %arg9[%c0_76, %c2_77, %c2_78, %c0_79] : memref<2x18x18x32xf32, #tpu.memory_space<vmem>>, vector<2x16x16x32xf32>
    %72 = tpu.concatenate %63, %64, %65, %66, %67, %68, %69, %70, %71 in 3 : vector<2x16x16x32xf32>, vector<2x16x16x32xf32>, vector<2x16x16x32xf32>, vector<2x16x16x32xf32>, vector<2x16x16x32xf32>, vector<2x16x16x32xf32>, vector<2x16x16x32xf32>, vector<2x16x16x32xf32>, vector<2x16x16x32xf32> -> vector<2x16x16x288xf32>
    %73 = vector.shape_cast %72 : vector<2x16x16x288xf32> to vector<512x288xf32>
    %74 = arith.truncf %73 : vector<512x288xf32> to vector<512x288xbf16>
    %c0_80 = arith.constant 0 : index
    %c0_81 = arith.constant 0 : index
    %75 = vector.load %arg7[%c0_80, %c0_81] : memref<288x8xbf16, #tpu.memory_space<vmem>>, vector<288x8xbf16>
    %cst_82 = arith.constant dense<0.000000e+00> : vector<512x8xf32>
    %76 = tpu.matmul %74, %75, %cst_82 {dimension_numbers = #tpu.dot_dimension_numbers<[1], [0], [0], [1], [0, 0, 1, 1], [], []>} : vector<512x288xbf16>, vector<288x8xbf16>, vector<512x8xf32> -> vector<512x8xf32>
    %77 = vector.shape_cast %76 : vector<512x8xf32> to vector<2x16x16x8xf32>
    %c0_83 = arith.constant 0 : index
    %c0_84 = arith.constant 0 : index
    %c0_85 = arith.constant 0 : index
    %c0_86 = arith.constant 0 : index
    %78 = vector.load %arg8[%c0_83, %c0_84, %c0_85, %c0_86] : memref<2x16x16x8xf32, #tpu.memory_space<vmem>>, vector<2x16x16x8xf32>
    tpu.vector_store %arg8[%c0_83, %c0_84, %c0_85, %c0_86], %77 {strides = array<i32>} : memref<2x16x16x8xf32, #tpu.memory_space<vmem>>, vector<2x16x16x8xf32>,
    return
  }
  func.func @transform_0(%arg0: i32) -> (i32, i32, i32, i32) {
    %c0_i32 = arith.constant 0 : i32
    %c0_i32_0 = arith.constant 0 : i32
    %c0_i32_1 = arith.constant 0 : i32
    %c0_i32_2 = arith.constant 0 : i32
    %c0_i32_3 = arith.constant 0 : i32
    return %c0_i32, %c0_i32_0, %c0_i32_1, %c0_i32_2 : i32, i32, i32, i32
  }
  func.func @transform_1(%arg0: i32) -> (i32, i32) {
    %c0_i32 = arith.constant 0 : i32
    %c0_i32_0 = arith.constant 0 : i32
    %c0_i32_1 = arith.constant 0 : i32
    return %c0_i32, %c0_i32_0 : i32, i32
  }
  func.func @transform_2(%arg0: i32) -> (i32, i32) {
    %c0_i32 = arith.constant 0 : i32
    %c0_i32_0 = arith.constant 0 : i32
    %c0_i32_1 = arith.constant 0 : i32
    return %c0_i32, %c0_i32_0 : i32, i32
  }
  func.func @transform_3(%arg0: i32) -> (i32, i32) {
    %c0_i32 = arith.constant 0 : i32
    %c0_i32_0 = arith.constant 0 : i32
    %c0_i32_1 = arith.constant 0 : i32
    return %c0_i32, %c0_i32_0 : i32, i32
  }
  func.func @transform_4(%arg0: i32) -> (i32, i32) {
    %c0_i32 = arith.constant 0 : i32
    %c0_i32_0 = arith.constant 0 : i32
    %c0_i32_1 = arith.constant 0 : i32
    return %c0_i32, %c0_i32_0 : i32, i32
  }
  func.func @transform_5(%arg0: i32) -> (i32, i32) {
    %c0_i32 = arith.constant 0 : i32
    %c0_i32_0 = arith.constant 0 : i32
    %c0_i32_1 = arith.constant 0 : i32
    return %c0_i32, %c0_i32_0 : i32, i32
  }
  func.func @transform_6(%arg0: i32) -> (i32, i32) {
    %c0_i32 = arith.constant 0 : i32
    %c0_i32_0 = arith.constant 0 : i32
    %c0_i32_1 = arith.constant 0 : i32
    return %c0_i32, %c0_i32_0 : i32, i32
  }
  func.func @transform_7(%arg0: i32) -> (i32, i32, i32, i32) {
    %c0_i32 = arith.constant 0 : i32
    %c0_i32_0 = arith.constant 0 : i32
    %c0_i32_1 = arith.constant 0 : i32
    %c0_i32_2 = arith.constant 0 : i32
    %c0_i32_3 = arith.constant 0 : i32
    return %c0_i32, %c0_i32_0, %c0_i32_1, %c0_i32_2 : i32, i32, i32, i32
  }
}

</mosaic_0001>

<bundles_post_ra>
// kernel: tpu_custom_call.1
= control target key start
LH: loop header
LB: loop body
LE: loop exit
PB: predicated region body
PF: predicated region fallthrough
CT: control target
= control target key end

     0   :  { %vm766_vm0 = vcmask 1041408   ;;  %vm91_vm1 = vcmask 31744   ;;  %vm1059_vm2 = vcmask 261120   ;;  %vm1607_vm3 = vcmask 254976   ;;  %s10873_s3 = inlined_call_operand.vmem [shape: bf16[4,32], index: 3, kind: input, shape index: {}]   ;;  %s10874_s0 = inlined_call_operand.vmem [shape: f32[2,16,16,4], index: 0, kind: input, shape index: {}]   ;;  %s10875_s1 = inlined_call_operand.vmem [shape: f32[1,4], index: 1, kind: input, shape index: {}]   ;;  %s10876_s2 = inlined_call_operand.vmem [shape: f32[1,4], index: 2, kind: input, shape index: {}]   ;;  %s10877_s4 = inlined_call_operand.vmem [shape: f32[1,32], index: 4, kind: input, shape index: {}]   ;;  %s10878_s5 = inlined_call_operand.vmem [shape: f32[1,32], index: 5, kind: input, shape index: {}]   ;;  %s10879_s6 = inlined_call_operand.vmem [shape: bf16[288,8], index: 6, kind: input, shape index: {}]   ;;  %s10880_s7 = inlined_call_operand.vmem [shape: f32[2,16,16,8], index: 7, kind: output, shape index: {}]  }
   0x1   :  { %v669_v0 = vld [vmem:[%s10873_s3] sm:$0x3]  ;;  %v6620_v2 = vld [vmem:[%s10874_s0 + $0x8] sm:$0xff]  ;;  %v6625_v4 = vld [vmem:[%s10874_s0 + $0x10] sm:$0xff]  ;;  %vm1619_vm4 = vcmask 253952   ;;  %s6568_s3 = smov 96  }
   0x2   :  { %v6615_v1 = vld [vmem:[%s10874_s0] sm:$0xff]  ;;  %5554 = vmatprep.subr.msk.bf16.mxu0 %vm766_vm0, %v669_v0  ;;  %v768_v3 = vsel %vm766_vm0, %v669_v0, 0  ;;  %v6630_v5 = vld [vmem:[%s10874_s0 + $0x18] sm:$0xff]  ;;  %v93_v7 = vsel %vm91_vm1, %v6620_v2, 0.0  ;;  %v95_v10 = vsel %vm91_vm1, %v6625_v4, 0.0  ;;  %v6648_v12 = vld [vmem:[%s10874_s0 + $0x28] sm:$0xff]  ;;  %v226_v60 = vmul.f32 %v6620_v2, %v6620_v2 }
   0x3   :  { %v92_v6 = vsel %vm91_vm1, %v6615_v1, 0.0  ;;  %5389 = vmatpush3.bf16.msra.mxu0 %v768_v3  ;;  %v6639_v8 = vld [vmem:[%s10874_s0 + $0x20] sm:$0xff]  ;;  %v97_v11 = vsel %vm91_vm1, %v6630_v5, 0.0  ;;  %v6655_v15 = vld [vmem:[%s10874_s0 + $0x30] sm:$0xff]  ;;  %v101_v17 = vsel %vm91_vm1, %v6648_v12, 0.0  ;;  %v6662_v18 = vld [vmem:[%s10874_s0 + $0x38] sm:$0xff]  ;;  %v225_v57 = vmul.f32 %v6615_v1, %v6615_v1 }
   0x4   :  { %v94_v9 = vadd.f32 %v93_v7, %v92_v6  ;;  %v99_v14 = vsel %vm91_vm1, %v6639_v8, 0.0  ;;  %v103_v20 = vsel %vm91_vm1, %v6655_v15, 0.0  ;;  %v6669_v21 = vld [vmem:[%s10874_s0 + $0x40] sm:$0xff]  ;;  %v105_v23 = vsel %vm91_vm1, %v6662_v18, 0.0  ;;  %v6676_v24 = vld [vmem:[%s10874_s0 + $0x48] sm:$0xff]  ;;  %v6683_v27 = vld [vmem:[%s10874_s0 + $0x50] sm:$0xff] }
   0x5   :  { %v107_v26 = vsel %vm91_vm1, %v6669_v21, 0.0  ;;  %v109_v29 = vsel %vm91_vm1, %v6676_v24, 0.0  ;;  %v6690_v30 = vld [vmem:[%s10874_s0 + $0x58] sm:$0xff]  ;;  %v111_v32 = vsel %vm91_vm1, %v6683_v27, 0.0  ;;  %v6697_v33 = vld [vmem:[%s10874_s0 + $0x60] sm:$0xff]  ;;  %v6704_v36 = vld [vmem:[%s10874_s0 + $0x68] sm:$0xff]  ;;  %v227_v61 = vmul.f32 %v6625_v4, %v6625_v4 }
   0x6   :  { %v96_v13 = vadd.f32 %v95_v10, %v94_v9  ;;  %v113_v35 = vsel %vm91_vm1, %v6690_v30, 0.0  ;;  %v115_v38 = vsel %vm91_vm1, %v6697_v33, 0.0  ;;  %v6711_v39 = vld [vmem:[%s10874_s0 + $0x70] sm:$0xff]  ;;  %v117_v41 = vsel %vm91_vm1, %v6704_v36, 0.0  ;;  %v6718_v42 = vld [vmem:[%s10874_s0 + $0x78] sm:$0xff]  ;;  %v6725_v45 = vld [vmem:[%s10874_s0 + $0x80] sm:$0xff] }
   0x7   :  { %v119_v44 = vsel %vm91_vm1, %v6711_v39, 0.0  ;;  %v121_v47 = vsel %vm91_vm1, %v6718_v42, 0.0  ;;  %v6732_v48 = vld [vmem:[%s10874_s0 + $0x88] sm:$0xff]  ;;  %v123_v50 = vsel %vm91_vm1, %v6725_v45, 0.0  ;;  %v6739_v51 = vld [vmem:[%s10874_s0 + $0x90] sm:$0xff]  ;;  %v6746_v54 = vld [vmem:[%s10874_s0 + $0x98] sm:$0xff]  ;;  %v228_v3 = vmul.f32 %v6630_v5, %v6630_v5 }
   0x8   :  { %v98_v16 = vadd.f32 %v97_v11, %v96_v13  ;;  %v125_v53 = vsel %vm91_vm1, %v6732_v48, 0.0  ;;  %v127_v56 = vsel %vm91_vm1, %v6739_v51, 0.0  ;;  %v6755_v58 = vld [vmem:[%s10874_s0 + $0xa0] sm:$0xff]  ;;  %v129_v62 = vsel %vm91_vm1, %v6746_v54, 0.0  ;;  %v6766_v63 = vld [vmem:[%s10874_s0 + $0xa8] sm:$0xff]  ;;  %v6776_v9 = vld [vmem:[%s10874_s0 + $0xb0] sm:$0xff] }
   0x9   :  { %v131_v6 = vsel %vm91_vm1, %v6755_v58, 0.0  ;;  %v289_v7 = vsel %vm91_vm1, %v225_v57, 0.0  ;;  %v229_v11 = vmul.f32 %v6639_v8, %v6639_v8  ;;  %v290_v13 = vsel %vm91_vm1, %v226_v60, 0.0 }
   0xa   :  { %v100_v19 = vadd.f32 %v99_v14, %v98_v16  ;;  %v292_v14 = vsel %vm91_vm1, %v227_v61, 0.0  ;;  %v133_v16 = vsel %vm91_vm1, %v6766_v63, 0.0  ;;  %v234_v57 = vmul.f32 %v6676_v24, %v6676_v24 }
   0xb   :  { %vm3934_vm5 = vcmask 523264   ;;  %vm3999_vm6 = vcmask 785408   ;;  %vm5170_vm7 = vcmask 64512  }
   0xc   :  { %v102_v22 = vadd.f32 %v101_v17, %v100_v19  ;;  %v291_v17 = vadd.f32 %v290_v13, %v289_v7  ;;  %v6787_v19 = vld [vmem:[%s10874_s0 + $0xb8] sm:$0xff] }
   0xe   :  { %v104_v25 = vadd.f32 %v103_v20, %v102_v22  ;;  %v230_v22 = vmul.f32 %v6648_v12, %v6648_v12 }
  0x10   :  { %v106_v28 = vadd.f32 %v105_v23, %v104_v25  ;;  %v294_v23 = vsel %vm91_vm1, %v228_v3, 0.0  ;;  %v135_v25 = vsel %vm91_vm1, %v6776_v9, 0.0  ;;  %v235_v3 = vmul.f32 %v6683_v27, %v6683_v27 }
  0x12   :  { %v108_v31 = vadd.f32 %v107_v26, %v106_v28  ;;  %v293_v26 = vadd.f32 %v292_v14, %v291_v17  ;;  %v6797_v28 = vld [vmem:[%s10874_s0 + $0xc0] sm:$0xff]  ;;  %v236_v14 = vmul.f32 %v6690_v30, %v6690_v30 }
  0x14   :  { %v110_v34 = vadd.f32 %v109_v29, %v108_v31  ;;  %v231_v31 = vmul.f32 %v6655_v15, %v6655_v15 }
  0x16   :  { %v112_v37 = vadd.f32 %v111_v32, %v110_v34  ;;  %v296_v32 = vsel %vm91_vm1, %v229_v11, 0.0  ;;  %v137_v34 = vsel %vm91_vm1, %v6787_v19, 0.0  ;;  %v6847_v11 = vld [vmem:[%s10874_s0 + $0xe8] sm:$0xff] }
  0x17   :  { %10984 = vst [vmem:[#allocation3_spill] sm:$0xff] %v6847_v11 }
  0x18   :  { %v114_v40 = vadd.f32 %v113_v35, %v112_v37  ;;  %v295_v35 = vadd.f32 %v294_v23, %v293_v26  ;;  %v6807_v37 = vld [vmem:[%s10874_s0 + $0xc8] sm:$0xff]  ;;  %v308_v26 = vsel %vm91_vm1, %v235_v3, 0.0 }
  0x1a   :  { %v116_v43 = vadd.f32 %v115_v38, %v114_v40  ;;  %v232_v40 = vmul.f32 %v6662_v18, %v6662_v18 }
  0x1c   :  { %v118_v46 = vadd.f32 %v117_v41, %v116_v43  ;;  %v298_v41 = vsel %vm91_vm1, %v230_v22, 0.0  ;;  %v139_v43 = vsel %vm91_vm1, %v6797_v28, 0.0  ;;  %v6857_v22 = vld [vmem:[%s10874_s0 + $0xf0] sm:$0xff] }
  0x1d   :  { %10985 = vst [vmem:[#allocation4_spill] sm:$0xff] %v6857_v22 }
  0x1e   :  { %v120_v49 = vadd.f32 %v119_v44, %v118_v46  ;;  %v297_v44 = vadd.f32 %v296_v32, %v295_v35  ;;  %v6817_v46 = vld [vmem:[%s10874_s0 + $0xd0] sm:$0xff]  ;;  %v6867_v32 = vld [vmem:[%s10874_s0 + $0xf8] sm:$0xff]  ;;  %v238_v35 = vmul.f32 %v6704_v36, %v6704_v36 }
  0x1f   :  { %v143_v60 = vsel %vm91_vm1, %v6817_v46, 0.0  ;;  %10986 = vst [vmem:[#allocation5_spill] sm:$0xff] %v6867_v32 }
  0x20   :  { %v122_v52 = vadd.f32 %v121_v47, %v120_v49  ;;  %v233_v49 = vmul.f32 %v6669_v21, %v6669_v21 }
  0x22   :  { %v124_v55 = vadd.f32 %v123_v50, %v122_v52  ;;  %v300_v50 = vsel %vm91_vm1, %v231_v31, 0.0  ;;  %v141_v52 = vsel %vm91_vm1, %v6807_v37, 0.0 }
  0x24   :  { %v126_v59 = vadd.f32 %v125_v53, %v124_v55  ;;  %v299_v53 = vadd.f32 %v298_v41, %v297_v44  ;;  %v6827_v55 = vld [vmem:[%s10874_s0 + $0xd8] sm:$0xff] }
  0x25   :  { %v145_v7 = vsel %vm91_vm1, %v6827_v55, 0.0 }
  0x26   :  { %v128_v0 = vadd.f32 %v127_v56, %v126_v59  ;;  %v302_v59 = vsel %vm91_vm1, %v232_v40, 0.0  ;;  %v301_v61 = vadd.f32 %v300_v50, %v299_v53  ;;  %v151_v40 = vsel %vm91_vm1, %v6857_v22, 0.0  ;;  %v6887_v53 = vld [vmem:[%s10874_s0 + $0x108] sm:$0xff] }
  0x27   :  { %v153_v50 = vsel %vm91_vm1, %v6867_v32, 0.0  ;;  %10988 = vst [vmem:[#allocation7_spill] sm:$0xff] %v6887_v53 }
  0x28   :  { %v130_v10 = vadd.f32 %v129_v62, %v128_v0  ;;  %v6837_v62 = vld [vmem:[%s10874_s0 + $0xe0] sm:$0xff] }
  0x29   :  { %v147_v17 = vsel %vm91_vm1, %v6837_v62, 0.0 }
  0x2a   :  { %v132_v20 = vadd.f32 %v131_v6, %v130_v10  ;;  %v304_v6 = vsel %vm91_vm1, %v233_v49, 0.0  ;;  %v303_v10 = vadd.f32 %v302_v59, %v301_v61  ;;  %v314_v59 = vsel %vm91_vm1, %v238_v35, 0.0 }
  0x2c   :  { %v134_v29 = vadd.f32 %v133_v16, %v132_v20  ;;  %v306_v16 = vsel %vm91_vm1, %v234_v57, 0.0  ;;  %v305_v20 = vadd.f32 %v304_v6, %v303_v10  ;;  %v240_v57 = vmul.f32 %v6718_v42, %v6718_v42 }
  0x2d   :  { %v241_v6 = vmul.f32 %v6725_v45, %v6725_v45  ;;  %v157_v10 = vsel %vm91_vm1, %v6887_v53, 0.0 }
  0x2e   :  { %v136_v38 = vadd.f32 %v135_v25, %v134_v29  ;;  %v237_v25 = vmul.f32 %v6697_v33, %v6697_v33  ;;  %v149_v29 = vsel %vm91_vm1, %v6847_v11, 0.0  ;;  %v307_v31 = vadd.f32 %v306_v16, %v305_v20 }
  0x2f   :  { %v318_v20 = vsel %vm91_vm1, %v240_v57, 0.0  ;;  %v245_v57 = vmul.f32 %v6755_v58, %v6755_v58 }
  0x30   :  { %v138_v47 = vadd.f32 %v137_v34, %v136_v38  ;;  %v310_v38 = vsel %vm91_vm1, %v236_v14, 0.0  ;;  %v309_v41 = vadd.f32 %v308_v26, %v307_v31  ;;  %v312_v49 = vsel %vm91_vm1, %v237_v25, 0.0  ;;  %v6907_v14 = vld [vmem:[%s10874_s0 + $0x118] sm:$0xff]  ;;  %v6917_v26 = vld [vmem:[%s10874_s0 + $0x120] sm:$0xff] }
  0x31   :  { %10990 = vst [vmem:[#allocation9_spill] sm:$0xff] %v6907_v14  ;;  %10991 = vst [vmem:[#allocation10_spill] sm:$0xff] %v6917_v26  ;;  %v243_v31 = vmul.f32 %v6739_v51, %v6739_v51  ;;  %v161_v35 = vsel %vm91_vm1, %v6907_v14, 0.0 }
  0x32   :  { %v140_v56 = vadd.f32 %v139_v43, %v138_v47  ;;  %v6877_v43 = vld [vmem:[%s10874_s0 + $0x100] sm:$0xff]  ;;  %v239_v47 = vmul.f32 %v6711_v39, %v6711_v39 }
  0x33   :  { %10987 = vst [vmem:[#allocation6_spill] sm:$0xff] %v6877_v43 }
  0x34   :  { %v142_v0 = vadd.f32 %v141_v52, %v140_v56  ;;  %v311_v52 = vadd.f32 %v310_v38, %v309_v41 }
  0x36   :  { %v144_v13 = vadd.f32 %v143_v60, %v142_v0  ;;  %v155_v60 = vsel %vm91_vm1, %v6877_v43, 0.0  ;;  %v313_v61 = vadd.f32 %v312_v49, %v311_v52  ;;  %v6897_v0 = vld [vmem:[%s10874_s0 + $0x110] sm:$0xff]  ;;  %v163_v49 = vsel %vm91_vm1, %v6917_v26, 0.0 }
  0x37   :  { %10989 = vst [vmem:[#allocation8_spill] sm:$0xff] %v6897_v0  ;;  %v6937_v52 = vld [vmem:[%s10874_s0 + $0x130] sm:$0xff] }
  0x38   :  { %v146_v23 = vadd.f32 %v145_v7, %v144_v13  ;;  %v316_v7 = vsel %vm91_vm1, %v239_v47, 0.0  ;;  %v315_v13 = vadd.f32 %v314_v59, %v313_v61  ;;  %v324_v59 = vsel %vm91_vm1, %v243_v31, 0.0 }
  0x3a   :  { %v148_v34 = vadd.f32 %v147_v17, %v146_v23  ;;  %v242_v17 = vmul.f32 %v6732_v48, %v6732_v48  ;;  %v159_v23 = vsel %vm91_vm1, %v6897_v0, 0.0  ;;  %v317_v25 = vadd.f32 %v316_v7, %v315_v13 }
  0x3b   :  { %v246_v7 = vmul.f32 %v6766_v63, %v6766_v63  ;;  %v167_v13 = vsel %vm91_vm1, %v6937_v52, 0.0 }
  0x3c   :  { %v150_v44 = vadd.f32 %v149_v29, %v148_v34  ;;  %v320_v34 = vsel %vm91_vm1, %v241_v6, 0.0  ;;  %v319_v38 = vadd.f32 %v318_v20, %v317_v25  ;;  %v322_v47 = vsel %vm91_vm1, %v242_v17, 0.0  ;;  %v6957_v17 = vld [vmem:[%s10874_s0 + $0x140] sm:$0xff] }
  0x3d   :  { %v328_v25 = vsel %vm91_vm1, %v245_v57, 0.0 }
  0x3e   :  { %v152_v56 = vadd.f32 %v151_v40, %v150_v44  ;;  %v6927_v40 = vld [vmem:[%s10874_s0 + $0x128] sm:$0xff]  ;;  %v244_v44 = vmul.f32 %v6746_v54, %v6746_v54 }
  0x3f   :  { %10992 = vst [vmem:[#allocation11_spill] sm:$0xff] %v6927_v40 }
  0x40   :  { %v154_v3 = vadd.f32 %v153_v50, %v152_v56  ;;  %v321_v50 = vadd.f32 %v320_v34, %v319_v38  ;;  %v6967_v34 = vld [vmem:[%s10874_s0 + $0x148] sm:$0xff]  ;;  %v248_v38 = vmul.f32 %v6787_v19, %v6787_v19 }
  0x41   :  { %10993 = vst [vmem:[#allocation12_spill] sm:$0xff] %v6967_v34 }
  0x42   :  { %v156_v16 = vadd.f32 %v155_v60, %v154_v3  ;;  %v165_v60 = vsel %vm91_vm1, %v6927_v40, 0.0  ;;  %v323_v61 = vadd.f32 %v322_v47, %v321_v50  ;;  %v6947_v3 = vld [vmem:[%s10874_s0 + $0x138] sm:$0xff] }
  0x44   :  { %v158_v29 = vadd.f32 %v157_v10, %v156_v16  ;;  %v326_v10 = vsel %vm91_vm1, %v244_v44, 0.0  ;;  %v325_v16 = vadd.f32 %v324_v59, %v323_v61  ;;  %v171_v44 = vsel %vm91_vm1, %v6957_v17, 0.0  ;;  %v6987_v61 = vld [vmem:[%s10874_s0 + $0x158] sm:$0xff] }
  0x45   :  { %v173_v59 = vsel %vm91_vm1, %v6967_v34, 0.0  ;;  %10994 = vst [vmem:[#allocation13_spill] sm:$0xff] %v6987_v61 }
  0x46   :  { %v160_v41 = vadd.f32 %v159_v23, %v158_v29  ;;  %v247_v23 = vmul.f32 %v6776_v9, %v6776_v9  ;;  %v169_v29 = vsel %vm91_vm1, %v6947_v3, 0.0  ;;  %v327_v31 = vadd.f32 %v326_v10, %v325_v16 }
  0x47   :  { %v334_v10 = vsel %vm91_vm1, %v248_v38, 0.0  ;;  %v7007_v38 = vld [vmem:[%s10874_s0 + $0x168] sm:$0xff] }
  0x48   :  { %v162_v56 = vadd.f32 %v161_v35, %v160_v41  ;;  %v330_v41 = vsel %vm91_vm1, %v246_v7, 0.0  ;;  %v329_v47 = vadd.f32 %v328_v25, %v327_v31  ;;  %v332_v57 = vsel %vm91_vm1, %v247_v23, 0.0  ;;  %10995 = vst [vmem:[#allocation14_spill] sm:$0xff] %v7007_v38 }
  0x49   :  { %v250_v7 = vmul.f32 %v6807_v37, %v6807_v37  ;;  %v251_v25 = vmul.f32 %v6817_v46, %v6817_v46  ;;  %v177_v31 = vsel %vm91_vm1, %v6987_v61, 0.0 }
  0x4a   :  { %v164_v6 = vadd.f32 %v163_v49, %v162_v56  ;;  %v6977_v49 = vld [vmem:[%s10874_s0 + $0x150] sm:$0xff]  ;;  %v249_v56 = vmul.f32 %v6797_v28, %v6797_v28 }
  0x4c   :  { %v166_v20 = vadd.f32 %v165_v60, %v164_v6  ;;  %v331_v60 = vadd.f32 %v330_v41, %v329_v47  ;;  %v338_v47 = vsel %vm91_vm1, %v250_v7, 0.0  ;;  %v7027_v7 = vld [vmem:[%s10874_s0 + $0x178] sm:$0xff] }
  0x4d   :  { %10996 = vst [vmem:[#allocation15_spill] sm:$0xff] %v7027_v7 }
  0x4e   :  { %v168_v35 = vadd.f32 %v167_v13, %v166_v20  ;;  %v175_v13 = vsel %vm91_vm1, %v6977_v49, 0.0  ;;  %v333_v16 = vadd.f32 %v332_v57, %v331_v60  ;;  %v6997_v20 = vld [vmem:[%s10874_s0 + $0x160] sm:$0xff]  ;;  %v253_v60 = vmul.f32 %v6837_v62, %v6837_v62 }
  0x50   :  { %v170_v50 = vadd.f32 %v169_v29, %v168_v35  ;;  %v336_v29 = vsel %vm91_vm1, %v249_v56, 0.0  ;;  %v335_v35 = vadd.f32 %v334_v10, %v333_v16  ;;  %v7017_v56 = vld [vmem:[%s10874_s0 + $0x170] sm:$0xff]  ;;  %v181_v10 = vsel %vm91_vm1, %v7007_v38, 0.0 }
  0x52   :  { %v172_v6 = vadd.f32 %v171_v44, %v170_v50  ;;  %v252_v44 = vmul.f32 %v6827_v55, %v6827_v55  ;;  %v179_v50 = vsel %vm91_vm1, %v6997_v20, 0.0  ;;  %v337_v57 = vadd.f32 %v336_v29, %v335_v35 }
  0x54   :  { %v174_v23 = vadd.f32 %v173_v59, %v172_v6  ;;  %v340_v6 = vsel %vm91_vm1, %v251_v25, 0.0  ;;  %v342_v29 = vsel %vm91_vm1, %v252_v44, 0.0  ;;  %v7037_v25 = vld [vmem:[%s10874_s0 + $0x180] sm:$0xff]  ;;  %v7047_v44 = vld [vmem:[%s10874_s0 + $0x188] sm:$0xff] }
  0x55   :  { %10997 = vst [vmem:[#allocation16_spill] sm:$0xff] %v7047_v44 }
  0x56   :  { %v176_v41 = vadd.f32 %v175_v13, %v174_v23  ;;  %v339_v13 = vadd.f32 %v338_v47, %v337_v57  ;;  %v254_v23 = vmul.f32 %v6847_v11, %v6847_v11  ;;  %v255_v47 = vmul.f32 %v6857_v22, %v6857_v22 }
  0x57   :  { %v185_v57 = vsel %vm91_vm1, %v7027_v7, 0.0  ;;  %v262_v11 = vmul.f32 %v6927_v40, %v6927_v40 }
  0x58   :  { %v178_v59 = vadd.f32 %v177_v31, %v176_v41  ;;  %v183_v31 = vsel %vm91_vm1, %v7017_v56, 0.0  ;;  %v341_v35 = vadd.f32 %v340_v6, %v339_v13  ;;  %v256_v13 = vmul.f32 %v6867_v32, %v6867_v32 }
  0x59   :  { %v362_v40 = vsel %vm91_vm1, %v262_v11, 0.0 }
  0x5a   :  { %v180_v16 = vadd.f32 %v179_v50, %v178_v59  ;;  %v344_v50 = vsel %vm91_vm1, %v253_v60, 0.0  ;;  %v343_v59 = vadd.f32 %v342_v29, %v341_v35  ;;  %v7057_v60 = vld [vmem:[%s10874_s0 + $0x190] sm:$0xff]  ;;  %v257_v35 = vmul.f32 %v6877_v43, %v6877_v43 }
  0x5c   :  { %v182_v41 = vadd.f32 %v181_v10, %v180_v16  ;;  %v346_v10 = vsel %vm91_vm1, %v254_v23, 0.0  ;;  %v187_v16 = vsel %vm91_vm1, %v7037_v25, 0.0  ;;  %v345_v22 = vadd.f32 %v344_v50, %v343_v59  ;;  %v7067_v23 = vld [vmem:[%s10874_s0 + $0x198] sm:$0xff] }
  0x5d   :  { %10998 = vst [vmem:[#allocation17_spill] sm:$0xff] %v7067_v23  ;;  %v258_v59 = vmul.f32 %v6887_v53, %v6887_v53 }
  0x5e   :  { %v184_v6 = vadd.f32 %v183_v31, %v182_v41  ;;  %v348_v31 = vsel %vm91_vm1, %v255_v47, 0.0  ;;  %v189_v41 = vsel %vm91_vm1, %v7047_v44, 0.0  ;;  %v347_v32 = vadd.f32 %v346_v10, %v345_v22  ;;  %v7077_v47 = vld [vmem:[%s10874_s0 + $0x1a0] sm:$0xff] }
  0x5f   :  { %10999 = vst [vmem:[#allocation18_spill] sm:$0xff] %v7077_v47  ;;  %v259_v10 = vmul.f32 %v6897_v0, %v6897_v0 }
  0x60   :  { %v186_v29 = vadd.f32 %v185_v57, %v184_v6  ;;  %v350_v57 = vsel %vm91_vm1, %v256_v13, 0.0  ;;  %v191_v6 = vsel %vm91_vm1, %v7057_v60, 0.0  ;;  %v349_v43 = vadd.f32 %v348_v31, %v347_v32  ;;  %v7087_v13 = vld [vmem:[%s10874_s0 + $0x1a8] sm:$0xff] }
  0x61   :  { %11000 = vst [vmem:[#allocation19_spill] sm:$0xff] %v7087_v13  ;;  %v260_v31 = vmul.f32 %v6907_v14, %v6907_v14 }
  0x62   :  { %v188_v50 = vadd.f32 %v187_v16, %v186_v29  ;;  %v352_v16 = vsel %vm91_vm1, %v257_v35, 0.0  ;;  %v193_v29 = vsel %vm91_vm1, %v7067_v23, 0.0  ;;  %v351_v53 = vadd.f32 %v350_v57, %v349_v43  ;;  %v7097_v35 = vld [vmem:[%s10874_s0 + $0x1b0] sm:$0xff] }
  0x63   :  { %11001 = vst [vmem:[#allocation20_spill] sm:$0xff] %v7097_v35  ;;  %v261_v57 = vmul.f32 %v6917_v26, %v6917_v26  ;;  %v263_v26 = vmul.f32 %v6937_v52, %v6937_v52 }
  0x64   :  { %v190_v22 = vadd.f32 %v189_v41, %v188_v50  ;;  %v354_v41 = vsel %vm91_vm1, %v258_v59, 0.0  ;;  %v195_v50 = vsel %vm91_vm1, %v7077_v47, 0.0  ;;  %v353_v0 = vadd.f32 %v352_v16, %v351_v53  ;;  %v7110_v16 = vld [vmem:[%s10874_s0 + $0x1b8] sm:$0xff] }
  0x65   :  { %v358_v53 = vsel %vm91_vm1, %v260_v31, 0.0  ;;  %v201_v31 = vsel %vm91_vm1, %v7110_v16, 0.0 }
  0x66   :  { %v192_v32 = vadd.f32 %v191_v6, %v190_v22  ;;  %v356_v6 = vsel %vm91_vm1, %v259_v10, 0.0  ;;  %v197_v22 = vsel %vm91_vm1, %v7087_v13, 0.0  ;;  %v355_v14 = vadd.f32 %v354_v41, %v353_v0 }
  0x67   :  { %v360_v0 = vsel %vm91_vm1, %v261_v57, 0.0  ;;  %v364_v57 = vsel %vm91_vm1, %v263_v26, 0.0 }
  0x68   :  { %v194_v43 = vadd.f32 %v193_v29, %v192_v32  ;;  %v199_v29 = vsel %vm91_vm1, %v7097_v35, 0.0  ;;  %v357_v32 = vadd.f32 %v356_v6, %v355_v14  ;;  %v7125_v14 = vld [vmem:[%s10874_s0 + $0x1c0] sm:$0xff] }
  0x6a   :  { %v196_v59 = vadd.f32 %v195_v50, %v194_v43  ;;  %v359_v41 = vadd.f32 %v358_v53, %v357_v32  ;;  %v264_v43 = vmul.f32 %v6947_v3, %v6947_v3  ;;  %v266_v32 = vmul.f32 %v6967_v34, %v6967_v34  ;;  %v7151_v34 = vld [vmem:[%s10874_s0 + $0x1d0] sm:$0xff] }
  0x6b   :  { %11003 = vst [vmem:[#allocation22_spill] sm:$0xff] %v7151_v34 }
  0x6c   :  { %v198_v10 = vadd.f32 %v197_v22, %v196_v59  ;;  %v361_v6 = vadd.f32 %v360_v0, %v359_v41  ;;  %v265_v22 = vmul.f32 %v6957_v17, %v6957_v17  ;;  %v366_v11 = vsel %vm91_vm1, %v264_v43, 0.0 }
  0x6d   :  { %v267_v41 = vmul.f32 %v6977_v49, %v6977_v49  ;;  %v370_v43 = vsel %vm91_vm1, %v266_v32, 0.0 }
  0x6e   :  { %v200_v50 = vadd.f32 %v199_v29, %v198_v10  ;;  %v363_v53 = vadd.f32 %v362_v40, %v361_v6  ;;  %v203_v29 = vsel %vm91_vm1, %v7125_v14, 0.0  ;;  %v7138_v10 = vld [vmem:[%s10874_s0 + $0x1c8] sm:$0xff]  ;;  %v368_v26 = vsel %vm91_vm1, %v265_v22, 0.0 }
  0x6f   :  { %11002 = vst [vmem:[#allocation21_spill] sm:$0xff] %v7138_v10  ;;  %v268_v6 = vmul.f32 %v6987_v61, %v6987_v61  ;;  %v372_v22 = vsel %vm91_vm1, %v267_v41, 0.0  ;;  %v7164_v61 = vld [vmem:[%s10874_s0 + $0x1d8] sm:$0xff] }
  0x70   :  { %v202_v59 = vadd.f32 %v201_v31, %v200_v50  ;;  %v365_v0 = vadd.f32 %v364_v57, %v363_v53  ;;  %v205_v31 = vsel %vm91_vm1, %v7138_v10, 0.0  ;;  %v269_v53 = vmul.f32 %v6997_v20, %v6997_v20  ;;  %11004 = vst [vmem:[#allocation23_spill] sm:$0xff] %v7164_v61 }
  0x71   :  { %v374_v32 = vsel %vm91_vm1, %v268_v6, 0.0 }
  0x72   :  { %v204_v40 = vadd.f32 %v203_v29, %v202_v59  ;;  %v367_v50 = vadd.f32 %v366_v11, %v365_v0  ;;  %v207_v11 = vsel %vm91_vm1, %v7151_v34, 0.0  ;;  %v270_v0 = vmul.f32 %v7007_v38, %v7007_v38  ;;  %v7177_v38 = vld [vmem:[%s10874_s0 + $0x1e0] sm:$0xff] }
  0x73   :  { %v376_v41 = vsel %vm91_vm1, %v269_v53, 0.0  ;;  %11005 = vst [vmem:[#allocation24_spill] sm:$0xff] %v7177_v38 }
  0x74   :  { %v369_v57 = vadd.f32 %v368_v26, %v367_v50  ;;  %v206_v59 = vadd.f32 %v205_v31, %v204_v40  ;;  %v271_v50 = vmul.f32 %v7017_v56, %v7017_v56  ;;  %v378_v6 = vsel %vm91_vm1, %v270_v0, 0.0 }
  0x76   :  { %v371_v29 = vadd.f32 %v370_v43, %v369_v57  ;;  %v208_v40 = vadd.f32 %v207_v11, %v206_v59  ;;  %v209_v43 = vsel %vm91_vm1, %v7164_v61, 0.0  ;;  %v272_v57 = vmul.f32 %v7027_v7, %v7027_v7  ;;  %v7190_v7 = vld [vmem:[%s10874_s0 + $0x1e8] sm:$0xff] }
  0x77   :  { %v380_v53 = vsel %vm91_vm1, %v271_v50, 0.0  ;;  %11006 = vst [vmem:[#allocation25_spill] sm:$0xff] %v7190_v7 }
  0x78   :  { %v373_v26 = vadd.f32 %v372_v22, %v371_v29  ;;  %v273_v29 = vmul.f32 %v7037_v25, %v7037_v25  ;;  %v210_v59 = vadd.f32 %v209_v43, %v208_v40  ;;  %v382_v0 = vsel %vm91_vm1, %v272_v57, 0.0 }
  0x7a   :  { %v375_v31 = vadd.f32 %v374_v32, %v373_v26  ;;  %v211_v32 = vsel %vm91_vm1, %v7177_v38, 0.0  ;;  %v274_v26 = vmul.f32 %v7047_v44, %v7047_v44  ;;  %v384_v50 = vsel %vm91_vm1, %v273_v29, 0.0  ;;  %v7203_v44 = vld [vmem:[%s10874_s0 + $0x1f0] sm:$0xff] }
  0x7b   :  { %v212_v40 = vadd.f32 %v211_v32, %v210_v59  ;;  %11007 = vst [vmem:[#allocation26_spill] sm:$0xff] %v7203_v44 }
  0x7c   :  { %v377_v22 = vadd.f32 %v376_v41, %v375_v31  ;;  %v275_v31 = vmul.f32 %v7057_v60, %v7057_v60  ;;  %v386_v57 = vsel %vm91_vm1, %v274_v26, 0.0 }
  0x7e   :  { %v379_v11 = vadd.f32 %v378_v6, %v377_v22  ;;  %v213_v6 = vsel %vm91_vm1, %v7190_v7, 0.0  ;;  %v276_v22 = vmul.f32 %v7067_v23, %v7067_v23  ;;  %v388_v29 = vsel %vm91_vm1, %v275_v31, 0.0  ;;  %v7216_v23 = vld [vmem:[%s10874_s0 + $0x1f8] sm:$0xff] }
  0x7f   :  { %v214_v59 = vadd.f32 %v213_v6, %v212_v40  ;;  %11008 = vst [vmem:[#allocation27_spill] sm:$0xff] %v7216_v23 }
  0x80   :  { %v381_v41 = vadd.f32 %v380_v53, %v379_v11  ;;  %v277_v11 = vmul.f32 %v7077_v47, %v7077_v47  ;;  %v390_v26 = vsel %vm91_vm1, %v276_v22, 0.0  ;;  %v281_v47 = vmul.f32 %v7125_v14, %v7125_v14 }
  0x82   :  { %v383_v43 = vadd.f32 %v382_v0, %v381_v41  ;;  %v215_v0 = vsel %vm91_vm1, %v7203_v44, 0.0  ;;  %v278_v41 = vmul.f32 %v7087_v13, %v7087_v13  ;;  %v392_v31 = vsel %vm91_vm1, %v277_v11, 0.0 }
  0x83   :  { %v216_v40 = vadd.f32 %v215_v0, %v214_v59  ;;  %v282_v11 = vmul.f32 %v7138_v10, %v7138_v10 }
  0x84   :  { %v385_v53 = vadd.f32 %v384_v50, %v383_v43  ;;  %v279_v43 = vmul.f32 %v7097_v35, %v7097_v35  ;;  %v394_v22 = vsel %vm91_vm1, %v278_v41, 0.0 }
  0x86   :  { %v387_v32 = vadd.f32 %v386_v57, %v385_v53  ;;  %v217_v57 = vsel %vm91_vm1, %v7216_v23, 0.0  ;;  %v280_v53 = vmul.f32 %v7110_v16, %v7110_v16 }
  0x88   :  { %v389_v50 = vadd.f32 %v388_v29, %v387_v32  ;;  %v396_v29 = vsel %vm91_vm1, %v279_v43, 0.0  ;;  %v218_v32 = vadd.f32 %v217_v57, %v216_v40  ;;  %v398_v59 = vsel %vm91_vm1, %v280_v53, 0.0 }
  0x89   :  { %v402_v43 = vsel %vm91_vm1, %v282_v11, 0.0 }
  0x8a   :  { %v391_v6 = vadd.f32 %v390_v26, %v389_v50  ;;  %v283_v26 = vmul.f32 %v7151_v34, %v7151_v34  ;;  %v400_v50 = vsel %vm91_vm1, %v281_v47, 0.0  ;;  %v219_v41 = vrot.slane %v218_v32, 4 }
  0x8c   :  { %v393_v13 = vadd.f32 %v392_v31, %v391_v6  ;;  %v284_v6 = vmul.f32 %v7164_v61, %v7164_v61  ;;  %v404_v57 = vsel %vm91_vm1, %v283_v26, 0.0  ;;  %v220_v53 = vadd.f32 %v219_v41, %v218_v32 }
  0x8e   :  { %v395_v35 = vadd.f32 %v394_v22, %v393_v13  ;;  %v285_v13 = vmul.f32 %v7177_v38, %v7177_v38  ;;  %v286_v22 = vmul.f32 %v7190_v7, %v7190_v7  ;;  %v406_v47 = vsel %vm91_vm1, %v284_v6, 0.0 }
  0x8f   :  { %v221_v11 = vrot.slane %v220_v53, 2 }
  0x90   :  { %v397_v0 = vadd.f32 %v396_v29, %v395_v35  ;;  %v410_v26 = vsel %vm91_vm1, %v286_v22, 0.0 }
  0x92   :  { %v399_v31 = vadd.f32 %v398_v59, %v397_v0  ;;  %v287_v59 = vmul.f32 %v7203_v44, %v7203_v44  ;;  %v408_v0 = vsel %vm91_vm1, %v285_v13, 0.0 }
  0x94   :  { %v401_v40 = vadd.f32 %v400_v50, %v399_v31  ;;  %v288_v31 = vmul.f32 %v7216_v23, %v7216_v23  ;;  %v412_v41 = vsel %vm91_vm1, %v287_v59, 0.0 }
  0x96   :  { %v403_v35 = vadd.f32 %v402_v43, %v401_v40  ;;  %v222_v43 = vadd.f32 %v221_v11, %v220_v53  ;;  %v414_v6 = vsel %vm91_vm1, %v288_v31, 0.0  ;;  %v434_v53 = vlaneseq  ;;  %v426_v11 = vld [vmem:[%s10875_s1] sm:$0x1]  ;;  %s6565_s1 = smov 32  }
  0x98   :  { %v405_v29 = vadd.f32 %v404_v57, %v403_v35  ;;  %v223_v35 = vrot.slane %v222_v43, 1  ;;  %v435_v59 = vshrl.u32 %v434_v53, 7 }
  0x9a   :  { %v407_v50 = vadd.f32 %v406_v47, %v405_v29  ;;  %v224_v38 = vadd.f32 %v223_v35, %v222_v43  ;;  %v7255_v31 = vsub.s32 0, %v435_v59 }
  0x9c   :  { %v409_v32 = vadd.f32 %v408_v0, %v407_v50  ;;  %v422_v29 = vmul.f32 0.001953125, %v224_v38 }
  0x9e   :  { %v411_v40 = vadd.f32 %v410_v26, %v409_v32  ;;  %v424_v10 = vmul.f32 %v422_v29, %v422_v29 }
  0xa0   :  { %v413_v57 = vadd.f32 %v412_v41, %v411_v40 }
  0xa2   :  { %v415_v7 = vadd.f32 %v414_v6, %v413_v57 }
  0xa4   :  { %v416_v44 = vrot.slane %v415_v7, 4 }
  0xa6   :  { %v417_v13 = vadd.f32 %v416_v44, %v415_v7 }
  0xa8   :  { %v418_v61 = vrot.slane %v417_v13, 2 }
  0xaa   :  { %v419_v47 = vadd.f32 %v418_v61, %v417_v13  ;;  %v430_v61 = vld [vmem:[%s10876_s2] sm:$0x1]  ;;  %s6566_s2 = smov 64  }
  0xac   :  { %v420_v34 = vrot.slane %v419_v47, 1 }
  0xae   :  { %v421_v23 = vadd.f32 %v420_v34, %v419_v47 }
  0xb0   :  { %v423_v22 = vmul.f32 0.001953125, %v421_v23 }
  0xb2   :  { %v425_v0 = vsub.f32 %v423_v22, %v424_v10 }
  0xb4   :  { %v427_v50 = vadd.f32 1e-05, %v425_v0 }
  0xb6   :  { %6538 = vrsqrt.f32 %v427_v50 }
  0xc3   :  { %v6539_v26 = vpop.eup %6538 }
  0xc4   :  { %v429_v7 = vmul.f32 %v6539_v26, %v426_v11 }
  0xc6   :  { %v431_v34 = vmul.f32 %v429_v7, %v422_v29  ;;  %v7261_v38 = vrot.slane %v429_v7, %v7255_v31 }
  0xc8   :  { %v432_v44 = vsub.f32 %v430_v61, %v431_v34  ;;  %v439_v23 = vmul.f32 %v7261_v38, %v6615_v1  ;;  %v440_v10 = vmul.f32 %v7261_v38, %v6620_v2  ;;  %v441_v32 = vmul.f32 %v7261_v38, %v6625_v4 }
  0xc9   :  { %v442_v41 = vmul.f32 %v7261_v38, %v6630_v5  ;;  %v443_v43 = vmul.f32 %v7261_v38, %v6639_v8  ;;  %v444_v40 = vmul.f32 %v7261_v38, %v6648_v12  ;;  %v445_v6 = vmul.f32 %v7261_v38, %v6655_v15 }
  0xca   :  { %v7278_v1 = vrot.slane %v432_v44, %v7255_v31  ;;  %v446_v2 = vmul.f32 %v7261_v38, %v6662_v18  ;;  %v447_v4 = vmul.f32 %v7261_v38, %v6669_v21  ;;  %v448_v5 = vmul.f32 %v7261_v38, %v6676_v24 }
  0xcb   :  { %v449_v8 = vmul.f32 %v7261_v38, %v6683_v27  ;;  %v450_v12 = vmul.f32 %v7261_v38, %v6690_v30  ;;  %v451_v53 = vmul.f32 %v7261_v38, %v6697_v33 }
  0xcc   :  { %v509_v15 = vadd.f32 %v7278_v1, %v439_v23  ;;  %v510_v57 = vadd.f32 %v7278_v1, %v440_v10  ;;  %v511_v35 = vadd.f32 %v7278_v1, %v441_v32  ;;  %v512_v18 = vadd.f32 %v7278_v1, %v442_v41 }
  0xcd   :  { %v513_v13 = vadd.f32 %v7278_v1, %v443_v43  ;;  %v514_v21 = vadd.f32 %v7278_v1, %v444_v40  ;;  %v515_v24 = vadd.f32 %v7278_v1, %v445_v6  ;;  %v516_v47 = vadd.f32 %v7278_v1, %v446_v2 }
  0xce   :  { %v573_v27 = vmax.f32 %v509_v15, 0.0  ;;  %v574_v29 = vmax.f32 %v510_v57, 0.0  ;;  %v575_v22 = vmax.f32 %v511_v35, 0.0  ;;  %v576_v30 = vmax.f32 %v512_v18, 0.0 }
  0xcf   :  { %v577_v0 = vmax.f32 %v513_v13, 0.0  ;;  %v578_v50 = vmax.f32 %v514_v21, 0.0  ;;  %v517_v26 = vadd.f32 %v7278_v1, %v447_v4  ;;  %v518_v7 = vadd.f32 %v7278_v1, %v448_v5 }
  0xd0   :  { %v637_v59 = vpack.c.bf16 %v574_v29, %v573_v27  ;;  %v638_v11 = vpack.c.bf16 %v576_v30, %v575_v22  ;;  %v519_v34 = vadd.f32 %v7278_v1, %v449_v8  ;;  %v520_v44 = vadd.f32 %v7278_v1, %v450_v12 }
  0xd1   :  { %v639_v61 = vpack.c.bf16 %v578_v50, %v577_v0  ;;  %v452_v23 = vmul.f32 %v7261_v38, %v6704_v36  ;;  %v579_v10 = vmax.f32 %v515_v24, 0.0  ;;  %v580_v32 = vmax.f32 %v516_v47, 0.0 }
  0xd2   :  { %5390 = vmatprep.mubr.msk.bf16.mxu0 %vm91_vm1, %v637_v59  ;;  %v581_v33 = vmax.f32 %v517_v26, 0.0  ;;  %v582_v41 = vmax.f32 %v518_v7, 0.0  ;;  %v453_v43 = vmul.f32 %v7261_v38, %v6711_v39  ;;  %v454_v40 = vmul.f32 %v7261_v38, %v6718_v42 }
  0xd3   :  { %5391 = vmatmul.mubr.msk.bf16.vlgmr.msra.gmra.mxu0 %vm91_vm1, %v638_v11  ;;  %v521_v6 = vadd.f32 %v7278_v1, %v451_v53  ;;  %v455_v36 = vmul.f32 %v7261_v38, %v6725_v45  ;;  %v583_v2 = vmax.f32 %v519_v34, 0.0  ;;  %v584_v4 = vmax.f32 %v520_v44, 0.0 }
  0xd4   :  { %5394 = vmatprep.mubr.msk.bf16.mxu0 %vm91_vm1, %v639_v61  ;;  %v522_v5 = vadd.f32 %v7278_v1, %v452_v23  ;;  %v456_v8 = vmul.f32 %v7261_v38, %v6732_v48  ;;  %v523_v12 = vadd.f32 %v7278_v1, %v453_v43  ;;  %v457_v39 = vmul.f32 %v7261_v38, %v6739_v51 }
  0xd5   :  { %v458_v42 = vmul.f32 %v7261_v38, %v6746_v54  ;;  %v640_v15 = vpack.c.bf16 %v580_v32, %v579_v10  ;;  %v641_v57 = vpack.c.bf16 %v582_v41, %v581_v33  ;;  %v524_v35 = vadd.f32 %v7278_v1, %v454_v40 }
  0xd6   :  { %v459_v45 = vmul.f32 %v7261_v38, %v6755_v58  ;;  %v585_v18 = vmax.f32 %v521_v6, 0.0  ;;  %v525_v13 = vadd.f32 %v7278_v1, %v455_v36  ;;  %v526_v48 = vadd.f32 %v7278_v1, %v456_v8 }
  0xd7   :  { %v460_v21 = vmul.f32 %v7261_v38, %v6766_v63  ;;  %v642_v24 = vpack.c.bf16 %v584_v4, %v583_v2  ;;  %v586_v51 = vmax.f32 %v522_v5, 0.0  ;;  %v527_v47 = vadd.f32 %v7278_v1, %v457_v39  ;;  %v11010_v4 = vld [vmem:[#allocation4_spill] sm:$0xff] }
  0xd8   :  { %v461_v54 = vmul.f32 %v7261_v38, %v6776_v9  ;;  %v587_v27 = vmax.f32 %v523_v12, 0.0  ;;  %v528_v29 = vadd.f32 %v7278_v1, %v458_v42  ;;  %v529_v58 = vadd.f32 %v7278_v1, %v459_v45 }
  0xd9   :  { %v462_v22 = vmul.f32 %v7261_v38, %v6787_v19  ;;  %v588_v30 = vmax.f32 %v524_v35, 0.0  ;;  %v530_v63 = vadd.f32 %v7278_v1, %v460_v21  ;;  %v463_v50 = vmul.f32 %v7261_v38, %v6797_v28  ;;  %v11011_v35 = vld [vmem:[#allocation8_spill] sm:$0xff] }
  0xda   :  { %v531_v0 = vadd.f32 %v7278_v1, %v461_v54  ;;  %v589_v9 = vmax.f32 %v525_v13, 0.0  ;;  %v590_v53 = vmax.f32 %v526_v48, 0.0  ;;  %v464_v11 = vmul.f32 %v7261_v38, %v6807_v37  ;;  %v11009_v37 = vld [vmem:[#allocation3_spill] sm:$0xff] }
  0xdb   :  { %5395 = vmatmul.mubr.msk.bf16.gmra.mxu0 %vm91_vm1, %v640_v15  ;;  %v532_v59 = vadd.f32 %v7278_v1, %v462_v22  ;;  %v591_v19 = vmax.f32 %v527_v47, 0.0  ;;  %v533_v26 = vadd.f32 %v7278_v1, %v463_v50  ;;  %v465_v7 = vmul.f32 %v7261_v38, %v6817_v46  ;;  %v11014_v47 = vld [vmem:[#allocation10_spill] sm:$0xff]  ;;  %v11015_v22 = vld [vmem:[#allocation11_spill] sm:$0xff] }
  0xdc   :  { %5398 = vmatprep.mubr.msk.bf16.mxu0 %vm91_vm1, %v641_v57  ;;  %v466_v61 = vmul.f32 %v7261_v38, %v6827_v55  ;;  %v592_v34 = vmax.f32 %v528_v29, 0.0  ;;  %v593_v28 = vmax.f32 %v529_v58, 0.0  ;;  %v534_v44 = vadd.f32 %v7278_v1, %v464_v11 }
  0xdd   :  { %v467_v23 = vmul.f32 %v7261_v38, %v6837_v62  ;;  %v594_v10 = vmax.f32 %v530_v63, 0.0  ;;  %v595_v32 = vmax.f32 %v531_v0, 0.0  ;;  %v596_v33 = vmax.f32 %v532_v59, 0.0  ;;  %v11016_v0 = vld [vmem:[#allocation6_spill] sm:$0xff] }
  0xde   :  { %v468_v41 = vmul.f32 %v7261_v38, %v11009_v37  ;;  %v643_v43 = vpack.c.bf16 %v586_v51, %v585_v18  ;;  %v7358_v40 = vadd.f32 %v7278_v1, %v465_v7  ;;  %v7361_v46 = vadd.f32 %v7278_v1, %v466_v61  ;;  %v11012_v18 = vld [vmem:[#allocation9_spill] sm:$0xff]  ;;  %v11017_v7 = vld [vmem:[#allocation7_spill] sm:$0xff] }
  0xdf   :  { %v597_v55 = vmax.f32 %v533_v26, 0.0  ;;  %v598_v6 = vmax.f32 %v534_v44, 0.0  ;;  %v7364_v36 = vadd.f32 %v7278_v1, %v467_v23  ;;  %v644_v2 = vpack.c.bf16 %v588_v30, %v587_v27 }
  0xe0   :  { %v645_v62 = vpack.c.bf16 %v590_v53, %v589_v9  ;;  %v469_v5 = vmul.f32 %v7261_v38, %v11010_v4  ;;  %v7369_v8 = vpack.c.bf16 %v592_v34, %v591_v19  ;;  %v7371_v12 = vpack.c.bf16 %v594_v10, %v593_v28 }
  0xe1   :  { %v7373_v39 = vpack.c.bf16 %v596_v33, %v595_v32  ;;  %v7376_v42 = vadd.f32 %v7278_v1, %v468_v41  ;;  %v599_v15 = vmax.f32 %v7358_v40, 0.0  ;;  %v600_v57 = vmax.f32 %v7361_v46, 0.0  ;;  %v11018_v32 = vld [vmem:[#allocation12_spill] sm:$0xff] }
  0xe2   :  { %v473_v45 = vmul.f32 %v7261_v38, %v11011_v35  ;;  %v474_v13 = vmul.f32 %v7261_v38, %v11012_v18  ;;  %v7385_v48 = vpack.c.bf16 %v598_v6, %v597_v55  ;;  %v601_v21 = vmax.f32 %v7364_v36, 0.0  ;;  %v11020_v18 = vld [vmem:[#allocation14_spill] sm:$0xff] }
  0xe3   :  { %5399 = vmatmul.mubr.msk.bf16.gmra.mxu0 %vm91_vm1, %v642_v24  ;;  %v11013_v24 = vld [vmem:[#allocation5_spill] sm:$0xff]  ;;  %v475_v54 = vmul.f32 %v7261_v38, %v11014_v47  ;;  %v7395_v27 = vadd.f32 %v7278_v1, %v469_v5  ;;  %v476_v30 = vmul.f32 %v7261_v38, %v11015_v22  ;;  %v602_v63 = vmax.f32 %v7376_v42, 0.0 }
  0xe4   :  { %5402 = vmatprep.mubr.msk.bf16.mxu0 %vm91_vm1, %v643_v43  ;;  %v7390_v51 = vmul.f32 %v7261_v38, %v11013_v24  ;;  %v543_v29 = vadd.f32 %v7278_v1, %v473_v45  ;;  %v544_v58 = vadd.f32 %v7278_v1, %v474_v13  ;;  %v7404_v50 = vmul.f32 %v7261_v38, %v11016_v0  ;;  %v11019_v43 = vld [vmem:[#allocation13_spill] sm:$0xff] }
  0xe5   :  { %v545_v9 = vadd.f32 %v7278_v1, %v475_v54  ;;  %v477_v53 = vmul.f32 %v7261_v38, %v6937_v52  ;;  %v546_v19 = vadd.f32 %v7278_v1, %v476_v30  ;;  %v478_v26 = vmul.f32 %v7261_v38, %v6947_v3 }
  0xe6   :  { %v607_v59 = vmax.f32 %v543_v29, 0.0  ;;  %v608_v11 = vmax.f32 %v544_v58, 0.0  ;;  %v7414_v61 = vmul.f32 %v7261_v38, %v11017_v7  ;;  %v479_v44 = vmul.f32 %v7261_v38, %v6957_v17  ;;  %v11021_v58 = vld [vmem:[#allocation15_spill] sm:$0xff] }
  0xe7   :  { %v609_v34 = vmax.f32 %v545_v9, 0.0  ;;  %v547_v28 = vadd.f32 %v7278_v1, %v477_v53  ;;  %v610_v52 = vmax.f32 %v546_v19, 0.0  ;;  %v548_v10 = vadd.f32 %v7278_v1, %v478_v26  ;;  %v11022_v19 = vld [vmem:[#allocation16_spill] sm:$0xff] }
  0xe8   :  { %v7419_v23 = vpack.c.bf16 %v608_v11, %v607_v59  ;;  %v480_v33 = vmul.f32 %v7261_v38, %v11018_v32  ;;  %v549_v37 = vadd.f32 %v7278_v1, %v479_v44  ;;  %v481_v41 = vmul.f32 %v7261_v38, %v6977_v49  ;;  %v11023_v44 = vld [vmem:[#allocation17_spill] sm:$0xff] }
  0xe9   :  { %v611_v3 = vmax.f32 %v547_v28, 0.0  ;;  %v482_v55 = vmul.f32 %v7261_v38, %v11019_v43  ;;  %v7431_v17 = vpack.c.bf16 %v610_v52, %v609_v34  ;;  %v612_v6 = vmax.f32 %v548_v10, 0.0  ;;  %v11025_v43 = vld [vmem:[#allocation19_spill] sm:$0xff] }
  0xea   :  { %v550_v4 = vadd.f32 %v7278_v1, %v480_v33  ;;  %v483_v5 = vmul.f32 %v7261_v38, %v6997_v20  ;;  %v551_v35 = vadd.f32 %v7278_v1, %v481_v41  ;;  %v484_v49 = vmul.f32 %v7261_v38, %v11020_v18  ;;  %v11024_v33 = vld [vmem:[#allocation18_spill] sm:$0xff] }
  0xeb   :  { %5403 = vmatmul.mubr.msk.bf16.gmra.mxu0 %vm91_vm1, %v644_v2  ;;  %v613_v2 = vmax.f32 %v549_v37, 0.0  ;;  %v552_v45 = vadd.f32 %v7278_v1, %v482_v55  ;;  %v7440_v13 = vpack.c.bf16 %v612_v6, %v611_v3  ;;  %v485_v47 = vmul.f32 %v7261_v38, %v7017_v56 }
  0xec   :  { %5406 = vmatprep.mubr.msk.bf16.mxu0 %vm91_vm1, %v645_v62  ;;  %v614_v24 = vmax.f32 %v550_v4, 0.0  ;;  %v553_v62 = vadd.f32 %v7278_v1, %v483_v5  ;;  %v615_v54 = vmax.f32 %v551_v35, 0.0  ;;  %v554_v20 = vadd.f32 %v7278_v1, %v484_v49  ;;  %v11026_v5 = vld [vmem:[#allocation20_spill] sm:$0xff] }
  0xed   :  { %v616_v29 = vmax.f32 %v552_v45, 0.0  ;;  %v486_v22 = vmul.f32 %v7261_v38, %v11021_v58  ;;  %v555_v9 = vadd.f32 %v7278_v1, %v485_v47  ;;  %v487_v53 = vmul.f32 %v7261_v38, %v7037_v25  ;;  %v11027_v58 = vld [vmem:[#allocation21_spill] sm:$0xff] }
  0xee   :  { %v7448_v30 = vpack.c.bf16 %v614_v24, %v613_v2  ;;  %v617_v0 = vmax.f32 %v553_v62, 0.0  ;;  %v618_v11 = vmax.f32 %v554_v20, 0.0  ;;  %v488_v26 = vmul.f32 %v7261_v38, %v11022_v19 }
  0xef   :  { %v7453_v59 = vpack.c.bf16 %v616_v29, %v615_v54  ;;  %v556_v56 = vadd.f32 %v7278_v1, %v486_v22  ;;  %v619_v7 = vmax.f32 %v555_v9, 0.0  ;;  %v557_v34 = vadd.f32 %v7278_v1, %v487_v53  ;;  %v11028_v53 = vld [vmem:[#allocation22_spill] sm:$0xff] }
  0xf0   :  { %v489_v28 = vmul.f32 %v7261_v38, %v7057_v60  ;;  %v490_v52 = vmul.f32 %v7261_v38, %v11023_v44  ;;  %v7465_v25 = vpack.c.bf16 %v618_v11, %v617_v0  ;;  %v558_v32 = vadd.f32 %v7278_v1, %v488_v26  ;;  %v11029_v11 = vld [vmem:[#allocation23_spill] sm:$0xff] }
  0xf1   :  { %v620_v10 = vmax.f32 %v556_v56, 0.0  ;;  %v491_v3 = vmul.f32 %v7261_v38, %v11024_v33  ;;  %v621_v37 = vmax.f32 %v557_v34, 0.0  ;;  %v492_v55 = vmul.f32 %v7261_v38, %v11025_v43 }
  0xf2   :  { %v559_v60 = vadd.f32 %v7278_v1, %v489_v28  ;;  %v560_v41 = vadd.f32 %v7278_v1, %v490_v52  ;;  %v622_v6 = vmax.f32 %v558_v32, 0.0  ;;  %v493_v2 = vmul.f32 %v7261_v38, %v11026_v5 }
  0xf3   :  { %5407 = vmatmul.mubr.msk.bf16.gmra.mxu0 %vm91_vm1, %v7369_v8  ;;  %v7476_v8 = vpack.c.bf16 %v620_v10, %v619_v7  ;;  %v561_v4 = vadd.f32 %v7278_v1, %v491_v3  ;;  %v494_v18 = vmul.f32 %v7261_v38, %v7110_v16  ;;  %v495_v47 = vmul.f32 %v7261_v38, %v7125_v14  ;;  %v11030_v7 = vld [vmem:[#allocation24_spill] sm:$0xff]  ;;  %v11031_v10 = vld [vmem:[#allocation25_spill] sm:$0xff] }
  0xf4   :  { %5410 = vmatprep.mubr.msk.bf16.mxu0 %vm91_vm1, %v7371_v12  ;;  %v623_v35 = vmax.f32 %v559_v60, 0.0  ;;  %v624_v45 = vmax.f32 %v560_v41, 0.0  ;;  %v562_v12 = vadd.f32 %v7278_v1, %v492_v55  ;;  %v661_v49 = vpack.c.bf16 %v622_v6, %v621_v37  ;;  %v11032_v60 = vld [vmem:[#allocation26_spill] sm:$0xff]  ;;  %v11033_v6 = vld [vmem:[#allocation27_spill] sm:$0xff] }
  0xf5   :  { %v625_v24 = vmax.f32 %v561_v4, 0.0  ;;  %v563_v62 = vadd.f32 %v7278_v1, %v493_v2  ;;  %v564_v20 = vadd.f32 %v7278_v1, %v494_v18  ;;  %v496_v22 = vmul.f32 %v7261_v38, %v11027_v58 }
  0xf6   :  { %v662_v54 = vpack.c.bf16 %v624_v45, %v623_v35  ;;  %v626_v29 = vmax.f32 %v562_v12, 0.0  ;;  %v565_v9 = vadd.f32 %v7278_v1, %v495_v47  ;;  %v497_v16 = vmul.f32 %v7261_v38, %v11028_v53 }
  0xf7   :  { %v627_v0 = vmax.f32 %v563_v62, 0.0  ;;  %v498_v56 = vmul.f32 %v7261_v38, %v11029_v11  ;;  %v628_v26 = vmax.f32 %v564_v20, 0.0  ;;  %v566_v14 = vadd.f32 %v7278_v1, %v496_v22 }
  0xf8   :  { %v663_v19 = vpack.c.bf16 %v626_v29, %v625_v24  ;;  %v499_v34 = vmul.f32 %v7261_v38, %v11030_v7  ;;  %v629_v28 = vmax.f32 %v565_v9, 0.0  ;;  %v567_v44 = vadd.f32 %v7278_v1, %v497_v16 }
  0xf9   :  { %v568_v52 = vadd.f32 %v7278_v1, %v498_v56  ;;  %v500_v32 = vmul.f32 %v7261_v38, %v11031_v10  ;;  %v664_v33 = vpack.c.bf16 %v628_v26, %v627_v0  ;;  %v630_v3 = vmax.f32 %v566_v14, 0.0 }
  0xfa   :  { %v569_v37 = vadd.f32 %v7278_v1, %v499_v34  ;;  %v501_v41 = vmul.f32 %v7261_v38, %v11032_v60  ;;  %v631_v43 = vmax.f32 %v567_v44, 0.0  ;;  %v502_v4 = vmul.f32 %v7261_v38, %v11033_v6 }
  0xfb   :  { %5411 = vmatmul.mubr.msk.bf16.gmra.mxu0 %vm91_vm1, %v7373_v39  ;;  %v632_v39 = vmax.f32 %v568_v52, 0.0  ;;  %v570_v55 = vadd.f32 %v7278_v1, %v500_v32  ;;  %v650_v5 = vpack.c.bf16 %v600_v57, %v599_v15  ;;  %v540_v45 = vadd.f32 %v7278_v1, %v7390_v51 }
  0xfc   :  { %5414 = vmatprep.mubr.msk.bf16.mxu0 %vm91_vm1, %v7385_v48  ;;  %v665_v48 = vpack.c.bf16 %v630_v3, %v629_v28  ;;  %v633_v2 = vmax.f32 %v569_v37, 0.0  ;;  %v571_v35 = vadd.f32 %v7278_v1, %v501_v41  ;;  %v572_v24 = vadd.f32 %v7278_v1, %v502_v4 }
  0xfd   :  { %v666_v12 = vpack.c.bf16 %v632_v39, %v631_v43  ;;  %v634_v18 = vmax.f32 %v570_v55, 0.0  ;;  %v651_v38 = vpack.c.bf16 %v602_v63, %v601_v21  ;;  %v541_v40 = vadd.f32 %v7278_v1, %v7404_v50 }
  0xfe   :  { %v542_v46 = vadd.f32 %v7278_v1, %v7414_v61  ;;  %v635_v15 = vmax.f32 %v571_v35, 0.0  ;;  %v636_v62 = vmax.f32 %v572_v24, 0.0  ;;  %v603_v51 = vmax.f32 %v7395_v27, 0.0 }
  0xff   :  { %v667_v57 = vpack.c.bf16 %v634_v18, %v633_v2  ;;  %v604_v47 = vmax.f32 %v540_v45, 0.0  ;;  %v605_v36 = vmax.f32 %v541_v40, 0.0 }
 0x100   :  { %v668_v29 = vpack.c.bf16 %v636_v62, %v635_v15  ;;  %v606_v42 = vmax.f32 %v542_v46, 0.0 }
 0x101   :  { %v652_v21 = vpack.c.bf16 %v604_v47, %v603_v51 }
 0x102   :  { %v653_v63 = vpack.c.bf16 %v606_v42, %v605_v36 }
 0x103   :  { %5415 = vmatmul.mubr.msk.bf16.gmra.mxu0 %vm91_vm1, %v650_v5 }
 0x104   :  { %5418 = vmatprep.mubr.msk.bf16.mxu0 %vm91_vm1, %v651_v38 }
 0x10b   :  { %5419 = vmatmul.mubr.msk.bf16.gmra.mxu0 %vm91_vm1, %v652_v21 }
 0x10c   :  { %5422 = vmatprep.mubr.msk.bf16.mxu0 %vm91_vm1, %v653_v63 }
 0x113   :  { %5423 = vmatmul.mubr.msk.bf16.gmra.mxu0 %vm91_vm1, %v7419_v23 }
 0x114   :  { %5426 = vmatprep.mubr.msk.bf16.mxu0 %vm91_vm1, %v7431_v17 }
 0x11b   :  { %5427 = vmatmul.mubr.msk.bf16.gmra.mxu0 %vm91_vm1, %v7440_v13 }
 0x11c   :  { %5430 = vmatprep.mubr.msk.bf16.mxu0 %vm91_vm1, %v7448_v30 }
 0x123   :  { %5431 = vmatmul.mubr.msk.bf16.gmra.mxu0 %vm91_vm1, %v7453_v59 }
 0x124   :  { %5434 = vmatprep.mubr.msk.bf16.mxu0 %vm91_vm1, %v7465_v25 }
 0x12b   :  { %5435 = vmatmul.mubr.msk.bf16.gmra.mxu0 %vm91_vm1, %v7476_v8 }
 0x12c   :  { %5438 = vmatprep.mubr.msk.bf16.mxu0 %vm91_vm1, %v661_v49 }
 0x133   :  { %5439 = vmatmul.mubr.msk.bf16.gmra.mxu0 %vm91_vm1, %v662_v54 }
 0x134   :  { %5442 = vmatprep.mubr.msk.bf16.mxu0 %vm91_vm1, %v663_v19 }
 0x13b   :  { %5443 = vmatmul.mubr.msk.bf16.gmra.mxu0 %vm91_vm1, %v664_v33 }
 0x13c   :  { %5446 = vmatprep.mubr.msk.bf16.mxu0 %vm91_vm1, %v665_v48 }
 0x143   :  { %5447 = vmatmul.mubr.msk.bf16.gmra.mxu0 %vm91_vm1, %v666_v12 }
 0x144   :  { %5450 = vmatprep.mubr.msk.bf16.mxu0 %vm91_vm1, %v667_v57 }
 0x14b   :  { %5451 = vmatmul.mubr.msk.bf16.gmra.mxu0 %vm91_vm1, %v668_v29 }
 0x193   :  { %v7555_v1 = vpop.f32.mrf.mxu0 }
 0x194   :  { %v1195_v17 = vmul.f32 %v7555_v1, %v7555_v1  ;;  %v1063_v49 = vsel %vm1059_vm2, %v7555_v1, 0.0 }
 0x195   :  { %v7557_v27 = vpop.f32.mrf.mxu0 }
 0x196   :  { %v1193_v61 = vmul.f32 %v7557_v27, %v7557_v27  ;;  %v1060_v13 = vsel %vm1059_vm2, %v7557_v27, 0.0  ;;  %v1260_v53 = vsel %vm1059_vm2, %v1195_v17, 0.0 }
 0x197   :  { %v7559_v50 = vpop.f32.mrf.mxu0 }
 0x198   :  { %v1257_v54 = vsel %vm1059_vm2, %v1193_v61, 0.0  ;;  %v1196_v20 = vmul.f32 %v7559_v50, %v7559_v50  ;;  %v1065_v16 = vsel %vm1059_vm2, %v7559_v50, 0.0 }
 0x199   :  { %v7563_v23 = vpop.f32.mrf.mxu0 }
 0x19a   :  { %v1061_v30 = vsel %vm1059_vm2, %v7563_v23, 0.0  ;;  %v1194_v59 = vmul.f32 %v7563_v23, %v7563_v23  ;;  %v1262_v14 = vsel %vm1059_vm2, %v1196_v20, 0.0 }
 0x19b   :  { %v1062_v25 = vadd.f32 %v1061_v30, %v1060_v13  ;;  %v7573_v8 = vpop.f32.mrf.mxu0 }
 0x19c   :  { %v1258_v58 = vsel %vm1059_vm2, %v1194_v59, 0.0  ;;  %v1199_v52 = vmul.f32 %v7573_v8, %v7573_v8  ;;  %v1071_v41 = vsel %vm1059_vm2, %v7573_v8, 0.0 }
 0x19d   :  { %v1259_v22 = vadd.f32 %v1258_v58, %v1257_v54  ;;  %v7581_v0 = vpop.f32.mrf.mxu0  ;;  %v1064_v9 = vadd.f32 %v1063_v49, %v1062_v25 }
 0x19e   :  { %v1197_v11 = vmul.f32 %v7581_v0, %v7581_v0  ;;  %v1067_v7 = vsel %vm1059_vm2, %v7581_v0, 0.0  ;;  %v1268_v5 = vsel %vm1059_vm2, %v1199_v52, 0.0 }
 0x19f   :  { %v1066_v56 = vadd.f32 %v1065_v16, %v1064_v9  ;;  %v1261_v19 = vadd.f32 %v1260_v53, %v1259_v22  ;;  %v7588_v26 = vpop.f32.mrf.mxu0 }
 0x1a0   :  { %v1264_v10 = vsel %vm1059_vm2, %v1197_v11, 0.0  ;;  %v1200_v43 = vmul.f32 %v7588_v26, %v7588_v26  ;;  %v1073_v48 = vsel %vm1059_vm2, %v7588_v26, 0.0 }
 0x1a1   :  { %v1068_v34 = vadd.f32 %v1067_v7, %v1066_v56  ;;  %v1263_v28 = vadd.f32 %v1262_v14, %v1261_v19  ;;  %v7593_v44 = vpop.f32.mrf.mxu0 }
 0x1a2   :  { %v1069_v32 = vsel %vm1059_vm2, %v7593_v44, 0.0  ;;  %v1198_v33 = vmul.f32 %v7593_v44, %v7593_v44  ;;  %v1270_v18 = vsel %vm1059_vm2, %v1200_v43, 0.0 }
 0x1a3   :  { %v1265_v3 = vadd.f32 %v1264_v10, %v1263_v28  ;;  %v1070_v37 = vadd.f32 %v1069_v32, %v1068_v34  ;;  %v7602_v60 = vpop.f32.mrf.mxu0 }
 0x1a4   :  { %v1266_v39 = vsel %vm1059_vm2, %v1198_v33, 0.0  ;;  %v1203_v15 = vmul.f32 %v7602_v60, %v7602_v60  ;;  %v1079_v42 = vsel %vm1059_vm2, %v7602_v60, 0.0 }
 0x1a5   :  { %v1267_v55 = vadd.f32 %v1266_v39, %v1265_v3  ;;  %v7609_v6 = vpop.f32.mrf.mxu0  ;;  %v1072_v4 = vadd.f32 %v1071_v41, %v1070_v37 }
 0x1a6   :  { %v1201_v2 = vmul.f32 %v7609_v6, %v7609_v6  ;;  %v1075_v24 = vsel %vm1059_vm2, %v7609_v6, 0.0  ;;  %v1276_v30 = vsel %vm1059_vm2, %v1203_v15, 0.0 }
 0x1a7   :  { %v1074_v35 = vadd.f32 %v1073_v48, %v1072_v4  ;;  %v1269_v45 = vadd.f32 %v1268_v5, %v1267_v55  ;;  %v7616_v12 = vpop.f32.mrf.mxu0 }
 0x1a8   :  { %v1272_v57 = vsel %vm1059_vm2, %v1201_v2, 0.0  ;;  %v1204_v21 = vmul.f32 %v7616_v12, %v7616_v12  ;;  %v1081_v59 = vsel %vm1059_vm2, %v7616_v12, 0.0 }
 0x1a9   :  { %v1076_v38 = vadd.f32 %v1075_v24, %v1074_v35  ;;  %v1271_v40 = vadd.f32 %v1270_v18, %v1269_v45  ;;  %v7621_v46 = vpop.f32.mrf.mxu0 }
 0x1aa   :  { %v1077_v62 = vsel %vm1059_vm2, %v7621_v46, 0.0  ;;  %v1202_v51 = vmul.f32 %v7621_v46, %v7621_v46  ;;  %v1278_v58 = vsel %vm1059_vm2, %v1204_v21, 0.0 }
 0x1ab   :  { %v1273_v47 = vadd.f32 %v1272_v57, %v1271_v40  ;;  %v1078_v29 = vadd.f32 %v1077_v62, %v1076_v38  ;;  %v7630_v36 = vpop.f32.mrf.mxu0 }
 0x1ac   :  { %v1274_v63 = vsel %vm1059_vm2, %v1202_v51, 0.0  ;;  %v1207_v11 = vmul.f32 %v7630_v36, %v7630_v36  ;;  %v1087_v52 = vsel %vm1059_vm2, %v7630_v36, 0.0 }
 0x1ad   :  { %v1275_v61 = vadd.f32 %v1274_v63, %v1273_v47  ;;  %v7637_v17 = vpop.f32.mrf.mxu0  ;;  %v1080_v13 = vadd.f32 %v1079_v42, %v1078_v29 }
 0x1ae   :  { %v1205_v25 = vmul.f32 %v7637_v17, %v7637_v17  ;;  %v1083_v22 = vsel %vm1059_vm2, %v7637_v17, 0.0  ;;  %v1284_v41 = vsel %vm1059_vm2, %v1207_v11, 0.0 }
 0x1af   :  { %v1082_v49 = vadd.f32 %v1081_v59, %v1080_v13  ;;  %v1277_v54 = vadd.f32 %v1276_v30, %v1275_v61  ;;  %v7644_v20 = vpop.f32.mrf.mxu0 }
 0x1b0   :  { %v1280_v56 = vsel %vm1059_vm2, %v1205_v25, 0.0  ;;  %v1208_v10 = vmul.f32 %v7644_v20, %v7644_v20  ;;  %v1089_v43 = vsel %vm1059_vm2, %v7644_v20, 0.0 }
 0x1b1   :  { %v1084_v9 = vadd.f32 %v1083_v22, %v1082_v49  ;;  %v1279_v53 = vadd.f32 %v1278_v58, %v1277_v54  ;;  %v7649_v16 = vpop.f32.mrf.mxu0 }
 0x1b2   :  { %v1085_v19 = vsel %vm1059_vm2, %v7649_v16, 0.0  ;;  %v1206_v14 = vmul.f32 %v7649_v16, %v7649_v16  ;;  %v1286_v48 = vsel %vm1059_vm2, %v1208_v10, 0.0 }
 0x1b3   :  { %v1281_v7 = vadd.f32 %v1280_v56, %v1279_v53  ;;  %v1086_v34 = vadd.f32 %v1085_v19, %v1084_v9  ;;  %v7658_v28 = vpop.f32.mrf.mxu0 }
 0x1b4   :  { %v1282_v32 = vsel %vm1059_vm2, %v1206_v14, 0.0  ;;  %v1211_v24 = vmul.f32 %v7658_v28, %v7658_v28  ;;  %v1095_v47 = vsel %vm1059_vm2, %v7658_v28, 0.0 }
 0x1b5   :  { %v1283_v33 = vadd.f32 %v1282_v32, %v1281_v7  ;;  %v7665_v3 = vpop.f32.mrf.mxu0  ;;  %v1088_v37 = vadd.f32 %v1087_v52, %v1086_v34 }
 0x1b6   :  { %v1209_v39 = vmul.f32 %v7665_v3, %v7665_v3  ;;  %v1091_v2 = vsel %vm1059_vm2, %v7665_v3, 0.0  ;;  %v1292_v13 = vsel %vm1059_vm2, %v1211_v24, 0.0  ;;  %v6564_v24 = vmov 0.0  }
 0x1b7   :  { %v1090_v55 = vadd.f32 %v1089_v43, %v1088_v37  ;;  %v1285_v4 = vadd.f32 %v1284_v41, %v1283_v33  ;;  %v7672_v5 = vpop.f32.mrf.mxu0  ;;  %1605 = vst.msk [vmem:[#allocation2] sm:$0xff] %vm1059_vm2, %v6564_v24  ;;  %1606 = vst.msk [vmem:[#allocation2 + $0x8] sm:$0xff] %vm1059_vm2, %v6564_v24 }
 0x1b8   :  { %v1288_v38 = vsel %vm1059_vm2, %v1209_v39, 0.0  ;;  %v1212_v29 = vmul.f32 %v7672_v5, %v7672_v5  ;;  %v1097_v30 = vsel %vm1059_vm2, %v7672_v5, 0.0  ;;  %1609 = vst.msk [vmem:[#allocation2 + $0x1b0] sm:$0xff] %vm1059_vm2, %v6564_v24  ;;  %1610 = vst.msk [vmem:[#allocation2 + $0x1b8] sm:$0xff] %vm1059_vm2, %v6564_v24 }
 0x1b9   :  { %v1092_v35 = vadd.f32 %v1091_v2, %v1090_v55  ;;  %v1287_v45 = vadd.f32 %v1286_v48, %v1285_v4  ;;  %v7677_v18 = vpop.f32.mrf.mxu0  ;;  %1613 = vst.msk [vmem:[#allocation2 + $0x198] sm:$0xff] %vm1059_vm2, %v6564_v24  ;;  %1614 = vst.msk [vmem:[#allocation2 + $0x1a0] sm:$0xff] %vm1059_vm2, %v6564_v24 }
 0x1ba   :  { %v1093_v40 = vsel %vm1059_vm2, %v7677_v18, 0.0  ;;  %v1210_v15 = vmul.f32 %v7677_v18, %v7677_v18  ;;  %v1294_v58 = vsel %vm1059_vm2, %v1212_v29, 0.0  ;;  %1616 = vst.msk [vmem:[#allocation2 + $0x348] sm:$0xff] %vm1059_vm2, %v6564_v24  ;;  %1617 = vst.msk [vmem:[#allocation2 + $0x350] sm:$0xff] %vm1059_vm2, %v6564_v24 }
 0x1bb   :  { %v1289_v57 = vadd.f32 %v1288_v38, %v1287_v45  ;;  %v1094_v62 = vadd.f32 %v1093_v40, %v1092_v35  ;;  %v7686_v51 = vpop.f32.mrf.mxu0  ;;  %1608 = vst.msk [vmem:[#allocation2 + $0x10] sm:$0x3] %vm1607_vm3, %v6564_v24  ;;  %1611 = vst.msk [vmem:[#allocation2 + $0x1c0] sm:$0x3] %vm1607_vm3, %v6564_v24 }
 0x1bc   :  { %v1290_v42 = vsel %vm1059_vm2, %v1210_v15, 0.0  ;;  %v1215_v56 = vmul.f32 %v7686_v51, %v7686_v51  ;;  %v1103_v32 = vsel %vm1059_vm2, %v7686_v51, 0.0  ;;  %1615 = vst.msk [vmem:[#allocation2 + $0x1a8] sm:$0x3] %vm1607_vm3, %v6564_v24  ;;  %1618 = vst.msk [vmem:[#allocation2 + $0x358] sm:$0x3] %vm1607_vm3, %v6564_v24 }
 0x1bd   :  { %v1291_v21 = vadd.f32 %v1290_v42, %v1289_v57  ;;  %v7693_v63 = vpop.f32.mrf.mxu0  ;;  %v1096_v61 = vadd.f32 %v1095_v47, %v1094_v62  ;;  %1656 = vst.msk [vmem:[#allocation2 + $0x11] sm:$0x1] %vm1619_vm4, %v6564_v24  ;;  %1620 = vst.msk [vmem:[#allocation2] sm:$0x1] %vm1619_vm4, %v6564_v24 }
 0x1be   :  { %v1213_v59 = vmul.f32 %v7693_v63, %v7693_v63  ;;  %v1099_v22 = vsel %vm1059_vm2, %v7693_v63, 0.0  ;;  %v1300_v55 = vsel %vm1059_vm2, %v1215_v56, 0.0  ;;  %1621 = vst.msk [vmem:[#allocation2 + $0x18] sm:$0x1] %vm1619_vm4, %v6564_v24  ;;  %1622 = vst.msk [vmem:[#allocation2 + $0x30] sm:$0x1] %vm1619_vm4, %v6564_v24 }
 0x1bf   :  { %v1098_v25 = vadd.f32 %v1097_v30, %v1096_v61  ;;  %v1293_v49 = vadd.f32 %v1292_v13, %v1291_v21  ;;  %v7700_v54 = vpop.f32.mrf.mxu0  ;;  %1623 = vst.msk [vmem:[#allocation2 + $0x48] sm:$0x1] %vm1619_vm4, %v6564_v24  ;;  %1624 = vst.msk [vmem:[#allocation2 + $0x60] sm:$0x1] %vm1619_vm4, %v6564_v24 }
 0x1c0   :  { %v1296_v19 = vsel %vm1059_vm2, %v1213_v59, 0.0  ;;  %v1216_v33 = vmul.f32 %v7700_v54, %v7700_v54  ;;  %v1105_v4 = vsel %vm1059_vm2, %v7700_v54, 0.0  ;;  %1625 = vst.msk [vmem:[#allocation2 + $0x78] sm:$0x1] %vm1619_vm4, %v6564_v24  ;;  %1626 = vst.msk [vmem:[#allocation2 + $0x90] sm:$0x1] %vm1619_vm4, %v6564_v24 }
 0x1c1   :  { %v1100_v9 = vadd.f32 %v1099_v22, %v1098_v25  ;;  %v1295_v53 = vadd.f32 %v1294_v58, %v1293_v49  ;;  %v7705_v11 = vpop.f32.mrf.mxu0  ;;  %1627 = vst.msk [vmem:[#allocation2 + $0xa8] sm:$0x1] %vm1619_vm4, %v6564_v24  ;;  %1628 = vst.msk [vmem:[#allocation2 + $0xc0] sm:$0x1] %vm1619_vm4, %v6564_v24 }
 0x1c2   :  { %v1101_v14 = vsel %vm1059_vm2, %v7705_v11, 0.0  ;;  %v1214_v7 = vmul.f32 %v7705_v11, %v7705_v11  ;;  %v1302_v38 = vsel %vm1059_vm2, %v1216_v33, 0.0  ;;  %1629 = vst.msk [vmem:[#allocation2 + $0xd8] sm:$0x1] %vm1619_vm4, %v6564_v24  ;;  %1630 = vst.msk [vmem:[#allocation2 + $0xf0] sm:$0x1] %vm1619_vm4, %v6564_v24 }
 0x1c3   :  { %v1297_v34 = vadd.f32 %v1296_v19, %v1295_v53  ;;  %v1102_v52 = vadd.f32 %v1101_v14, %v1100_v9  ;;  %v7714_v10 = vpop.f32.mrf.mxu0  ;;  %v7780_v14 = vld [vmem:[#allocation2 + $0x1] sm:$0xff]  ;;  %1631 = vst.msk [vmem:[#allocation2 + $0x108] sm:$0x1] %vm1619_vm4, %v6564_v24  ;;  %1632 = vst.msk [vmem:[#allocation2 + $0x120] sm:$0x1] %vm1619_vm4, %v6564_v24 }
 0x1c4   :  { %v1298_v37 = vsel %vm1059_vm2, %v1214_v7, 0.0  ;;  %v1219_v47 = vmul.f32 %v7714_v10, %v7714_v10  ;;  %v1111_v59 = vsel %vm1059_vm2, %v7714_v10, 0.0  ;;  %1633 = vst.msk [vmem:[#allocation2 + $0x138] sm:$0x1] %vm1619_vm4, %v6564_v24  ;;  %1634 = vst.msk [vmem:[#allocation2 + $0x150] sm:$0x1] %vm1619_vm4, %v6564_v24 }
 0x1c5   :  { %v1299_v41 = vadd.f32 %v1298_v37, %v1297_v34  ;;  %v7721_v43 = vpop.f32.mrf.mxu0  ;;  %v1104_v39 = vadd.f32 %v1103_v32, %v1102_v52  ;;  %v7790_v32 = vld [vmem:[#allocation2 + $0x9] sm:$0xff]  ;;  %1635 = vst.msk [vmem:[#allocation2 + $0x168] sm:$0x1] %vm1619_vm4, %v6564_v24  ;;  %1636 = vst.msk [vmem:[#allocation2 + $0x180] sm:$0x1] %vm1619_vm4, %v6564_v24 }
 0x1c6   :  { %v1217_v48 = vmul.f32 %v7721_v43, %v7721_v43  ;;  %v1107_v40 = vsel %vm1059_vm2, %v7721_v43, 0.0  ;;  %v1308_v53 = vsel %vm1059_vm2, %v1219_v47, 0.0  ;;  %1639 = vst.msk [vmem:[#allocation2 + $0x1c8] sm:$0x1] %vm1619_vm4, %v6564_v24  ;;  %1640 = vst.msk [vmem:[#allocation2 + $0x1e0] sm:$0x1] %vm1619_vm4, %v6564_v24 }
 0x1c7   :  { %v1106_v2 = vadd.f32 %v1105_v4, %v1104_v39  ;;  %v1301_v35 = vadd.f32 %v1300_v55, %v1299_v41  ;;  %v7728_v45 = vpop.f32.mrf.mxu0  ;;  %1641 = vst.msk [vmem:[#allocation2 + $0x1f8] sm:$0x1] %vm1619_vm4, %v6564_v24  ;;  %1642 = vst.msk [vmem:[#allocation2 + $0x210] sm:$0x1] %vm1619_vm4, %v6564_v24  ;;  %v5560_v41 = vpack.i.bf16 %v7790_v32, %v7780_v14 }
 0x1c8   :  { %v1304_v29 = vsel %vm1059_vm2, %v1217_v48, 0.0  ;;  %v7768_v25 = vmul.f32 %v7728_v45, %v7728_v45  ;;  %v1113_v56 = vsel %vm1059_vm2, %v7728_v45, 0.0  ;;  %1643 = vst.msk [vmem:[#allocation2 + $0x228] sm:$0x1] %vm1619_vm4, %v6564_v24  ;;  %1644 = vst.msk [vmem:[#allocation2 + $0x240] sm:$0x1] %vm1619_vm4, %v6564_v24 }
 0x1c9   :  { %v1108_v15 = vadd.f32 %v1107_v40, %v1106_v2  ;;  %v1303_v57 = vadd.f32 %v1302_v38, %v1301_v35  ;;  %v7753_v62 = vpop.f32.mrf.mxu0  ;;  %1645 = vst.msk [vmem:[#allocation2 + $0x258] sm:$0x1] %vm1619_vm4, %v6564_v24  ;;  %1646 = vst.msk [vmem:[#allocation2 + $0x270] sm:$0x1] %vm1619_vm4, %v6564_v24  ;;  %5561 = vrot.lane.b32.xlu0 %v5560_v41, %s6565_s1 }
 0x1ca   :  { %v1109_v42 = vsel %vm1059_vm2, %v7753_v62, 0.0  ;;  %v1218_v21 = vmul.f32 %v7753_v62, %v7753_v62  ;;  %1647 = vst.msk [vmem:[#allocation2 + $0x288] sm:$0x1] %vm1619_vm4, %v6564_v24  ;;  %1648 = vst.msk [vmem:[#allocation2 + $0x2a0] sm:$0x1] %vm1619_vm4, %v6564_v24  ;;  %v1310_v33 = vsel %vm1059_vm2, %v7768_v25, 0.0 }
 0x1cb   :  { %v1305_v61 = vadd.f32 %v1304_v29, %v1303_v57  ;;  %v1110_v13 = vadd.f32 %v1109_v42, %v1108_v15  ;;  %v7762_v30 = vpop.f32.mrf.mxu0  ;;  %1649 = vst.msk [vmem:[#allocation2 + $0x2b8] sm:$0x1] %vm1619_vm4, %v6564_v24  ;;  %1650 = vst.msk [vmem:[#allocation2 + $0x2d0] sm:$0x1] %vm1619_vm4, %v6564_v24 }
 0x1cc   :  { %v1306_v49 = vsel %vm1059_vm2, %v1218_v21, 0.0  ;;  %1651 = vst.msk [vmem:[#allocation2 + $0x2e8] sm:$0x1] %vm1619_vm4, %v6564_v24  ;;  %1652 = vst.msk [vmem:[#allocation2 + $0x300] sm:$0x1] %vm1619_vm4, %v6564_v24  ;;  %v1223_v48 = vmul.f32 %v7762_v30, %v7762_v30  ;;  %v1119_v57 = vsel %vm1059_vm2, %v7762_v30, 0.0 }
 0x1cd   :  { %v1307_v58 = vadd.f32 %v1306_v49, %v1305_v61  ;;  %v7771_v22 = vpop.f32.mrf.mxu0  ;;  %v1112_v9 = vadd.f32 %v1111_v59, %v1110_v13  ;;  %1653 = vst.msk [vmem:[#allocation2 + $0x318] sm:$0x1] %vm1619_vm4, %v6564_v24  ;;  %1654 = vst.msk [vmem:[#allocation2 + $0x330] sm:$0x1] %vm1619_vm4, %v6564_v24 }
 0x1ce   :  { %v7778_v19 = vmul.f32 %v7771_v22, %v7771_v22  ;;  %1657 = vst.msk [vmem:[#allocation2 + $0x29] sm:$0x1] %vm1619_vm4, %v6564_v24  ;;  %1658 = vst.msk [vmem:[#allocation2 + $0x41] sm:$0x1] %vm1619_vm4, %v6564_v24  ;;  %v1115_v37 = vsel %vm1059_vm2, %v7771_v22, 0.0  ;;  %v1316_v13 = vsel %vm1059_vm2, %v1223_v48, 0.0 }
 0x1cf   :  { %v7782_v7 = vadd.f32 %v1113_v56, %v1112_v9  ;;  %v7784_v34 = vadd.f32 %v1308_v53, %v1307_v58  ;;  %v7786_v52 = vpop.f32.mrf.mxu0  ;;  %1659 = vst.msk [vmem:[#allocation2 + $0x59] sm:$0x1] %vm1619_vm4, %v6564_v24  ;;  %1660 = vst.msk [vmem:[#allocation2 + $0x71] sm:$0x1] %vm1619_vm4, %v6564_v24 }
 0x1d0   :  { %1661 = vst.msk [vmem:[#allocation2 + $0x89] sm:$0x1] %vm1619_vm4, %v6564_v24  ;;  %1662 = vst.msk [vmem:[#allocation2 + $0xa1] sm:$0x1] %vm1619_vm4, %v6564_v24  ;;  %v1312_v2 = vsel %vm1059_vm2, %v7778_v19, 0.0  ;;  %v1224_v47 = vmul.f32 %v7786_v52, %v7786_v52  ;;  %v1121_v59 = vsel %vm1059_vm2, %v7786_v52, 0.0 }
 0x1d1   :  { %1663 = vst.msk [vmem:[#allocation2 + $0xb9] sm:$0x1] %vm1619_vm4, %v6564_v24  ;;  %1664 = vst.msk [vmem:[#allocation2 + $0xd1] sm:$0x1] %vm1619_vm4, %v6564_v24  ;;  %v1116_v39 = vadd.f32 %v1115_v37, %v7782_v7  ;;  %v1311_v55 = vadd.f32 %v1310_v33, %v7784_v34  ;;  %v7942_v4 = vpop.f32.mrf.mxu0 }
 0x1d2   :  { %1665 = vst.msk [vmem:[#allocation2 + $0xe9] sm:$0x1] %vm1619_vm4, %v6564_v24  ;;  %1666 = vst.msk [vmem:[#allocation2 + $0x101] sm:$0x1] %vm1619_vm4, %v6564_v24  ;;  %v1117_v35 = vsel %vm1059_vm2, %v7942_v4, 0.0  ;;  %v1318_v53 = vsel %vm1059_vm2, %v1224_v47, 0.0 }
 0x1d3   :  { %1667 = vst.msk [vmem:[#allocation2 + $0x119] sm:$0x1] %vm1619_vm4, %v6564_v24  ;;  %1668 = vst.msk [vmem:[#allocation2 + $0x131] sm:$0x1] %vm1619_vm4, %v6564_v24  ;;  %v1313_v38 = vadd.f32 %v1312_v2, %v1311_v55  ;;  %v1118_v40 = vadd.f32 %v1117_v35, %v1116_v39  ;;  %v7953_v15 = vpop.f32.mrf.mxu0 }
 0x1d4   :  { %1669 = vst.msk [vmem:[#allocation2 + $0x149] sm:$0x1] %vm1619_vm4, %v6564_v24  ;;  %1670 = vst.msk [vmem:[#allocation2 + $0x161] sm:$0x1] %vm1619_vm4, %v6564_v24  ;;  %v1227_v34 = vmul.f32 %v7953_v15, %v7953_v15  ;;  %v1127_v48 = vsel %vm1059_vm2, %v7953_v15, 0.0 }
 0x1d5   :  { %1671 = vst.msk [vmem:[#allocation2 + $0x179] sm:$0x1] %vm1619_vm4, %v6564_v24  ;;  %1672 = vst.msk [vmem:[#allocation2 + $0x191] sm:$0x1] %vm1619_vm4, %v6564_v24  ;;  %v1120_v42 = vadd.f32 %v1119_v57, %v1118_v40  ;;  %v7960_v61 = vpop.f32.mrf.mxu0 }
 0x1d6   :  { %1675 = vst.msk [vmem:[#allocation2 + $0x1d9] sm:$0x1] %vm1619_vm4, %v6564_v24  ;;  %1676 = vst.msk [vmem:[#allocation2 + $0x1f1] sm:$0x1] %vm1619_vm4, %v6564_v24  ;;  %v1225_v25 = vmul.f32 %v7960_v61, %v7960_v61  ;;  %v1123_v56 = vsel %vm1059_vm2, %v7960_v61, 0.0  ;;  %v1324_v57 = vsel %vm1059_vm2, %v1227_v34, 0.0 }
 0x1d7   :  { %1677 = vst.msk [vmem:[#allocation2 + $0x209] sm:$0x1] %vm1619_vm4, %v6564_v24  ;;  %1678 = vst.msk [vmem:[#allocation2 + $0x221] sm:$0x1] %vm1619_vm4, %v6564_v24  ;;  %v1122_v58 = vadd.f32 %v1121_v59, %v1120_v42  ;;  %v7967_v9 = vpop.f32.mrf.mxu0  ;;  %v1853_v42 = vld [vmem:[#allocation2 + $0x1b1] sm:$0xff] }
 0x1d8   :  { %1679 = vst.msk [vmem:[#allocation2 + $0x239] sm:$0x1] %vm1619_vm4, %v6564_v24  ;;  %1680 = vst.msk [vmem:[#allocation2 + $0x251] sm:$0x1] %vm1619_vm4, %v6564_v24  ;;  %v1320_v32 = vsel %vm1059_vm2, %v1225_v25, 0.0  ;;  %v1228_v2 = vmul.f32 %v7967_v9, %v7967_v9  ;;  %v1129_v47 = vsel %vm1059_vm2, %v7967_v9, 0.0 }
 0x1d9   :  { %1681 = vst.msk [vmem:[#allocation2 + $0x269] sm:$0x1] %vm1619_vm4, %v6564_v24  ;;  %1682 = vst.msk [vmem:[#allocation2 + $0x281] sm:$0x1] %vm1619_vm4, %v6564_v24  ;;  %v1124_v19 = vadd.f32 %v1123_v56, %v1122_v58  ;;  %v7972_v7 = vpop.f32.mrf.mxu0 }
 0x1da   :  { %1683 = vst.msk [vmem:[#allocation2 + $0x299] sm:$0x1] %vm1619_vm4, %v6564_v24  ;;  %1684 = vst.msk [vmem:[#allocation2 + $0x2b1] sm:$0x1] %vm1619_vm4, %v6564_v24  ;;  %v1125_v33 = vsel %vm1059_vm2, %v7972_v7, 0.0  ;;  %v1226_v37 = vmul.f32 %v7972_v7, %v7972_v7  ;;  %v1326_v58 = vsel %vm1059_vm2, %v1228_v2, 0.0 }
 0x1db   :  { %1685 = vst.msk [vmem:[#allocation2 + $0x2c9] sm:$0x1] %vm1619_vm4, %v6564_v24  ;;  %1686 = vst.msk [vmem:[#allocation2 + $0x2e1] sm:$0x1] %vm1619_vm4, %v6564_v24  ;;  %v1126_v39 = vadd.f32 %v1125_v33, %v1124_v19  ;;  %v7981_v55 = vpop.f32.mrf.mxu0 }
 0x1dc   :  { %1687 = vst.msk [vmem:[#allocation2 + $0x2f9] sm:$0x1] %vm1619_vm4, %v6564_v24  ;;  %1688 = vst.msk [vmem:[#allocation2 + $0x311] sm:$0x1] %vm1619_vm4, %v6564_v24  ;;  %v1322_v35 = vsel %vm1059_vm2, %v1226_v37, 0.0  ;;  %v1231_v34 = vmul.f32 %v7981_v55, %v7981_v55  ;;  %v1135_v2 = vsel %vm1059_vm2, %v7981_v55, 0.0 }
 0x1dd   :  { %1689 = vst.msk [vmem:[#allocation2 + $0x329] sm:$0x1] %vm1619_vm4, %v6564_v24  ;;  %1690 = vst.msk [vmem:[#allocation2 + $0x341] sm:$0x1] %vm1619_vm4, %v6564_v24  ;;  %v7988_v40 = vpop.f32.mrf.mxu0 }
 0x1de   :  { %1638 = vst.msk [vmem:[#allocation2 + $0x1b0] sm:$0x1] %vm1619_vm4, %v6564_v24  ;;  %1637 = vst.msk [vmem:[#allocation2 + $0x198] sm:$0x1] %vm1619_vm4, %v6564_v24 }
 0x1df   :  { %1655 = vst.msk [vmem:[#allocation2 + $0x348] sm:$0x1] %vm1619_vm4, %v6564_v24  ;;  %1673 = vst.msk [vmem:[#allocation2 + $0x1a9] sm:$0x1] %vm1619_vm4, %v6564_v24  ;;  %v7995_v25 = vpop.f32.mrf.mxu0 }
 0x1e0   :  { %1674 = vst.msk [vmem:[#allocation2 + $0x1c1] sm:$0x1] %vm1619_vm4, %v6564_v24  ;;  %1691 = vst.msk [vmem:[#allocation2 + $0x359] sm:$0x1] %vm1619_vm4, %v6564_v24  ;;  %v1222_v24 = vmul.f32 %v7942_v4, %v7942_v4 }
 0x1e1   :  { %11034 = vst [vmem:[#allocation3_spill] sm:$0xff] %v7981_v55  ;;  %11035 = vst [vmem:[#allocation4_spill] sm:$0xff] %v7995_v25 }
 0x1e2   :  { %v1314_v29 = vsel %vm1059_vm2, %v1222_v24, 0.0  ;;  %v1128_v24 = vadd.f32 %v1127_v48, %v1126_v39 }
 0x1e3   :  { %v1315_v21 = vadd.f32 %v1314_v29, %v1313_v38  ;;  %v1229_v29 = vmul.f32 %v7988_v40, %v7988_v40 }
 0x1e4   :  { %v1130_v59 = vadd.f32 %v1129_v47, %v1128_v24 }
 0x1e5   :  { %v1317_v49 = vadd.f32 %v1316_v13, %v1315_v21  ;;  %v1854_v21 = vld [vmem:[#allocation2 + $0x1b9] sm:$0xff] }
 0x1e7   :  { %v1319_v14 = vadd.f32 %v1318_v53, %v1317_v49  ;;  %v5565_v49 = vpack.i.bf16 %v1854_v21, %v1853_v42  ;;  %v1131_v53 = vsel %vm1059_vm2, %v7988_v40, 0.0  ;;  %v1137_v42 = vsel %vm1059_vm2, %v7995_v25, 0.0 }
 0x1e8   :  { %v1132_v56 = vadd.f32 %v1131_v53, %v1130_v59 }
 0x1e9   :  { %v1321_v41 = vadd.f32 %v1320_v32, %v1319_v14  ;;  %v8000_v14 = vpop.f32.mrf.mxu0  ;;  %5566 = vrot.lane.b32.xlu0 %v5565_v49, %s6565_s1  ;;  %v1328_v32 = vsel %vm1059_vm2, %v1229_v29, 0.0  ;;  %v1332_v29 = vsel %vm1059_vm2, %v1231_v34, 0.0 }
 0x1ea   :  { %v1133_v33 = vsel %vm1059_vm2, %v8000_v14, 0.0  ;;  %v1230_v37 = vmul.f32 %v8000_v14, %v8000_v14 }
 0x1eb   :  { %v1323_v38 = vadd.f32 %v1322_v35, %v1321_v41  ;;  %v1134_v39 = vadd.f32 %v1133_v33, %v1132_v56  ;;  %v8010_v48 = vpop.f32.mrf.mxu0  ;;  %v1232_v35 = vmul.f32 %v7995_v25, %v7995_v25 }
 0x1ec   :  { %11036 = vst [vmem:[#allocation8_spill] sm:$0xff] %v8010_v48  ;;  %v1330_v24 = vsel %vm1059_vm2, %v1230_v37, 0.0  ;;  %v1235_v34 = vmul.f32 %v8010_v48, %v8010_v48 }
 0x1ed   :  { %v1325_v13 = vadd.f32 %v1324_v57, %v1323_v38  ;;  %v1136_v38 = vadd.f32 %v1135_v2, %v1134_v39  ;;  %v8017_v47 = vpop.f32.mrf.mxu0 }
 0x1ee   :  { %11037 = vst [vmem:[#allocation9_spill] sm:$0xff] %v8017_v47  ;;  %v1233_v21 = vmul.f32 %v8017_v47, %v8017_v47  ;;  %v1139_v53 = vsel %vm1059_vm2, %v8017_v47, 0.0 }
 0x1ef   :  { %v1327_v19 = vadd.f32 %v1326_v58, %v1325_v13  ;;  %v1138_v59 = vadd.f32 %v1137_v42, %v1136_v38  ;;  %v8024_v49 = vpop.f32.mrf.mxu0  ;;  %v1334_v58 = vsel %vm1059_vm2, %v1232_v35, 0.0 }
 0x1f0   :  { %11038 = vst [vmem:[#allocation5_spill] sm:$0xff] %v8024_v49  ;;  %v1336_v33 = vsel %vm1059_vm2, %v1233_v21, 0.0  ;;  %v1236_v38 = vmul.f32 %v8024_v49, %v8024_v49 }
 0x1f1   :  { %v1329_v41 = vadd.f32 %v1328_v32, %v1327_v19  ;;  %v1140_v56 = vadd.f32 %v1139_v53, %v1138_v59  ;;  %v8029_v32 = vpop.f32.mrf.mxu0  ;;  %v1145_v59 = vsel %vm1059_vm2, %v8024_v49, 0.0 }
 0x1f2   :  { %11039 = vst [vmem:[#allocation10_spill] sm:$0xff] %v8029_v32  ;;  %v1141_v37 = vsel %vm1059_vm2, %v8029_v32, 0.0 }
 0x1f3   :  { %v1331_v57 = vadd.f32 %v1330_v24, %v1329_v41  ;;  %v1234_v41 = vmul.f32 %v8029_v32, %v8029_v32  ;;  %v1142_v2 = vadd.f32 %v1141_v37, %v1140_v56  ;;  %v8038_v35 = vpop.f32.mrf.mxu0  ;;  %v1143_v24 = vsel %vm1059_vm2, %v8010_v48, 0.0  ;;  %v1886_v37 = vld [vmem:[#allocation2 + $0xa] sm:$0xff]  ;;  %v2172_v48 = vld [vmem:[#allocation2 + $0x198] sm:$0xff] }
 0x1f4   :  { %11040 = vst [vmem:[#allocation11_spill] sm:$0xff] %v8038_v35 }
 0x1f5   :  { %v1333_v13 = vadd.f32 %v1332_v29, %v1331_v57  ;;  %v1338_v57 = vsel %vm1059_vm2, %v1234_v41, 0.0  ;;  %v1144_v29 = vadd.f32 %v1143_v24, %v1142_v2  ;;  %v8045_v21 = vpop.f32.mrf.mxu0  ;;  %v1342_v41 = vsel %vm1059_vm2, %v1236_v38, 0.0 }
 0x1f6   :  { %11041 = vst [vmem:[#allocation6_spill] sm:$0xff] %v8045_v21 }
 0x1f7   :  { %v1335_v19 = vadd.f32 %v1334_v58, %v1333_v13  ;;  %v1340_v13 = vsel %vm1059_vm2, %v1235_v34, 0.0  ;;  %v1237_v58 = vmul.f32 %v8045_v21, %v8045_v21  ;;  %v1146_v56 = vadd.f32 %v1145_v59, %v1144_v29  ;;  %v1917_v29 = vld [vmem:[#allocation2 + $0x1b2] sm:$0xff] }
 0x1f8   :  { %v1239_v34 = vmul.f32 %v8038_v35, %v8038_v35 }
 0x1f9   :  { %v1337_v39 = vadd.f32 %v1336_v33, %v1335_v19  ;;  %v8052_v19 = vpop.f32.mrf.mxu0  ;;  %v1885_v33 = vld [vmem:[#allocation2 + $0x2] sm:$0xff] }
 0x1fa   :  { %11042 = vst [vmem:[#allocation7_spill] sm:$0xff] %v8052_v19  ;;  %v5570_v2 = vpack.i.bf16 %v1886_v37, %v1885_v33  ;;  %v1918_v37 = vld [vmem:[#allocation2 + $0x1ba] sm:$0xff] }
 0x1fb   :  { %v1339_v42 = vadd.f32 %v1338_v57, %v1337_v39  ;;  %v1147_v39 = vsel %vm1059_vm2, %v8045_v21, 0.0  ;;  %v8059_v49 = vpop.f32.mrf.mxu0  ;;  %v1151_v21 = vsel %vm1059_vm2, %v8038_v35, 0.0 }
 0x1fc   :  { %v1148_v24 = vadd.f32 %v1147_v39, %v1146_v56  ;;  %11043 = vst [vmem:[#allocation12_spill] sm:$0xff] %v8059_v49  ;;  %v1149_v59 = vsel %vm1059_vm2, %v8059_v49, 0.0  ;;  %v1238_v38 = vmul.f32 %v8059_v49, %v8059_v49  ;;  %5571 = vrot.lane.b32.xlu0 %v5570_v2, %s6566_s2  ;;  %v5575_v39 = vpack.i.bf16 %v1918_v37, %v1917_v29 }
 0x1fd   :  { %v1341_v53 = vadd.f32 %v1340_v13, %v1339_v42  ;;  %v2173_v42 = vld [vmem:[#allocation2 + $0x1a0] sm:$0xff]  ;;  %v1344_v13 = vsel %vm1059_vm2, %v1237_v58, 0.0  ;;  %v1240_v58 = vmul.f32 %v8052_v19, %v8052_v19 }
 0x1fe   :  { %v5580_v33 = vpack.i.bf16 %v2173_v42, %v2172_v48  ;;  %v1346_v32 = vsel %vm1059_vm2, %v1238_v38, 0.0  ;;  %v1348_v48 = vsel %vm1059_vm2, %v1239_v34, 0.0 }
 0x1ff   :  { %v1343_v57 = vadd.f32 %v1342_v41, %v1341_v53  ;;  %v1150_v53 = vadd.f32 %v1149_v59, %v1148_v24  ;;  %v8067_v41 = vpop.f32.mrf.mxu0  ;;  %v1153_v24 = vsel %vm1059_vm2, %v8052_v19, 0.0  ;;  %v1350_v59 = vsel %vm1059_vm2, %v1240_v58, 0.0 }
 0x200   :  { %11044 = vst [vmem:[#allocation13_spill] sm:$0xff] %v8067_v41  ;;  %5581 = vrot.lane.b32.xlu1 %v5580_v33, %s6566_s2  ;;  %5576 = vrot.lane.b32.xlu0 %v5575_v39, %s6566_s2  ;;  %v1243_v33 = vmul.f32 %v8067_v41, %v8067_v41  ;;  %v1159_v58 = vsel %vm1059_vm2, %v8067_v41, 0.0 }
 0x201   :  { %v1345_v56 = vadd.f32 %v1344_v13, %v1343_v57  ;;  %v1152_v49 = vadd.f32 %v1151_v21, %v1150_v53  ;;  %v8075_v2 = vpop.f32.mrf.mxu0 }
 0x202   :  { %11045 = vst [vmem:[#allocation14_spill] sm:$0xff] %v8075_v2  ;;  %v1241_v57 = vmul.f32 %v8075_v2, %v8075_v2 }
 0x203   :  { %v1347_v47 = vadd.f32 %v1346_v32, %v1345_v56  ;;  %v1154_v29 = vadd.f32 %v1153_v24, %v1152_v49  ;;  %v8083_v13 = vpop.f32.mrf.mxu0  ;;  %v1155_v32 = vsel %vm1059_vm2, %v8075_v2, 0.0 }
 0x204   :  { %11046 = vst [vmem:[#allocation15_spill] sm:$0xff] %v8083_v13  ;;  %v1352_v37 = vsel %vm1059_vm2, %v1241_v57, 0.0 }
 0x205   :  { %v1349_v42 = vadd.f32 %v1348_v48, %v1347_v47  ;;  %v1156_v21 = vadd.f32 %v1155_v32, %v1154_v29  ;;  %v8088_v34 = vpop.f32.mrf.mxu0  ;;  %v1244_v48 = vmul.f32 %v8083_v13, %v8083_v13  ;;  %v1161_v32 = vsel %vm1059_vm2, %v8083_v13, 0.0 }
 0x206   :  { %11047 = vst [vmem:[#allocation16_spill] sm:$0xff] %v8088_v34  ;;  %v1157_v47 = vsel %vm1059_vm2, %v8088_v34, 0.0  ;;  %v1242_v49 = vmul.f32 %v8088_v34, %v8088_v34 }
 0x207   :  { %v1351_v38 = vadd.f32 %v1350_v59, %v1349_v42  ;;  %v1158_v53 = vadd.f32 %v1157_v47, %v1156_v21  ;;  %v8097_v39 = vpop.f32.mrf.mxu0  ;;  %v1356_v59 = vsel %vm1059_vm2, %v1243_v33, 0.0  ;;  %v1358_v41 = vsel %vm1059_vm2, %v1244_v48, 0.0 }
 0x208   :  { %11048 = vst [vmem:[#allocation17_spill] sm:$0xff] %v8097_v39  ;;  %v1354_v24 = vsel %vm1059_vm2, %v1242_v49, 0.0  ;;  %v1247_v33 = vmul.f32 %v8097_v39, %v8097_v39 }
 0x209   :  { %v1353_v56 = vadd.f32 %v1352_v37, %v1351_v38  ;;  %v1160_v42 = vadd.f32 %v1159_v58, %v1158_v53  ;;  %v8104_v29 = vpop.f32.mrf.mxu0 }
 0x20a   :  { %11049 = vst [vmem:[#allocation18_spill] sm:$0xff] %v8104_v29  ;;  %v1245_v21 = vmul.f32 %v8104_v29, %v8104_v29  ;;  %v1163_v49 = vsel %vm1059_vm2, %v8104_v29, 0.0  ;;  %v1364_v13 = vsel %vm1059_vm2, %v1247_v33, 0.0 }
 0x20b   :  { %v1355_v57 = vadd.f32 %v1354_v24, %v1353_v56  ;;  %v1162_v37 = vadd.f32 %v1161_v32, %v1160_v42  ;;  %v8111_v47 = vpop.f32.mrf.mxu0 }
 0x20c   :  { %11050 = vst [vmem:[#allocation19_spill] sm:$0xff] %v8111_v47  ;;  %v1360_v24 = vsel %vm1059_vm2, %v1245_v21, 0.0 }
 0x20d   :  { %v1357_v38 = vadd.f32 %v1356_v59, %v1355_v57  ;;  %v1164_v56 = vadd.f32 %v1163_v49, %v1162_v37  ;;  %v8116_v58 = vpop.f32.mrf.mxu0 }
 0x20e   :  { %11051 = vst [vmem:[#allocation20_spill] sm:$0xff] %v8116_v58  ;;  %v1165_v57 = vsel %vm1059_vm2, %v8116_v58, 0.0  ;;  %v1246_v42 = vmul.f32 %v8116_v58, %v8116_v58 }
 0x20f   :  { %v1359_v53 = vadd.f32 %v1358_v41, %v1357_v38  ;;  %v1166_v48 = vadd.f32 %v1165_v57, %v1164_v56  ;;  %v8125_v32 = vpop.f32.mrf.mxu0  ;;  %v1167_v41 = vsel %vm1059_vm2, %v8097_v39, 0.0  ;;  %v1248_v38 = vmul.f32 %v8111_v47, %v8111_v47 }
 0x210   :  { %11052 = vst [vmem:[#allocation21_spill] sm:$0xff] %v8125_v32  ;;  %v1362_v37 = vsel %vm1059_vm2, %v1246_v42, 0.0  ;;  %v1251_v33 = vmul.f32 %v8125_v32, %v8125_v32 }
 0x211   :  { %v1361_v59 = vadd.f32 %v1360_v24, %v1359_v53  ;;  %v1168_v49 = vadd.f32 %v1167_v41, %v1166_v48  ;;  %v8132_v29 = vpop.f32.mrf.mxu0  ;;  %v1169_v53 = vsel %vm1059_vm2, %v8111_v47, 0.0  ;;  %v1366_v58 = vsel %vm1059_vm2, %v1248_v38, 0.0 }
 0x212   :  { %11053 = vst [vmem:[#allocation22_spill] sm:$0xff] %v8132_v29  ;;  %v1249_v56 = vmul.f32 %v8132_v29, %v8132_v29  ;;  %v1171_v42 = vsel %vm1059_vm2, %v8132_v29, 0.0  ;;  %v1372_v47 = vsel %vm1059_vm2, %v1251_v33, 0.0 }
 0x213   :  { %v1363_v21 = vadd.f32 %v1362_v37, %v1361_v59  ;;  %v1170_v57 = vadd.f32 %v1169_v53, %v1168_v49  ;;  %v8139_v39 = vpop.f32.mrf.mxu0 }
 0x214   :  { %11054 = vst [vmem:[#allocation23_spill] sm:$0xff] %v8139_v39  ;;  %v1368_v37 = vsel %vm1059_vm2, %v1249_v56, 0.0 }
 0x215   :  { %v1365_v24 = vadd.f32 %v1364_v13, %v1363_v21  ;;  %v1172_v59 = vadd.f32 %v1171_v42, %v1170_v57  ;;  %v8144_v41 = vpop.f32.mrf.mxu0 }
 0x216   :  { %11055 = vst [vmem:[#allocation24_spill] sm:$0xff] %v8144_v41  ;;  %v1173_v13 = vsel %vm1059_vm2, %v8144_v41, 0.0  ;;  %v1250_v49 = vmul.f32 %v8144_v41, %v8144_v41 }
 0x217   :  { %v1367_v48 = vadd.f32 %v1366_v58, %v1365_v24  ;;  %v1174_v38 = vadd.f32 %v1173_v13, %v1172_v59  ;;  %v8153_v53 = vpop.f32.mrf.mxu0  ;;  %v1175_v58 = vsel %vm1059_vm2, %v8125_v32, 0.0  ;;  %v1252_v24 = vmul.f32 %v8139_v39, %v8139_v39 }
 0x218   :  { %11056 = vst [vmem:[#allocation25_spill] sm:$0xff] %v8153_v53  ;;  %v1370_v57 = vsel %vm1059_vm2, %v1250_v49, 0.0  ;;  %v1255_v33 = vmul.f32 %v8153_v53, %v8153_v53 }
 0x219   :  { %v1369_v21 = vadd.f32 %v1368_v37, %v1367_v48  ;;  %v1176_v42 = vadd.f32 %v1175_v58, %v1174_v38  ;;  %v8160_v29 = vpop.f32.mrf.mxu0  ;;  %v1177_v48 = vsel %vm1059_vm2, %v8139_v39, 0.0  ;;  %v1374_v41 = vsel %vm1059_vm2, %v1252_v24, 0.0 }
 0x21a   :  { %11057 = vst [vmem:[#allocation26_spill] sm:$0xff] %v8160_v29  ;;  %v1253_v59 = vmul.f32 %v8160_v29, %v8160_v29  ;;  %v1179_v49 = vsel %vm1059_vm2, %v8160_v29, 0.0 }
 0x21b   :  { %v1371_v56 = vadd.f32 %v1370_v57, %v1369_v21  ;;  %v1178_v13 = vadd.f32 %v1177_v48, %v1176_v42  ;;  %v8167_v32 = vpop.f32.mrf.mxu0 }
 0x21c   :  { %11058 = vst [vmem:[#allocation27_spill] sm:$0xff] %v8167_v32  ;;  %v1376_v57 = vsel %vm1059_vm2, %v1253_v59, 0.0  ;;  %v1256_v24 = vmul.f32 %v8167_v32, %v8167_v32  ;;  %v1185_v59 = vsel %vm1059_vm2, %v8167_v32, 0.0 }
 0x21d   :  { %v1373_v37 = vadd.f32 %v1372_v47, %v1371_v56  ;;  %v1180_v21 = vadd.f32 %v1179_v49, %v1178_v13  ;;  %v1047_v58 = vpop.f32.mrf.mxu0  ;;  %v1183_v56 = vsel %vm1059_vm2, %v8153_v53, 0.0  ;;  %v1380_v13 = vsel %vm1059_vm2, %v1255_v33, 0.0 }
 0x21e   :  { %v1181_v39 = vsel %vm1059_vm2, %v1047_v58, 0.0  ;;  %v1254_v34 = vmul.f32 %v1047_v58, %v1047_v58 }
 0x21f   :  { %v1375_v38 = vadd.f32 %v1374_v41, %v1373_v37  ;;  %v1182_v42 = vadd.f32 %v1181_v39, %v1180_v21 }
 0x220   :  { %v1378_v48 = vsel %vm1059_vm2, %v1254_v34, 0.0 }
 0x221   :  { %v1377_v47 = vadd.f32 %v1376_v57, %v1375_v38  ;;  %v1184_v41 = vadd.f32 %v1183_v56, %v1182_v42  ;;  %v1382_v38 = vsel %vm1059_vm2, %v1256_v24, 0.0 }
 0x223   :  { %v1379_v37 = vadd.f32 %v1378_v48, %v1377_v47  ;;  %v1186_v49 = vadd.f32 %v1185_v59, %v1184_v41 }
 0x225   :  { %v1381_v29 = vadd.f32 %v1380_v13, %v1379_v37  ;;  %v1187_v39 = vrot.slane %v1186_v49, 4 }
 0x227   :  { %v1383_v21 = vadd.f32 %v1382_v38, %v1381_v29  ;;  %v1188_v57 = vadd.f32 %v1187_v39, %v1186_v49  ;;  %v1394_v29 = vld [vmem:[%s10877_s4] sm:$0x1] }
 0x229   :  { %v1384_v53 = vrot.slane %v1383_v21, 4  ;;  %v1189_v2 = vrot.slane %v1188_v57, 2 }
 0x22b   :  { %v1385_v19 = vadd.f32 %v1384_v53, %v1383_v21  ;;  %v1190_v35 = vadd.f32 %v1189_v2, %v1188_v57  ;;  %v1398_v2 = vld [vmem:[%s10878_s5] sm:$0x1]  ;;  %v11060_v57 = vld [vmem:[#allocation4_spill] sm:$0xff] }
 0x22c   :  { %v11059_v21 = vld [vmem:[#allocation3_spill] sm:$0xff] }
 0x22d   :  { %v1386_v25 = vrot.slane %v1385_v19, 2  ;;  %v1191_v34 = vrot.slane %v1190_v35, 1 }
 0x22f   :  { %v1387_v42 = vadd.f32 %v1386_v25, %v1385_v19  ;;  %v1192_v47 = vadd.f32 %v1191_v34, %v1190_v35  ;;  %v11061_v34 = vld [vmem:[#allocation9_spill] sm:$0xff] }
 0x231   :  { %v1388_v56 = vrot.slane %v1387_v42, 1  ;;  %v1390_v48 = vmul.f32 0.001953125, %v1192_v47  ;;  %v11063_v47 = vld [vmem:[#allocation8_spill] sm:$0xff] }
 0x233   :  { %v1389_v33 = vadd.f32 %v1388_v56, %v1387_v42  ;;  %v1392_v32 = vmul.f32 %v1390_v48, %v1390_v48  ;;  %v11062_v42 = vld [vmem:[#allocation10_spill] sm:$0xff]  ;;  %v11064_v56 = vld [vmem:[#allocation5_spill] sm:$0xff] }
 0x235   :  { %v1391_v55 = vmul.f32 0.001953125, %v1389_v33 }
 0x237   :  { %v1393_v41 = vsub.f32 %v1391_v55, %v1392_v32 }
 0x239   :  { %v1395_v37 = vadd.f32 1e-05, %v1393_v41 }
 0x23b   :  { %6540 = vrsqrt.f32 %v1395_v37  ;;  %v11066_v37 = vld [vmem:[#allocation12_spill] sm:$0xff] }
 0x248   :  { %v6541_v24 = vpop.eup %6540 }
 0x249   :  { %v1397_v13 = vmul.f32 %v6541_v24, %v1394_v29  ;;  %v11067_v24 = vld [vmem:[#allocation11_spill] sm:$0xff] }
 0x24b   :  { %v1399_v25 = vmul.f32 %v1397_v13, %v1390_v48  ;;  %v8192_v35 = vrot.slane %v1397_v13, %v7255_v31  ;;  %v11065_v48 = vld [vmem:[#allocation6_spill] sm:$0xff] }
 0x24d   :  { %v1400_v19 = vsub.f32 %v1398_v2, %v1399_v25  ;;  %v1468_v53 = vmul.f32 %v8192_v35, %v1047_v58  ;;  %v8197_v55 = vmul.f32 %v8192_v35, %v7557_v27  ;;  %v8201_v32 = vmul.f32 %v8192_v35, %v7563_v23  ;;  %v11068_v2 = vld [vmem:[#allocation7_spill] sm:$0xff] }
 0x24e   :  { %v8205_v59 = vmul.f32 %v7555_v1, %v8192_v35  ;;  %v8209_v49 = vmul.f32 %v7559_v50, %v8192_v35  ;;  %v8213_v38 = vmul.f32 %v8192_v35, %v7581_v0  ;;  %v8217_v27 = vmul.f32 %v8192_v35, %v7593_v44 }
 0x24f   :  { %v8220_v58 = vrot.slane %v1400_v19, %v7255_v31  ;;  %v8224_v23 = vmul.f32 %v7573_v8, %v8192_v35  ;;  %v8228_v1 = vmul.f32 %v7588_v26, %v8192_v35  ;;  %v8232_v50 = vmul.f32 %v8192_v35, %v7609_v6  ;;  %v11069_v19 = vld [vmem:[#allocation14_spill] sm:$0xff] }
 0x250   :  { %v8236_v0 = vmul.f32 %v8192_v35, %v7621_v46  ;;  %v8240_v31 = vmul.f32 %v7602_v60, %v8192_v35  ;;  %v8244_v8 = vmul.f32 %v7616_v12, %v8192_v35  ;;  %v8248_v26 = vmul.f32 %v8192_v35, %v7637_v17 }
 0x251   :  { %v1538_v44 = vadd.f32 %v8220_v58, %v1468_v53  ;;  %v8253_v6 = vmul.f32 %v8192_v35, %v7649_v16  ;;  %v8257_v46 = vmul.f32 %v7630_v36, %v8192_v35  ;;  %v8261_v60 = vmul.f32 %v7644_v20, %v8192_v35 }
 0x252   :  { %v8265_v12 = vmul.f32 %v8192_v35, %v7665_v3  ;;  %v8269_v17 = vmul.f32 %v8192_v35, %v7677_v18  ;;  %v8273_v16 = vmul.f32 %v7658_v28, %v8192_v35  ;;  %v8277_v36 = vmul.f32 %v7672_v5, %v8192_v35 }
 0x253   :  { %v1602_v39 = vmax.f32 %v1538_v44, 0.0  ;;  %v8281_v20 = vmul.f32 %v8192_v35, %v7693_v63  ;;  %v8285_v3 = vmul.f32 %v8192_v35, %v7705_v11  ;;  %v8289_v18 = vmul.f32 %v7686_v51, %v8192_v35  ;;  %v11070_v44 = vld [vmem:[#allocation16_spill] sm:$0xff] }
 0x254   :  { %v8293_v28 = vmul.f32 %v7700_v54, %v8192_v35  ;;  %v8297_v5 = vmul.f32 %v8192_v35, %v7721_v43  ;;  %v8301_v63 = vmul.f32 %v8192_v35, %v7753_v62  ;;  %v8305_v11 = vmul.f32 %v7714_v10, %v8192_v35 }
 0x255   :  { %1754 = vst.msk [vmem:[#allocation2 + $0x321] sm:$0xff] %vm1059_vm2, %v1602_v39  ;;  %v8310_v51 = vmul.f32 %v7728_v45, %v8192_v35  ;;  %v8314_v54 = vmul.f32 %v8192_v35, %v7771_v22  ;;  %v8318_v43 = vmul.f32 %v8192_v35, %v7942_v4  ;;  %v8322_v62 = vmul.f32 %v7762_v30, %v8192_v35 }
 0x256   :  { %v8326_v10 = vmul.f32 %v7786_v52, %v8192_v35  ;;  %v8330_v45 = vmul.f32 %v8192_v35, %v7960_v61  ;;  %v8334_v22 = vmul.f32 %v8192_v35, %v7972_v7  ;;  %v8338_v4 = vmul.f32 %v7953_v15, %v8192_v35 }
 0x257   :  { %v8342_v30 = vmul.f32 %v7967_v9, %v8192_v35  ;;  %v8346_v52 = vmul.f32 %v8192_v35, %v7988_v40  ;;  %v8350_v61 = vmul.f32 %v8192_v35, %v8000_v14  ;;  %v8354_v7 = vmul.f32 %v11059_v21, %v8192_v35  ;;  %v11071_v21 = vld [vmem:[#allocation13_spill] sm:$0xff] }
 0x258   :  { %v8358_v15 = vmul.f32 %v11060_v57, %v8192_v35  ;;  %v8362_v9 = vmul.f32 %v8192_v35, %v11061_v34  ;;  %v8366_v40 = vmul.f32 %v8192_v35, %v11062_v42  ;;  %v8370_v14 = vmul.f32 %v11063_v47, %v8192_v35  ;;  %v11072_v34 = vld [vmem:[#allocation15_spill] sm:$0xff]  ;;  %v11074_v47 = vld [vmem:[#allocation18_spill] sm:$0xff] }
 0x259   :  { %v8374_v33 = vmul.f32 %v11064_v56, %v8192_v35  ;;  %v8378_v41 = vmul.f32 %v8192_v35, %v11065_v48  ;;  %v8382_v29 = vmul.f32 %v8192_v35, %v11066_v37  ;;  %v8386_v13 = vmul.f32 %v11067_v24, %v8192_v35  ;;  %v11076_v48 = vld [vmem:[#allocation20_spill] sm:$0xff]  ;;  %v11078_v24 = vld [vmem:[#allocation17_spill] sm:$0xff] }
 0x25a   :  { %v8390_v25 = vmul.f32 %v11068_v2, %v8192_v35  ;;  %v8394_v53 = vmul.f32 %v8192_v35, %v11069_v19  ;;  %v8398_v39 = vmul.f32 %v8192_v35, %v11070_v44  ;;  %v8402_v57 = vmul.f32 %v11071_v21, %v8192_v35  ;;  %v11080_v19 = vld [vmem:[#allocation19_spill] sm:$0xff]  ;;  %v11082_v21 = vld [vmem:[#allocation22_spill] sm:$0xff] }
 0x25b   :  { %v8406_v42 = vmul.f32 %v11072_v34, %v8192_v35  ;;  %v8410_v56 = vmul.f32 %v8192_v35, %v11074_v47  ;;  %v8414_v37 = vmul.f32 %v8192_v35, %v11076_v48  ;;  %v8418_v2 = vmul.f32 %v11078_v24, %v8192_v35 }
 0x25c   :  { %v8422_v44 = vmul.f32 %v11080_v19, %v8192_v35  ;;  %v8426_v34 = vmul.f32 %v8192_v35, %v11082_v21 }
 0x25d   :  { %11073 = vst [vmem:[#allocation3_spill] sm:$0xff] %v8406_v42  ;;  %11075 = vst [vmem:[#allocation4_spill] sm:$0xff] %v8410_v56  ;;  %v11084_v42 = vld [vmem:[#allocation24_spill] sm:$0xff]  ;;  %v11085_v56 = vld [vmem:[#allocation21_spill] sm:$0xff] }
 0x25e   :  { %11077 = vst [vmem:[#allocation9_spill] sm:$0xff] %v8414_v37  ;;  %11079 = vst [vmem:[#allocation10_spill] sm:$0xff] %v8418_v2  ;;  %v8430_v47 = vmul.f32 %v8192_v35, %v11084_v42  ;;  %v8434_v48 = vmul.f32 %v11085_v56, %v8192_v35  ;;  %v11086_v37 = vld [vmem:[#allocation23_spill] sm:$0xff]  ;;  %v11087_v2 = vld [vmem:[#allocation26_spill] sm:$0xff]  ;;  %v8454_v56 = vadd.f32 %v8220_v58, %v8197_v55 }
 0x25f   :  { %11081 = vst [vmem:[#allocation8_spill] sm:$0xff] %v8422_v44  ;;  %11083 = vst [vmem:[#allocation5_spill] sm:$0xff] %v8426_v34  ;;  %v8438_v24 = vmul.f32 %v11086_v37, %v8192_v35  ;;  %v8442_v19 = vmul.f32 %v8192_v35, %v11087_v2  ;;  %v11088_v44 = vld [vmem:[#allocation25_spill] sm:$0xff]  ;;  %v11089_v34 = vld [vmem:[#allocation27_spill] sm:$0xff]  ;;  %v8458_v37 = vadd.f32 %v8220_v58, %v8201_v32 }
 0x260   :  { %v8446_v21 = vmul.f32 %v11088_v44, %v8192_v35  ;;  %v8450_v42 = vmul.f32 %v11089_v34, %v8192_v35  ;;  %v8462_v2 = vadd.f32 %v8220_v58, %v8205_v59  ;;  %v8466_v44 = vadd.f32 %v8220_v58, %v8209_v49 }
 0x261   :  { %v8470_v35 = vadd.f32 %v8220_v58, %v8213_v38  ;;  %v8474_v55 = vadd.f32 %v8220_v58, %v8217_v27  ;;  %v8478_v32 = vadd.f32 %v8220_v58, %v8224_v23  ;;  %v8482_v59 = vadd.f32 %v8220_v58, %v8228_v1 }
 0x262   :  { %v8486_v49 = vadd.f32 %v8220_v58, %v8232_v50  ;;  %v8490_v38 = vadd.f32 %v8220_v58, %v8236_v0  ;;  %v8494_v27 = vadd.f32 %v8220_v58, %v8240_v31  ;;  %v8498_v23 = vadd.f32 %v8220_v58, %v8244_v8 }
 0x263   :  { %v8502_v1 = vadd.f32 %v8220_v58, %v8248_v26  ;;  %v8506_v50 = vadd.f32 %v8220_v58, %v8253_v6  ;;  %v8510_v0 = vadd.f32 %v8220_v58, %v8257_v46  ;;  %v8514_v31 = vadd.f32 %v8220_v58, %v8261_v60 }
 0x264   :  { %v8518_v8 = vadd.f32 %v8220_v58, %v8265_v12  ;;  %v8522_v26 = vadd.f32 %v8220_v58, %v8269_v17  ;;  %v8526_v6 = vadd.f32 %v8220_v58, %v8273_v16  ;;  %v8530_v46 = vadd.f32 %v8220_v58, %v8277_v36  ;;  %v11095_v34 = vld [vmem:[#allocation3_spill] sm:$0xff] }
 0x265   :  { %v8534_v60 = vadd.f32 %v8220_v58, %v8281_v20  ;;  %v8538_v12 = vadd.f32 %v8220_v58, %v8285_v3  ;;  %v8542_v17 = vadd.f32 %v8220_v58, %v8289_v18  ;;  %v8546_v16 = vadd.f32 %v8220_v58, %v8293_v28 }
 0x266   :  { %v8550_v36 = vadd.f32 %v8220_v58, %v8297_v5  ;;  %v8554_v20 = vadd.f32 %v8220_v58, %v8301_v63  ;;  %v8558_v3 = vadd.f32 %v8220_v58, %v8305_v11  ;;  %v8562_v18 = vadd.f32 %v8220_v58, %v8310_v51 }
 0x267   :  { %v8566_v28 = vadd.f32 %v8220_v58, %v8314_v54  ;;  %v8570_v5 = vadd.f32 %v8220_v58, %v8318_v43  ;;  %v8574_v63 = vadd.f32 %v8220_v58, %v8322_v62  ;;  %v8578_v11 = vadd.f32 %v8220_v58, %v8326_v10 }
 0x268   :  { %v8582_v51 = vadd.f32 %v8220_v58, %v8330_v45  ;;  %v8586_v54 = vadd.f32 %v8220_v58, %v8334_v22  ;;  %v8590_v43 = vadd.f32 %v8220_v58, %v8338_v4  ;;  %v8594_v62 = vadd.f32 %v8220_v58, %v8342_v30 }
 0x269   :  { %v8598_v10 = vadd.f32 %v8220_v58, %v8346_v52  ;;  %v8602_v45 = vadd.f32 %v8220_v58, %v8350_v61  ;;  %v8606_v22 = vadd.f32 %v8220_v58, %v8354_v7  ;;  %v8610_v4 = vadd.f32 %v8220_v58, %v8358_v15 }
 0x26a   :  { %v8614_v30 = vadd.f32 %v8220_v58, %v8362_v9  ;;  %v8618_v52 = vadd.f32 %v8220_v58, %v8366_v40  ;;  %v8622_v61 = vadd.f32 %v8220_v58, %v8370_v14  ;;  %v8626_v7 = vadd.f32 %v8220_v58, %v8374_v33 }
 0x26b   :  { %v8630_v15 = vadd.f32 %v8220_v58, %v8378_v41  ;;  %v8634_v9 = vadd.f32 %v8220_v58, %v8382_v29  ;;  %v8638_v40 = vadd.f32 %v8220_v58, %v8386_v13  ;;  %v8642_v14 = vadd.f32 %v8220_v58, %v8390_v25 }
 0x26c   :  { %v8646_v33 = vadd.f32 %v8220_v58, %v8394_v53  ;;  %v8650_v41 = vadd.f32 %v8220_v58, %v8398_v39  ;;  %v8654_v29 = vadd.f32 %v8220_v58, %v8402_v57  ;;  %v8658_v13 = vadd.f32 %v8220_v58, %v11095_v34 }
 0x26d   :  { %11090 = vst [vmem:[#allocation6_spill] sm:$0xff] %v8638_v40  ;;  %11091 = vst [vmem:[#allocation12_spill] sm:$0xff] %v8642_v14  ;;  %v11096_v40 = vld [vmem:[#allocation4_spill] sm:$0xff]  ;;  %v11097_v14 = vld [vmem:[#allocation9_spill] sm:$0xff] }
 0x26e   :  { %11092 = vst [vmem:[#allocation11_spill] sm:$0xff] %v8646_v33  ;;  %11093 = vst [vmem:[#allocation7_spill] sm:$0xff] %v8650_v41  ;;  %v8662_v25 = vadd.f32 %v8220_v58, %v11096_v40  ;;  %v8666_v53 = vadd.f32 %v8220_v58, %v11097_v14  ;;  %v11098_v33 = vld [vmem:[#allocation10_spill] sm:$0xff]  ;;  %v11099_v41 = vld [vmem:[#allocation8_spill] sm:$0xff]  ;;  %v8682_v40 = vadd.f32 %v8220_v58, %v8430_v47 }
 0x26f   :  { %11094 = vst [vmem:[#allocation14_spill] sm:$0xff] %v8654_v29  ;;  %v8670_v39 = vadd.f32 %v8220_v58, %v11098_v33  ;;  %v8674_v57 = vadd.f32 %v8220_v58, %v11099_v41  ;;  %v11100_v29 = vld [vmem:[#allocation5_spill] sm:$0xff]  ;;  %v8686_v14 = vadd.f32 %v8220_v58, %v8434_v48  ;;  %v8690_v33 = vadd.f32 %v8220_v58, %v8438_v24 }
 0x270   :  { %v8678_v34 = vadd.f32 %v8220_v58, %v11100_v29  ;;  %11101 = vst [vmem:[#allocation16_spill] sm:$0xff] %v8682_v40  ;;  %v8694_v41 = vadd.f32 %v8220_v58, %v8442_v19  ;;  %v8698_v29 = vadd.f32 %v8220_v58, %v8446_v21  ;;  %v8702_v47 = vadd.f32 %v8220_v58, %v8450_v42 }
 0x271   :  { %11102 = vst [vmem:[#allocation13_spill] sm:$0xff] %v8686_v14  ;;  %11103 = vst [vmem:[#allocation15_spill] sm:$0xff] %v8690_v33  ;;  %v1541_v40 = vmax.f32 %v8454_v56, 0.0  ;;  %v1542_v48 = vmax.f32 %v8458_v37, 0.0  ;;  %v1543_v14 = vmax.f32 %v8462_v2, 0.0  ;;  %v1544_v24 = vmax.f32 %v8466_v44, 0.0 }
 0x272   :  { %11104 = vst [vmem:[#allocation18_spill] sm:$0xff] %v8694_v41  ;;  %11105 = vst [vmem:[#allocation20_spill] sm:$0xff] %v8698_v29  ;;  %v1545_v33 = vmax.f32 %v8470_v35, 0.0  ;;  %v1546_v19 = vmax.f32 %v8474_v55, 0.0  ;;  %v1547_v41 = vmax.f32 %v8478_v32, 0.0  ;;  %v1548_v21 = vmax.f32 %v8482_v59, 0.0 }
 0x273   :  { %v1549_v29 = vmax.f32 %v8486_v49, 0.0  ;;  %1693 = vst.msk [vmem:[#allocation2 + $0x19] sm:$0xff] %vm1059_vm2, %v1541_v40  ;;  %v1550_v58 = vmax.f32 %v8490_v38, 0.0  ;;  %v1551_v42 = vmax.f32 %v8494_v27, 0.0  ;;  %v1552_v56 = vmax.f32 %v8498_v23, 0.0  ;;  %1694 = vst.msk [vmem:[#allocation2 + $0x21] sm:$0xff] %vm1059_vm2, %v1542_v48 }
 0x274   :  { %v1553_v37 = vmax.f32 %v8502_v1, 0.0  ;;  %1695 = vst.msk [vmem:[#allocation2 + $0x31] sm:$0xff] %vm1059_vm2, %v1543_v14  ;;  %1696 = vst.msk [vmem:[#allocation2 + $0x39] sm:$0xff] %vm1059_vm2, %v1544_v24  ;;  %v1554_v2 = vmax.f32 %v8506_v50, 0.0  ;;  %v1555_v44 = vmax.f32 %v8510_v0, 0.0  ;;  %v1556_v35 = vmax.f32 %v8514_v31, 0.0 }
 0x275   :  { %1697 = vst.msk [vmem:[#allocation2 + $0x49] sm:$0xff] %vm1059_vm2, %v1545_v33  ;;  %v1557_v55 = vmax.f32 %v8518_v8, 0.0  ;;  %1698 = vst.msk [vmem:[#allocation2 + $0x51] sm:$0xff] %vm1059_vm2, %v1546_v19  ;;  %v1558_v32 = vmax.f32 %v8522_v26, 0.0  ;;  %v1559_v59 = vmax.f32 %v8526_v6, 0.0  ;;  %v1560_v49 = vmax.f32 %v8530_v46, 0.0 }
 0x276   :  { %1699 = vst.msk [vmem:[#allocation2 + $0x61] sm:$0xff] %vm1059_vm2, %v1547_v41  ;;  %1700 = vst.msk [vmem:[#allocation2 + $0x69] sm:$0xff] %vm1059_vm2, %v1548_v21  ;;  %v1561_v38 = vmax.f32 %v8534_v60, 0.0  ;;  %v1562_v27 = vmax.f32 %v8538_v12, 0.0  ;;  %v1563_v23 = vmax.f32 %v8542_v17, 0.0  ;;  %v1564_v1 = vmax.f32 %v8546_v16, 0.0 }
 0x277   :  { %1701 = vst.msk [vmem:[#allocation2 + $0x79] sm:$0xff] %vm1059_vm2, %v1549_v29  ;;  %1702 = vst.msk [vmem:[#allocation2 + $0x81] sm:$0xff] %vm1059_vm2, %v1550_v58  ;;  %v1565_v50 = vmax.f32 %v8550_v36, 0.0  ;;  %v1566_v0 = vmax.f32 %v8554_v20, 0.0  ;;  %v1567_v31 = vmax.f32 %v8558_v3, 0.0  ;;  %v1568_v8 = vmax.f32 %v8562_v18, 0.0 }
 0x278   :  { %1703 = vst.msk [vmem:[#allocation2 + $0x91] sm:$0xff] %vm1059_vm2, %v1551_v42  ;;  %1704 = vst.msk [vmem:[#allocation2 + $0x99] sm:$0xff] %vm1059_vm2, %v1552_v56  ;;  %v1569_v26 = vmax.f32 %v8566_v28, 0.0  ;;  %v1570_v6 = vmax.f32 %v8570_v5, 0.0  ;;  %v1571_v46 = vmax.f32 %v8574_v63, 0.0  ;;  %v1572_v60 = vmax.f32 %v8578_v11, 0.0 }
 0x279   :  { %1705 = vst.msk [vmem:[#allocation2 + $0xa9] sm:$0xff] %vm1059_vm2, %v1553_v37  ;;  %1706 = vst.msk [vmem:[#allocation2 + $0xb1] sm:$0xff] %vm1059_vm2, %v1554_v2  ;;  %v1573_v12 = vmax.f32 %v8582_v51, 0.0  ;;  %v1574_v17 = vmax.f32 %v8586_v54, 0.0  ;;  %v1575_v16 = vmax.f32 %v8590_v43, 0.0  ;;  %v1576_v36 = vmax.f32 %v8594_v62, 0.0 }
 0x27a   :  { %1707 = vst.msk [vmem:[#allocation2 + $0xc1] sm:$0xff] %vm1059_vm2, %v1555_v44  ;;  %1708 = vst.msk [vmem:[#allocation2 + $0xc9] sm:$0xff] %vm1059_vm2, %v1556_v35  ;;  %v1577_v20 = vmax.f32 %v8598_v10, 0.0  ;;  %v1578_v3 = vmax.f32 %v8602_v45, 0.0  ;;  %v1579_v18 = vmax.f32 %v8606_v22, 0.0  ;;  %v1580_v28 = vmax.f32 %v8610_v4, 0.0 }
 0x27b   :  { %1709 = vst.msk [vmem:[#allocation2 + $0xd9] sm:$0xff] %vm1059_vm2, %v1557_v55  ;;  %1710 = vst.msk [vmem:[#allocation2 + $0xe1] sm:$0xff] %vm1059_vm2, %v1558_v32  ;;  %v1581_v5 = vmax.f32 %v8614_v30, 0.0  ;;  %v1582_v63 = vmax.f32 %v8618_v52, 0.0  ;;  %v1583_v11 = vmax.f32 %v8622_v61, 0.0  ;;  %v1584_v51 = vmax.f32 %v8626_v7, 0.0 }
 0x27c   :  { %1711 = vst.msk [vmem:[#allocation2 + $0xf1] sm:$0xff] %vm1059_vm2, %v1559_v59  ;;  %1712 = vst.msk [vmem:[#allocation2 + $0xf9] sm:$0xff] %vm1059_vm2, %v1560_v49  ;;  %v1585_v54 = vmax.f32 %v8630_v15, 0.0  ;;  %v1586_v43 = vmax.f32 %v8634_v9, 0.0  ;;  %v11106_v62 = vld [vmem:[#allocation6_spill] sm:$0xff]  ;;  %v11107_v45 = vld [vmem:[#allocation12_spill] sm:$0xff] }
 0x27d   :  { %1713 = vst.msk [vmem:[#allocation2 + $0x109] sm:$0xff] %vm1059_vm2, %v1561_v38  ;;  %1714 = vst.msk [vmem:[#allocation2 + $0x111] sm:$0xff] %vm1059_vm2, %v1562_v27  ;;  %v1587_v10 = vmax.f32 %v11106_v62, 0.0  ;;  %v1588_v22 = vmax.f32 %v11107_v45, 0.0  ;;  %v11108_v4 = vld [vmem:[#allocation11_spill] sm:$0xff]  ;;  %v1825_v52 = vld [vmem:[#allocation2 + $0x31] sm:$0xff] }
 0x27e   :  { %1715 = vst.msk [vmem:[#allocation2 + $0x121] sm:$0xff] %vm1059_vm2, %v1563_v23  ;;  %1716 = vst.msk [vmem:[#allocation2 + $0x129] sm:$0xff] %vm1059_vm2, %v1564_v1  ;;  %v1589_v30 = vmax.f32 %v11108_v4, 0.0  ;;  %v1823_v61 = vld [vmem:[#allocation2 + $0x19] sm:$0xff]  ;;  %v1592_v14 = vmax.f32 %v8658_v13, 0.0  ;;  %v1593_v33 = vmax.f32 %v8662_v25, 0.0 }
 0x27f   :  { %1717 = vst.msk [vmem:[#allocation2 + $0x139] sm:$0xff] %vm1059_vm2, %v1565_v50  ;;  %1718 = vst.msk [vmem:[#allocation2 + $0x141] sm:$0xff] %vm1059_vm2, %v1566_v0  ;;  %v11109_v7 = vld [vmem:[#allocation7_spill] sm:$0xff]  ;;  %v11110_v40 = vld [vmem:[#allocation14_spill] sm:$0xff]  ;;  %v1594_v48 = vmax.f32 %v8666_v53, 0.0  ;;  %v1595_v24 = vmax.f32 %v8670_v39, 0.0 }
 0x280   :  { %1719 = vst.msk [vmem:[#allocation2 + $0x151] sm:$0xff] %vm1059_vm2, %v1567_v31  ;;  %1720 = vst.msk [vmem:[#allocation2 + $0x159] sm:$0xff] %vm1059_vm2, %v1568_v8  ;;  %v1590_v15 = vmax.f32 %v11109_v7, 0.0  ;;  %v1591_v9 = vmax.f32 %v11110_v40, 0.0  ;;  %v1826_v41 = vld [vmem:[#allocation2 + $0x39] sm:$0xff]  ;;  %v1824_v29 = vld [vmem:[#allocation2 + $0x21] sm:$0xff] }
 0x281   :  { %1721 = vst.msk [vmem:[#allocation2 + $0x169] sm:$0xff] %vm1059_vm2, %v1569_v26  ;;  %1722 = vst.msk [vmem:[#allocation2 + $0x171] sm:$0xff] %vm1059_vm2, %v1570_v6  ;;  %v1596_v19 = vmax.f32 %v8674_v57, 0.0  ;;  %v1597_v13 = vmax.f32 %v8678_v34, 0.0  ;;  %v11111_v25 = vld [vmem:[#allocation16_spill] sm:$0xff]  ;;  %v11112_v58 = vld [vmem:[#allocation13_spill] sm:$0xff]  ;;  %v5590_v44 = vpack.i.bf16 %v1826_v41, %v1825_v52  ;;  %v5585_v35 = vpack.i.bf16 %v1824_v29, %v1823_v61 }
 0x282   :  { %1723 = vst.msk [vmem:[#allocation2 + $0x181] sm:$0xff] %vm1059_vm2, %v1571_v46  ;;  %1724 = vst.msk [vmem:[#allocation2 + $0x189] sm:$0xff] %vm1059_vm2, %v1572_v60  ;;  %v1598_v21 = vmax.f32 %v11111_v25, 0.0  ;;  %v1599_v42 = vmax.f32 %v11112_v58, 0.0  ;;  %v11113_v56 = vld [vmem:[#allocation15_spill] sm:$0xff]  ;;  %v11114_v37 = vld [vmem:[#allocation18_spill] sm:$0xff] }
 0x283   :  { %1725 = vst.msk [vmem:[#allocation2 + $0x1c9] sm:$0xff] %vm1059_vm2, %v1573_v12  ;;  %1726 = vst.msk [vmem:[#allocation2 + $0x1d1] sm:$0xff] %vm1059_vm2, %v1574_v17  ;;  %v1600_v53 = vmax.f32 %v11113_v56, 0.0  ;;  %v1601_v39 = vmax.f32 %v11114_v37, 0.0  ;;  %v11115_v57 = vld [vmem:[#allocation20_spill] sm:$0xff]  ;;  %v1604_v2 = vmax.f32 %v8702_v47, 0.0  ;;  %5591 = vrot.lane.b32.xlu1 %v5590_v44, %s6565_s1  ;;  %5586 = vrot.lane.b32.xlu0 %v5585_v35, %s6565_s1 }
 0x284   :  { %1727 = vst.msk [vmem:[#allocation2 + $0x1e1] sm:$0xff] %vm1059_vm2, %v1575_v16  ;;  %1728 = vst.msk [vmem:[#allocation2 + $0x1e9] sm:$0xff] %vm1059_vm2, %v1576_v36  ;;  %v1603_v34 = vmax.f32 %v11115_v57, 0.0  ;;  %v1827_v55 = vld [vmem:[#allocation2 + $0x49] sm:$0xff]  ;;  %v1828_v47 = vld [vmem:[#allocation2 + $0x51] sm:$0xff] }
 0x285   :  { %1729 = vst.msk [vmem:[#allocation2 + $0x1f9] sm:$0xff] %vm1059_vm2, %v1577_v20  ;;  %1730 = vst.msk [vmem:[#allocation2 + $0x201] sm:$0xff] %vm1059_vm2, %v1578_v3  ;;  %v1829_v32 = vld [vmem:[#allocation2 + $0x61] sm:$0xff]  ;;  %v1830_v59 = vld [vmem:[#allocation2 + $0x69] sm:$0xff]  ;;  %v5595_v49 = vpack.i.bf16 %v1828_v47, %v1827_v55 }
 0x286   :  { %1731 = vst.msk [vmem:[#allocation2 + $0x211] sm:$0xff] %vm1059_vm2, %v1579_v18  ;;  %1732 = vst.msk [vmem:[#allocation2 + $0x219] sm:$0xff] %vm1059_vm2, %v1580_v28  ;;  %v5600_v38 = vpack.i.bf16 %v1830_v59, %v1829_v32  ;;  %v8832_v27 = vld [vmem:[#allocation2 + $0x79] sm:$0xff]  ;;  %v8834_v23 = vld [vmem:[#allocation2 + $0x81] sm:$0xff] }
 0x287   :  { %1733 = vst.msk [vmem:[#allocation2 + $0x229] sm:$0xff] %vm1059_vm2, %v1581_v5  ;;  %1734 = vst.msk [vmem:[#allocation2 + $0x231] sm:$0xff] %vm1059_vm2, %v1582_v63  ;;  %v8836_v1 = vld [vmem:[#allocation2 + $0x91] sm:$0xff]  ;;  %v8838_v50 = vld [vmem:[#allocation2 + $0x99] sm:$0xff]  ;;  %5596 = vrot.lane.b32.xlu1 %v5595_v49, %s6565_s1  ;;  %v5605_v26 = vpack.i.bf16 %v8834_v23, %v8832_v27 }
 0x288   :  { %1735 = vst.msk [vmem:[#allocation2 + $0x241] sm:$0xff] %vm1059_vm2, %v1583_v11  ;;  %1736 = vst.msk [vmem:[#allocation2 + $0x249] sm:$0xff] %vm1059_vm2, %v1584_v51  ;;  %5601 = vrot.lane.b32.xlu0 %v5600_v38, %s6565_s1  ;;  %v8842_v0 = vld [vmem:[#allocation2 + $0xa9] sm:$0xff]  ;;  %v8844_v31 = vld [vmem:[#allocation2 + $0xb1] sm:$0xff]  ;;  %v5610_v6 = vpack.i.bf16 %v8838_v50, %v8836_v1  ;;  %v5930_v12 = vpack.i.bf16 %v8836_v1, %v8834_v23 }
 0x289   :  { %1737 = vst.msk [vmem:[#allocation2 + $0x259] sm:$0xff] %vm1059_vm2, %v1585_v54  ;;  %1738 = vst.msk [vmem:[#allocation2 + $0x261] sm:$0xff] %vm1059_vm2, %v1586_v43  ;;  %v8846_v8 = vld [vmem:[#allocation2 + $0xc1] sm:$0xff]  ;;  %v8852_v46 = vld [vmem:[#allocation2 + $0xc9] sm:$0xff]  ;;  %v5945_v60 = vpack.i.bf16 %v8842_v0, %v8838_v50  ;;  %v5615_v16 = vpack.i.bf16 %v8844_v31, %v8842_v0 }
 0x28a   :  { %1739 = vst.msk [vmem:[#allocation2 + $0x271] sm:$0xff] %vm1059_vm2, %v1587_v10  ;;  %1740 = vst.msk [vmem:[#allocation2 + $0x279] sm:$0xff] %vm1059_vm2, %v1588_v22  ;;  %v5960_v17 = vpack.i.bf16 %v8846_v8, %v8844_v31  ;;  %v5620_v36 = vpack.i.bf16 %v8852_v46, %v8846_v8  ;;  %v1839_v20 = vld [vmem:[#allocation2 + $0xd9] sm:$0xff]  ;;  %v1840_v3 = vld [vmem:[#allocation2 + $0xe1] sm:$0xff] }
 0x28b   :  { %1741 = vst.msk [vmem:[#allocation2 + $0x289] sm:$0xff] %vm1059_vm2, %v1589_v30  ;;  %1742 = vst.msk [vmem:[#allocation2 + $0x291] sm:$0xff] %vm1059_vm2, %v1590_v15  ;;  %5606 = vrot.lane.b32.xlu1 %v5605_v26, %s6565_s1  ;;  %v1841_v18 = vld [vmem:[#allocation2 + $0xf1] sm:$0xff]  ;;  %v1842_v28 = vld [vmem:[#allocation2 + $0xf9] sm:$0xff]  ;;  %v5625_v5 = vpack.i.bf16 %v1840_v3, %v1839_v20 }
 0x28c   :  { %1743 = vst.msk [vmem:[#allocation2 + $0x2a1] sm:$0xff] %vm1059_vm2, %v1591_v9  ;;  %1744 = vst.msk [vmem:[#allocation2 + $0x2a9] sm:$0xff] %vm1059_vm2, %v1592_v14  ;;  %5611 = vrot.lane.b32.xlu0 %v5610_v6, %s6565_s1  ;;  %v5630_v63 = vpack.i.bf16 %v1842_v28, %v1841_v18  ;;  %v1843_v11 = vld [vmem:[#allocation2 + $0x109] sm:$0xff]  ;;  %v1844_v51 = vld [vmem:[#allocation2 + $0x111] sm:$0xff] }
 0x28d   :  { %1745 = vst.msk [vmem:[#allocation2 + $0x2b9] sm:$0xff] %vm1059_vm2, %v1593_v33  ;;  %1746 = vst.msk [vmem:[#allocation2 + $0x2c1] sm:$0xff] %vm1059_vm2, %v1594_v48  ;;  %v1845_v54 = vld [vmem:[#allocation2 + $0x121] sm:$0xff]  ;;  %v1846_v43 = vld [vmem:[#allocation2 + $0x129] sm:$0xff]  ;;  %v5635_v62 = vpack.i.bf16 %v1844_v51, %v1843_v11 }
 0x28e   :  { %1747 = vst.msk [vmem:[#allocation2 + $0x2d1] sm:$0xff] %vm1059_vm2, %v1595_v24  ;;  %1748 = vst.msk [vmem:[#allocation2 + $0x2d9] sm:$0xff] %vm1059_vm2, %v1596_v19  ;;  %v5640_v10 = vpack.i.bf16 %v1846_v43, %v1845_v54  ;;  %v1847_v45 = vld [vmem:[#allocation2 + $0x139] sm:$0xff]  ;;  %v1848_v22 = vld [vmem:[#allocation2 + $0x141] sm:$0xff] }
 0x28f   :  { %1749 = vst.msk [vmem:[#allocation2 + $0x2e9] sm:$0xff] %vm1059_vm2, %v1597_v13  ;;  %1750 = vst.msk [vmem:[#allocation2 + $0x2f1] sm:$0xff] %vm1059_vm2, %v1598_v21  ;;  %5616 = vrot.lane.b32.xlu1 %v5615_v16, %s6565_s1  ;;  %v1849_v4 = vld [vmem:[#allocation2 + $0x151] sm:$0xff]  ;;  %v1850_v30 = vld [vmem:[#allocation2 + $0x159] sm:$0xff]  ;;  %v5645_v52 = vpack.i.bf16 %v1848_v22, %v1847_v45 }
 0x290   :  { %1751 = vst.msk [vmem:[#allocation2 + $0x301] sm:$0xff] %vm1059_vm2, %v1599_v42  ;;  %1752 = vst.msk [vmem:[#allocation2 + $0x309] sm:$0xff] %vm1059_vm2, %v1600_v53  ;;  %5621 = vrot.lane.b32.xlu0 %v5620_v36, %s6565_s1  ;;  %v5650_v61 = vpack.i.bf16 %v1850_v30, %v1849_v4  ;;  %v1851_v7 = vld [vmem:[#allocation2 + $0x169] sm:$0xff]  ;;  %v1852_v15 = vld [vmem:[#allocation2 + $0x171] sm:$0xff] }
 0x291   :  { %1753 = vst.msk [vmem:[#allocation2 + $0x319] sm:$0xff] %vm1059_vm2, %v1601_v39  ;;  %1755 = vst.msk [vmem:[#allocation2 + $0x331] sm:$0xff] %vm1059_vm2, %v1603_v34  ;;  %v1857_v40 = vld [vmem:[#allocation2 + $0x1e1] sm:$0xff]  ;;  %v1858_v9 = vld [vmem:[#allocation2 + $0x1e9] sm:$0xff]  ;;  %v5655_v14 = vpack.i.bf16 %v1852_v15, %v1851_v7 }
 0x292   :  { %1756 = vst.msk [vmem:[#allocation2 + $0x339] sm:$0xff] %vm1059_vm2, %v1604_v2  ;;  %v5665_v33 = vpack.i.bf16 %v1858_v9, %v1857_v40  ;;  %v1855_v41 = vld [vmem:[#allocation2 + $0x1c9] sm:$0xff]  ;;  %v1856_v29 = vld [vmem:[#allocation2 + $0x1d1] sm:$0xff]  ;;  %v1862_v24 = vld [vmem:[#allocation2 + $0x219] sm:$0xff] }
 0x293   :  { %5626 = vrot.lane.b32.xlu1 %v5625_v5, %s6565_s1  ;;  %v1861_v48 = vld [vmem:[#allocation2 + $0x211] sm:$0xff]  ;;  %v5660_v19 = vpack.i.bf16 %v1856_v29, %v1855_v41  ;;  %v1859_v25 = vld [vmem:[#allocation2 + $0x1f9] sm:$0xff]  ;;  %v1860_v21 = vld [vmem:[#allocation2 + $0x201] sm:$0xff] }
 0x294   :  { %5631 = vrot.lane.b32.xlu0 %v5630_v63, %s6565_s1  ;;  %v5675_v13 = vpack.i.bf16 %v1862_v24, %v1861_v48  ;;  %v1865_v58 = vld [vmem:[#allocation2 + $0x241] sm:$0xff]  ;;  %v1866_v42 = vld [vmem:[#allocation2 + $0x249] sm:$0xff]  ;;  %v5670_v56 = vpack.i.bf16 %v1860_v21, %v1859_v25  ;;  %v1864_v39 = vld [vmem:[#allocation2 + $0x231] sm:$0xff] }
 0x295   :  { %v5685_v53 = vpack.i.bf16 %v1866_v42, %v1865_v58  ;;  %v1863_v37 = vld [vmem:[#allocation2 + $0x229] sm:$0xff]  ;;  %v1869_v57 = vld [vmem:[#allocation2 + $0x271] sm:$0xff]  ;;  %v1870_v34 = vld [vmem:[#allocation2 + $0x279] sm:$0xff] }
 0x296   :  { %v5680_v2 = vpack.i.bf16 %v1864_v39, %v1863_v37  ;;  %v5695_v44 = vpack.i.bf16 %v1870_v34, %v1869_v57  ;;  %v1867_v35 = vld [vmem:[#allocation2 + $0x259] sm:$0xff]  ;;  %v1868_v55 = vld [vmem:[#allocation2 + $0x261] sm:$0xff]  ;;  %v1874_v32 = vld [vmem:[#allocation2 + $0x2a9] sm:$0xff] }
 0x297   :  { %5636 = vrot.lane.b32.xlu1 %v5635_v62, %s6565_s1  ;;  %v1873_v47 = vld [vmem:[#allocation2 + $0x2a1] sm:$0xff]  ;;  %v5690_v59 = vpack.i.bf16 %v1868_v55, %v1867_v35  ;;  %v1871_v38 = vld [vmem:[#allocation2 + $0x289] sm:$0xff]  ;;  %v1872_v26 = vld [vmem:[#allocation2 + $0x291] sm:$0xff] }
 0x298   :  { %5641 = vrot.lane.b32.xlu0 %v5640_v10, %s6565_s1  ;;  %v5705_v49 = vpack.i.bf16 %v1874_v32, %v1873_v47  ;;  %v1877_v6 = vld [vmem:[#allocation2 + $0x2d1] sm:$0xff]  ;;  %v1878_v16 = vld [vmem:[#allocation2 + $0x2d9] sm:$0xff]  ;;  %v5700_v36 = vpack.i.bf16 %v1872_v26, %v1871_v38  ;;  %v1876_v18 = vld [vmem:[#allocation2 + $0x2c1] sm:$0xff]  ;;  %v6567_v32 = vmov 0  }
 0x299   :  { %v5715_v20 = vpack.i.bf16 %v1878_v16, %v1877_v6  ;;  %v1875_v3 = vld [vmem:[#allocation2 + $0x2b9] sm:$0xff]  ;;  %v1881_v28 = vld [vmem:[#allocation2 + $0x301] sm:$0xff]  ;;  %v1882_v5 = vld [vmem:[#allocation2 + $0x309] sm:$0xff]  ;;  %5522 = vmatprep.subr.bf16.mxu1 %v6567_v32  ;;  %4592 = vmatprep.subr.bf16.mxu0 %v6567_v32 }
 0x29a   :  { %v5710_v63 = vpack.i.bf16 %v1876_v18, %v1875_v3  ;;  %v5725_v11 = vpack.i.bf16 %v1882_v5, %v1881_v28  ;;  %v1879_v51 = vld [vmem:[#allocation2 + $0x2e9] sm:$0xff]  ;;  %v1880_v54 = vld [vmem:[#allocation2 + $0x2f1] sm:$0xff]  ;;  %v1890_v62 = vld [vmem:[#allocation2 + $0x3a] sm:$0xff] }
 0x29b   :  { %5646 = vrot.lane.b32.xlu1 %v5645_v52, %s6565_s1  ;;  %v1889_v43 = vld [vmem:[#allocation2 + $0x32] sm:$0xff]  ;;  %v5720_v10 = vpack.i.bf16 %v1880_v54, %v1879_v51  ;;  %v1884_v22 = vld [vmem:[#allocation2 + $0x321] sm:$0xff]  ;;  %v1894_v52 = vld [vmem:[#allocation2 + $0x6a] sm:$0xff] }
 0x29c   :  { %5651 = vrot.lane.b32.xlu0 %v5650_v61, %s6565_s1  ;;  %v5740_v45 = vpack.i.bf16 %v1890_v62, %v1889_v43  ;;  %v1883_v4 = vld [vmem:[#allocation2 + $0x319] sm:$0xff]  ;;  %v1893_v30 = vld [vmem:[#allocation2 + $0x62] sm:$0xff]  ;;  %v1891_v29 = vld [vmem:[#allocation2 + $0x4a] sm:$0xff] }
 0x29d   :  { %v5730_v61 = vpack.i.bf16 %v1884_v22, %v1883_v4  ;;  %v8890_v7 = vpack.i.bf16 %v1894_v52, %v1893_v30  ;;  %v1887_v15 = vld [vmem:[#allocation2 + $0x1a] sm:$0xff]  ;;  %v1888_v40 = vld [vmem:[#allocation2 + $0x22] sm:$0xff]  ;;  %v1897_v9 = vld [vmem:[#allocation2 + $0x92] sm:$0xff] }
 0x29e   :  { %v1892_v48 = vld [vmem:[#allocation2 + $0x52] sm:$0xff]  ;;  %v1901_v24 = vld [vmem:[#allocation2 + $0xc2] sm:$0xff]  ;;  %v1895_v21 = vld [vmem:[#allocation2 + $0x7a] sm:$0xff] }
 0x29f   :  { %5656 = vrot.lane.b32.xlu1 %v5655_v14, %s6565_s1  ;;  %v1898_v14 = vld [vmem:[#allocation2 + $0x9a] sm:$0xff]  ;;  %v1896_v58 = vld [vmem:[#allocation2 + $0x82] sm:$0xff]  ;;  %v1905_v42 = vld [vmem:[#allocation2 + $0xf2] sm:$0xff] }
 0x2a0   :  { %5666 = vrot.lane.b32.xlu0 %v5665_v33, %s6565_s1  ;;  %v5735_v33 = vpack.i.bf16 %v1888_v40, %v1887_v15  ;;  %v8895_v41 = vpack.i.bf16 %v1898_v14, %v1897_v9  ;;  %v1899_v39 = vld [vmem:[#allocation2 + $0xaa] sm:$0xff]  ;;  %v1900_v57 = vld [vmem:[#allocation2 + $0xb2] sm:$0xff]  ;;  %v1909_v34 = vld [vmem:[#allocation2 + $0x122] sm:$0xff]  ;;  %v8958_v14 = vpop.permute.xlu0 %5561 }
 0x2a1   :  { %v1904_v35 = vld [vmem:[#allocation2 + $0xe2] sm:$0xff]  ;;  %v1913_v55 = vld [vmem:[#allocation2 + $0x152] sm:$0xff]  ;;  %v1914_v47 = vld [vmem:[#allocation2 + $0x15a] sm:$0xff] }
 0x2a2   :  { %v6521_v26 = vld [vmem:[%s10879_s6 + $0x30] sm:$0xff]   ;;  %v5800_v18 = vpack.i.bf16 %v1914_v47, %v1913_v55  ;;  %v6522_v28 = vld [vmem:[%s10879_s6 + $0x28] sm:$0xff]   ;;  %v1911_v5 = vld [vmem:[#allocation2 + $0x13a] sm:$0xff] }
 0x2a3   :  { %5661 = vrot.lane.b32.xlu1 %v5660_v19, %s6565_s1  ;;  %v1902_v19 = vld [vmem:[#allocation2 + $0xca] sm:$0xff]  ;;  %v1908_v16 = vld [vmem:[#allocation2 + $0x112] sm:$0xff]  ;;  %v1926_v51 = vld [vmem:[#allocation2 + $0x21a] sm:$0xff] }
 0x2a4   :  { %5676 = vrot.lane.b32.xlu0 %v5675_v13, %s6565_s1  ;;  %v5745_v13 = vpack.i.bf16 %v1892_v48, %v1891_v29  ;;  %v8900_v25 = vpack.i.bf16 %v1902_v19, %v1901_v24  ;;  %v1907_v6 = vld [vmem:[#allocation2 + $0x10a] sm:$0xff]  ;;  %v6523_v62 = vld [vmem:[%s10879_s6 + $0x20] sm:$0xff]   ;;  %v1916_v4 = vld [vmem:[#allocation2 + $0x172] sm:$0xff] }
 0x2a5   :  { %v8941_v54 = vpack.i.bf16 %v1908_v16, %v1907_v6  ;;  %v1915_v22 = vld [vmem:[#allocation2 + $0x16a] sm:$0xff]  ;;  %v1929_v30 = vld [vmem:[#allocation2 + $0x242] sm:$0xff]  ;;  %v1933_v29 = vld [vmem:[#allocation2 + $0x272] sm:$0xff] }
 0x2a6   :  { %v1930_v52 = vld [vmem:[#allocation2 + $0x24a] sm:$0xff]  ;;  %v5805_v15 = vpack.i.bf16 %v1916_v4, %v1915_v22  ;;  %v1934_v48 = vld [vmem:[#allocation2 + $0x27a] sm:$0xff]  ;;  %v1941_v55 = vld [vmem:[#allocation2 + $0x2d2] sm:$0xff] }
 0x2a7   :  { %5671 = vrot.lane.b32.xlu1 %v5670_v56, %s6565_s1  ;;  %v1906_v56 = vld [vmem:[#allocation2 + $0xfa] sm:$0xff]  ;;  %v5835_v40 = vpack.i.bf16 %v1930_v52, %v1929_v30  ;;  %v1919_v9 = vld [vmem:[#allocation2 + $0x1ca] sm:$0xff] }
 0x2a8   :  { %5686 = vrot.lane.b32.xlu0 %v5685_v53, %s6565_s1  ;;  %v8905_v53 = vpack.i.bf16 %v1896_v58, %v1895_v21  ;;  %v8907_v37 = vpack.i.bf16 %v1906_v56, %v1905_v42  ;;  %v6525_v24 = vld [vmem:[%s10879_s6 + $0x10] sm:$0xff]   ;;  %v1923_v21 = vld [vmem:[#allocation2 + $0x1fa] sm:$0xff]  ;;  %v1924_v58 = vld [vmem:[#allocation2 + $0x202] sm:$0xff] }
 0x2a9   :  { %v1937_v42 = vld [vmem:[#allocation2 + $0x2a2] sm:$0xff]  ;;  %v1938_v56 = vld [vmem:[#allocation2 + $0x2aa] sm:$0xff]  ;;  %v1942_v47 = vld [vmem:[#allocation2 + $0x2da] sm:$0xff] }
 0x2aa   :  { %v1931_v16 = vld [vmem:[#allocation2 + $0x25a] sm:$0xff]  ;;  %v6529_v4 = vld [vmem:[%s10879_s6 + $0x70] sm:$0xff]  }
 0x2ab   :  { %5681 = vrot.lane.b32.xlu1 %v5680_v2, %s6565_s1  ;;  %v1910_v2 = vld [vmem:[#allocation2 + $0x12a] sm:$0xff]  ;;  %v2221_v31 = vld [vmem:[#allocation2 + $0xe1] sm:$0xff] }
 0x2ac   :  { %5696 = vrot.lane.b32.xlu0 %v5695_v44, %s6565_s1  ;;  %v1903_v44 = vld [vmem:[#allocation2 + $0xda] sm:$0xff]  ;;  %v8920_v38 = vpack.i.bf16 %v1910_v2, %v1909_v34  ;;  %v5820_v34 = vpack.i.bf16 %v1924_v58, %v1923_v21  ;;  %v5855_v2 = vpack.i.bf16 %v1938_v56, %v1937_v42  ;;  %v1944_v21 = vld [vmem:[#allocation2 + $0x2f2] sm:$0xff] }
 0x2ad   :  { %v8931_v3 = vpack.i.bf16 %v1904_v35, %v1903_v44  ;;  %v1927_v44 = vld [vmem:[#allocation2 + $0x22a] sm:$0xff]  ;;  %v1928_v35 = vld [vmem:[#allocation2 + $0x232] sm:$0xff]  ;;  %v9022_v42 = vld [vmem:[#allocation2 + $0x80] sm:$0xff] }
 0x2ae   :  { %v9020_v58 = vld [vmem:[#allocation2 + $0x78] sm:$0xff]  ;;  %v6531_v56 = vld [vmem:[%s10879_s6 + $0x60] sm:$0xff]  }
 0x2af   :  { %5691 = vrot.lane.b32.xlu1 %v5690_v59, %s6565_s1  ;;  %v6520_v59 = vld [vmem:[%s10879_s6 + $0x38] sm:$0xff]  }
 0x2b0   :  { %5706 = vrot.lane.b32.xlu0 %v5705_v49, %s6565_s1  ;;  %v8918_v49 = vpack.i.bf16 %v1900_v57, %v1899_v39  ;;  %5538 = vmatpush1.bf16.msra.mxu1 %v6520_v59  ;;  %v8969_v39 = vpop.permute.xlu0 %5566  ;;  %v6526_v57 = vld [vmem:[%s10879_s6 + $0x8] sm:$0xff]  }
 0x2b1   :  { %4593 = vmatpush1.bf16.msra.mxu0 %v6520_v59  ;;  %5523 = vmatprep.subr.bf16.mxu1 %v6567_v32  ;;  %v5830_v59 = vpack.i.bf16 %v1928_v35, %v1927_v44  ;;  %v5905_v44 = vpack.i.bf16 %v9022_v42, %v9020_v58  ;;  %v1947_v35 = vld [vmem:[#allocation2 + $0x31a] sm:$0xff] }
 0x2b2   :  { %4594 = vmatprep.subr.bf16.mxu0 %v6567_v32 }
 0x2b3   :  { %5701 = vrot.lane.b32.xlu1 %v5700_v36, %s6565_s1  ;;  %v1921_v36 = vld [vmem:[#allocation2 + $0x1e2] sm:$0xff] }
 0x2b4   :  { %5716 = vrot.lane.b32.xlu0 %v5715_v20, %s6565_s1  ;;  %v1922_v20 = vld [vmem:[#allocation2 + $0x1ea] sm:$0xff]  ;;  %5539 = vmatpush1.bf16.msra.mxu1 %v6521_v26  ;;  %v8980_v6 = vpop.permute.xlu0 %5571 }
 0x2b5   :  { %4595 = vmatpush1.bf16.msra.mxu0 %v6521_v26  ;;  %5524 = vmatprep.subr.bf16.mxu1 %v6567_v32  ;;  %v5815_v43 = vpack.i.bf16 %v1922_v20, %v1921_v36  ;;  %v5865_v26 = vpack.i.bf16 %v1942_v47, %v1941_v55  ;;  %v6527_v36 = vld [vmem:[%s10879_s6] sm:$0xff]   ;;  %v1961_v47 = vld [vmem:[#allocation2 + $0xa8] sm:$0xff] }
 0x2b6   :  { %4596 = vmatprep.subr.bf16.mxu0 %v6567_v32  ;;  %v1932_v20 = vld [vmem:[#allocation2 + $0x262] sm:$0xff] }
 0x2b7   :  { %5711 = vrot.lane.b32.xlu1 %v5710_v63, %s6565_s1  ;;  %v1912_v63 = vld [vmem:[#allocation2 + $0x142] sm:$0xff] }
 0x2b8   :  { %5726 = vrot.lane.b32.xlu0 %v5725_v11, %s6565_s1  ;;  %v1925_v11 = vld [vmem:[#allocation2 + $0x212] sm:$0xff]  ;;  %5540 = vmatpush1.bf16.msra.mxu1 %v6522_v28  ;;  %v8996_v22 = vpop.permute.xlu0 %5576  ;;  %v1948_v55 = vld [vmem:[#allocation2 + $0x322] sm:$0xff] }
 0x2b9   :  { %4597 = vmatpush1.bf16.msra.mxu0 %v6522_v28  ;;  %5525 = vmatprep.subr.bf16.mxu1 %v6567_v32  ;;  %v1946_v28 = vld [vmem:[#allocation2 + $0x30a] sm:$0xff]  ;;  %11116 = vst [vmem:[#allocation17_spill] sm:$0xff] %v8996_v22  ;;  %v2110_v22 = vld [vmem:[#allocation2 + $0x1d2] sm:$0xff] }
 0x2ba   :  { %4598 = vmatprep.subr.bf16.mxu0 %v6567_v32 }
 0x2bb   :  { %5721 = vrot.lane.b32.xlu1 %v5720_v10, %s6565_s1  ;;  %v5795_v10 = vpack.i.bf16 %v1912_v63, %v1911_v5  ;;  %v6528_v5 = vld [vmem:[%s10879_s6 + $0x78] sm:$0xff]   ;;  %v5840_v63 = vpack.i.bf16 %v1932_v20, %v1931_v16  ;;  %v5915_v20 = vpack.i.bf16 %v8832_v27, %v1961_v47 }
 0x2bc   :  { %5741 = vrot.lane.b32.xlu0 %v5740_v45, %s6566_s2  ;;  %v5825_v45 = vpack.i.bf16 %v1926_v51, %v1925_v11  ;;  %5541 = vmatpush1.bf16.msra.mxu1 %v6523_v62  ;;  %v1949_v51 = vld [vmem:[#allocation2 + $0x18] sm:$0xff] }
 0x2bd   :  { %4599 = vmatpush1.bf16.msra.mxu0 %v6523_v62  ;;  %5526 = vmatprep.subr.bf16.mxu1 %v6567_v32  ;;  %v1936_v62 = vld [vmem:[#allocation2 + $0x292] sm:$0xff] }
 0x2be   :  { %4600 = vmatprep.subr.bf16.mxu0 %v6567_v32 }
 0x2bf   :  { %5731 = vrot.lane.b32.xlu1 %v5730_v61, %s6565_s1  ;;  %v6524_v61 = vld [vmem:[%s10879_s6 + $0x18] sm:$0xff]  }
 0x2c0   :  { %5751 = vrot.lane.b32.xlu0 %v8890_v7, %s6566_s2  ;;  %5542 = vmatpush1.bf16.msra.mxu1 %v6524_v61 }
 0x2c1   :  { %4601 = vmatpush1.bf16.msra.mxu0 %v6524_v61  ;;  %5527 = vmatprep.subr.bf16.mxu1 %v6567_v32  ;;  %v1939_v61 = vld [vmem:[#allocation2 + $0x2ba] sm:$0xff] }
 0x2c2   :  { %4602 = vmatprep.subr.bf16.mxu0 %v6567_v32 }
 0x2c3   :  { %5736 = vrot.lane.b32.xlu1 %v5735_v33, %s6566_s2  ;;  %v1920_v33 = vld [vmem:[#allocation2 + $0x1d2] sm:$0xff] }
 0x2c4   :  { %5761 = vrot.lane.b32.xlu0 %v8895_v41, %s6566_s2  ;;  %v5810_v19 = vpack.i.bf16 %v1920_v33, %v1919_v9  ;;  %5543 = vmatpush1.bf16.msra.mxu1 %v6525_v24  ;;  %v9005_v9 = vld [vmem:[#allocation2 + $0x50] sm:$0xff]  ;;  %v6530_v33 = vld [vmem:[%s10879_s6 + $0x68] sm:$0xff]  }
 0x2c5   :  { %4603 = vmatpush1.bf16.msra.mxu0 %v6525_v24  ;;  %5528 = vmatprep.subr.bf16.mxu1 %v6567_v32 }
 0x2c6   :  { %4604 = vmatprep.subr.bf16.mxu0 %v6567_v32 }
 0x2c7   :  { %5746 = vrot.lane.b32.xlu1 %v5745_v13, %s6566_s2  ;;  %v5845_v13 = vpack.i.bf16 %v1934_v48, %v1933_v29 }
 0x2c8   :  { %5771 = vrot.lane.b32.xlu0 %v8900_v25, %s6566_s2  ;;  %5544 = vmatpush1.bf16.msra.mxu1 %v6526_v57 }
 0x2c9   :  { %4605 = vmatpush1.bf16.msra.mxu0 %v6526_v57  ;;  %5529 = vmatprep.subr.bf16.mxu1 %v6567_v32 }
 0x2ca   :  { %4606 = vmatprep.subr.bf16.mxu0 %v6567_v32 }
 0x2cb   :  { %5756 = vrot.lane.b32.xlu1 %v8905_v53, %s6566_s2 }
 0x2cc   :  { %5781 = vrot.lane.b32.xlu0 %v8907_v37, %s6566_s2  ;;  %5545 = vmatpush1.bf16.msra.mxu1 %v6527_v36 }
 0x2cd   :  { %4607 = vmatpush1.bf16.msra.mxu0 %v6527_v36  ;;  %5530 = vmatprep.subr.bf16.mxu1 %v6567_v32  ;;  %v5880_v36 = vpack.i.bf16 %v1948_v55, %v1947_v35 }
 0x2ce   :  { %4608 = vmatprep.subr.bf16.mxu0 %v6567_v32 }
 0x2cf   :  { %5766 = vrot.lane.b32.xlu1 %v8918_v49, %s6566_s2 }
 0x2d0   :  { %5791 = vrot.lane.b32.xlu0 %v8920_v38, %s6566_s2  ;;  %5546 = vmatpush2.bf16.msra.mxu1 %v6528_v5 }
 0x2d1   :  { %4609 = vmatpush2.bf16.msra.mxu0 %v6528_v5  ;;  %5531 = vmatprep.subr.bf16.mxu1 %v6567_v32  ;;  %v6533_v5 = vld [vmem:[%s10879_s6 + $0x50] sm:$0xff]  }
 0x2d2   :  { %4610 = vmatprep.subr.bf16.mxu0 %v6567_v32 }
 0x2d3   :  { %5776 = vrot.lane.b32.xlu1 %v8931_v3, %s6566_s2 }
 0x2d4   :  { %5801 = vrot.lane.b32.xlu0 %v5800_v18, %s6566_s2  ;;  %v1945_v18 = vld [vmem:[#allocation2 + $0x302] sm:$0xff]  ;;  %5547 = vmatpush2.bf16.msra.mxu1 %v6529_v4 }
 0x2d5   :  { %v5875_v11 = vpack.i.bf16 %v1946_v28, %v1945_v18  ;;  %4611 = vmatpush2.bf16.msra.mxu0 %v6529_v4  ;;  %5532 = vmatprep.subr.bf16.mxu1 %v6567_v32  ;;  %v1761_v18 = vld [vmem:[#allocation2 + $0x30] sm:$0xff]  ;;  %v1762_v28 = vld [vmem:[#allocation2 + $0x38] sm:$0xff] }
 0x2d6   :  { %4612 = vmatprep.subr.bf16.mxu0 %v6567_v32  ;;  %v9058_v27 = vpack.i.bf16 %v1762_v28, %v1761_v18  ;;  %v1779_v28 = vld [vmem:[#allocation2 + $0x108] sm:$0xff] }
 0x2d7   :  { %5786 = vrot.lane.b32.xlu1 %v8941_v54, %s6566_s2 }
 0x2d8   :  { %5816 = vrot.lane.b32.xlu0 %v5815_v43, %s6566_s2  ;;  %v1935_v43 = vld [vmem:[#allocation2 + $0x28a] sm:$0xff]  ;;  %5548 = vmatpush2.bf16.msra.mxu1 %v6530_v33 }
 0x2d9   :  { %v5850_v30 = vpack.i.bf16 %v1936_v62, %v1935_v43  ;;  %5533 = vmatprep.subr.bf16.mxu1 %v6567_v32  ;;  %4613 = vmatpush2.bf16.msra.mxu0 %v6530_v33  ;;  %v9063_v43 = vld [vmem:[#allocation2 + $0x68] sm:$0xff] }
 0x2da   :  { %4614 = vmatprep.subr.bf16.mxu0 %v6567_v32  ;;  %v6534_v62 = vld [vmem:[%s10879_s6 + $0x48] sm:$0xff]  }
 0x2db   :  { %5796 = vrot.lane.b32.xlu1 %v5795_v10, %s6566_s2  ;;  %v1950_v10 = vld [vmem:[#allocation2 + $0x20] sm:$0xff] }
 0x2dc   :  { %5826 = vrot.lane.b32.xlu0 %v5825_v45, %s6566_s2  ;;  %v8994_v45 = vpop.permute.xlu1 %5581  ;;  %v5885_v52 = vpack.i.bf16 %v1950_v10, %v1949_v51  ;;  %5549 = vmatpush2.bf16.msra.mxu1 %v6531_v56  ;;  %v9061_v51 = vld [vmem:[#allocation2 + $0x60] sm:$0xff] }
 0x2dd   :  { %5534 = vmatprep.subr.bf16.mxu1 %v6567_v32  ;;  %4615 = vmatpush2.bf16.msra.mxu0 %v6531_v56 }
 0x2de   :  { %4616 = vmatprep.subr.bf16.mxu0 %v6567_v32 }
 0x2df   :  { %5806 = vrot.lane.b32.xlu1 %v5805_v15, %s6566_s2  ;;  %v1940_v15 = vld [vmem:[#allocation2 + $0x2c2] sm:$0xff] }
 0x2e0   :  { %5836 = vrot.lane.b32.xlu0 %v5835_v40, %s6566_s2  ;;  %v9003_v40 = vld [vmem:[#allocation2 + $0x48] sm:$0xff]  ;;  %v5860_v24 = vpack.i.bf16 %v1940_v15, %v1939_v61  ;;  %v9081_v61 = vld [vmem:[#allocation2 + $0x98] sm:$0xff]  ;;  %v6535_v15 = vld [vmem:[%s10879_s6 + $0x40] sm:$0xff]  }
 0x2e3   :  { %5811 = vrot.lane.b32.xlu1 %v5810_v19, %s6566_s2  ;;  %v5895_v19 = vpack.i.bf16 %v9005_v9, %v9003_v40 }
 0x2e4   :  { %5846 = vrot.lane.b32.xlu0 %v5845_v13, %s6566_s2  ;;  %v1943_v13 = vld [vmem:[#allocation2 + $0x2ea] sm:$0xff] }
 0x2e7   :  { %5821 = vrot.lane.b32.xlu1 %v5820_v34, %s6566_s2 }
 0x2e8   :  { %5856 = vrot.lane.b32.xlu0 %v5855_v2, %s6566_s2  ;;  %v5870_v2 = vpack.i.bf16 %v1944_v21, %v1943_v13  ;;  %v9097_v13 = vld [vmem:[#allocation2 + $0xb0] sm:$0xff] }
 0x2e9   :  { %v5955_v56 = vpack.i.bf16 %v9097_v13, %v1961_v47 }
 0x2eb   :  { %5831 = vrot.lane.b32.xlu1 %v5830_v59, %s6566_s2  ;;  %v6532_v59 = vld [vmem:[%s10879_s6 + $0x58] sm:$0xff]  }
 0x2ec   :  { %5866 = vrot.lane.b32.xlu0 %v5865_v26, %s6566_s2  ;;  %5550 = vmatpush2.bf16.msra.mxu1 %v6532_v59 }
 0x2ed   :  { %5535 = vmatprep.subr.bf16.mxu1 %v6567_v32  ;;  %4617 = vmatpush2.bf16.msra.mxu0 %v6532_v59  ;;  %v1777_v59 = vld [vmem:[#allocation2 + $0xf0] sm:$0xff] }
 0x2ee   :  { %4618 = vmatprep.subr.bf16.mxu0 %v6567_v32 }
 0x2ef   :  { %5841 = vrot.lane.b32.xlu1 %v5840_v63, %s6566_s2 }
 0x2f0   :  { %5876 = vrot.lane.b32.xlu0 %v5875_v11, %s6566_s2  ;;  %5551 = vmatpush2.bf16.msra.mxu1 %v6533_v5 }
 0x2f1   :  { %5536 = vmatprep.subr.bf16.mxu1 %v6567_v32  ;;  %4619 = vmatpush2.bf16.msra.mxu0 %v6533_v5 }
 0x2f2   :  { %4620 = vmatprep.subr.bf16.mxu0 %v6567_v32 }
 0x2f3   :  { %5851 = vrot.lane.b32.xlu1 %v5850_v30, %s6566_s2  ;;  %v5900_v30 = vpack.i.bf16 %v9063_v43, %v9061_v51 }
 0x2f4   :  { %5886 = vrot.lane.b32.xlu0 %v5885_v52, %s6568_s3  ;;  %v9079_v52 = vld [vmem:[#allocation2 + $0x90] sm:$0xff]  ;;  %5552 = vmatpush2.bf16.msra.mxu1 %v6534_v62 }
 0x2f5   :  { %v9012_v29 = vpop.permute.xlu1 %5591  ;;  %v9014_v48 = vpop.permute.xlu0 %5586  ;;  %5537 = vmatprep.subr.bf16.mxu1 %v6567_v32  ;;  %4621 = vmatpush2.bf16.msra.mxu0 %v6534_v62 }
 0x2f6   :  { %11117 = vst [vmem:[#allocation19_spill] sm:$0xff] %v9012_v29  ;;  %11118 = vst [vmem:[#allocation22_spill] sm:$0xff] %v9014_v48  ;;  %4622 = vmatprep.subr.bf16.mxu0 %v6567_v32  ;;  %v2181_v48 = vld [vmem:[#allocation2 + $0x230] sm:$0xff]  ;;  %v9342_v29 = vld [vmem:[#allocation2 + $0x241] sm:$0xff] }
 0x2f7   :  { %5861 = vrot.lane.b32.xlu1 %v5860_v24, %s6566_s2 }
 0x2f8   :  { %5896 = vrot.lane.b32.xlu0 %v5895_v19, %s6568_s3  ;;  %v5910_v19 = vpack.i.bf16 %v9081_v61, %v9079_v52  ;;  %5553 = vmatpush2.bf16.msra.mxu1 %v6535_v15 }
 0x2f9   :  { %v9029_v57 = vpop.permute.xlu1 %5596  ;;  %4623 = vmatpush2.bf16.msra.mxu0 %v6535_v15  ;;  %v2220_v15 = vld [vmem:[#allocation2 + $0xd9] sm:$0xff] }
 0x2fa   :  { %v9031_v34 = vpop.permute.xlu0 %5601 }
 0x2fb   :  { %5871 = vrot.lane.b32.xlu1 %v5870_v2, %s6566_s2 }
 0x2fc   :  { %5906 = vrot.lane.b32.xlu0 %v5905_v44, %s6568_s3 }
 0x2fd   :  { %v9042_v26 = vpop.permute.xlu1 %5606 }
 0x2fe   :  { %v9044_v16 = vpop.permute.xlu0 %5611 }
 0x2ff   :  { %5881 = vrot.lane.b32.xlu1 %v5880_v36, %s6566_s2  ;;  %v1778_v36 = vld [vmem:[#allocation2 + $0xf8] sm:$0xff] }
 0x300   :  { %5916 = vrot.lane.b32.xlu0 %v5915_v20, %s6568_s3 }
 0x301   :  { %v9054_v63 = vpop.permute.xlu1 %5616 }
 0x302   :  { %v9056_v11 = vpop.permute.xlu0 %5621 }
 0x303   :  { %5891 = vrot.lane.b32.xlu1 %v9058_v27, %s6568_s3 }
 0x304   :  { %5926 = vrot.lane.b32.xlu0 %v5905_v44, %s6566_s2  ;;  %v1776_v44 = vld [vmem:[#allocation2 + $0xe0] sm:$0xff] }
 0x305   :  { %v9072_v10 = vpop.permute.xlu1 %5626 }
 0x306   :  { %11119 = vst [vmem:[#allocation24_spill] sm:$0xff] %v9072_v10  ;;  %v9074_v4 = vpop.permute.xlu0 %5631  ;;  %v9344_v10 = vld [vmem:[#allocation2 + $0x249] sm:$0xff] }
 0x307   :  { %11120 = vst [vmem:[#allocation21_spill] sm:$0xff] %v9074_v4  ;;  %5901 = vrot.lane.b32.xlu1 %v5900_v30, %s6568_s3  ;;  %v1780_v30 = vld [vmem:[#allocation2 + $0x110] sm:$0xff] }
 0x308   :  { %5936 = vrot.lane.b32.xlu0 %v8905_v53, %s6565_s1 }
 0x309   :  { %v9090_v33 = vpop.permute.xlu1 %5636 }
 0x30a   :  { %11121 = vst [vmem:[#allocation23_spill] sm:$0xff] %v9090_v33  ;;  %v9092_v24 = vpop.permute.xlu0 %5641  ;;  %v9334_v33 = vld [vmem:[#allocation2 + $0x232] sm:$0xff] }
 0x30b   :  { %11122 = vst [vmem:[#allocation26_spill] sm:$0xff] %v9092_v24  ;;  %5911 = vrot.lane.b32.xlu1 %v5910_v19, %s6568_s3  ;;  %v9322_v24 = vld [vmem:[#allocation2 + $0x229] sm:$0xff] }
 0x30c   :  { %5946 = vrot.lane.b32.xlu0 %v5945_v60, %s6568_s3  ;;  %v5975_v60 = vpack.i.bf16 %v9097_v13, %v8852_v46 }
 0x30d   :  { %v9105_v53 = vpop.permute.xlu1 %5646 }
 0x30e   :  { %11123 = vst [vmem:[#allocation25_spill] sm:$0xff] %v9105_v53  ;;  %v9107_v21 = vpop.permute.xlu0 %5651 }
 0x30f   :  { %11124 = vst [vmem:[#allocation27_spill] sm:$0xff] %v9107_v21  ;;  %5921 = vrot.lane.b32.xlu1 %v8890_v7, %s6565_s1  ;;  %v1775_v7 = vld [vmem:[#allocation2 + $0xd8] sm:$0xff]  ;;  %v2177_v21 = vld [vmem:[#allocation2 + $0x200] sm:$0xff] }
 0x310   :  { %5956 = vrot.lane.b32.xlu0 %v5955_v56, %s6566_s2  ;;  %v5985_v1 = vpack.i.bf16 %v1776_v44, %v1775_v7  ;;  %v6025_v56 = vpack.i.bf16 %v1780_v30, %v1779_v28  ;;  %v1783_v28 = vld [vmem:[#allocation2 + $0x138] sm:$0xff] }
 0x311   :  { %v9113_v32 = vpop.permute.xlu1 %5656 }
 0x312   :  { %11125 = vst [vmem:[#allocation3_spill] sm:$0xff] %v9113_v32  ;;  %v9115_v2 = vpop.permute.xlu0 %5666 }
 0x313   :  { %11126 = vst [vmem:[#allocation4_spill] sm:$0xff] %v9115_v2  ;;  %5931 = vrot.lane.b32.xlu1 %v5930_v12, %s6568_s3  ;;  %v1773_v12 = vld [vmem:[#allocation2 + $0xc0] sm:$0xff]  ;;  %v2105_v2 = vld [vmem:[#allocation2 + $0x16a] sm:$0xff] }
 0x314   :  { %5966 = vrot.lane.b32.xlu0 %v8918_v49, %s6565_s1  ;;  %v1774_v49 = vld [vmem:[#allocation2 + $0xc8] sm:$0xff] }
 0x315   :  { %v9123_v50 = vpop.permute.xlu1 %5661  ;;  %v5995_v47 = vpack.i.bf16 %v1774_v49, %v1773_v12  ;;  %v1782_v12 = vld [vmem:[#allocation2 + $0x128] sm:$0xff]  ;;  %v2222_v49 = vld [vmem:[#allocation2 + $0xf1] sm:$0xff] }
 0x316   :  { %11127 = vst [vmem:[#allocation9_spill] sm:$0xff] %v9123_v50  ;;  %v9125_v0 = vpop.permute.xlu0 %5676  ;;  %v2109_v50 = vld [vmem:[#allocation2 + $0x1ca] sm:$0xff] }
 0x317   :  { %11128 = vst [vmem:[#allocation10_spill] sm:$0xff] %v9125_v0  ;;  %5941 = vrot.lane.b32.xlu1 %v5910_v19, %s6566_s2  ;;  %v5990_v19 = vpack.i.bf16 %v2221_v31, %v2220_v15  ;;  %v1784_v31 = vld [vmem:[#allocation2 + $0x140] sm:$0xff] }
 0x318   :  { %5976 = vrot.lane.b32.xlu0 %v5975_v60, %s6568_s3  ;;  %v1781_v60 = vld [vmem:[#allocation2 + $0x120] sm:$0xff] }
 0x319   :  { %v9131_v35 = vpop.permute.xlu1 %5671  ;;  %v2077_v0 = vld [vmem:[#allocation2 + $0x1a] sm:$0xff] }
 0x31a   :  { %11129 = vst [vmem:[#allocation8_spill] sm:$0xff] %v9131_v35  ;;  %v9133_v23 = vpop.permute.xlu0 %5686  ;;  %v2078_v35 = vld [vmem:[#allocation2 + $0x22] sm:$0xff] }
 0x31b   :  { %11130 = vst [vmem:[#allocation5_spill] sm:$0xff] %v9133_v23  ;;  %5951 = vrot.lane.b32.xlu1 %v8895_v41, %s6565_s1  ;;  %v6005_v41 = vpack.i.bf16 %v1778_v36, %v1777_v59  ;;  %v6045_v36 = vpack.i.bf16 %v1782_v12, %v1781_v60  ;;  %v2232_v23 = vld [vmem:[#allocation2 + $0x169] sm:$0xff] }
 0x31c   :  { %5986 = vrot.lane.b32.xlu0 %v5985_v1, %s6566_s2 }
 0x31d   :  { %v9138_v55 = vpop.permute.xlu1 %5681 }
 0x31e   :  { %11131 = vst [vmem:[#allocation6_spill] sm:$0xff] %v9138_v55  ;;  %v9140_v46 = vpop.permute.xlu0 %5696  ;;  %v2233_v55 = vld [vmem:[#allocation2 + $0x171] sm:$0xff] }
 0x31f   :  { %11132 = vst [vmem:[#allocation12_spill] sm:$0xff] %v9140_v46  ;;  %5961 = vrot.lane.b32.xlu1 %v5960_v17, %s6568_s3  ;;  %v2230_v46 = vld [vmem:[#allocation2 + $0x151] sm:$0xff] }
 0x320   :  { %5996 = vrot.lane.b32.xlu0 %v5995_v47, %s6568_s3 }
 0x321   :  { %v9147_v20 = vpop.permute.xlu1 %5691 }
 0x322   :  { %11133 = vst [vmem:[#allocation11_spill] sm:$0xff] %v9147_v20  ;;  %v9149_v18 = vpop.permute.xlu0 %5706  ;;  %v2231_v20 = vld [vmem:[#allocation2 + $0x159] sm:$0xff] }
 0x323   :  { %11134 = vst [vmem:[#allocation7_spill] sm:$0xff] %v9149_v18  ;;  %5971 = vrot.lane.b32.xlu1 %v5995_v47, %s6566_s2 }
 0x324   :  { %6006 = vrot.lane.b32.xlu0 %v6005_v41, %s6566_s2 }
 0x325   :  { %v9153_v5 = vpop.permute.xlu1 %5701 }
 0x326   :  { %11135 = vst [vmem:[#allocation14_spill] sm:$0xff] %v9153_v5  ;;  %v9155_v62 = vpop.permute.xlu0 %5716 }
 0x327   :  { %11136 = vst [vmem:[#allocation16_spill] sm:$0xff] %v9155_v62  ;;  %5981 = vrot.lane.b32.xlu1 %v8900_v25, %s6565_s1  ;;  %v2223_v25 = vld [vmem:[#allocation2 + $0xf9] sm:$0xff] }
 0x328   :  { %6016 = vrot.lane.b32.xlu0 %v5985_v1, %s6568_s3  ;;  %v6010_v59 = vpack.i.bf16 %v2223_v25, %v2222_v49  ;;  %v6065_v49 = vpack.i.bf16 %v1784_v31, %v1783_v28  ;;  %v1785_v25 = vld [vmem:[#allocation2 + $0x150] sm:$0xff]  ;;  %v2228_v62 = vld [vmem:[#allocation2 + $0x139] sm:$0xff] }
 0x329   :  { %v9160_v8 = vpop.permute.xlu1 %5711 }
 0x32a   :  { %11137 = vst [vmem:[#allocation13_spill] sm:$0xff] %v9160_v8  ;;  %v9162_v17 = vpop.permute.xlu0 %5726  ;;  %v2207_v8 = vld [vmem:[#allocation2 + $0x39] sm:$0xff] }
 0x32b   :  { %11138 = vst [vmem:[#allocation15_spill] sm:$0xff] %v9162_v17  ;;  %5991 = vrot.lane.b32.xlu1 %v5990_v19, %s6568_s3  ;;  %v2224_v19 = vld [vmem:[#allocation2 + $0x109] sm:$0xff]  ;;  %v1786_v17 = vld [vmem:[#allocation2 + $0x158] sm:$0xff] }
 0x32c   :  { %6026 = vrot.lane.b32.xlu0 %v6025_v56, %s6566_s2 }
 0x32d   :  { %v9166_v7 = vpop.permute.xlu1 %5721 }
 0x32e   :  { %11139 = vst [vmem:[#allocation18_spill] sm:$0xff] %v9166_v7  ;;  %v9168_v44 = vpop.permute.xlu0 %5741  ;;  %v2226_v7 = vld [vmem:[#allocation2 + $0x121] sm:$0xff] }
 0x32f   :  { %11140 = vst [vmem:[#allocation20_spill] sm:$0xff] %v9168_v44  ;;  %6001 = vrot.lane.b32.xlu1 %v8931_v3, %s6565_s1  ;;  %v2225_v3 = vld [vmem:[#allocation2 + $0x111] sm:$0xff]  ;;  %v5564_v44 = vunpack.i.h.bf16 %v8958_v14 }
 0x330   :  { %6036 = vrot.lane.b32.xlu0 %v6005_v41, %s6568_s3  ;;  %v6030_v12 = vpack.i.bf16 %v2225_v3, %v2224_v19  ;;  %v9203_v19 = vpack.i.bf16 %v1786_v17, %v1785_v25  ;;  %v2101_v25 = vld [vmem:[#allocation2 + $0x13a] sm:$0xff] }
 0x331   :  { %v9173_v1 = vpop.permute.xlu1 %5731 }
 0x332   :  { %11141 = vst [vmem:[#allocation28_spill] sm:$0xff] %v9173_v1  ;;  %v9175_v47 = vpop.permute.xlu0 %5751 }
 0x333   :  { %6011 = vrot.lane.b32.xlu1 %v6010_v59, %s6568_s3 }
 0x334   :  { %6046 = vrot.lane.b32.xlu0 %v6045_v36, %s6566_s2 }
 0x335   :  { %v9179_v30 = vpop.permute.xlu1 %5736 }
 0x336   :  { %11142 = vst [vmem:[#allocation29_spill] sm:$0xff] %v9179_v30  ;;  %v9181_v15 = vpop.permute.xlu0 %5761  ;;  %v2114_v30 = vld [vmem:[#allocation2 + $0x202] sm:$0xff] }
 0x337   :  { %6021 = vrot.lane.b32.xlu1 %v8907_v37, %s6565_s1  ;;  %v2227_v37 = vld [vmem:[#allocation2 + $0x129] sm:$0xff] }
 0x338   :  { %6056 = vrot.lane.b32.xlu0 %v6025_v56, %s6568_s3  ;;  %v6050_v31 = vpack.i.bf16 %v2227_v37, %v2226_v7  ;;  %v2102_v37 = vld [vmem:[#allocation2 + $0x142] sm:$0xff] }
 0x339   :  { %v9186_v41 = vpop.permute.xlu1 %5746 }
 0x33a   :  { %v9188_v60 = vpop.permute.xlu0 %5771 }
 0x33b   :  { %11143 = vst [vmem:[#allocation30_spill] sm:$0xff] %v9188_v60  ;;  %6031 = vrot.lane.b32.xlu1 %v6030_v12, %s6568_s3 }
 0x33c   :  { %6066 = vrot.lane.b32.xlu0 %v6065_v49, %s6566_s2 }
 0x33d   :  { %v9192_v59 = vpop.permute.xlu1 %5756 }
 0x33e   :  { %v9194_v1 = vpop.permute.xlu0 %5781 }
 0x33f   :  { %11144 = vst [vmem:[#allocation31_spill] sm:$0xff] %v9194_v1  ;;  %6041 = vrot.lane.b32.xlu1 %v8941_v54, %s6565_s1  ;;  %v2229_v54 = vld [vmem:[#allocation2 + $0x141] sm:$0xff] }
 0x340   :  { %6076 = vrot.lane.b32.xlu0 %v6045_v36, %s6568_s3  ;;  %v6070_v7 = vpack.i.bf16 %v2229_v54, %v2228_v62  ;;  %v2180_v1 = vld [vmem:[#allocation2 + $0x228] sm:$0xff] }
 0x341   :  { %v9199_v56 = vpop.permute.xlu1 %5766 }
 0x342   :  { %v9201_v28 = vpop.permute.xlu0 %5791 }
 0x343   :  { %11145 = vst [vmem:[#allocation32_spill] sm:$0xff] %v9201_v28  ;;  %6051 = vrot.lane.b32.xlu1 %v6050_v31, %s6568_s3  ;;  %v2206_v31 = vld [vmem:[#allocation2 + $0x31] sm:$0xff] }
 0x344   :  { %6086 = vrot.lane.b32.xlu0 %v9203_v19, %s6566_s2  ;;  %v2178_v28 = vld [vmem:[#allocation2 + $0x210] sm:$0xff] }
 0x345   :  { %v9208_v3 = vpop.permute.xlu1 %5776 }
 0x346   :  { %11146 = vst [vmem:[#allocation33_spill] sm:$0xff] %v9208_v3  ;;  %v9210_v12 = vpop.permute.xlu0 %5801 }
 0x347   :  { %11147 = vst [vmem:[#allocation34_spill] sm:$0xff] %v9210_v12  ;;  %6061 = vrot.lane.b32.xlu1 %v8920_v38, %s6565_s1  ;;  %v6080_v38 = vpack.i.bf16 %v2102_v37, %v2101_v25  ;;  %v6100_v37 = vpack.i.bf16 %v2078_v35, %v2077_v0  ;;  %v5573_v12 = vunpack.i.l.bf16 %v8980_v6 }
 0x348   :  { %6096 = vrot.lane.b32.xlu0 %v6065_v49, %s6568_s3  ;;  %v6115_v49 = vpack.i.bf16 %v2207_v8, %v2206_v31 }
 0x349   :  { %v9215_v36 = vpop.permute.xlu1 %5786 }
 0x34a   :  { %11148 = vst [vmem:[#allocation35_spill] sm:$0xff] %v9215_v36  ;;  %v9217_v17 = vpop.permute.xlu0 %5816  ;;  %v2179_v36 = vld [vmem:[#allocation2 + $0x218] sm:$0xff] }
 0x34b   :  { %11149 = vst [vmem:[#allocation36_spill] sm:$0xff] %v9217_v17  ;;  %6071 = vrot.lane.b32.xlu1 %v6070_v7, %s6568_s3  ;;  %v6090_v7 = vpack.i.bf16 %v2231_v20, %v2230_v46  ;;  %v2079_v17 = vld [vmem:[#allocation2 + $0x32] sm:$0xff] }
 0x34c   :  { %6106 = vrot.lane.b32.xlu0 %v9058_v27, %s6566_s2  ;;  %v6125_v27 = vpack.i.bf16 %v2233_v55, %v2232_v23  ;;  %v1787_v23 = vld [vmem:[#allocation2 + $0x168] sm:$0xff] }
 0x34d   :  { %v9222_v18 = vpop.permute.xlu1 %5796 }
 0x34e   :  { %11150 = vst [vmem:[#allocation37_spill] sm:$0xff] %v9222_v18  ;;  %v9224_v5 = vpop.permute.xlu0 %5826 }
 0x34f   :  { %11151 = vst [vmem:[#allocation38_spill] sm:$0xff] %v9224_v5  ;;  %6081 = vrot.lane.b32.xlu1 %v6080_v38, %s6565_s1  ;;  %v2080_v5 = vld [vmem:[#allocation2 + $0x3a] sm:$0xff]  ;;  %v2103_v38 = vld [vmem:[#allocation2 + $0x152] sm:$0xff] }
 0x350   :  { %6116 = vrot.lane.b32.xlu0 %v6115_v49, %s6568_s3  ;;  %v6135_v31 = vpack.i.bf16 %v2080_v5, %v2079_v17  ;;  %v2104_v49 = vld [vmem:[#allocation2 + $0x15a] sm:$0xff] }
 0x351   :  { %v9228_v62 = vpop.permute.xlu1 %5806  ;;  %v6110_v20 = vpack.i.bf16 %v2104_v49, %v2103_v38  ;;  %v2145_v38 = vld [vmem:[#allocation2 + $0x50] sm:$0xff]  ;;  %v2146_v49 = vld [vmem:[#allocation2 + $0x60] sm:$0xff] }
 0x352   :  { %11152 = vst [vmem:[#allocation39_spill] sm:$0xff] %v9228_v62  ;;  %v9230_v54 = vpop.permute.xlu0 %5836  ;;  %v2239_v62 = vld [vmem:[#allocation2 + $0x1e9] sm:$0xff] }
 0x353   :  { %11153 = vst [vmem:[#allocation40_spill] sm:$0xff] %v9230_v54  ;;  %6091 = vrot.lane.b32.xlu1 %v6090_v7, %s6568_s3  ;;  %v2106_v54 = vld [vmem:[#allocation2 + $0x172] sm:$0xff] }
 0x354   :  { %6126 = vrot.lane.b32.xlu0 %v6125_v27, %s6568_s3  ;;  %v6145_v7 = vpack.i.bf16 %v2106_v54, %v2105_v2  ;;  %v1788_v27 = vld [vmem:[#allocation2 + $0x170] sm:$0xff] }
 0x355   :  { %v9234_v8 = vpop.permute.xlu1 %5811  ;;  %v6120_v5 = vpack.i.bf16 %v1788_v27, %v1787_v23  ;;  %v2208_v27 = vld [vmem:[#allocation2 + $0x49] sm:$0xff] }
 0x356   :  { %11154 = vst [vmem:[#allocation41_spill] sm:$0xff] %v9234_v8  ;;  %v9236_v25 = vpop.permute.xlu0 %5846  ;;  %v2170_v8 = vld [vmem:[#allocation2 + $0x180] sm:$0xff] }
 0x357   :  { %11155 = vst [vmem:[#allocation42_spill] sm:$0xff] %v9236_v25  ;;  %6101 = vrot.lane.b32.xlu1 %v6100_v37, %s6565_s1  ;;  %v2171_v25 = vld [vmem:[#allocation2 + $0x188] sm:$0xff] }
 0x358   :  { %6136 = vrot.lane.b32.xlu0 %v6135_v31, %s6565_s1  ;;  %v9250_v17 = vpack.i.bf16 %v2171_v25, %v2170_v8  ;;  %v2144_v37 = vld [vmem:[#allocation2 + $0x48] sm:$0xff] }
 0x359   :  { %v9240_v55 = vpop.permute.xlu1 %5821  ;;  %v6536_v31 = vld [vmem:[%s10879_s6 + $0x88] sm:$0xff]   ;;  %v6140_v23 = vpack.i.bf16 %v2145_v38, %v2144_v37 }
 0x35a   :  { %11156 = vst [vmem:[#allocation43_spill] sm:$0xff] %v9240_v55  ;;  %v9242_v46 = vpop.permute.xlu0 %5856  ;;  %5454 = vmatprep.subr.bf16.mxu0 %v6536_v31  ;;  %v2234_v38 = vld [vmem:[#allocation2 + $0x181] sm:$0xff]  ;;  %v2081_v55 = vld [vmem:[#allocation2 + $0x4a] sm:$0xff] }
 0x35b   :  { %11157 = vst [vmem:[#allocation44_spill] sm:$0xff] %v9242_v46  ;;  %6111 = vrot.lane.b32.xlu1 %v6110_v20, %s6565_s1  ;;  %v2147_v20 = vld [vmem:[#allocation2 + $0x68] sm:$0xff] }
 0x35c   :  { %6146 = vrot.lane.b32.xlu0 %v6145_v7, %s6565_s1  ;;  %v6175_v7 = vpack.i.bf16 %v2147_v20, %v2146_v49  ;;  %v9271_v46 = vld [vmem:[#allocation2 + $0x69] sm:$0xff] }
 0x35d   :  { %v9246_v0 = vpop.permute.xlu1 %5831  ;;  %v2235_v49 = vld [vmem:[#allocation2 + $0x189] sm:$0xff] }
 0x35e   :  { %11158 = vst [vmem:[#allocation45_spill] sm:$0xff] %v9246_v0  ;;  %v9248_v35 = vpop.permute.xlu0 %5866  ;;  %v6160_v0 = vpack.i.bf16 %v2235_v49, %v2234_v38 }
 0x35f   :  { %11159 = vst [vmem:[#allocation46_spill] sm:$0xff] %v9248_v35  ;;  %6121 = vrot.lane.b32.xlu1 %v6120_v5, %s6566_s2  ;;  %v9269_v35 = vld [vmem:[#allocation2 + $0x61] sm:$0xff] }
 0x360   :  { %6156 = vrot.lane.b32.xlu0 %v9250_v17, %s6566_s2  ;;  %v6185_v37 = vpack.i.bf16 %v9271_v46, %v9269_v35 }
 0x361   :  { %v9255_v2 = vpop.permute.xlu1 %5841 }
 0x362   :  { %11160 = vst [vmem:[#allocation47_spill] sm:$0xff] %v9255_v2  ;;  %v9257_v54 = vpop.permute.xlu0 %5876  ;;  %v2237_v2 = vld [vmem:[#allocation2 + $0x1a1] sm:$0xff] }
 0x363   :  { %11161 = vst [vmem:[#allocation48_spill] sm:$0xff] %v9257_v54  ;;  %6131 = vrot.lane.b32.xlu1 %v9203_v19, %s6568_s3  ;;  %v2209_v54 = vld [vmem:[#allocation2 + $0x51] sm:$0xff]  ;;  %v2236_v19 = vld [vmem:[#allocation2 + $0x199] sm:$0xff] }
 0x364   :  { %6166 = vrot.lane.b32.xlu0 %v6120_v5, %s6568_s3  ;;  %v6190_v20 = vpack.i.bf16 %v2237_v2, %v2236_v19  ;;  %v2107_v2 = vld [vmem:[#allocation2 + $0x182] sm:$0xff]  ;;  %v2108_v19 = vld [vmem:[#allocation2 + $0x18a] sm:$0xff] }
 0x365   :  { %v9265_v8 = vpop.permute.xlu1 %5851 }
 0x366   :  { %11162 = vst [vmem:[#allocation49_spill] sm:$0xff] %v9265_v8  ;;  %v9267_v25 = vpop.permute.xlu0 %5886  ;;  %v6150_v8 = vpack.i.bf16 %v2209_v54, %v2208_v27 }
 0x367   :  { %11163 = vst [vmem:[#allocation50_spill] sm:$0xff] %v9267_v25  ;;  %6141 = vrot.lane.b32.xlu1 %v6140_v23, %s6566_s2  ;;  %v9320_v25 = vld [vmem:[#allocation2 + $0x21a] sm:$0xff] }
 0x368   :  { %6176 = vrot.lane.b32.xlu0 %v6175_v7, %s6566_s2 }
 0x369   :  { %v9275_v5 = vpop.permute.xlu1 %5861 }
 0x36a   :  { %11164 = vst [vmem:[#allocation51_spill] sm:$0xff] %v9275_v5  ;;  %v9277_v31 = vpop.permute.xlu0 %5896  ;;  %v2082_v5 = vld [vmem:[#allocation2 + $0x52] sm:$0xff] }
 0x36b   :  { %11165 = vst [vmem:[#allocation52_spill] sm:$0xff] %v9277_v31  ;;  %6151 = vrot.lane.b32.xlu1 %v6150_v8, %s6568_s3  ;;  %v6170_v8 = vpack.i.bf16 %v2082_v5, %v2081_v55  ;;  %v2111_v31 = vld [vmem:[#allocation2 + $0x1e2] sm:$0xff] }
 0x36c   :  { %6186 = vrot.lane.b32.xlu0 %v6185_v37, %s6568_s3  ;;  %v6200_v37 = vpack.i.bf16 %v2110_v22, %v2109_v50  ;;  %v5563_v22 = vunpack.i.l.bf16 %v8958_v14  ;;  %v1758_v50 = vld [vmem:[#allocation2 + $0x8] sm:$0xff]  ;;  %v1757_v55 = vld [vmem:[#allocation2] sm:$0xff] }
 0x36d   :  { %v9283_v23 = vpop.permute.xlu1 %5871  ;;  %v2174_v5 = vld [vmem:[#allocation2 + $0x1e0] sm:$0xff]  ;;  %v1981_v14 = vld [vmem:[#allocation2 + $0x1c8] sm:$0xff]  ;;  %v3871_v18 = vsel %vm1059_vm2, %v1758_v50, %v5564_v44  ;;  %v9324_v44 = vld [vmem:[#allocation2 + $0x231] sm:$0xff] }
 0x36e   :  { %11166 = vst [vmem:[#allocation53_spill] sm:$0xff] %v9283_v23  ;;  %v9285_v7 = vpop.permute.xlu0 %5906  ;;  %v2238_v23 = vld [vmem:[#allocation2 + $0x1e1] sm:$0xff]  ;;  %v3870_v53 = vsel %vm1059_vm2, %v1757_v55, %v5563_v22  ;;  %v9332_v55 = vld [vmem:[#allocation2 + $0x22a] sm:$0xff] }
 0x36f   :  { %6161 = vrot.lane.b32.xlu1 %v6160_v0, %s6568_s3  ;;  %v6180_v0 = vpack.i.bf16 %v2108_v19, %v2107_v2  ;;  %v2175_v2 = vld [vmem:[#allocation2 + $0x1e8] sm:$0xff]  ;;  %v5574_v19 = vunpack.i.h.bf16 %v8980_v6  ;;  %v9318_v6 = vld [vmem:[#allocation2 + $0x212] sm:$0xff]  ;;  %v9337_v4 = vsel %vm3934_vm5, %v3870_v53, %v5573_v12  ;;  %v5749_v12 = vunpack.i.h.bf16 %v9186_v41 }
 0x370   :  { %6191 = vrot.lane.b32.xlu0 %v6190_v20, %s6568_s3  ;;  %v6210_v20 = vpack.i.bf16 %v2239_v62, %v2238_v23  ;;  %v2240_v62 = vld [vmem:[#allocation2 + $0x1f9] sm:$0xff]  ;;  %v2241_v23 = vld [vmem:[#allocation2 + $0x201] sm:$0xff]  ;;  %11169 = vst [vmem:[#allocation56_spill] sm:$0xff] %v9337_v4  ;;  %v9353_v53 = vld [vmem:[#allocation2 + $0x24a] sm:$0xff] }
 0x371   :  { %v9289_v54 = vpop.permute.xlu1 %5881  ;;  %v9340_v3 = vsel %vm3934_vm5, %v3871_v18, %v5574_v19  ;;  %v9359_v19 = vpack.i.bf16 %v2179_v36, %v2178_v28  ;;  %v5598_v28 = vunpack.i.l.bf16 %v9029_v57 }
 0x372   :  { %11167 = vst [vmem:[#allocation54_spill] sm:$0xff] %v9289_v54  ;;  %v9291_v27 = vpop.permute.xlu0 %5916  ;;  %v2112_v54 = vld [vmem:[#allocation2 + $0x1ea] sm:$0xff]  ;;  %11170 = vst [vmem:[#allocation57_spill] sm:$0xff] %v9340_v3  ;;  %v5748_v3 = vunpack.i.l.bf16 %v9186_v41 }
 0x373   :  { %6171 = vrot.lane.b32.xlu1 %v6170_v8, %s6565_s1  ;;  %v6220_v32 = vpack.i.bf16 %v2112_v54, %v2111_v31  ;;  %v9314_v31 = vld [vmem:[#allocation2 + $0x211] sm:$0xff]  ;;  %v9316_v54 = vld [vmem:[#allocation2 + $0x219] sm:$0xff] }
 0x374   :  { %6201 = vrot.lane.b32.xlu0 %v6200_v37, %s6565_s1  ;;  %v6250_v18 = vpack.i.bf16 %v9316_v54, %v9314_v31 }
 0x375   :  { %v9295_v38 = vpop.permute.xlu1 %5891 }
 0x376   :  { %11168 = vst [vmem:[#allocation55_spill] sm:$0xff] %v9295_v38  ;;  %v9297_v49 = vpop.permute.xlu0 %5926  ;;  %v1982_v38 = vld [vmem:[#allocation2 + $0x1d0] sm:$0xff] }
 0x377   :  { %6181 = vrot.lane.b32.xlu1 %v6180_v0, %s6565_s1  ;;  %v2113_v0 = vld [vmem:[#allocation2 + $0x1fa] sm:$0xff]  ;;  %v5928_v60 = vunpack.i.l.bf16 %v9297_v49 }
 0x378   :  { %6211 = vrot.lane.b32.xlu0 %v6210_v20, %s6568_s3  ;;  %v2176_v20 = vld [vmem:[#allocation2 + $0x1f8] sm:$0xff] }
 0x379   :  { %v9303_v8 = vpop.permute.xlu1 %5901 }
 0x37a   :  { %v9305_v37 = vpop.permute.xlu0 %5936 }
 0x37b   :  { %6196 = vrot.lane.b32.xlu1 %v9250_v17, %s6568_s3  ;;  %v9330_v17 = vpack.i.bf16 %v2175_v2, %v2174_v5  ;;  %v6215_v5 = vpack.i.bf16 %v1982_v38, %v1981_v14  ;;  %v6240_v2 = vpack.i.bf16 %v2114_v30, %v2113_v0  ;;  %v2183_v38 = vld [vmem:[#allocation2 + $0x248] sm:$0xff]  ;;  %v2021_v0 = vld [vmem:[#allocation2 + $0x79] sm:$0xff] }
 0x37c   :  { %6221 = vrot.lane.b32.xlu0 %v6220_v32, %s6565_s1  ;;  %v6230_v32 = vpack.i.bf16 %v2241_v23, %v2240_v62  ;;  %v9349_v62 = vpack.i.bf16 %v2177_v21, %v2176_v20  ;;  %v9351_v23 = vld [vmem:[#allocation2 + $0x242] sm:$0xff]  ;;  %v5599_v21 = vunpack.i.h.bf16 %v9029_v57  ;;  %v9368_v20 = vpack.i.bf16 %v2181_v48, %v2180_v1 }
 0x37d   :  { %v9326_v22 = vpop.permute.xlu1 %5911  ;;  %v5904_v1 = vunpack.i.h.bf16 %v9303_v8  ;;  %v5903_v57 = vunpack.i.l.bf16 %v9303_v8  ;;  %v3876_v8 = vsel %vm1059_vm2, %v9003_v40, %v5598_v28 }
 0x37e   :  { %v9328_v50 = vpop.permute.xlu0 %5946  ;;  %v3877_v41 = vsel %vm1059_vm2, %v9005_v9, %v5599_v21 }
 0x37f   :  { %6206 = vrot.lane.b32.xlu1 %v9330_v17, %s6566_s2 }
 0x380   :  { %6231 = vrot.lane.b32.xlu0 %v6230_v32, %s6568_s3  ;;  %v2182_v32 = vld [vmem:[#allocation2 + $0x240] sm:$0xff] }
 0x381   :  { %v5922_v30 = vpop.permute.xlu1 %5921  ;;  %v9380_v48 = vpack.i.bf16 %v2183_v38, %v2182_v32  ;;  %v5919_v38 = vunpack.i.h.bf16 %v9291_v27 }
 0x382   :  { %v9364_v14 = vpop.permute.xlu0 %5956  ;;  %v5924_v36 = vunpack.i.h.bf16 %v5922_v30  ;;  %v5923_v54 = vunpack.i.l.bf16 %v5922_v30 }
 0x383   :  { %6216 = vrot.lane.b32.xlu1 %v6215_v5, %s6568_s3  ;;  %v5929_v5 = vunpack.i.h.bf16 %v9297_v49  ;;  %v3941_v49 = vsel %vm3934_vm5, %v3876_v8, %v5748_v3 }
 0x384   :  { %6241 = vrot.lane.b32.xlu0 %v6240_v2, %s6565_s1  ;;  %v4070_v30 = vsel %vm1059_vm2, %v9269_v35, %v5923_v54  ;;  %v4071_v4 = vsel %vm1059_vm2, %v9271_v46, %v5924_v36  ;;  %v5939_v35 = vunpack.i.h.bf16 %v9305_v37  ;;  %v5938_v46 = vunpack.i.l.bf16 %v9305_v37 }
 0x385   :  { %v5932_v31 = vpop.permute.xlu1 %5931  ;;  %v4134_v32 = vsel %vm3934_vm5, %v4070_v30, %v5928_v60  ;;  %v4135_v9 = vsel %vm3934_vm5, %v4071_v4, %v5929_v5  ;;  %v3942_v60 = vsel %vm3934_vm5, %v3877_v41, %v5749_v12  ;;  %v4006_v28 = vsel %vm3999_vm6, %v3941_v49, %v5903_v57  ;;  %v2022_v4 = vld [vmem:[#allocation2 + $0x81] sm:$0xff]  ;;  %v9414_v41 = vld [vmem:[#allocation2 + $0x259] sm:$0xff] }
 0x386   :  { %v9391_v2 = vpop.permute.xlu0 %5966  ;;  %v5933_v54 = vunpack.i.l.bf16 %v5932_v31  ;;  %v4198_v40 = vsel %vm3999_vm6, %v4134_v32, %v5919_v38  ;;  %v4007_v36 = vsel %vm3999_vm6, %v3942_v60, %v5904_v1  ;;  %v5604_v37 = vunpack.i.h.bf16 %v9031_v34  ;;  %v9418_v38 = vld [vmem:[#allocation2 + $0x261] sm:$0xff] }
 0x387   :  { %6226 = vrot.lane.b32.xlu1 %v9349_v62, %s6566_s2  ;;  %v5603_v30 = vunpack.i.l.bf16 %v9031_v34  ;;  %v5753_v32 = vunpack.i.l.bf16 %v9175_v47  ;;  %v4073_v57 = vsel %vm1059_vm2, %v2022_v4, %v5939_v35  ;;  %v9422_v34 = vld [vmem:[#allocation2 + $0x262] sm:$0xff]  ;;  %v5948_v49 = vunpack.i.l.bf16 %v9328_v50 }
 0x388   :  { %6251 = vrot.lane.b32.xlu0 %v6250_v18, %s6568_s3  ;;  %v4199_v21 = vsel %vm3999_vm6, %v4135_v9, %v5933_v54  ;;  %v5754_v18 = vunpack.i.h.bf16 %v9175_v47  ;;  %v9420_v54 = vld [vmem:[#allocation2 + $0x25a] sm:$0xff]  ;;  %v4072_v9 = vsel %vm1059_vm2, %v2021_v0, %v5938_v46  ;;  %v5934_v60 = vunpack.i.h.bf16 %v5932_v31 }
 0x389   :  { %v5942_v5 = vpop.permute.xlu1 %5941  ;;  %v4266_v12 = vpack.c.bf16 %v4199_v21, %v4198_v40  ;;  %v11171_v47 = vpack.i.bf16 %v9320_v25, %v9318_v6  ;;  %v4265_v35 = vpack.c.bf16 %v4007_v36, %v4006_v28  ;;  %v5909_v40 = vunpack.i.h.bf16 %v9285_v7 }
 0x38a   :  { %v9412_v3 = vpop.permute.xlu0 %5976  ;;  %v5944_v8 = vunpack.i.h.bf16 %v5942_v5  ;;  %v5943_v1 = vunpack.i.l.bf16 %v5942_v5  ;;  %v5908_v21 = vunpack.i.l.bf16 %v9285_v7  ;;  %v6310_v25 = vpack.i.bf16 %v9418_v38, %v9414_v41  ;;  %v9578_v41 = vld [vmem:[#allocation2 + $0x2aa] sm:$0xff] }
 0x38b   :  { %6236 = vrot.lane.b32.xlu1 %v9330_v17, %s6568_s3  ;;  %4648 = vmatprep.mubr.bf16.mxu1 %v4266_v12  ;;  %v6320_v6 = vpack.i.bf16 %v9422_v34, %v9420_v54  ;;  %v3879_v7 = vsel %vm1059_vm2, %v9063_v43, %v5604_v37  ;;  %v3878_v28 = vsel %vm1059_vm2, %v9061_v51, %v5603_v30  ;;  %v5618_v38 = vunpack.i.l.bf16 %v9054_v63  ;;  %v6542_v34 = vld [vmem:[#allocation2 + $0xa8] sm:$0xff] }
 0x38c   :  { %6261 = vrot.lane.b32.xlu0 %v11171_v47, %s6565_s1  ;;  %v4136_v4 = vsel %vm3934_vm5, %v4072_v9, %v5943_v1  ;;  %v4137_v0 = vsel %vm3934_vm5, %v4073_v57, %v5944_v8  ;;  %4649 = vmatmul.mubr.bf16.vlgmr.msra.gmra.mxu1 %v4265_v35  ;;  %v5958_v57 = vunpack.i.l.bf16 %v9364_v14  ;;  %v2023_v8 = vld [vmem:[#allocation2 + $0x91] sm:$0xff]  ;;  %v2024_v1 = vld [vmem:[#allocation2 + $0x99] sm:$0xff]  ;;  %v11172_v9 = vpack.i.bf16 %v9324_v44, %v9322_v24 }
 0x38d   :  { %v5952_v31 = vpop.permute.xlu1 %5951  ;;  %v4200_v17 = vsel %vm3999_vm6, %v4136_v4, %v5934_v60  ;;  %v4201_v5 = vsel %vm3999_vm6, %v4137_v0, %v5948_v49  ;;  %v3943_v43 = vsel %vm3934_vm5, %v3878_v28, %v5753_v32  ;;  %v3944_v37 = vsel %vm3934_vm5, %v3879_v7, %v5754_v18  ;;  %v2025_v28 = vld [vmem:[#allocation2 + $0xa9] sm:$0xff] }
 0x38e   :  { %v9436_v46 = vpop.permute.xlu0 %5986  ;;  %v5954_v36 = vunpack.i.h.bf16 %v5952_v31  ;;  %v5953_v12 = vunpack.i.l.bf16 %v5952_v31  ;;  %v4269_v49 = vpack.c.bf16 %v4201_v5, %v4200_v17  ;;  %v4008_v60 = vsel %vm3999_vm6, %v3943_v43, %v5908_v21 }
 0x38f   :  { %6246 = vrot.lane.b32.xlu1 %v9359_v19, %s6566_s2  ;;  %v4009_v47 = vsel %vm3999_vm6, %v3944_v37, %v5909_v40  ;;  %v5609_v35 = vunpack.i.h.bf16 %v9042_v26  ;;  %v5608_v4 = vunpack.i.l.bf16 %v9042_v26  ;;  %v5959_v24 = vunpack.i.h.bf16 %v9364_v14 }
 0x390   :  { %6271 = vrot.lane.b32.xlu0 %v11172_v9, %s6568_s3  ;;  %v4075_v51 = vsel %vm1059_vm2, %v2024_v1, %v5954_v36  ;;  %v4074_v30 = vsel %vm1059_vm2, %v2023_v8, %v5953_v12  ;;  %4656 = vmatprep.mubr.bf16.mxu1 %v4269_v49  ;;  %v5759_v32 = vunpack.i.h.bf16 %v9192_v59  ;;  %v5758_v31 = vunpack.i.l.bf16 %v9192_v59  ;;  %v2185_v9 = vld [vmem:[#allocation2 + $0x260] sm:$0xff] }
 0x391   :  { %v5962_v44 = vpop.permute.xlu1 %5961  ;;  %v4138_v18 = vsel %vm3934_vm5, %v4074_v30, %v5958_v57  ;;  %v5949_v21 = vunpack.i.h.bf16 %v9328_v50  ;;  %v5969_v40 = vunpack.i.h.bf16 %v9391_v2  ;;  %v5968_v5 = vunpack.i.l.bf16 %v9391_v2  ;;  %v9494_v30 = vld [vmem:[#allocation2 + $0x279] sm:$0xff] }
 0x392   :  { %v9464_v0 = vpop.permute.xlu0 %5996  ;;  %v5963_v17 = vunpack.i.l.bf16 %v5962_v44  ;;  %v11173_v26 = vpack.i.bf16 %v9334_v33, %v9332_v55  ;;  %v4268_v14 = vpack.c.bf16 %v4009_v47, %v4008_v60  ;;  %v4139_v7 = vsel %vm3934_vm5, %v4075_v51, %v5959_v24  ;;  %v2026_v55 = vld [vmem:[#allocation2 + $0xb1] sm:$0xff] }
 0x393   :  { %6256 = vrot.lane.b32.xlu1 %v9349_v62, %s6568_s3  ;;  %v5914_v59 = vunpack.i.h.bf16 %v9326_v22  ;;  %v5913_v50 = vunpack.i.l.bf16 %v9326_v22  ;;  %v4202_v36 = vsel %vm3999_vm6, %v4138_v18, %v5949_v21  ;;  %v3881_v62 = vsel %vm1059_vm2, %v9022_v42, %v5609_v35  ;;  %v2184_v22 = vld [vmem:[#allocation2 + $0x258] sm:$0xff] }
 0x394   :  { %6281 = vrot.lane.b32.xlu0 %v11173_v26, %s6565_s1  ;;  %v4203_v2 = vsel %vm3999_vm6, %v4139_v7, %v5963_v17  ;;  %v3880_v12 = vsel %vm1059_vm2, %v9020_v58, %v5608_v4  ;;  %v5614_v33 = vunpack.i.h.bf16 %v9044_v16  ;;  %4657 = vmatmul.mubr.bf16.gmra.mxu1 %v4268_v14  ;;  %v3946_v51 = vsel %vm3934_vm5, %v3881_v62, %v5759_v32  ;;  %v9492_v42 = vld [vmem:[#allocation2 + $0x271] sm:$0xff]  ;;  %v9507_v18 = vld [vmem:[#allocation2 + $0x27a] sm:$0xff] }
 0x395   :  { %v5972_v57 = vpop.permute.xlu1 %5971  ;;  %v4272_v1 = vpack.c.bf16 %v4203_v2, %v4202_v36  ;;  %v3945_v37 = vsel %vm3934_vm5, %v3880_v12, %v5758_v31  ;;  %v9496_v58 = vld [vmem:[#allocation2 + $0x272] sm:$0xff]  ;;  %v4077_v60 = vsel %vm1059_vm2, %v2026_v55, %v5969_v40  ;;  %v4076_v47 = vsel %vm1059_vm2, %v2025_v28, %v5968_v5  ;;  %v9513_v5 = vld [vmem:[#allocation2 + $0x289] sm:$0xff] }
 0x396   :  { %v9488_v8 = vpop.permute.xlu0 %6006  ;;  %v5974_v49 = vunpack.i.h.bf16 %v5972_v57  ;;  %v5973_v43 = vunpack.i.l.bf16 %v5972_v57  ;;  %v5978_v35 = vunpack.i.l.bf16 %v9412_v3  ;;  %v5964_v4 = vunpack.i.h.bf16 %v5962_v44  ;;  %v2186_v32 = vld [vmem:[#allocation2 + $0x270] sm:$0xff]  ;;  %v2187_v31 = vld [vmem:[#allocation2 + $0x278] sm:$0xff] }
 0x397   :  { %6266 = vrot.lane.b32.xlu1 %v9368_v20, %s6566_s2  ;;  %v11174_v24 = vpack.i.bf16 %v9344_v10, %v9342_v29  ;;  %4664 = vmatprep.mubr.bf16.mxu1 %v4272_v1  ;;  %v4010_v21 = vsel %vm3999_vm6, %v3945_v37, %v5913_v50  ;;  %v4011_v17 = vsel %vm3999_vm6, %v3946_v51, %v5914_v59  ;;  %v9523_v28 = vld [vmem:[#allocation2 + $0x291] sm:$0xff]  ;;  %v5613_v57 = vunpack.i.l.bf16 %v9044_v16 }
 0x398   :  { %v4140_v40 = vsel %vm3934_vm5, %v4076_v47, %v5973_v43  ;;  %v4141_v44 = vsel %vm3934_vm5, %v4077_v60, %v5974_v49  ;;  %v9519_v7 = vpack.i.bf16 %v2185_v9, %v2184_v22  ;;  %v6330_v50 = vpack.i.bf16 %v9494_v30, %v9492_v42  ;;  %v9525_v59 = vld [vmem:[#allocation2 + $0x28a] sm:$0xff]  ;;  %v9527_v36 = vld [vmem:[#allocation2 + $0x292] sm:$0xff]  ;;  %v2027_v22 = vld [vmem:[#allocation2 + $0xc1] sm:$0xff] }
 0x399   :  { %6291 = vrot.lane.b32.xlu0 %v11174_v24, %s6568_s3  ;;  %v5982_v26 = vpop.permute.xlu1 %5981  ;;  %v4204_v29 = vsel %vm3999_vm6, %v4140_v40, %v5964_v4  ;;  %v4205_v10 = vsel %vm3999_vm6, %v4141_v44, %v5978_v35  ;;  %v6340_v12 = vpack.i.bf16 %v9507_v18, %v9496_v58  ;;  %v9531_v55 = vpack.i.bf16 %v2187_v31, %v2186_v32  ;;  %v2028_v60 = vld [vmem:[#allocation2 + $0xc9] sm:$0xff]  ;;  %v9635_v30 = vld [vmem:[#allocation2 + $0x2d1] sm:$0xff]  ;;  %v6544_v58 = vld [vmem:[#allocation2 + $0xc0] sm:$0xff] }
 0x39a   :  { %v9515_v14 = vpop.permute.xlu0 %6016  ;;  %v5984_v2 = vunpack.i.h.bf16 %v5982_v26  ;;  %v5983_v62 = vunpack.i.l.bf16 %v5982_v26  ;;  %v5764_v1 = vunpack.i.h.bf16 %v9181_v15  ;;  %v11175_v9 = vpack.i.bf16 %v9353_v53, %v9351_v23  ;;  %v2189_v35 = vld [vmem:[#allocation2 + $0x290] sm:$0xff] }
 0x39b   :  { %6276 = vrot.lane.b32.xlu1 %v9359_v19, %s6568_s3  ;;  %v4271_v49 = vpack.c.bf16 %v4011_v17, %v4010_v21  ;;  %v4275_v43 = vpack.c.bf16 %v4205_v10, %v4204_v29  ;;  %v3883_v37 = vsel %vm1059_vm2, %v9081_v61, %v5614_v33  ;;  %v5979_v51 = vunpack.i.h.bf16 %v9412_v3  ;;  %v2188_v19 = vld [vmem:[#allocation2 + $0x288] sm:$0xff] }
 0x39c   :  { %v6350_v16 = vpack.i.bf16 %v9523_v28, %v9513_v5  ;;  %v6360_v47 = vpack.i.bf16 %v9527_v36, %v9525_v59  ;;  %v5763_v4 = vunpack.i.l.bf16 %v9181_v15  ;;  %v5918_v23 = vunpack.i.l.bf16 %v9291_v27  ;;  %v9570_v44 = vld [vmem:[#allocation2 + $0x2a9] sm:$0xff] }
 0x39d   :  { %6301 = vrot.lane.b32.xlu0 %v11175_v9, %s6565_s1  ;;  %v4079_v53 = vsel %vm1059_vm2, %v2028_v60, %v5984_v2  ;;  %v4078_v24 = vsel %vm1059_vm2, %v2027_v22, %v5983_v62  ;;  %4665 = vmatmul.mubr.bf16.gmra.mxu1 %v4271_v49  ;;  %v5992_v61 = vpop.permute.xlu1 %5991  ;;  %v5989_v33 = vunpack.i.h.bf16 %v9436_v46  ;;  %v5988_v32 = vunpack.i.l.bf16 %v9436_v46  ;;  %v9568_v46 = vld [vmem:[#allocation2 + $0x2a1] sm:$0xff] }
 0x39e   :  { %v9552_v3 = vpop.permute.xlu0 %6026  ;;  %v5994_v31 = vunpack.i.h.bf16 %v5992_v61  ;;  %v5993_v21 = vunpack.i.l.bf16 %v5992_v61  ;;  %4672 = vmatprep.mubr.bf16.mxu1 %v4275_v43  ;;  %v3882_v15 = vsel %vm1059_vm2, %v9079_v52, %v5613_v57  ;;  %v3948_v27 = vsel %vm3934_vm5, %v3883_v37, %v5764_v1  ;;  %v9576_v2 = vld [vmem:[#allocation2 + $0x2a2] sm:$0xff] }
 0x39f   :  { %6286 = vrot.lane.b32.xlu1 %v9380_v48, %s6566_s2  ;;  %v9566_v40 = vpack.i.bf16 %v2189_v35, %v2188_v19  ;;  %v5619_v26 = vunpack.i.h.bf16 %v9054_v63  ;;  %v4013_v52 = vsel %vm3999_vm6, %v3948_v27, %v5979_v51  ;;  %v4142_v29 = vsel %vm3934_vm5, %v4078_v24, %v5988_v32  ;;  %v2190_v9 = vld [vmem:[#allocation2 + $0x2a0] sm:$0xff]  ;;  %v2191_v49 = vld [vmem:[#allocation2 + $0x2a8] sm:$0xff] }
 0x3a0   :  { %v4143_v10 = vsel %vm3934_vm5, %v4079_v53, %v5989_v33  ;;  %v3947_v57 = vsel %vm3934_vm5, %v3882_v15, %v5763_v4  ;;  %v4206_v1 = vsel %vm3999_vm6, %v4142_v29, %v5993_v21  ;;  %v6370_v60 = vpack.i.bf16 %v9570_v44, %v9568_v46  ;;  %v2029_v35 = vld [vmem:[#allocation2 + $0xd9] sm:$0xff]  ;;  %v2030_v61 = vld [vmem:[#allocation2 + $0xe1] sm:$0xff] }
 0x3a1   :  { %6311 = vrot.lane.b32.xlu0 %v6310_v25, %s6568_s3  ;;  %v6002_v25 = vpop.permute.xlu1 %6001  ;;  %v4207_v22 = vsel %vm3999_vm6, %v4143_v10, %v5994_v31  ;;  %v4012_v51 = vsel %vm3999_vm6, %v3947_v57, %v5918_v23  ;;  %v5769_v63 = vunpack.i.h.bf16 %v9199_v56  ;;  %v5768_v19 = vunpack.i.l.bf16 %v9199_v56  ;;  %v9603_v32 = vld [vmem:[#allocation2 + $0x2b9] sm:$0xff]  ;;  %v9629_v57 = vld [vmem:[#allocation2 + $0x2c2] sm:$0xff] }
 0x3a2   :  { %v9581_v62 = vpop.permute.xlu0 %6036  ;;  %v6004_v43 = vunpack.i.h.bf16 %v6002_v25  ;;  %v6003_v37 = vunpack.i.l.bf16 %v6002_v25  ;;  %v4274_v4 = vpack.c.bf16 %v4013_v52, %v4012_v51  ;;  %v6380_v23 = vpack.i.bf16 %v9578_v41, %v9576_v2  ;;  %v9616_v25 = vld [vmem:[#allocation2 + $0x2ba] sm:$0xff] }
 0x3a3   :  { %6296 = vrot.lane.b32.xlu1 %v9368_v20, %s6568_s3  ;;  %v5999_v53 = vunpack.i.h.bf16 %v9464_v0  ;;  %v5998_v24 = vunpack.i.l.bf16 %v9464_v0  ;;  %v4278_v33 = vpack.c.bf16 %v4207_v22, %v4206_v1  ;;  %v9601_v56 = vpack.i.bf16 %v2191_v49, %v2190_v9  ;;  %v9605_v20 = vld [vmem:[#allocation2 + $0x2c1] sm:$0xff]  ;;  %v2192_v1 = vld [vmem:[#allocation2 + $0x2b8] sm:$0xff] }
 0x3a4   :  { %v3885_v54 = vsel %vm1059_vm2, %v9097_v13, %v5619_v26  ;;  %v4081_v31 = vsel %vm1059_vm2, %v2030_v61, %v6004_v43  ;;  %v4080_v21 = vsel %vm1059_vm2, %v2029_v35, %v6003_v37  ;;  %v6009_v27 = vunpack.i.h.bf16 %v9488_v8  ;;  %v2193_v22 = vld [vmem:[#allocation2 + $0x2c0] sm:$0xff] }
 0x3a5   :  { %6321 = vrot.lane.b32.xlu0 %v6320_v6, %s6565_s1  ;;  %v3884_v6 = vsel %vm1059_vm2, %v6542_v34, %v5618_v38  ;;  %4673 = vmatmul.mubr.bf16.gmra.mxu1 %v4274_v4  ;;  %v6012_v0 = vpop.permute.xlu1 %6011  ;;  %v6008_v52 = vunpack.i.l.bf16 %v9488_v8  ;;  %v5584_v13 = vunpack.i.h.bf16 %v8994_v45  ;;  %v3950_v38 = vsel %vm3934_vm5, %v3885_v54, %v5769_v63 }
 0x3a6   :  { %v9612_v15 = vpop.permute.xlu0 %6046  ;;  %v6014_v29 = vunpack.i.h.bf16 %v6012_v0  ;;  %v6013_v10 = vunpack.i.l.bf16 %v6012_v0  ;;  %4680 = vmatprep.mubr.bf16.mxu1 %v4278_v33  ;;  %v3949_v26 = vsel %vm3934_vm5, %v3884_v6, %v5768_v19  ;;  %v6390_v8 = vpack.i.bf16 %v9605_v20, %v9603_v32  ;;  %v11176_v6 = vld [vmem:[#allocation30_spill] sm:$0xff] }
 0x3a7   :  { %6306 = vrot.lane.b32.xlu1 %v9519_v7, %s6566_s2  ;;  %v4014_v9 = vsel %vm3999_vm6, %v3949_v26, %v5998_v24  ;;  %v4015_v49 = vsel %vm3999_vm6, %v3950_v38, %v5999_v53  ;;  %v4144_v43 = vsel %vm3934_vm5, %v4080_v21, %v6008_v52  ;;  %v4145_v42 = vsel %vm3934_vm5, %v4081_v31, %v6009_v27  ;;  %v9645_v53 = vld [vmem:[#allocation2 + $0x2d2] sm:$0xff]  ;;  %v9647_v24 = vld [vmem:[#allocation2 + $0x2da] sm:$0xff] }
 0x3a8   :  { %v5624_v37 = vunpack.i.h.bf16 %v9056_v11  ;;  %v5623_v51 = vunpack.i.l.bf16 %v9056_v11  ;;  %v4208_v35 = vsel %vm3999_vm6, %v4144_v43, %v6013_v10  ;;  %v4209_v4 = vsel %vm3999_vm6, %v4145_v42, %v6014_v29  ;;  %v2031_v21 = vld [vmem:[#allocation2 + $0xf1] sm:$0xff]  ;;  %v2032_v10 = vld [vmem:[#allocation2 + $0xf9] sm:$0xff] }
 0x3a9   :  { %6331 = vrot.lane.b32.xlu0 %v6330_v50, %s6568_s3  ;;  %v9637_v50 = vld [vmem:[#allocation2 + $0x2d9] sm:$0xff]  ;;  %v6022_v63 = vpop.permute.xlu1 %6021  ;;  %v6400_v54 = vpack.i.bf16 %v9629_v57, %v9616_v25  ;;  %v9651_v34 = vpack.i.bf16 %v2193_v22, %v2192_v1  ;;  %v5774_v11 = vunpack.i.h.bf16 %v11176_v6  ;;  %v5773_v31 = vunpack.i.l.bf16 %v11176_v6  ;;  %v2194_v1 = vld [vmem:[#allocation2 + $0x2d0] sm:$0xff]  ;;  %v6543_v22 = vld [vmem:[#allocation2 + $0xc8] sm:$0xff] }
 0x3aa   :  { %v9641_v19 = vpop.permute.xlu0 %6056  ;;  %v6024_v61 = vunpack.i.h.bf16 %v6022_v63  ;;  %v6023_v33 = vunpack.i.l.bf16 %v6022_v63  ;;  %v4277_v0 = vpack.c.bf16 %v4015_v49, %v4014_v9  ;;  %v6410_v27 = vpack.i.bf16 %v9637_v50, %v9635_v30 }
 0x3ab   :  { %6316 = vrot.lane.b32.xlu1 %v9380_v48, %s6568_s3  ;;  %v6019_v52 = vunpack.i.h.bf16 %v9515_v14  ;;  %v6018_v29 = vunpack.i.l.bf16 %v9515_v14  ;;  %v4281_v26 = vpack.c.bf16 %v4209_v4, %v4208_v35  ;;  %v6420_v38 = vpack.i.bf16 %v9647_v24, %v9645_v53  ;;  %v2195_v48 = vld [vmem:[#allocation2 + $0x2d8] sm:$0xff] }
 0x3ac   :  { %v3887_v43 = vsel %vm1059_vm2, %v6543_v22, %v5624_v37  ;;  %v3886_v18 = vsel %vm1059_vm2, %v6544_v58, %v5623_v51  ;;  %v4082_v9 = vsel %vm1059_vm2, %v2031_v21, %v6023_v33  ;;  %v6029_v42 = vunpack.i.h.bf16 %v9552_v3 }
 0x3ad   :  { %6341 = vrot.lane.b32.xlu0 %v6340_v12, %s6565_s1  ;;  %v4083_v12 = vsel %vm1059_vm2, %v2032_v10, %v6024_v61  ;;  %4681 = vmatmul.mubr.bf16.gmra.mxu1 %v4277_v0  ;;  %v6032_v49 = vpop.permute.xlu1 %6031  ;;  %v6028_v63 = vunpack.i.l.bf16 %v9552_v3  ;;  %v5583_v37 = vunpack.i.l.bf16 %v8994_v45  ;;  %v3951_v51 = vsel %vm3934_vm5, %v3886_v18, %v5773_v31  ;;  %v11177_v10 = vld [vmem:[#allocation24_spill] sm:$0xff]  ;;  %v11179_v18 = vld [vmem:[#allocation22_spill] sm:$0xff] }
 0x3ae   :  { %v9671_v14 = vpop.permute.xlu0 %6066  ;;  %v6034_v35 = vunpack.i.h.bf16 %v6032_v49  ;;  %v6033_v4 = vunpack.i.l.bf16 %v6032_v49  ;;  %4688 = vmatprep.mubr.bf16.mxu1 %v4281_v26  ;;  %v3952_v61 = vsel %vm3934_vm5, %v3887_v43, %v5774_v11  ;;  %v9684_v33 = vpack.i.bf16 %v2195_v48, %v2194_v1  ;;  %v9696_v31 = vld [vmem:[#allocation2 + $0x2e9] sm:$0xff] }
 0x3af   :  { %6326 = vrot.lane.b32.xlu1 %v9531_v55, %s6566_s2  ;;  %v4016_v3 = vsel %vm3999_vm6, %v3951_v51, %v6018_v29  ;;  %v4017_v6 = vsel %vm3999_vm6, %v3952_v61, %v6019_v52  ;;  %v4146_v21 = vsel %vm3934_vm5, %v4082_v9, %v6028_v63  ;;  %v4147_v0 = vsel %vm3934_vm5, %v4083_v12, %v6029_v42  ;;  %v9698_v29 = vld [vmem:[#allocation2 + $0x2f1] sm:$0xff]  ;;  %v11178_v52 = vld [vmem:[#allocation19_spill] sm:$0xff]  ;;  %v2033_v63 = vld [vmem:[#allocation2 + $0x109] sm:$0xff] }
 0x3b0   :  { %v5629_v26 = vunpack.i.h.bf16 %v11177_v10  ;;  %v5628_v22 = vunpack.i.l.bf16 %v11177_v10  ;;  %v4211_v11 = vsel %vm3999_vm6, %v4147_v0, %v6034_v35  ;;  %v5594_v1 = vunpack.i.h.bf16 %v11178_v52  ;;  %v11180_v9 = vld [vmem:[#allocation33_spill] sm:$0xff] }
 0x3b1   :  { %6351 = vrot.lane.b32.xlu0 %v6350_v16, %s6568_s3  ;;  %v6042_v5 = vpop.permute.xlu1 %6041  ;;  %v4210_v16 = vsel %vm3999_vm6, %v4146_v21, %v6033_v4  ;;  %v5593_v48 = vunpack.i.l.bf16 %v11178_v52  ;;  %v5589_v12 = vunpack.i.h.bf16 %v11179_v18  ;;  %v5779_v49 = vunpack.i.h.bf16 %v11180_v9  ;;  %v2034_v61 = vld [vmem:[#allocation2 + $0x111] sm:$0xff] }
 0x3b2   :  { %v9692_v28 = vpop.permute.xlu0 %6076  ;;  %v6044_v43 = vunpack.i.h.bf16 %v6042_v5  ;;  %v6043_v58 = vunpack.i.l.bf16 %v6042_v5  ;;  %v5778_v42 = vunpack.i.l.bf16 %v11180_v9  ;;  %v4280_v35 = vpack.c.bf16 %v4017_v6, %v4016_v3  ;;  %v9715_v10 = vld [vmem:[#allocation2 + $0x2ea] sm:$0xff]  ;;  %v9717_v5 = vld [vmem:[#allocation2 + $0x2f2] sm:$0xff] }
 0x3b3   :  { %6336 = vrot.lane.b32.xlu1 %v9519_v7, %s6568_s3  ;;  %v6039_v4 = vunpack.i.h.bf16 %v9581_v62  ;;  %v6038_v51 = vunpack.i.l.bf16 %v9581_v62  ;;  %v4284_v21 = vpack.c.bf16 %v4211_v11, %v4210_v16  ;;  %v6430_v0 = vpack.i.bf16 %v9698_v29, %v9696_v31  ;;  %v6545_v7 = vld [vmem:[#allocation2 + $0xe0] sm:$0xff]  ;;  %v6546_v9 = vld [vmem:[#allocation2 + $0xd8] sm:$0xff] }
 0x3b4   :  { %v3889_v52 = vsel %vm1059_vm2, %v6545_v7, %v5629_v26  ;;  %v3888_v59 = vsel %vm1059_vm2, %v6546_v9, %v5628_v22  ;;  %v4085_v36 = vsel %vm1059_vm2, %v2034_v61, %v6044_v43  ;;  %v6049_v6 = vunpack.i.h.bf16 %v9612_v15  ;;  %v11181_v9 = vld [vmem:[#allocation21_spill] sm:$0xff] }
 0x3b5   :  { %6361 = vrot.lane.b32.xlu0 %v6360_v47, %s6565_s1  ;;  %v4084_v47 = vsel %vm1059_vm2, %v2033_v63, %v6043_v58  ;;  %4689 = vmatmul.mubr.bf16.gmra.mxu1 %v4280_v35  ;;  %v6052_v62 = vpop.permute.xlu1 %6051  ;;  %v6048_v16 = vunpack.i.l.bf16 %v9612_v15  ;;  %v5588_v26 = vunpack.i.l.bf16 %v11179_v18  ;;  %v3953_v22 = vsel %vm3934_vm5, %v3888_v59, %v5778_v42  ;;  %v2196_v58 = vld [vmem:[#allocation2 + $0x2e8] sm:$0xff]  ;;  %v2197_v63 = vld [vmem:[#allocation2 + $0x2f0] sm:$0xff] }
 0x3b6   :  { %v9723_v3 = vpop.permute.xlu0 %6086  ;;  %v6054_v11 = vunpack.i.h.bf16 %v6052_v62  ;;  %v6053_v17 = vunpack.i.l.bf16 %v6052_v62  ;;  %4696 = vmatprep.mubr.bf16.mxu1 %v4284_v21  ;;  %v3954_v43 = vsel %vm3934_vm5, %v3889_v52, %v5779_v49  ;;  %v6440_v15 = vpack.i.bf16 %v9717_v5, %v9715_v10  ;;  %v6547_v59 = vld [vmem:[#allocation2 + $0x30] sm:$0xff]  ;;  %v6559_v10 = vld [vmem:[%s10879_s6 + $0x88] sm:$0xff]   ;;  %v2200_v5 = vld [vmem:[#allocation2 + $0x318] sm:$0xff] }
 0x3b7   :  { %6346 = vrot.lane.b32.xlu1 %v9566_v40, %s6566_s2  ;;  %v4018_v35 = vsel %vm3999_vm6, %v3953_v22, %v6038_v51  ;;  %v4019_v61 = vsel %vm3999_vm6, %v3954_v43, %v6039_v4  ;;  %v4148_v21 = vsel %vm3934_vm5, %v4084_v47, %v6048_v16  ;;  %v4149_v7 = vsel %vm3934_vm5, %v4085_v36, %v6049_v6  ;;  %v6548_v36 = vld [vmem:[#allocation2 + $0x38] sm:$0xff]  ;;  %v11182_v16 = vld [vmem:[#allocation31_spill] sm:$0xff] }
 0x3b8   :  { %v5634_v46 = vunpack.i.h.bf16 %v11181_v9  ;;  %v5633_v44 = vunpack.i.l.bf16 %v11181_v9  ;;  %v4212_v49 = vsel %vm3999_vm6, %v4148_v21, %v6053_v17  ;;  %v4213_v52 = vsel %vm3999_vm6, %v4149_v7, %v6054_v11  ;;  %v2036_v21 = vld [vmem:[#allocation2 + $0x129] sm:$0xff]  ;;  %v6550_v9 = vld [vmem:[#allocation2 + $0xf8] sm:$0xff] }
 0x3b9   :  { %6371 = vrot.lane.b32.xlu0 %v6370_v60, %s6568_s3  ;;  %v6062_v60 = vpop.permute.xlu1 %6061  ;;  %v9749_v51 = vsel %vm1059_vm2, %v6547_v59, %v5593_v48  ;;  %v9751_v47 = vpack.i.bf16 %v2197_v63, %v2196_v58  ;;  %v9754_v6 = vsel %vm1059_vm2, %v6548_v36, %v5594_v1  ;;  %v5784_v22 = vunpack.i.h.bf16 %v11182_v16  ;;  %v6549_v48 = vld [vmem:[#allocation2 + $0x18] sm:$0xff]  ;;  %v2035_v63 = vld [vmem:[#allocation2 + $0x121] sm:$0xff] }
 0x3ba   :  { %v9744_v42 = vpop.permute.xlu0 %6096  ;;  %v6064_v4 = vunpack.i.h.bf16 %v6062_v60  ;;  %v6063_v62 = vunpack.i.l.bf16 %v6062_v60  ;;  %v5783_v43 = vunpack.i.l.bf16 %v11182_v16  ;;  %v4283_v17 = vpack.c.bf16 %v4019_v61, %v4018_v35  ;;  %v6551_v60 = vld [vmem:[#allocation2 + $0xf0] sm:$0xff] }
 0x3bb   :  { %6356 = vrot.lane.b32.xlu1 %v9531_v55, %s6568_s3  ;;  %v9765_v11 = vsel %vm1059_vm2, %v6549_v48, %v5588_v26  ;;  %v6059_v1 = vunpack.i.h.bf16 %v9641_v19  ;;  %v6058_v58 = vunpack.i.l.bf16 %v9641_v19  ;;  %v4287_v7 = vpack.c.bf16 %v4213_v52, %v4212_v49  ;;  %v11183_v52 = vld [vmem:[#allocation23_spill] sm:$0xff] }
 0x3bc   :  { %v3891_v55 = vsel %vm1059_vm2, %v6550_v9, %v5634_v46  ;;  %v3890_v59 = vsel %vm1059_vm2, %v6551_v60, %v5633_v44  ;;  %v4087_v2 = vsel %vm1059_vm2, %v2036_v21, %v6064_v4  ;;  %v4086_v41 = vsel %vm1059_vm2, %v2035_v63, %v6063_v62  ;;  %v9789_v62 = vld [vmem:[#allocation2 + $0x309] sm:$0xff]  ;;  %v11184_v21 = vld [vmem:[#allocation26_spill] sm:$0xff]  ;;  %v6552_v9 = vld [vmem:[#allocation2 + $0x20] sm:$0xff] }
 0x3bd   :  { %6381 = vrot.lane.b32.xlu0 %v6380_v23, %s6565_s1  ;;  %4697 = vmatmul.mubr.bf16.gmra.mxu1 %v4283_v17  ;;  %v6072_v23 = vpop.permute.xlu1 %6071  ;;  %v6069_v35 = vunpack.i.h.bf16 %v9671_v14  ;;  %v6068_v19 = vunpack.i.l.bf16 %v9671_v14  ;;  %v5639_v46 = vunpack.i.h.bf16 %v11183_v52  ;;  %v5638_v36 = vunpack.i.l.bf16 %v11183_v52  ;;  %v9787_v14 = vld [vmem:[#allocation2 + $0x301] sm:$0xff]  ;;  %v2037_v52 = vld [vmem:[#allocation2 + $0x139] sm:$0xff] }
 0x3be   :  { %v9773_v26 = vpop.permute.xlu0 %6106  ;;  %v6074_v61 = vunpack.i.h.bf16 %v6072_v23  ;;  %v6073_v49 = vunpack.i.l.bf16 %v6072_v23  ;;  %4704 = vmatprep.mubr.bf16.mxu1 %v4287_v7  ;;  %v3955_v44 = vsel %vm3934_vm5, %v3890_v59, %v5783_v43  ;;  %v3956_v4 = vsel %vm3934_vm5, %v3891_v55, %v5784_v22  ;;  %v6553_v59 = vld [vmem:[#allocation2 + $0x110] sm:$0xff] }
 0x3bf   :  { %6366 = vrot.lane.b32.xlu1 %v9601_v56, %s6566_s2  ;;  %v4020_v16 = vsel %vm3999_vm6, %v3955_v44, %v6058_v58  ;;  %v4021_v17 = vsel %vm3999_vm6, %v3956_v4, %v6059_v1  ;;  %v4150_v48 = vsel %vm3934_vm5, %v4086_v41, %v6068_v19  ;;  %v4151_v63 = vsel %vm3934_vm5, %v4087_v2, %v6069_v35  ;;  %v11185_v41 = vld [vmem:[#allocation35_spill] sm:$0xff]  ;;  %v6555_v4 = vld [vmem:[#allocation2 + $0x128] sm:$0xff] }
 0x3c0   :  { %v5644_v7 = vunpack.i.h.bf16 %v11184_v21  ;;  %v5643_v32 = vunpack.i.l.bf16 %v11184_v21  ;;  %v4214_v22 = vsel %vm3999_vm6, %v4150_v48, %v6073_v49  ;;  %v4215_v43 = vsel %vm3999_vm6, %v4151_v63, %v6074_v61 }
 0x3c1   :  { %6391 = vrot.lane.b32.xlu0 %v6390_v8, %s6568_s3  ;;  %v6082_v20 = vpop.permute.xlu1 %6081  ;;  %v9804_v1 = vsel %vm1059_vm2, %v6552_v9, %v5589_v12  ;;  %v6450_v60 = vpack.i.bf16 %v9789_v62, %v9787_v14  ;;  %v3893_v2 = vsel %vm1059_vm2, %v6553_v59, %v5639_v46  ;;  %v5789_v23 = vunpack.i.h.bf16 %v11185_v41  ;;  %v6554_v12 = vld [vmem:[#allocation2 + $0x108] sm:$0xff]  ;;  %v11187_v59 = vld [vmem:[#allocation50_spill] sm:$0xff] }
 0x3c2   :  { %v9797_v8 = vpop.permute.xlu0 %6116  ;;  %v6084_v58 = vunpack.i.h.bf16 %v6082_v20  ;;  %v6083_v55 = vunpack.i.l.bf16 %v6082_v20  ;;  %v5788_v35 = vunpack.i.l.bf16 %v11185_v41  ;;  %v4286_v18 = vpack.c.bf16 %v4021_v17, %v4020_v16  ;;  %v2038_v46 = vld [vmem:[#allocation2 + $0x141] sm:$0xff] }
 0x3c3   :  { %6376 = vrot.lane.b32.xlu1 %v9566_v40, %s6568_s3  ;;  %v3892_v19 = vsel %vm1059_vm2, %v6554_v12, %v5638_v36  ;;  %v6079_v61 = vunpack.i.h.bf16 %v9692_v28  ;;  %v6078_v49 = vunpack.i.l.bf16 %v9692_v28  ;;  %v4290_v44 = vpack.c.bf16 %v4215_v43, %v4214_v22  ;;  %v6556_v40 = vld [vmem:[#allocation2 + $0x120] sm:$0xff]  ;;  %v11186_v20 = vld [vmem:[#allocation32_spill] sm:$0xff] }
 0x3c4   :  { %v3895_v48 = vsel %vm1059_vm2, %v6555_v4, %v5644_v7  ;;  %v3894_v63 = vsel %vm1059_vm2, %v6556_v40, %v5643_v32  ;;  %v4089_v25 = vsel %vm1059_vm2, %v2038_v46, %v6084_v58  ;;  %v4088_v57 = vsel %vm1059_vm2, %v2037_v52, %v6083_v55  ;;  %v2014_v46 = vld [vmem:[#allocation2 + $0x21] sm:$0xff] }
 0x3c5   :  { %6401 = vrot.lane.b32.xlu0 %v6400_v54, %s6565_s1  ;;  %4705 = vmatmul.mubr.bf16.gmra.mxu1 %v4286_v18  ;;  %v6092_v54 = vpop.permute.xlu1 %6091  ;;  %v6089_v16 = vunpack.i.h.bf16 %v9723_v3  ;;  %v6088_v28 = vunpack.i.l.bf16 %v9723_v3  ;;  %v5794_v7 = vunpack.i.h.bf16 %v11186_v20  ;;  %v5793_v22 = vunpack.i.l.bf16 %v11186_v20  ;;  %v11188_v20 = vld [vmem:[#allocation57_spill] sm:$0xff] }
 0x3c6   :  { %v9824_v36 = vpop.permute.xlu0 %6126  ;;  %v6094_v17 = vunpack.i.h.bf16 %v6092_v54  ;;  %v6093_v21 = vunpack.i.l.bf16 %v6092_v54  ;;  %4712 = vmatprep.mubr.bf16.mxu1 %v4290_v44  ;;  %v3957_v32 = vsel %vm3934_vm5, %v3892_v19, %v5788_v35  ;;  %v3958_v43 = vsel %vm3934_vm5, %v3893_v2, %v5789_v23  ;;  %v9864_v54 = vld [vmem:[#allocation2 + $0x30a] sm:$0xff] }
 0x3c7   :  { %6386 = vrot.lane.b32.xlu1 %v9651_v34, %s6566_s2  ;;  %v4022_v3 = vsel %vm3999_vm6, %v3957_v32, %v6078_v49  ;;  %v4023_v9 = vsel %vm3999_vm6, %v3958_v43, %v6079_v61  ;;  %v4152_v58 = vsel %vm3934_vm5, %v4088_v57, %v6088_v28  ;;  %v4153_v55 = vsel %vm3934_vm5, %v4089_v25, %v6089_v16  ;;  %v2013_v49 = vld [vmem:[#allocation2 + $0x19] sm:$0xff]  ;;  %v9862_v57 = vld [vmem:[#allocation2 + $0x302] sm:$0xff] }
 0x3c8   :  { %v5889_v41 = vunpack.i.h.bf16 %v11187_v59  ;;  %v5888_v18 = vunpack.i.l.bf16 %v11187_v59  ;;  %v4216_v30 = vsel %vm3999_vm6, %v4152_v58, %v6093_v21  ;;  %v4217_v50 = vsel %vm3999_vm6, %v4153_v55, %v6094_v17  ;;  %v2198_v17 = vld [vmem:[#allocation2 + $0x300] sm:$0xff]  ;;  %v11190_v59 = vld [vmem:[#allocation25_spill] sm:$0xff] }
 0x3c9   :  { %6411 = vrot.lane.b32.xlu0 %v6410_v27, %s6568_s3  ;;  %v6102_v12 = vpop.permute.xlu1 %6101  ;;  %v6099_v27 = vunpack.i.h.bf16 %v9744_v42  ;;  %v6098_v2 = vunpack.i.l.bf16 %v9744_v42  ;;  %v6109_v19 = vunpack.i.h.bf16 %v9773_v26  ;;  %v6108_v61 = vunpack.i.l.bf16 %v9773_v26  ;;  %v9874_v21 = vld [vmem:[#allocation2 + $0x319] sm:$0xff] }
 0x3ca   :  { %v9844_v52 = vpop.permute.xlu0 %6136  ;;  %v6104_v23 = vunpack.i.h.bf16 %v6102_v12  ;;  %v6103_v35 = vunpack.i.l.bf16 %v6102_v12  ;;  %v4289_v44 = vpack.c.bf16 %v4023_v9, %v4022_v3  ;;  %v3959_v4 = vsel %vm3934_vm5, %v3894_v63, %v5793_v22  ;;  %v11189_v22 = vld [vmem:[#allocation56_spill] sm:$0xff] }
 0x3cb   :  { %6396 = vrot.lane.b32.xlu1 %v9601_v56, %s6568_s3  ;;  %v4293_v25 = vpack.c.bf16 %v4217_v50, %v4216_v30  ;;  %v3960_v26 = vsel %vm3934_vm5, %v3895_v48, %v5794_v7  ;;  %v9866_v56 = vld [vmem:[#allocation2 + $0x321] sm:$0xff]  ;;  %v6119_v16 = vunpack.i.h.bf16 %v9797_v8  ;;  %v6118_v53 = vunpack.i.l.bf16 %v9797_v8 }
 0x3cc   :  { %v4065_v42 = vsel %vm1059_vm2, %v2014_v46, %v6104_v23  ;;  %v4064_v40 = vsel %vm1059_vm2, %v2013_v49, %v6103_v35  ;;  %v2199_v48 = vld [vmem:[#allocation2 + $0x308] sm:$0xff]  ;;  %v4001_v7 = vsel %vm3999_vm6, %v11188_v20, %v5889_v41  ;;  %v4000_v32 = vsel %vm3999_vm6, %v11189_v22, %v5888_v18  ;;  %v9902_v35 = vld [vmem:[#allocation2 + $0x31a] sm:$0xff]  ;;  %v2039_v49 = vld [vmem:[#allocation2 + $0x151] sm:$0xff] }
 0x3cd   :  { %6421 = vrot.lane.b32.xlu0 %v6420_v38, %s6565_s1  ;;  %4713 = vmatmul.mubr.bf16.gmra.mxu1 %v4289_v44  ;;  %v6112_v24 = vpop.permute.xlu1 %6111  ;;  %v4128_v63 = vsel %vm3934_vm5, %v4064_v40, %v6108_v61  ;;  %v4129_v28 = vsel %vm3934_vm5, %v4065_v42, %v6109_v19  ;;  %v4024_v8 = vsel %vm3999_vm6, %v3959_v4, %v6098_v2  ;;  %v5649_v41 = vunpack.i.h.bf16 %v11190_v59  ;;  %v9904_v19 = vld [vmem:[#allocation2 + $0x322] sm:$0xff]  ;;  %v2040_v46 = vld [vmem:[#allocation2 + $0x159] sm:$0xff] }
 0x3ce   :  { %v9870_v38 = vpop.permute.xlu0 %6146  ;;  %4720 = vmatprep.mubr.bf16.mxu1 %v4293_v25  ;;  %v4025_v43 = vsel %vm3999_vm6, %v3960_v26, %v6099_v27  ;;  %v6114_v3 = vunpack.i.h.bf16 %v6112_v24  ;;  %v6113_v9 = vunpack.i.l.bf16 %v6112_v24  ;;  %v4192_v58 = vsel %vm3999_vm6, %v4128_v63, %v6118_v53  ;;  %v11191_v27 = vld [vmem:[#allocation37_spill] sm:$0xff]  ;;  %v6537_v53 = vld [vmem:[%s10879_s6 + $0x80] sm:$0xff]  }
 0x3cf   :  { %6406 = vrot.lane.b32.xlu1 %v9684_v33, %s6566_s2  ;;  %v4193_v55 = vsel %vm3999_vm6, %v4129_v28, %v6119_v16  ;;  %v6460_v18 = vpack.i.bf16 %v9864_v54, %v9862_v57  ;;  %v9893_v12 = vpack.i.bf16 %v2199_v48, %v2198_v17  ;;  %v6470_v30 = vpack.i.bf16 %v9866_v56, %v9874_v21  ;;  %v11192_v24 = vld [vmem:[#allocation27_spill] sm:$0xff]  ;;  %v11197_v56 = vld [vmem:[#allocation20_spill] sm:$0xff] }
 0x3d0   :  { %v5648_v50 = vunpack.i.l.bf16 %v11190_v59  ;;  %v5799_v2 = vunpack.i.h.bf16 %v11191_v27  ;;  %v5798_v31 = vunpack.i.l.bf16 %v11191_v27  ;;  %v4257_v23 = vpack.c.bf16 %v4193_v55, %v4192_v58  ;;  %v6557_v48 = vld [vmem:[#allocation2 + $0x140] sm:$0xff] }
 0x3d1   :  { %6431 = vrot.lane.b32.xlu0 %v6430_v0, %s6568_s3  ;;  %v6122_v29 = vpop.permute.xlu1 %6121  ;;  %v4256_v61 = vpack.c.bf16 %v4001_v7, %v4000_v32  ;;  %v4292_v42 = vpack.c.bf16 %v4025_v43, %v4024_v8  ;;  %v6129_v40 = vunpack.i.h.bf16 %v9824_v36  ;;  %v6128_v25 = vunpack.i.l.bf16 %v9824_v36  ;;  %v6558_v43 = vld [vmem:[#allocation2 + $0x138] sm:$0xff]  ;;  %v11196_v57 = vld [vmem:[#allocation3_spill] sm:$0xff] }
 0x3d2   :  { %v9900_v0 = vpop.permute.xlu0 %6156  ;;  %v6124_v44 = vunpack.i.h.bf16 %v6122_v29  ;;  %v6123_v4 = vunpack.i.l.bf16 %v6122_v29  ;;  %v4091_v26 = vsel %vm1059_vm2, %v2040_v46, %v6114_v3  ;;  %v4090_v16 = vsel %vm1059_vm2, %v2039_v49, %v6113_v9  ;;  %4624 = vmatprep.mubr.bf16.mxu0 %v4257_v23  ;;  %v11193_v9 = vld [vmem:[#allocation29_spill] sm:$0xff]  ;;  %v9946_v46 = vld [vmem:[#allocation2 + $0x33a] sm:$0xff] }
 0x3d3   :  { %6416 = vrot.lane.b32.xlu1 %v9651_v34, %s6568_s3  ;;  %v5654_v63 = vunpack.i.h.bf16 %v11192_v24  ;;  %4625 = vmatmul.mubr.bf16.vlgmr.msra.gmra.mxu0 %v4256_v61  ;;  %v6480_v36 = vpack.i.bf16 %v9904_v19, %v9902_v35  ;;  %v3897_v20 = vsel %vm1059_vm2, %v6557_v48, %v5649_v41  ;;  %v5653_v7 = vunpack.i.l.bf16 %v11192_v24  ;;  %v9935_v41 = vld [vmem:[#allocation2 + $0x331] sm:$0xff]  ;;  %v9942_v61 = vld [vmem:[#allocation2 + $0x339] sm:$0xff]  ;;  %v2017_v19 = vld [vmem:[#allocation2 + $0x49] sm:$0xff] }
 0x3d4   :  { %v4154_v28 = vsel %vm3934_vm5, %v4090_v16, %v6123_v4  ;;  %v4155_v17 = vsel %vm3934_vm5, %v4091_v26, %v6124_v44  ;;  %v3896_v3 = vsel %vm1059_vm2, %v6558_v43, %v5648_v50  ;;  %v5739_v58 = vunpack.i.h.bf16 %v11193_v9  ;;  %5455 = vmatpush3.bf16.msra.mxu0 %v6559_v10  ;;  %v9944_v49 = vld [vmem:[#allocation2 + $0x332] sm:$0xff]  ;;  %v11194_v44 = vld [vmem:[#allocation55_spill] sm:$0xff] }
 0x3d5   :  { %6441 = vrot.lane.b32.xlu0 %v6440_v15, %s6565_s1  ;;  %4721 = vmatmul.mubr.bf16.gmra.mxu1 %v4292_v42  ;;  %v6132_v34 = vpop.permute.xlu1 %6131  ;;  %v4218_v32 = vsel %vm3999_vm6, %v4154_v28, %v6128_v25  ;;  %v4219_v8 = vsel %vm3999_vm6, %v4155_v17, %v6129_v40  ;;  %v2201_v15 = vld [vmem:[#allocation2 + $0x320] sm:$0xff]  ;;  %v5738_v27 = vunpack.i.l.bf16 %v11193_v9  ;;  %v3961_v50 = vsel %vm3934_vm5, %v3896_v3, %v5798_v31  ;;  %v6560_v17 = vld [vmem:[#allocation2 + $0x158] sm:$0xff] }
 0x3d6   :  { %v9926_v22 = vpop.permute.xlu0 %6166  ;;  %v6134_v55 = vunpack.i.h.bf16 %v6132_v34  ;;  %v6133_v59 = vunpack.i.l.bf16 %v6132_v34  ;;  %v4296_v29 = vpack.c.bf16 %v4219_v8, %v4218_v32  ;;  %v3962_v23 = vsel %vm3934_vm5, %v3897_v20, %v5799_v2  ;;  %5456 = vmatprep.subr.bf16.mxu0 %v6537_v53  ;;  %v6561_v20 = vld [vmem:[#allocation2 + $0x150] sm:$0xff]  ;;  %v11195_v8 = vld [vmem:[#allocation34_spill] sm:$0xff] }
 0x3d7   :  { %6426 = vrot.lane.b32.xlu1 %v9751_v47, %s6566_s2  ;;  %v5894_v4 = vunpack.i.h.bf16 %v11194_v44  ;;  %v5893_v42 = vunpack.i.l.bf16 %v11194_v44  ;;  %v6139_v26 = vunpack.i.h.bf16 %v9844_v52  ;;  %v6138_v31 = vunpack.i.l.bf16 %v9844_v52  ;;  %v2015_v3 = vld [vmem:[#allocation2 + $0x31] sm:$0xff]  ;;  %v2016_v9 = vld [vmem:[#allocation2 + $0x39] sm:$0xff] }
 0x3d8   :  { %v4026_v40 = vsel %vm3999_vm6, %v3961_v50, %v6133_v59  ;;  %v4027_v25 = vsel %vm3999_vm6, %v3962_v23, %v6134_v55  ;;  %4728 = vmatprep.mubr.bf16.mxu1 %v4296_v29  ;;  %v9960_v28 = vpack.i.bf16 %v2201_v15, %v2200_v5  ;;  %v3899_v48 = vsel %vm1059_vm2, %v6560_v17, %v5654_v63  ;;  %v2202_v17 = vld [vmem:[#allocation2 + $0x330] sm:$0xff] }
 0x3d9   :  { %6451 = vrot.lane.b32.xlu0 %v6450_v60, %s6568_s3  ;;  %v6142_v2 = vpop.permute.xlu1 %6141  ;;  %v4295_v24 = vpack.c.bf16 %v4027_v25, %v4026_v40  ;;  %v3898_v34 = vsel %vm1059_vm2, %v6561_v20, %v5653_v7  ;;  %v6490_v52 = vpack.i.bf16 %v9942_v61, %v9935_v41  ;;  %v6505_v14 = vpack.i.bf16 %v9946_v46, %v9944_v49  ;;  %v2042_v40 = vld [vmem:[#allocation2 + $0x171] sm:$0xff]  ;;  %v2043_v61 = vld [vmem:[#allocation2 + $0x181] sm:$0xff] }
 0x3da   :  { %v9958_v16 = vpop.permute.xlu0 %6176  ;;  %5457 = vmatpush3.bf16.msra.mxu0 %v6537_v53  ;;  %v6144_v62 = vunpack.i.h.bf16 %v6142_v2  ;;  %v6143_v60 = vunpack.i.l.bf16 %v6142_v2  ;;  %v3937_v32 = vsel %vm3934_vm5, %v9765_v11, %v5738_v27  ;;  %v3938_v63 = vsel %vm3934_vm5, %v9804_v1, %v5739_v58  ;;  %v2203_v20 = vld [vmem:[#allocation2 + $0x338] sm:$0xff] }
 0x3db   :  { %6436 = vrot.lane.b32.xlu1 %v9684_v33, %s6568_s3  ;;  %v5804_v7 = vunpack.i.h.bf16 %v11195_v8  ;;  %v5803_v43 = vunpack.i.l.bf16 %v11195_v8  ;;  %v4002_v55 = vsel %vm3999_vm6, %v3937_v32, %v5893_v42  ;;  %v4003_v53 = vsel %vm3999_vm6, %v3938_v63, %v5894_v4  ;;  %v10010_v63 = vld [vmem:[#allocation2 + $0x32] sm:$0xff]  ;;  %v10012_v8 = vld [vmem:[#allocation2 + $0x3a] sm:$0xff] }
 0x3dc   :  { %v4067_v59 = vsel %vm1059_vm2, %v2016_v9, %v6139_v26  ;;  %v4066_v33 = vsel %vm1059_vm2, %v2015_v3, %v6138_v31  ;;  %v6149_v10 = vunpack.i.h.bf16 %v9870_v38  ;;  %v6148_v11 = vunpack.i.l.bf16 %v9870_v38 }
 0x3dd   :  { %6461 = vrot.lane.b32.xlu0 %v6460_v18, %s6565_s1  ;;  %4729 = vmatmul.mubr.bf16.gmra.mxu1 %v4295_v24  ;;  %v6152_v1 = vpop.permute.xlu1 %6151  ;;  %v6159_v5 = vunpack.i.h.bf16 %v9900_v0  ;;  %v6158_v15 = vunpack.i.l.bf16 %v9900_v0  ;;  %v6169_v50 = vunpack.i.h.bf16 %v9926_v22  ;;  %v6168_v23 = vunpack.i.l.bf16 %v9926_v22  ;;  %v2041_v18 = vld [vmem:[#allocation2 + $0x169] sm:$0xff] }
 0x3de   :  { %v9986_v58 = vpop.permute.xlu0 %6186  ;;  %v6154_v27 = vunpack.i.h.bf16 %v6152_v1  ;;  %v6153_v29 = vunpack.i.l.bf16 %v6152_v1  ;;  %v4130_v38 = vsel %vm3934_vm5, %v4066_v33, %v6143_v60  ;;  %v4131_v44 = vsel %vm3934_vm5, %v4067_v59, %v6144_v62  ;;  %v11198_v59 = vld [vmem:[#allocation52_spill] sm:$0xff] }
 0x3df   :  { %6446 = vrot.lane.b32.xlu1 %v9893_v12, %s6566_s2  ;;  %v5659_v54 = vunpack.i.h.bf16 %v11196_v57  ;;  %v3963_v42 = vsel %vm3934_vm5, %v3898_v34, %v5803_v43  ;;  %v4092_v25 = vsel %vm1059_vm2, %v2041_v18, %v6148_v11  ;;  %v4259_v2 = vpack.c.bf16 %v4003_v53, %v4002_v55 }
 0x3e0   :  { %v4194_v4 = vsel %vm3999_vm6, %v4130_v38, %v6153_v29  ;;  %v4195_v0 = vsel %vm3999_vm6, %v4131_v44, %v6154_v27  ;;  %v3964_v24 = vsel %vm3934_vm5, %v3899_v48, %v5804_v7  ;;  %v4093_v62 = vsel %vm1059_vm2, %v2042_v40, %v6149_v10 }
 0x3e1   :  { %6471 = vrot.lane.b32.xlu0 %v6470_v30, %s6568_s3  ;;  %v6162_v22 = vpop.permute.xlu1 %6161  ;;  %v4260_v31 = vpack.c.bf16 %v4195_v0, %v4194_v4  ;;  %v4156_v34 = vsel %vm3934_vm5, %v4092_v25, %v6158_v15  ;;  %v5743_v21 = vunpack.i.l.bf16 %v11197_v56  ;;  %v4157_v30 = vsel %vm3934_vm5, %v4093_v62, %v6159_v5 }
 0x3e2   :  { %v10005_v26 = vpop.permute.xlu0 %6191  ;;  %v6164_v60 = vunpack.i.h.bf16 %v6162_v22  ;;  %v6163_v32 = vunpack.i.l.bf16 %v6162_v22  ;;  %v4028_v48 = vsel %vm3999_vm6, %v3963_v42, %v6168_v23  ;;  %v4029_v7 = vsel %vm3999_vm6, %v3964_v24, %v6169_v50  ;;  %v6562_v50 = vld [vmem:[#allocation2 + $0x170] sm:$0xff] }
 0x3e3   :  { %6456 = vrot.lane.b32.xlu1 %v9751_v47, %s6568_s3  ;;  %4632 = vmatprep.mubr.bf16.mxu0 %v4260_v31  ;;  %v5744_v43 = vunpack.i.h.bf16 %v11197_v56  ;;  %v10023_v55 = vpack.i.bf16 %v2203_v20, %v2202_v17  ;;  %v5658_v53 = vunpack.i.l.bf16 %v11196_v57  ;;  %v5899_v33 = vunpack.i.h.bf16 %v11198_v59  ;;  %v11199_v57 = vld [vmem:[#allocation39_spill] sm:$0xff]  ;;  %v2268_v17 = vld [vmem:[#allocation2 + $0x349] sm:$0xff] }
 0x3e4   :  { %4633 = vmatmul.mubr.bf16.gmra.mxu0 %v4259_v2  ;;  %v4220_v3 = vsel %vm3999_vm6, %v4156_v34, %v6163_v32  ;;  %v4221_v9 = vsel %vm3999_vm6, %v4157_v30, %v6164_v60  ;;  %v4258_v1 = vpack.c.bf16 %v10012_v8, %v10010_v63  ;;  %v5898_v5 = vunpack.i.l.bf16 %v11198_v59 }
 0x3e5   :  { %6481 = vrot.lane.b32.xlu0 %v6480_v36, %s6565_s1  ;;  %v6172_v47 = vpop.permute.xlu1 %6171  ;;  %v4299_v11 = vpack.c.bf16 %v4221_v9, %v4220_v3  ;;  %v4298_v29 = vpack.c.bf16 %v4029_v7, %v4028_v48  ;;  %v10037_v23 = vsel %vm1059_vm2, %v6562_v50, %v5659_v54  ;;  %v6179_v38 = vunpack.i.h.bf16 %v9958_v16  ;;  %v2018_v36 = vld [vmem:[#allocation2 + $0x51] sm:$0xff]  ;;  %v6563_v9 = vld [vmem:[#allocation2 + $0x168] sm:$0xff] }
 0x3e6   :  { %v10031_v10 = vpop.permute.xlu0 %6201  ;;  %v6174_v15 = vunpack.i.h.bf16 %v6172_v47  ;;  %v6173_v27 = vunpack.i.l.bf16 %v6172_v47  ;;  %v6178_v35 = vunpack.i.l.bf16 %v9958_v16  ;;  %v3939_v44 = vsel %vm3934_vm5, %v9749_v51, %v5743_v21  ;;  %v1789_v3 = vld [vmem:[#allocation2 + $0x1b0] sm:$0xff]  ;;  %v2204_v47 = vld [vmem:[#allocation2 + $0x348] sm:$0xff] }
 0x3e7   :  { %6466 = vrot.lane.b32.xlu1 %v9960_v28, %s6566_s2  ;;  %4736 = vmatprep.mubr.bf16.mxu1 %v4299_v11  ;;  %v5808_v18 = vunpack.i.l.bf16 %v11199_v57  ;;  %v3940_v0 = vsel %vm3934_vm5, %v9754_v6, %v5744_v43  ;;  %v6189_v16 = vunpack.i.h.bf16 %v9986_v58  ;;  %v6188_v42 = vunpack.i.l.bf16 %v9986_v58  ;;  %v2269_v58 = vld [vmem:[#allocation2 + $0x351] sm:$0xff] }
 0x3e8   :  { %v4069_v4 = vsel %vm1059_vm2, %v2018_v36, %v6174_v15  ;;  %v4068_v54 = vsel %vm1059_vm2, %v2017_v19, %v6173_v27  ;;  %4737 = vmatmul.mubr.bf16.gmra.mxu1 %v4298_v29  ;;  %v4004_v6 = vsel %vm3999_vm6, %v3939_v44, %v5898_v5  ;;  %v4005_v24 = vsel %vm3999_vm6, %v3940_v0, %v5899_v33  ;;  %v2205_v11 = vld [vmem:[#allocation2 + $0x350] sm:$0xff]  ;;  %v1790_v27 = vld [vmem:[#allocation2 + $0x1b8] sm:$0xff] }
 0x3e9   :  { %6491 = vrot.lane.b32.xlu0 %v6490_v52, %s6568_s3  ;;  %v6182_v51 = vpop.permute.xlu1 %6181  ;;  %v4132_v25 = vsel %vm3934_vm5, %v4068_v54, %v6178_v35  ;;  %v4133_v22 = vsel %vm3934_vm5, %v4069_v4, %v6179_v38  ;;  %v6194_v20 = vunpack.i.h.bf16 %v10005_v26  ;;  %v6193_v41 = vunpack.i.l.bf16 %v10005_v26  ;;  %v2044_v52 = vld [vmem:[#allocation2 + $0x189] sm:$0xff]  ;;  %v2046_v36 = vld [vmem:[#allocation2 + $0x1d1] sm:$0xff] }
 0x3ea   :  { %v10056_v40 = vpop.permute.xlu0 %6211  ;;  %v6184_v31 = vunpack.i.h.bf16 %v6182_v51  ;;  %v6183_v2 = vunpack.i.l.bf16 %v6182_v51  ;;  %v4196_v62 = vsel %vm3999_vm6, %v4132_v25, %v6188_v42  ;;  %v4197_v34 = vsel %vm3999_vm6, %v4133_v22, %v6189_v16  ;;  %v11201_v38 = vld [vmem:[#allocation17_spill] sm:$0xff]  ;;  %v2274_v25 = vld [vmem:[#allocation2 + $0x62] sm:$0xff] }
 0x3eb   :  { %6476 = vrot.lane.b32.xlu1 %v9893_v12, %s6568_s3  ;;  %v5809_v60 = vunpack.i.h.bf16 %v11199_v57  ;;  %v4263_v21 = vpack.c.bf16 %v4197_v34, %v4196_v62  ;;  %v4262_v12 = vpack.c.bf16 %v4005_v24, %v4004_v6  ;;  %v6510_v43 = vpack.i.bf16 %v2269_v58, %v2268_v17  ;;  %v2273_v4 = vld [vmem:[#allocation2 + $0x52] sm:$0xff]  ;;  %v2275_v22 = vld [vmem:[#allocation2 + $0x6a] sm:$0xff] }
 0x3ec   :  { %v4095_v32 = vsel %vm1059_vm2, %v2044_v52, %v6184_v31  ;;  %v4094_v56 = vsel %vm1059_vm2, %v2043_v61, %v6183_v2  ;;  %v3900_v59 = vsel %vm1059_vm2, %v6563_v9, %v5658_v53  ;;  %v6204_v49 = vunpack.i.h.bf16 %v10031_v10  ;;  %v2276_v9 = vld [vmem:[#allocation2 + $0x7a] sm:$0xff] }
 0x3ed   :  { %6506 = vrot.lane.b32.xlu0 %v6505_v14, %s6565_s1  ;;  %v6197_v26 = vpop.permute.xlu1 %6196  ;;  %v4158_v48 = vsel %vm3934_vm5, %v4094_v56, %v5583_v37  ;;  %v4159_v7 = vsel %vm3934_vm5, %v4095_v32, %v5584_v13  ;;  %4640 = vmatprep.mubr.bf16.mxu0 %v4263_v21  ;;  %v6203_v33 = vunpack.i.l.bf16 %v10031_v10  ;;  %v3965_v37 = vsel %vm3934_vm5, %v3900_v59, %v5808_v18  ;;  %v2277_v59 = vld [vmem:[#allocation2 + $0x82] sm:$0xff] }
 0x3ee   :  { %v10075_v30 = vpop.permute.xlu0 %6221  ;;  %v6199_v46 = vunpack.i.h.bf16 %v6197_v26  ;;  %v6198_v14 = vunpack.i.l.bf16 %v6197_v26  ;;  %4641 = vmatmul.mubr.bf16.gmra.mxu0 %v4262_v12  ;;  %v4222_v45 = vsel %vm3999_vm6, %v4158_v48, %v6193_v41  ;;  %v4223_v13 = vsel %vm3999_vm6, %v4159_v7, %v6194_v20  ;;  %v11202_v26 = vld [vmem:[#allocation9_spill] sm:$0xff]  ;;  %v2047_v7 = vld [vmem:[#allocation2 + $0x1e1] sm:$0xff] }
 0x3ef   :  { %6486 = vrot.lane.b32.xlu1 %v10023_v55, %s6566_s2  ;;  %v5569_v53 = vunpack.i.h.bf16 %v8969_v39  ;;  %5458 = vmatprep.mubr.msk.bf16.mxu0 %vm1059_vm2, %v4258_v1  ;;  %v4302_v10 = vpack.c.bf16 %v4223_v13, %v4222_v45  ;;  %v3966_v5 = vsel %vm3934_vm5, %v10037_v23, %v5809_v60  ;;  %v11200_v29 = vunpack.i.l.bf16 %v8969_v39  ;;  %v2045_v1 = vld [vmem:[#allocation2 + $0x1c9] sm:$0xff] }
 0x3f0   :  { %v4030_v15 = vsel %vm3999_vm6, %v3965_v37, %v6198_v14  ;;  %v5579_v35 = vunpack.i.h.bf16 %v11201_v38  ;;  %v5578_v19 = vunpack.i.l.bf16 %v11201_v38  ;;  %v4031_v8 = vsel %vm3999_vm6, %v3966_v5, %v6199_v46  ;;  %v2272_v39 = vld [vmem:[#allocation2 + $0x4a] sm:$0xff]  ;;  %v2278_v37 = vld [vmem:[#allocation2 + $0x92] sm:$0xff] }
 0x3f1   :  { %v3902_v50 = vsel %vm1059_vm2, %v1789_v3, %v11200_v29  ;;  %v6207_v44 = vpop.permute.xlu1 %6206  ;;  %6511 = vrot.lane.b32.xlu0 %v6510_v43, %s6568_s3  ;;  %v4097_v23 = vsel %vm1059_vm2, %v2046_v36, %v6204_v49  ;;  %4744 = vmatprep.mubr.bf16.mxu1 %v4302_v10  ;;  %v6500_v54 = vpack.i.bf16 %v2205_v11, %v2204_v47  ;;  %v6214_v16 = vunpack.i.h.bf16 %v10056_v40  ;;  %v11203_v49 = vld [vmem:[#allocation41_spill] sm:$0xff]  ;;  %v2279_v47 = vld [vmem:[#allocation2 + $0x9a] sm:$0xff] }
 0x3f2   :  { %v10104_v63 = vpop.permute.xlu0 %6231  ;;  %v6209_v57 = vunpack.i.h.bf16 %v6207_v44  ;;  %v6208_v18 = vunpack.i.l.bf16 %v6207_v44  ;;  %v4096_v0 = vsel %vm1059_vm2, %v2045_v1, %v6203_v33  ;;  %v6213_v42 = vunpack.i.l.bf16 %v10056_v40  ;;  %v2048_v33 = vld [vmem:[#allocation2 + $0x1e9] sm:$0xff] }
 0x3f3   :  { %6496 = vrot.lane.b32.xlu1 %v9960_v28, %s6568_s3  ;;  %v4301_v51 = vpack.c.bf16 %v4031_v8, %v4030_v15  ;;  %v3903_v31 = vsel %vm1059_vm2, %v1790_v27, %v5569_v53  ;;  %v4261_v58 = vpack.c.bf16 %v2273_v4, %v2272_v39  ;;  %v4264_v61 = vpack.c.bf16 %v2275_v22, %v2274_v25  ;;  %v1791_v15 = vld [vmem:[#allocation2 + $0x1c8] sm:$0xff]  ;;  %v1792_v38 = vld [vmem:[#allocation2 + $0x1d0] sm:$0xff]  ;;  %v2049_v22 = vld [vmem:[#allocation2 + $0x1f9] sm:$0xff] }
 0x3f4   :  { %v4160_v2 = vsel %vm3934_vm5, %v4096_v0, %v6208_v18  ;;  %v4161_v6 = vsel %vm3934_vm5, %v4097_v23, %v6209_v57  ;;  %v3967_v52 = vsel %vm3934_vm5, %v3902_v50, %v5578_v19  ;;  %v6224_v62 = vunpack.i.h.bf16 %v10075_v30 }
 0x3f5   :  { %4745 = vmatmul.mubr.bf16.gmra.mxu1 %v4301_v51  ;;  %v6217_v24 = vpop.permute.xlu1 %6216  ;;  %v4224_v20 = vsel %vm3999_vm6, %v4160_v2, %v6213_v42  ;;  %v4225_v40 = vsel %vm3999_vm6, %v4161_v6, %v6214_v16  ;;  %v6223_v34 = vunpack.i.l.bf16 %v10075_v30  ;;  %v3968_v32 = vsel %vm3934_vm5, %v3903_v31, %v5579_v35  ;;  %v11204_v42 = vld [vmem:[#allocation4_spill] sm:$0xff] }
 0x3f6   :  { %v10117_v17 = vpop.permute.xlu0 %6241  ;;  %v6219_v41 = vunpack.i.h.bf16 %v6217_v24  ;;  %v6218_v28 = vunpack.i.l.bf16 %v6217_v24  ;;  %5459 = vmatmul.mubr.msk.bf16.vlgmr.msra.gmra.mxu0 %vm1059_vm2, %v4261_v58  ;;  %v4305_v60 = vpack.c.bf16 %v4225_v40, %v4224_v20  ;;  %v5664_v12 = vunpack.i.h.bf16 %v11202_v26  ;;  %v2280_v24 = vld [vmem:[#allocation2 + $0xaa] sm:$0xff] }
 0x3f7   :  { %6501 = vrot.lane.b32.xlu1 %v6500_v54, %s6566_s2  ;;  %5462 = vmatprep.mubr.msk.bf16.mxu0 %vm1059_vm2, %v4264_v61  ;;  %v5663_v48 = vunpack.i.l.bf16 %v11202_v26  ;;  %v5814_v46 = vunpack.i.h.bf16 %v11203_v49  ;;  %v5813_v14 = vunpack.i.l.bf16 %v11203_v49  ;;  %v4099_v11 = vsel %vm1059_vm2, %v2048_v33, %v6224_v62  ;;  %v11205_v58 = vld [vmem:[#allocation36_spill] sm:$0xff] }
 0x3f8   :  { %v4032_v56 = vsel %vm3999_vm6, %v3967_v52, %v6218_v28  ;;  %v4033_v21 = vsel %vm3999_vm6, %v3968_v32, %v6219_v41  ;;  %4752 = vmatprep.mubr.bf16.mxu1 %v4305_v60  ;;  %v4098_v53 = vsel %vm1059_vm2, %v2047_v7, %v6223_v34  ;;  %v6234_v10 = vunpack.i.h.bf16 %v10104_v63  ;;  %v2050_v41 = vld [vmem:[#allocation2 + $0x201] sm:$0xff]  ;;  %v2283_v62 = vld [vmem:[#allocation2 + $0xca] sm:$0xff] }
 0x3f9   :  { %v6227_v30 = vpop.permute.xlu1 %6226  ;;  %v4304_v3 = vpack.c.bf16 %v4033_v21, %v4032_v56  ;;  %v6233_v5 = vunpack.i.l.bf16 %v10104_v63  ;;  %v4267_v50 = vpack.c.bf16 %v2277_v59, %v2276_v9  ;;  %v3904_v35 = vsel %vm1059_vm2, %v1791_v15, %v5663_v48  ;;  %v2282_v52 = vld [vmem:[#allocation2 + $0xc2] sm:$0xff] }
 0x3fa   :  { %v10132_v43 = vpop.permute.xlu0 %6251  ;;  %v6229_v45 = vunpack.i.h.bf16 %v6227_v30  ;;  %v6228_v13 = vunpack.i.l.bf16 %v6227_v30  ;;  %v4270_v44 = vpack.c.bf16 %v2279_v47, %v2278_v37  ;;  %v3969_v57 = vsel %vm3934_vm5, %v3904_v35, %v5813_v14  ;;  %v1793_v21 = vld [vmem:[#allocation2 + $0x1e0] sm:$0xff]  ;;  %v1794_v7 = vld [vmem:[#allocation2 + $0x1e8] sm:$0xff] }
 0x3fb   :  { %6516 = vrot.lane.b32.xlu1 %v10023_v55, %s6568_s3  ;;  %v3905_v55 = vsel %vm1059_vm2, %v1792_v38, %v5664_v12  ;;  %v6244_v18 = vunpack.i.h.bf16 %v10117_v17  ;;  %v6243_v39 = vunpack.i.l.bf16 %v10117_v17  ;;  %v5669_v51 = vunpack.i.h.bf16 %v11204_v42  ;;  %v2281_v17 = vld [vmem:[#allocation2 + $0xb2] sm:$0xff] }
 0x3fc   :  { %v4162_v27 = vsel %vm3934_vm5, %v4098_v53, %v6228_v13  ;;  %v4163_v29 = vsel %vm3934_vm5, %v4099_v11, %v6229_v45  ;;  %v3970_v54 = vsel %vm3934_vm5, %v3905_v55, %v5814_v46  ;;  %v5668_v25 = vunpack.i.l.bf16 %v11204_v42  ;;  %v2052_v55 = vld [vmem:[#allocation2 + $0x219] sm:$0xff] }
 0x3fd   :  { %4753 = vmatmul.mubr.bf16.gmra.mxu1 %v4304_v3  ;;  %v6237_v19 = vpop.permute.xlu1 %6236  ;;  %v4226_v8 = vsel %vm3999_vm6, %v4162_v27, %v6233_v5  ;;  %v4227_v63 = vsel %vm3999_vm6, %v4163_v29, %v6234_v10  ;;  %v5819_v20 = vunpack.i.h.bf16 %v11205_v58  ;;  %v5818_v40 = vunpack.i.l.bf16 %v11205_v58  ;;  %v11206_v5 = vld [vmem:[#allocation8_spill] sm:$0xff]  ;;  %v2051_v29 = vld [vmem:[#allocation2 + $0x211] sm:$0xff] }
 0x3fe   :  { %v10145_v36 = vpop.permute.xlu0 %6261  ;;  %v6239_v1 = vunpack.i.h.bf16 %v6237_v19  ;;  %v6238_v23 = vunpack.i.l.bf16 %v6237_v19  ;;  %5463 = vmatmul.mubr.msk.bf16.gmra.mxu0 %vm1059_vm2, %v4267_v50  ;;  %v4308_v4 = vpack.c.bf16 %v4227_v63, %v4226_v8  ;;  %v4101_v34 = vsel %vm1059_vm2, %v2050_v41, %v6244_v18  ;;  %v2284_v19 = vld [vmem:[#allocation2 + $0xda] sm:$0xff] }
 0x3ff   :  { %5466 = vmatprep.mubr.msk.bf16.mxu0 %vm1059_vm2, %v4270_v44  ;;  %v4100_v60 = vsel %vm1059_vm2, %v2049_v22, %v6243_v39  ;;  %v6254_v32 = vunpack.i.h.bf16 %v10132_v43  ;;  %v6253_v56 = vunpack.i.l.bf16 %v10132_v43  ;;  %v4273_v48 = vpack.c.bf16 %v2281_v17, %v2280_v24  ;;  %v11207_v44 = vld [vmem:[#allocation43_spill] sm:$0xff] }
 0x400   :  { %v4034_v0 = vsel %vm3999_vm6, %v3969_v57, %v6238_v23  ;;  %v4035_v16 = vsel %vm3999_vm6, %v3970_v54, %v6239_v1  ;;  %4760 = vmatprep.mubr.bf16.mxu1 %v4308_v4  ;;  %v3906_v30 = vsel %vm1059_vm2, %v1793_v21, %v5668_v25  ;;  %v4276_v59 = vpack.c.bf16 %v2283_v62, %v2282_v52  ;;  %v2286_v57 = vld [vmem:[#allocation2 + $0xf2] sm:$0xff]  ;;  %v2287_v18 = vld [vmem:[#allocation2 + $0xfa] sm:$0xff] }
 0x401   :  { %v6247_v31 = vpop.permute.xlu1 %6246  ;;  %v4307_v6 = vpack.c.bf16 %v4035_v16, %v4034_v0  ;;  %v3907_v43 = vsel %vm1059_vm2, %v1794_v7, %v5669_v51  ;;  %v3971_v45 = vsel %vm3934_vm5, %v3906_v30, %v5818_v40  ;;  %v6264_v13 = vunpack.i.h.bf16 %v10145_v36  ;;  %v1795_v16 = vld [vmem:[#allocation2 + $0x1f8] sm:$0xff]  ;;  %v1796_v22 = vld [vmem:[#allocation2 + $0x200] sm:$0xff] }
 0x402   :  { %v10160_v2 = vpop.permute.xlu0 %6271  ;;  %v6249_v28 = vunpack.i.h.bf16 %v6247_v31  ;;  %v6248_v61 = vunpack.i.l.bf16 %v6247_v31  ;;  %v6263_v37 = vunpack.i.l.bf16 %v10145_v36  ;;  %v3972_v11 = vsel %vm3934_vm5, %v3907_v43, %v5819_v20  ;;  %v2285_v36 = vld [vmem:[#allocation2 + $0xe2] sm:$0xff]  ;;  %v2054_v43 = vld [vmem:[#allocation2 + $0x231] sm:$0xff] }
 0x403   :  { %v5674_v15 = vunpack.i.h.bf16 %v11206_v5  ;;  %v5673_v27 = vunpack.i.l.bf16 %v11206_v5  ;;  %v5824_v8 = vunpack.i.h.bf16 %v11207_v44  ;;  %v5823_v63 = vunpack.i.l.bf16 %v11207_v44 }
 0x404   :  { %v4164_v26 = vsel %vm3934_vm5, %v4100_v60, %v6248_v61  ;;  %v4165_v12 = vsel %vm3934_vm5, %v4101_v34, %v6249_v28  ;;  %v4103_v39 = vsel %vm1059_vm2, %v2052_v55, %v6264_v13  ;;  %v4102_v4 = vsel %vm1059_vm2, %v2051_v29, %v6263_v37  ;;  %v2291_v13 = vld [vmem:[#allocation2 + $0x12a] sm:$0xff]  ;;  %v1798_v29 = vld [vmem:[#allocation2 + $0x218] sm:$0xff] }
 0x405   :  { %4761 = vmatmul.mubr.bf16.gmra.mxu1 %v4307_v6  ;;  %v6257_v3 = vpop.permute.xlu1 %6256  ;;  %v4228_v49 = vsel %vm3999_vm6, %v4164_v26, %v6253_v56  ;;  %v4229_v46 = vsel %vm3999_vm6, %v4165_v12, %v6254_v32  ;;  %v6274_v54 = vunpack.i.h.bf16 %v10160_v2  ;;  %v6273_v0 = vunpack.i.l.bf16 %v10160_v2  ;;  %v11208_v56 = vld [vmem:[#allocation10_spill] sm:$0xff]  ;;  %v2053_v12 = vld [vmem:[#allocation2 + $0x229] sm:$0xff] }
 0x406   :  { %v10171_v9 = vpop.permute.xlu0 %6281  ;;  %v6259_v14 = vunpack.i.h.bf16 %v6257_v3  ;;  %v6258_v33 = vunpack.i.l.bf16 %v6257_v3  ;;  %5467 = vmatmul.mubr.msk.bf16.gmra.mxu0 %vm1059_vm2, %v4273_v48  ;;  %v4311_v47 = vpack.c.bf16 %v4229_v46, %v4228_v49  ;;  %v4279_v25 = vpack.c.bf16 %v2285_v36, %v2284_v19  ;;  %v2288_v3 = vld [vmem:[#allocation2 + $0x10a] sm:$0xff] }
 0x407   :  { %5470 = vmatprep.mubr.msk.bf16.mxu0 %vm1059_vm2, %v4276_v59  ;;  %v3908_v31 = vsel %vm1059_vm2, %v1795_v16, %v5673_v27  ;;  %v4282_v17 = vpack.c.bf16 %v2287_v18, %v2286_v57  ;;  %v3909_v2 = vsel %vm1059_vm2, %v1796_v22, %v5674_v15  ;;  %v6284_v61 = vunpack.i.h.bf16 %v10171_v9  ;;  %v11209_v59 = vld [vmem:[#allocation38_spill] sm:$0xff] }
 0x408   :  { %v4036_v53 = vsel %vm3999_vm6, %v3971_v45, %v6258_v33  ;;  %v4037_v10 = vsel %vm3999_vm6, %v3972_v11, %v6259_v14  ;;  %4768 = vmatprep.mubr.bf16.mxu1 %v4311_v47  ;;  %v3973_v28 = vsel %vm3934_vm5, %v3908_v31, %v5823_v63  ;;  %v6283_v52 = vunpack.i.l.bf16 %v10171_v9  ;;  %v2289_v9 = vld [vmem:[#allocation2 + $0x112] sm:$0xff]  ;;  %v2290_v45 = vld [vmem:[#allocation2 + $0x122] sm:$0xff] }
 0x409   :  { %v6267_v50 = vpop.permute.xlu1 %6266  ;;  %v4310_v35 = vpack.c.bf16 %v4037_v10, %v4036_v53  ;;  %v3974_v34 = vsel %vm3934_vm5, %v3909_v2, %v5824_v8  ;;  %v5679_v21 = vunpack.i.h.bf16 %v11208_v56  ;;  %v5678_v26 = vunpack.i.l.bf16 %v11208_v56  ;;  %v1797_v10 = vld [vmem:[#allocation2 + $0x210] sm:$0xff] }
 0x40a   :  { %v6269_v1 = vunpack.i.h.bf16 %v6267_v50  ;;  %v6268_v23 = vunpack.i.l.bf16 %v6267_v50  ;;  %v5829_v49 = vunpack.i.h.bf16 %v11209_v59  ;;  %v5828_v46 = vunpack.i.l.bf16 %v11209_v59  ;;  %v2056_v2 = vld [vmem:[#allocation2 + $0x249] sm:$0xff] }
 0x40b   :  { %v10186_v38 = vpop.permute.xlu0 %6291  ;;  %v4105_v37 = vsel %vm1059_vm2, %v2054_v43, %v6284_v61  ;;  %v4104_v47 = vsel %vm1059_vm2, %v2053_v12, %v6283_v52  ;;  %v4285_v27 = vpack.c.bf16 %v2289_v9, %v2288_v3  ;;  %v3910_v50 = vsel %vm1059_vm2, %v1797_v10, %v5678_v26  ;;  %v2295_v61 = vld [vmem:[#allocation2 + $0x15a] sm:$0xff]  ;;  %v1800_v12 = vld [vmem:[#allocation2 + $0x230] sm:$0xff] }
 0x40c   :  { %v4166_v42 = vsel %vm3934_vm5, %v4102_v4, %v6268_v23  ;;  %v4167_v51 = vsel %vm3934_vm5, %v4103_v39, %v6269_v1  ;;  %v6294_v11 = vunpack.i.h.bf16 %v10186_v38  ;;  %v6293_v53 = vunpack.i.l.bf16 %v10186_v38 }
 0x40d   :  { %4769 = vmatmul.mubr.bf16.gmra.mxu1 %v4310_v35  ;;  %v6277_v6 = vpop.permute.xlu1 %6276  ;;  %v4230_v58 = vsel %vm3999_vm6, %v4166_v42, %v6273_v0  ;;  %v4231_v20 = vsel %vm3999_vm6, %v4167_v51, %v6274_v54  ;;  %v4288_v36 = vpack.c.bf16 %v2291_v13, %v2290_v45  ;;  %v3911_v38 = vsel %vm1059_vm2, %v1798_v29, %v5679_v21  ;;  %v11210_v0 = vld [vmem:[#allocation6_spill] sm:$0xff]  ;;  %v2055_v51 = vld [vmem:[#allocation2 + $0x241] sm:$0xff] }
 0x40e   :  { %v6279_v40 = vunpack.i.h.bf16 %v6277_v6  ;;  %v6278_v41 = vunpack.i.l.bf16 %v6277_v6  ;;  %5471 = vmatmul.mubr.msk.bf16.gmra.mxu0 %vm1059_vm2, %v4279_v25  ;;  %v4314_v62 = vpack.c.bf16 %v4231_v20, %v4230_v58  ;;  %v3975_v1 = vsel %vm3934_vm5, %v3910_v50, %v5828_v46  ;;  %v2292_v6 = vld [vmem:[#allocation2 + $0x13a] sm:$0xff] }
 0x40f   :  { %v10197_v24 = vpop.permute.xlu0 %6301  ;;  %5474 = vmatprep.mubr.msk.bf16.mxu0 %vm1059_vm2, %v4282_v17  ;;  %v3976_v39 = vsel %vm3934_vm5, %v3911_v38, %v5829_v49  ;;  %v5684_v16 = vunpack.i.h.bf16 %v11210_v0  ;;  %v5683_v42 = vunpack.i.l.bf16 %v11210_v0  ;;  %v11211_v17 = vld [vmem:[#allocation45_spill] sm:$0xff]  ;;  %v2058_v38 = vld [vmem:[#allocation2 + $0x261] sm:$0xff] }
 0x410   :  { %v4038_v60 = vsel %vm3999_vm6, %v3973_v28, %v6278_v41  ;;  %v4039_v32 = vsel %vm3999_vm6, %v3974_v34, %v6279_v40  ;;  %4776 = vmatprep.mubr.bf16.mxu1 %v4314_v62  ;;  %v6304_v23 = vunpack.i.h.bf16 %v10197_v24  ;;  %v6303_v57 = vunpack.i.l.bf16 %v10197_v24  ;;  %v2293_v24 = vld [vmem:[#allocation2 + $0x142] sm:$0xff]  ;;  %v2294_v28 = vld [vmem:[#allocation2 + $0x152] sm:$0xff] }
 0x411   :  { %v6287_v48 = vpop.permute.xlu1 %6286  ;;  %v4313_v30 = vpack.c.bf16 %v4039_v32, %v4038_v60  ;;  %v5834_v58 = vunpack.i.h.bf16 %v11211_v17  ;;  %v5833_v20 = vunpack.i.l.bf16 %v11211_v17  ;;  %v1799_v32 = vld [vmem:[#allocation2 + $0x228] sm:$0xff]  ;;  %v4291_v26 = vpack.c.bf16 %v2293_v24, %v2292_v6 }
 0x412   :  { %v6289_v14 = vunpack.i.h.bf16 %v6287_v48  ;;  %v6288_v33 = vunpack.i.l.bf16 %v6287_v48  ;;  %v4107_v52 = vsel %vm1059_vm2, %v2056_v2, %v6304_v23  ;;  %v4106_v62 = vsel %vm1059_vm2, %v2055_v51, %v6303_v57  ;;  %v2299_v23 = vld [vmem:[#allocation2 + $0x18a] sm:$0xff] }
 0x413   :  { %v10212_v7 = vpop.permute.xlu0 %6311  ;;  %v3912_v48 = vsel %vm1059_vm2, %v1799_v32, %v5683_v42  ;;  %v4294_v9 = vpack.c.bf16 %v2295_v61, %v2294_v28  ;;  %v1802_v51 = vld [vmem:[#allocation2 + $0x248] sm:$0xff] }
 0x414   :  { %v4168_v5 = vsel %vm3934_vm5, %v4104_v47, %v6288_v33  ;;  %v4169_v15 = vsel %vm3934_vm5, %v4105_v37, %v6289_v14  ;;  %v6314_v34 = vunpack.i.h.bf16 %v10212_v7  ;;  %v6313_v60 = vunpack.i.l.bf16 %v10212_v7 }
 0x415   :  { %4777 = vmatmul.mubr.bf16.gmra.mxu1 %v4313_v30  ;;  %v6297_v35 = vpop.permute.xlu1 %6296  ;;  %v4232_v44 = vsel %vm3999_vm6, %v4168_v5, %v6293_v53  ;;  %v4233_v8 = vsel %vm3999_vm6, %v4169_v15, %v6294_v11  ;;  %v3913_v7 = vsel %vm1059_vm2, %v1800_v12, %v5684_v16  ;;  %v3977_v14 = vsel %vm3934_vm5, %v3912_v48, %v5833_v20  ;;  %v11212_v53 = vld [vmem:[#allocation5_spill] sm:$0xff]  ;;  %v2057_v15 = vld [vmem:[#allocation2 + $0x259] sm:$0xff] }
 0x416   :  { %v6299_v63 = vunpack.i.h.bf16 %v6297_v35  ;;  %v6298_v55 = vunpack.i.l.bf16 %v6297_v35  ;;  %5475 = vmatmul.mubr.msk.bf16.gmra.mxu0 %vm1059_vm2, %v4285_v27  ;;  %v4317_v18 = vpack.c.bf16 %v4233_v8, %v4232_v44  ;;  %v3978_v37 = vsel %vm3934_vm5, %v3913_v7, %v5834_v58  ;;  %v2296_v35 = vld [vmem:[#allocation2 + $0x16a] sm:$0xff]  ;;  %v11215_v12 = vld [vmem:[#allocation47_spill] sm:$0xff] }
 0x417   :  { %v10223_v19 = vpop.permute.xlu0 %6321  ;;  %5478 = vmatprep.mubr.msk.bf16.mxu0 %vm1059_vm2, %v4288_v36  ;;  %v5689_v10 = vunpack.i.h.bf16 %v11212_v53  ;;  %v5688_v5 = vunpack.i.l.bf16 %v11212_v53  ;;  %v11213_v36 = vld [vmem:[#allocation40_spill] sm:$0xff]  ;;  %v5844_v48 = vunpack.i.h.bf16 %v11215_v12  ;;  %v2060_v7 = vld [vmem:[#allocation2 + $0x279] sm:$0xff] }
 0x418   :  { %v4040_v4 = vsel %vm3999_vm6, %v3975_v1, %v6298_v55  ;;  %v4041_v54 = vsel %vm3999_vm6, %v3976_v39, %v6299_v63  ;;  %4784 = vmatprep.mubr.bf16.mxu1 %v4317_v18  ;;  %v6324_v33 = vunpack.i.h.bf16 %v10223_v19  ;;  %v6323_v45 = vunpack.i.l.bf16 %v10223_v19  ;;  %v2297_v19 = vld [vmem:[#allocation2 + $0x172] sm:$0xff]  ;;  %v2298_v1 = vld [vmem:[#allocation2 + $0x182] sm:$0xff] }
 0x419   :  { %v6307_v25 = vpop.permute.xlu1 %6306  ;;  %v4316_v31 = vpack.c.bf16 %v4041_v54, %v4040_v4  ;;  %v5839_v44 = vunpack.i.h.bf16 %v11213_v36  ;;  %v5838_v8 = vunpack.i.l.bf16 %v11213_v36  ;;  %v1801_v54 = vld [vmem:[#allocation2 + $0x240] sm:$0xff]  ;;  %v4297_v42 = vpack.c.bf16 %v2297_v19, %v2296_v35  ;;  %v1803_v53 = vld [vmem:[#allocation2 + $0x258] sm:$0xff] }
 0x41a   :  { %v6309_v40 = vunpack.i.h.bf16 %v6307_v25  ;;  %v6308_v41 = vunpack.i.l.bf16 %v6307_v25  ;;  %v4109_v57 = vsel %vm1059_vm2, %v2058_v38, %v6324_v33  ;;  %v4108_v18 = vsel %vm1059_vm2, %v2057_v15, %v6323_v45  ;;  %v2302_v33 = vld [vmem:[#allocation2 + $0x1e2] sm:$0xff]  ;;  %v2303_v45 = vld [vmem:[#allocation2 + $0x1ea] sm:$0xff] }
 0x41b   :  { %v10238_v22 = vpop.permute.xlu0 %6331  ;;  %v3914_v25 = vsel %vm1059_vm2, %v1801_v54, %v5688_v5  ;;  %v4300_v24 = vpack.c.bf16 %v2299_v23, %v2298_v1  ;;  %v1804_v15 = vld [vmem:[#allocation2 + $0x260] sm:$0xff]  ;;  %v4306_v19 = vpack.c.bf16 %v2303_v45, %v2302_v33 }
 0x41c   :  { %v4170_v56 = vsel %vm3934_vm5, %v4106_v62, %v6308_v41  ;;  %v4171_v21 = vsel %vm3934_vm5, %v4107_v52, %v6309_v40  ;;  %v6334_v39 = vunpack.i.h.bf16 %v10238_v22  ;;  %v6333_v4 = vunpack.i.l.bf16 %v10238_v22  ;;  %v2300_v62 = vld [vmem:[#allocation2 + $0x19a] sm:$0xff] }
 0x41d   :  { %4785 = vmatmul.mubr.bf16.gmra.mxu1 %v4316_v31  ;;  %v6317_v30 = vpop.permute.xlu1 %6316  ;;  %v4234_v59 = vsel %vm3999_vm6, %v4170_v56, %v6313_v60  ;;  %v4235_v49 = vsel %vm3999_vm6, %v4171_v21, %v6314_v34  ;;  %v3915_v22 = vsel %vm1059_vm2, %v1802_v51, %v5689_v10  ;;  %v3979_v40 = vsel %vm3934_vm5, %v3914_v25, %v5838_v8  ;;  %v2301_v34 = vld [vmem:[#allocation2 + $0x1a2] sm:$0xff] }
 0x41e   :  { %v6319_v46 = vunpack.i.h.bf16 %v6317_v30  ;;  %v6318_v43 = vunpack.i.l.bf16 %v6317_v30  ;;  %5479 = vmatmul.mubr.msk.bf16.gmra.mxu0 %vm1059_vm2, %v4291_v26  ;;  %v4320_v13 = vpack.c.bf16 %v4235_v49, %v4234_v59  ;;  %v3980_v52 = vsel %vm3934_vm5, %v3915_v22, %v5839_v44  ;;  %v11214_v56 = vld [vmem:[#allocation11_spill] sm:$0xff]  ;;  %v2059_v30 = vld [vmem:[#allocation2 + $0x271] sm:$0xff] }
 0x41f   :  { %v10249_v3 = vpop.permute.xlu0 %6341  ;;  %5482 = vmatprep.mubr.msk.bf16.mxu0 %vm1059_vm2, %v4294_v9  ;;  %v5694_v21 = vunpack.i.h.bf16 %v11214_v56  ;;  %v5693_v26 = vunpack.i.l.bf16 %v11214_v56  ;;  %v5843_v49 = vunpack.i.l.bf16 %v11215_v12  ;;  %v2062_v22 = vld [vmem:[#allocation2 + $0x291] sm:$0xff] }
 0x420   :  { %v4042_v47 = vsel %vm3999_vm6, %v3977_v14, %v6318_v43  ;;  %v4043_v11 = vsel %vm3999_vm6, %v3978_v37, %v6319_v46  ;;  %4792 = vmatprep.mubr.bf16.mxu1 %v4320_v13  ;;  %v6344_v41 = vunpack.i.h.bf16 %v10249_v3  ;;  %v6343_v28 = vunpack.i.l.bf16 %v10249_v3 }
 0x421   :  { %v6327_v27 = vpop.permute.xlu1 %6326  ;;  %v4319_v50 = vpack.c.bf16 %v4043_v11, %v4042_v47  ;;  %v4303_v14 = vpack.c.bf16 %v2301_v34, %v2300_v62  ;;  %v3917_v8 = vsel %vm1059_vm2, %v1804_v15, %v5694_v21  ;;  %v1805_v34 = vld [vmem:[#allocation2 + $0x270] sm:$0xff]  ;;  %v1806_v21 = vld [vmem:[#allocation2 + $0x278] sm:$0xff] }
 0x422   :  { %v6329_v63 = vunpack.i.h.bf16 %v6327_v27  ;;  %v6328_v55 = vunpack.i.l.bf16 %v6327_v27  ;;  %v4111_v13 = vsel %vm1059_vm2, %v2060_v7, %v6344_v41  ;;  %v4110_v37 = vsel %vm1059_vm2, %v2059_v30, %v6343_v28  ;;  %v2307_v41 = vld [vmem:[#allocation2 + $0x21a] sm:$0xff] }
 0x423   :  { %v10264_v29 = vpop.permute.xlu0 %6351  ;;  %v3916_v27 = vsel %vm1059_vm2, %v1803_v53, %v5693_v26 }
 0x424   :  { %v4172_v0 = vsel %vm3934_vm5, %v4108_v18, %v6328_v55  ;;  %v4173_v16 = vsel %vm3934_vm5, %v4109_v57, %v6329_v63  ;;  %v6354_v47 = vunpack.i.h.bf16 %v10264_v29  ;;  %v6353_v11 = vunpack.i.l.bf16 %v10264_v29 }
 0x425   :  { %4793 = vmatmul.mubr.bf16.gmra.mxu1 %v4319_v50  ;;  %v6337_v31 = vpop.permute.xlu1 %6336  ;;  %v4236_v17 = vsel %vm3999_vm6, %v4172_v0, %v6333_v4  ;;  %v4237_v58 = vsel %vm3999_vm6, %v4173_v16, %v6334_v39  ;;  %v3981_v63 = vsel %vm3934_vm5, %v3916_v27, %v5843_v49  ;;  %v3982_v57 = vsel %vm3934_vm5, %v3917_v8, %v5844_v48  ;;  %v11216_v4 = vld [vmem:[#allocation12_spill] sm:$0xff] }
 0x426   :  { %v6339_v20 = vunpack.i.h.bf16 %v6337_v31  ;;  %v6338_v2 = vunpack.i.l.bf16 %v6337_v31  ;;  %5483 = vmatmul.mubr.msk.bf16.gmra.mxu0 %vm1059_vm2, %v4297_v42  ;;  %v4323_v61 = vpack.c.bf16 %v4237_v58, %v4236_v17  ;;  %v5699_v54 = vunpack.i.h.bf16 %v11216_v4  ;;  %v2061_v16 = vld [vmem:[#allocation2 + $0x289] sm:$0xff]  ;;  %v2304_v31 = vld [vmem:[#allocation2 + $0x1fa] sm:$0xff] }
 0x427   :  { %v10275_v6 = vpop.permute.xlu0 %6361  ;;  %5486 = vmatprep.mubr.msk.bf16.mxu0 %vm1059_vm2, %v4300_v24  ;;  %v5698_v0 = vunpack.i.l.bf16 %v11216_v4  ;;  %v11217_v24 = vld [vmem:[#allocation42_spill] sm:$0xff]  ;;  %v2064_v8 = vld [vmem:[#allocation2 + $0x2a9] sm:$0xff] }
 0x428   :  { %v4044_v60 = vsel %vm3999_vm6, %v3979_v40, %v6338_v2  ;;  %v4045_v32 = vsel %vm3999_vm6, %v3980_v52, %v6339_v20  ;;  %4800 = vmatprep.mubr.bf16.mxu1 %v4323_v61  ;;  %v6364_v55 = vunpack.i.h.bf16 %v10275_v6  ;;  %v6363_v1 = vunpack.i.l.bf16 %v10275_v6  ;;  %v2305_v6 = vld [vmem:[#allocation2 + $0x202] sm:$0xff]  ;;  %v2306_v40 = vld [vmem:[#allocation2 + $0x212] sm:$0xff] }
 0x429   :  { %v6347_v3 = vpop.permute.xlu1 %6346  ;;  %v4322_v59 = vpack.c.bf16 %v4045_v32, %v4044_v60  ;;  %v5849_v17 = vunpack.i.h.bf16 %v11217_v24  ;;  %v5848_v58 = vunpack.i.l.bf16 %v11217_v24  ;;  %v4309_v56 = vpack.c.bf16 %v2305_v6, %v2304_v31 }
 0x42a   :  { %v6349_v46 = vunpack.i.h.bf16 %v6347_v3  ;;  %v6348_v43 = vunpack.i.l.bf16 %v6347_v3  ;;  %v4113_v28 = vsel %vm1059_vm2, %v2062_v22, %v6364_v55  ;;  %v4112_v61 = vsel %vm1059_vm2, %v2061_v16, %v6363_v1  ;;  %v2311_v55 = vld [vmem:[#allocation2 + $0x24a] sm:$0xff] }
 0x42b   :  { %v10291_v9 = vpop.permute.xlu0 %6371  ;;  %v3918_v26 = vsel %vm1059_vm2, %v1805_v34, %v5698_v0  ;;  %v4312_v30 = vpack.c.bf16 %v2307_v41, %v2306_v40  ;;  %v1808_v16 = vld [vmem:[#allocation2 + $0x290] sm:$0xff] }
 0x42c   :  { %v4174_v10 = vsel %vm3934_vm5, %v4110_v37, %v6348_v43  ;;  %v4175_v5 = vsel %vm3934_vm5, %v4111_v13, %v6349_v46  ;;  %v6374_v52 = vunpack.i.h.bf16 %v10291_v9  ;;  %v6373_v62 = vunpack.i.l.bf16 %v10291_v9 }
 0x42d   :  { %4801 = vmatmul.mubr.bf16.gmra.mxu1 %v4322_v59  ;;  %v6357_v50 = vpop.permute.xlu1 %6356  ;;  %v4238_v36 = vsel %vm3999_vm6, %v4174_v10, %v6353_v11  ;;  %v4239_v44 = vsel %vm3999_vm6, %v4175_v5, %v6354_v47  ;;  %v3919_v9 = vsel %vm1059_vm2, %v1806_v21, %v5699_v54  ;;  %v3983_v46 = vsel %vm3934_vm5, %v3918_v26, %v5848_v58  ;;  %v11218_v47 = vld [vmem:[#allocation14_spill] sm:$0xff]  ;;  %v2063_v10 = vld [vmem:[#allocation2 + $0x2a1] sm:$0xff] }
 0x42e   :  { %v6359_v29 = vunpack.i.h.bf16 %v6357_v50  ;;  %v6358_v38 = vunpack.i.l.bf16 %v6357_v50  ;;  %5487 = vmatmul.mubr.msk.bf16.gmra.mxu0 %vm1059_vm2, %v4303_v14  ;;  %v4326_v23 = vpack.c.bf16 %v4239_v44, %v4238_v36  ;;  %v3984_v45 = vsel %vm3934_vm5, %v3919_v9, %v5849_v17  ;;  %v2308_v50 = vld [vmem:[#allocation2 + $0x22a] sm:$0xff]  ;;  %v2066_v9 = vld [vmem:[#allocation2 + $0x2c1] sm:$0xff] }
 0x42f   :  { %v10301_v35 = vpop.permute.xlu0 %6381  ;;  %5490 = vmatprep.mubr.msk.bf16.mxu0 %vm1059_vm2, %v4306_v19  ;;  %v5704_v11 = vunpack.i.h.bf16 %v11218_v47  ;;  %v5703_v53 = vunpack.i.l.bf16 %v11218_v47  ;;  %v11219_v19 = vld [vmem:[#allocation49_spill] sm:$0xff] }
 0x430   :  { %v4046_v18 = vsel %vm3999_vm6, %v3981_v63, %v6358_v38  ;;  %v4047_v39 = vsel %vm3999_vm6, %v3982_v57, %v6359_v29  ;;  %4808 = vmatprep.mubr.bf16.mxu1 %v4326_v23  ;;  %v6384_v43 = vunpack.i.h.bf16 %v10301_v35  ;;  %v6383_v14 = vunpack.i.l.bf16 %v10301_v35  ;;  %v2309_v35 = vld [vmem:[#allocation2 + $0x232] sm:$0xff]  ;;  %v2310_v63 = vld [vmem:[#allocation2 + $0x242] sm:$0xff] }
 0x431   :  { %v6367_v42 = vpop.permute.xlu1 %6366  ;;  %v4325_v25 = vpack.c.bf16 %v4047_v39, %v4046_v18  ;;  %v5854_v36 = vunpack.i.h.bf16 %v11219_v19  ;;  %v5853_v44 = vunpack.i.l.bf16 %v11219_v19  ;;  %v1807_v39 = vld [vmem:[#allocation2 + $0x288] sm:$0xff]  ;;  %v4315_v0 = vpack.c.bf16 %v2309_v35, %v2308_v50 }
 0x432   :  { %v6369_v20 = vunpack.i.h.bf16 %v6367_v42  ;;  %v6368_v2 = vunpack.i.l.bf16 %v6367_v42  ;;  %v4115_v1 = vsel %vm1059_vm2, %v2064_v8, %v6384_v43  ;;  %v4114_v23 = vsel %vm1059_vm2, %v2063_v10, %v6383_v14  ;;  %v2315_v43 = vld [vmem:[#allocation2 + $0x27a] sm:$0xff] }
 0x433   :  { %v10316_v51 = vpop.permute.xlu0 %6391  ;;  %v3920_v42 = vsel %vm1059_vm2, %v1807_v39, %v5703_v53  ;;  %v4318_v6 = vpack.c.bf16 %v2311_v55, %v2310_v63  ;;  %v1809_v10 = vld [vmem:[#allocation2 + $0x2a0] sm:$0xff] }
 0x434   :  { %v4176_v60 = vsel %vm3934_vm5, %v4112_v61, %v6368_v2  ;;  %v4177_v32 = vsel %vm3934_vm5, %v4113_v28, %v6369_v20  ;;  %v6394_v57 = vunpack.i.h.bf16 %v10316_v51  ;;  %v6393_v18 = vunpack.i.l.bf16 %v10316_v51 }
 0x435   :  { %4809 = vmatmul.mubr.bf16.gmra.mxu1 %v4325_v25  ;;  %v6377_v12 = vpop.permute.xlu1 %6376  ;;  %v4240_v3 = vsel %vm3999_vm6, %v4176_v60, %v6373_v62  ;;  %v4241_v59 = vsel %vm3999_vm6, %v4177_v32, %v6374_v52  ;;  %v3921_v51 = vsel %vm1059_vm2, %v1808_v16, %v5704_v11  ;;  %v3985_v20 = vsel %vm3934_vm5, %v3920_v42, %v5853_v44  ;;  %v11220_v62 = vld [vmem:[#allocation7_spill] sm:$0xff]  ;;  %v2316_v42 = vld [vmem:[#allocation2 + $0x28a] sm:$0xff] }
 0x436   :  { %v6379_v49 = vunpack.i.h.bf16 %v6377_v12  ;;  %v6378_v7 = vunpack.i.l.bf16 %v6377_v12  ;;  %5491 = vmatmul.mubr.msk.bf16.gmra.mxu0 %vm1059_vm2, %v4309_v56  ;;  %v4329_v33 = vpack.c.bf16 %v4241_v59, %v4240_v3  ;;  %v3986_v28 = vsel %vm3934_vm5, %v3921_v51, %v5854_v36  ;;  %v2065_v32 = vld [vmem:[#allocation2 + $0x2b9] sm:$0xff] }
 0x437   :  { %v10327_v48 = vpop.permute.xlu0 %6401  ;;  %5494 = vmatprep.mubr.msk.bf16.mxu0 %vm1059_vm2, %v4312_v30  ;;  %v5709_v34 = vunpack.i.h.bf16 %v11220_v62  ;;  %v5708_v60 = vunpack.i.l.bf16 %v11220_v62  ;;  %v2312_v12 = vld [vmem:[#allocation2 + $0x25a] sm:$0xff]  ;;  %v11221_v30 = vld [vmem:[#allocation44_spill] sm:$0xff] }
 0x438   :  { %v4048_v13 = vsel %vm3999_vm6, %v3983_v46, %v6378_v7  ;;  %v4049_v37 = vsel %vm3999_vm6, %v3984_v45, %v6379_v49  ;;  %4816 = vmatprep.mubr.bf16.mxu1 %v4329_v33  ;;  %v6404_v2 = vunpack.i.h.bf16 %v10327_v48  ;;  %v6403_v40 = vunpack.i.l.bf16 %v10327_v48  ;;  %v2313_v48 = vld [vmem:[#allocation2 + $0x262] sm:$0xff]  ;;  %v2314_v46 = vld [vmem:[#allocation2 + $0x272] sm:$0xff] }
 0x439   :  { %v6387_v5 = vpop.permute.xlu1 %6386  ;;  %v4328_v27 = vpack.c.bf16 %v4049_v37, %v4048_v13  ;;  %v5859_v3 = vunpack.i.h.bf16 %v11221_v30  ;;  %v5858_v59 = vunpack.i.l.bf16 %v11221_v30  ;;  %v1810_v37 = vld [vmem:[#allocation2 + $0x2a8] sm:$0xff]  ;;  %v4321_v53 = vpack.c.bf16 %v2313_v48, %v2312_v12 }
 0x43a   :  { %v6389_v29 = vunpack.i.h.bf16 %v6387_v5  ;;  %v6388_v38 = vunpack.i.l.bf16 %v6387_v5  ;;  %v4117_v14 = vsel %vm1059_vm2, %v2066_v9, %v6404_v2  ;;  %v4116_v33 = vsel %vm1059_vm2, %v2065_v32, %v6403_v40  ;;  %v1811_v32 = vld [vmem:[#allocation2 + $0x2b8] sm:$0xff] }
 0x43b   :  { %v10342_v15 = vpop.permute.xlu0 %6411  ;;  %v3923_v5 = vsel %vm1059_vm2, %v1810_v37, %v5709_v34  ;;  %v4324_v50 = vpack.c.bf16 %v2315_v43, %v2314_v46  ;;  %v3922_v36 = vsel %vm1059_vm2, %v1809_v10, %v5708_v60  ;;  %v2069_v10 = vld [vmem:[#allocation2 + $0x2e9] sm:$0xff] }
 0x43c   :  { %v4178_v4 = vsel %vm3934_vm5, %v4114_v23, %v6388_v38  ;;  %v4179_v54 = vsel %vm3934_vm5, %v4115_v1, %v6389_v29  ;;  %v6414_v45 = vunpack.i.h.bf16 %v10342_v15  ;;  %v6413_v13 = vunpack.i.l.bf16 %v10342_v15 }
 0x43d   :  { %4817 = vmatmul.mubr.bf16.gmra.mxu1 %v4328_v27  ;;  %v6397_v25 = vpop.permute.xlu1 %6396  ;;  %v4242_v24 = vsel %vm3999_vm6, %v4178_v4, %v6393_v18  ;;  %v4243_v17 = vsel %vm3999_vm6, %v4179_v54, %v6394_v57  ;;  %v3987_v55 = vsel %vm3934_vm5, %v3922_v36, %v5858_v59  ;;  %v3988_v1 = vsel %vm3934_vm5, %v3923_v5, %v5859_v3  ;;  %v11222_v18 = vld [vmem:[#allocation13_spill] sm:$0xff]  ;;  %v11225_v36 = vld [vmem:[#allocation46_spill] sm:$0xff] }
 0x43e   :  { %v6399_v58 = vunpack.i.h.bf16 %v6397_v25  ;;  %v6398_v22 = vunpack.i.l.bf16 %v6397_v25  ;;  %5495 = vmatmul.mubr.msk.bf16.gmra.mxu0 %vm1059_vm2, %v4315_v0  ;;  %v4332_v41 = vpack.c.bf16 %v4243_v17, %v4242_v24  ;;  %v5714_v39 = vunpack.i.h.bf16 %v11222_v18  ;;  %v2067_v54 = vld [vmem:[#allocation2 + $0x2d1] sm:$0xff]  ;;  %v2068_v17 = vld [vmem:[#allocation2 + $0x2d9] sm:$0xff] }
 0x43f   :  { %v10353_v31 = vpop.permute.xlu0 %6421  ;;  %5498 = vmatprep.mubr.msk.bf16.mxu0 %vm1059_vm2, %v4318_v6  ;;  %v5713_v4 = vunpack.i.l.bf16 %v11222_v18  ;;  %v2317_v25 = vld [vmem:[#allocation2 + $0x292] sm:$0xff] }
 0x440   :  { %v4050_v61 = vsel %vm3999_vm6, %v3985_v20, %v6398_v22  ;;  %v4051_v52 = vsel %vm3999_vm6, %v3986_v28, %v6399_v58  ;;  %4824 = vmatprep.mubr.bf16.mxu1 %v4332_v41  ;;  %v6424_v29 = vunpack.i.h.bf16 %v10353_v31  ;;  %v6423_v38 = vunpack.i.l.bf16 %v10353_v31  ;;  %v11223_v31 = vld [vmem:[#allocation51_spill] sm:$0xff]  ;;  %v2319_v20 = vld [vmem:[#allocation2 + $0x2aa] sm:$0xff] }
 0x441   :  { %v6407_v56 = vpop.permute.xlu1 %6406  ;;  %v4331_v26 = vpack.c.bf16 %v4051_v52, %v4050_v61  ;;  %v5864_v6 = vunpack.i.h.bf16 %v11223_v31  ;;  %v5863_v24 = vunpack.i.l.bf16 %v11223_v31  ;;  %v2318_v22 = vld [vmem:[#allocation2 + $0x2a2] sm:$0xff]  ;;  %v4327_v60 = vpack.c.bf16 %v2317_v25, %v2316_v42  ;;  %v1813_v25 = vld [vmem:[#allocation2 + $0x2d0] sm:$0xff] }
 0x442   :  { %v6409_v49 = vunpack.i.h.bf16 %v6407_v56  ;;  %v6408_v7 = vunpack.i.l.bf16 %v6407_v56  ;;  %v4119_v2 = vsel %vm1059_vm2, %v2068_v17, %v6424_v29  ;;  %v4118_v40 = vsel %vm1059_vm2, %v2067_v54, %v6423_v38  ;;  %v1812_v52 = vld [vmem:[#allocation2 + $0x2c0] sm:$0xff]  ;;  %v1814_v54 = vld [vmem:[#allocation2 + $0x2d8] sm:$0xff] }
 0x443   :  { %v10368_v21 = vpop.permute.xlu0 %6431  ;;  %v3925_v56 = vsel %vm1059_vm2, %v1812_v52, %v5714_v39  ;;  %v4330_v48 = vpack.c.bf16 %v2319_v20, %v2318_v22 }
 0x444   :  { %v4180_v47 = vsel %vm3934_vm5, %v4116_v33, %v6408_v7  ;;  %v4181_v11 = vsel %vm3934_vm5, %v4117_v14, %v6409_v49  ;;  %v6434_v41 = vunpack.i.h.bf16 %v10368_v21  ;;  %v6433_v28 = vunpack.i.l.bf16 %v10368_v21 }
 0x445   :  { %4825 = vmatmul.mubr.bf16.gmra.mxu1 %v4331_v26  ;;  %v6417_v27 = vpop.permute.xlu1 %6416  ;;  %v4244_v35 = vsel %vm3999_vm6, %v4180_v47, %v6413_v13  ;;  %v4245_v19 = vsel %vm3999_vm6, %v4181_v11, %v6414_v45  ;;  %v3924_v21 = vsel %vm1059_vm2, %v1811_v32, %v5713_v4  ;;  %v3990_v45 = vsel %vm3934_vm5, %v3925_v56, %v5864_v6  ;;  %v11224_v47 = vld [vmem:[#allocation16_spill] sm:$0xff]  ;;  %v11226_v56 = vld [vmem:[#allocation18_spill] sm:$0xff] }
 0x446   :  { %v6419_v44 = vunpack.i.h.bf16 %v6417_v27  ;;  %v6418_v15 = vunpack.i.l.bf16 %v6417_v27  ;;  %v4335_v8 = vpack.c.bf16 %v4245_v19, %v4244_v35  ;;  %5499 = vmatmul.mubr.msk.bf16.gmra.mxu0 %vm1059_vm2, %v4321_v53  ;;  %v3989_v33 = vsel %vm3934_vm5, %v3924_v21, %v5863_v24  ;;  %v2320_v35 = vld [vmem:[#allocation2 + $0x2ba] sm:$0xff]  ;;  %v2321_v19 = vld [vmem:[#allocation2 + $0x2c2] sm:$0xff] }
 0x447   :  { %v10384_v63 = vpop.permute.xlu0 %6441  ;;  %5502 = vmatprep.mubr.msk.bf16.mxu0 %vm1059_vm2, %v4324_v50  ;;  %v5719_v11 = vunpack.i.h.bf16 %v11224_v47  ;;  %v5718_v53 = vunpack.i.l.bf16 %v11224_v47  ;;  %v4333_v42 = vpack.c.bf16 %v2321_v19, %v2320_v35 }
 0x448   :  { %4832 = vmatprep.mubr.bf16.mxu1 %v4335_v8  ;;  %v4052_v23 = vsel %vm3999_vm6, %v3987_v55, %v6418_v15  ;;  %v4053_v57 = vsel %vm3999_vm6, %v3988_v1, %v6419_v44  ;;  %v6444_v7 = vunpack.i.h.bf16 %v10384_v63  ;;  %v6443_v46 = vunpack.i.l.bf16 %v10384_v63  ;;  %v2070_v8 = vld [vmem:[#allocation2 + $0x2f1] sm:$0xff]  ;;  %v2323_v55 = vld [vmem:[#allocation2 + $0x2da] sm:$0xff] }
 0x449   :  { %v6427_v0 = vpop.permute.xlu1 %6426  ;;  %v4334_v16 = vpack.c.bf16 %v4053_v57, %v4052_v23  ;;  %v5869_v44 = vunpack.i.h.bf16 %v11225_v36  ;;  %v5868_v15 = vunpack.i.l.bf16 %v11225_v36  ;;  %v2322_v63 = vld [vmem:[#allocation2 + $0x2d2] sm:$0xff]  ;;  %v3927_v31 = vsel %vm1059_vm2, %v1814_v54, %v5719_v11 }
 0x44a   :  { %v6429_v51 = vunpack.i.h.bf16 %v6427_v0  ;;  %v6428_v58 = vunpack.i.l.bf16 %v6427_v0  ;;  %v4121_v1 = vsel %vm1059_vm2, %v2070_v8, %v6444_v7  ;;  %v4120_v23 = vsel %vm1059_vm2, %v2069_v10, %v6443_v46  ;;  %v11227_v7 = vld [vmem:[#allocation53_spill] sm:$0xff] }
 0x44b   :  { %v6452_v61 = vpop.permute.xlu0 %6451  ;;  %v4336_v17 = vpack.c.bf16 %v2323_v55, %v2322_v63  ;;  %v3926_v22 = vsel %vm1059_vm2, %v1813_v25, %v5718_v53  ;;  %v5874_v46 = vunpack.i.h.bf16 %v11227_v7 }
 0x44c   :  { %v4182_v62 = vsel %vm3934_vm5, %v4118_v40, %v6428_v58  ;;  %v4183_v34 = vsel %vm3934_vm5, %v4119_v2, %v6429_v51  ;;  %v10403_v26 = vpop.f32.mrf.mxu1  ;;  %v6454_v57 = vunpack.i.h.bf16 %v6452_v61  ;;  %v6453_v18 = vunpack.i.l.bf16 %v6452_v61 }
 0x44d   :  { %4833 = vmatmul.mubr.bf16.gmra.mxu1 %v4334_v16  ;;  %v6437_v12 = vpop.permute.xlu1 %6436  ;;  %v4246_v30 = vsel %vm3999_vm6, %v4182_v62, %v6433_v28  ;;  %v4247_v3 = vsel %vm3999_vm6, %v4183_v34, %v6434_v41  ;;  %v3991_v62 = vsel %vm3934_vm5, %v3926_v22, %v5868_v15  ;;  %v3992_v34 = vsel %vm3934_vm5, %v3927_v31, %v5869_v44  ;;  %v1815_v15 = vld [vmem:[#allocation2 + $0x2e8] sm:$0xff] }
 0x44e   :  { %v6439_v59 = vunpack.i.h.bf16 %v6437_v12  ;;  %v6438_v9 = vunpack.i.l.bf16 %v6437_v12  ;;  %v4338_v49 = vpack.c.bf16 %v4247_v3, %v4246_v30  ;;  %v4652_v14 = vpop.f32.mrf.mxu1  ;;  %5503 = vmatmul.mubr.msk.bf16.gmra.mxu0 %vm1059_vm2, %v4327_v60  ;;  %v5724_v12 = vunpack.i.h.bf16 %v11226_v56  ;;  %v2071_v30 = vld [vmem:[#allocation2 + $0x301] sm:$0xff] }
 0x44f   :  { %v10410_v43 = vpop.permute.xlu0 %6461  ;;  %5506 = vmatprep.mubr.msk.bf16.mxu0 %vm1059_vm2, %v4330_v48  ;;  %v5723_v48 = vunpack.i.l.bf16 %v11226_v56  ;;  %v2072_v14 = vld [vmem:[#allocation2 + $0x309] sm:$0xff]  ;;  %v2330_v56 = vld [vmem:[#allocation2 + $0x332] sm:$0xff] }
 0x450   :  { %4840 = vmatprep.mubr.bf16.mxu1 %v4338_v49  ;;  %v4054_v13 = vsel %vm3999_vm6, %v3989_v33, %v6438_v9  ;;  %v4055_v37 = vsel %vm3999_vm6, %v3990_v45, %v6439_v59  ;;  %v10420_v5 = vpop.f32.mrf.mxu1  ;;  %v6464_v41 = vunpack.i.h.bf16 %v10410_v43  ;;  %v6463_v28 = vunpack.i.l.bf16 %v10410_v43  ;;  %v2324_v9 = vld [vmem:[#allocation2 + $0x2ea] sm:$0xff]  ;;  %v2325_v49 = vld [vmem:[#allocation2 + $0x2f2] sm:$0xff] }
 0x451   :  { %v6447_v27 = vpop.permute.xlu1 %6446  ;;  %v4337_v50 = vpack.c.bf16 %v4055_v37, %v4054_v13  ;;  %v5873_v43 = vunpack.i.l.bf16 %v11227_v7  ;;  %v2326_v13 = vld [vmem:[#allocation2 + $0x302] sm:$0xff]  ;;  %v2327_v37 = vld [vmem:[#allocation2 + $0x30a] sm:$0xff]  ;;  %v4339_v44 = vpack.c.bf16 %v2325_v49, %v2324_v9 }
 0x452   :  { %v6449_v29 = vunpack.i.h.bf16 %v6447_v27  ;;  %v6448_v38 = vunpack.i.l.bf16 %v6447_v27  ;;  %v4655_v4 = vpop.f32.mrf.mxu1  ;;  %v4123_v47 = vsel %vm1059_vm2, %v2072_v14, %v6464_v41  ;;  %v4122_v11 = vsel %vm1059_vm2, %v2071_v30, %v6463_v28  ;;  %v2329_v41 = vld [vmem:[#allocation2 + $0x322] sm:$0xff] }
 0x453   :  { %v10426_v39 = vpop.permute.xlu0 %6471  ;;  %v4342_v63 = vpack.c.bf16 %v2327_v37, %v2326_v13  ;;  %v11229_v28 = vld [vmem:[#allocation48_spill] sm:$0xff]  ;;  %v1817_v14 = vld [vmem:[#allocation2 + $0x300] sm:$0xff] }
 0x454   :  { %v4184_v0 = vsel %vm3934_vm5, %v4120_v23, %v6448_v38  ;;  %v4185_v16 = vsel %vm3934_vm5, %v4121_v1, %v6449_v29  ;;  %v10431_v6 = vpop.f32.mrf.mxu1  ;;  %v6474_v53 = vunpack.i.h.bf16 %v10426_v39  ;;  %v6473_v10 = vunpack.i.l.bf16 %v10426_v39  ;;  %v1818_v49 = vld [vmem:[#allocation2 + $0x308] sm:$0xff] }
 0x455   :  { %4841 = vmatmul.mubr.bf16.gmra.mxu1 %v4337_v50  ;;  %v6457_v24 = vpop.permute.xlu1 %6456  ;;  %v4248_v51 = vsel %vm3999_vm6, %v4184_v0, %v6453_v18  ;;  %v4249_v58 = vsel %vm3999_vm6, %v4185_v16, %v6454_v57  ;;  %v1816_v50 = vld [vmem:[#allocation2 + $0x2f0] sm:$0xff]  ;;  %v3928_v23 = vsel %vm1059_vm2, %v1815_v15, %v5723_v48 }
 0x456   :  { %v6459_v20 = vunpack.i.h.bf16 %v6457_v24  ;;  %v6458_v2 = vunpack.i.l.bf16 %v6457_v24  ;;  %v4341_v40 = vpack.c.bf16 %v4249_v58, %v4248_v51  ;;  %v4660_v52 = vpop.f32.mrf.mxu1  ;;  %5507 = vmatmul.mubr.msk.bf16.gmra.mxu0 %vm1059_vm2, %v4333_v42  ;;  %v3929_v8 = vsel %vm1059_vm2, %v1816_v50, %v5724_v12  ;;  %v11228_v24 = vld [vmem:[#allocation15_spill] sm:$0xff] }
 0x457   :  { %v10438_v61 = vpop.permute.xlu0 %6481  ;;  %5510 = vmatprep.mubr.msk.bf16.mxu0 %vm1059_vm2, %v4336_v17  ;;  %v3993_v16 = vsel %vm3934_vm5, %v3928_v23, %v5873_v43  ;;  %v3994_v42 = vsel %vm3934_vm5, %v3929_v8, %v5874_v46  ;;  %v5729_v17 = vunpack.i.h.bf16 %v11228_v24  ;;  %v5728_v51 = vunpack.i.l.bf16 %v11228_v24  ;;  %v2073_v58 = vld [vmem:[#allocation2 + $0x319] sm:$0xff]  ;;  %v11230_v23 = vld [vmem:[#allocation28_spill] sm:$0xff] }
 0x458   :  { %4848 = vmatprep.mubr.bf16.mxu1 %v4341_v40  ;;  %v4056_v60 = vsel %vm3999_vm6, %v3991_v62, %v6458_v2  ;;  %v4057_v32 = vsel %vm3999_vm6, %v3992_v34, %v6459_v20  ;;  %v10448_v3 = vpop.f32.mrf.mxu1  ;;  %v6484_v4 = vunpack.i.h.bf16 %v10438_v61  ;;  %v6483_v54 = vunpack.i.l.bf16 %v10438_v61  ;;  %v2328_v40 = vld [vmem:[#allocation2 + $0x31a] sm:$0xff] }
 0x459   :  { %v6467_v21 = vpop.permute.xlu1 %6466  ;;  %v4340_v59 = vpack.c.bf16 %v4057_v32, %v4056_v60  ;;  %v5879_v61 = vunpack.i.h.bf16 %v11229_v28  ;;  %v5878_v52 = vunpack.i.l.bf16 %v11229_v28  ;;  %v2074_v62 = vld [vmem:[#allocation2 + $0x321] sm:$0xff]  ;;  %v4345_v43 = vpack.c.bf16 %v2329_v41, %v2328_v40  ;;  %v2076_v24 = vld [vmem:[#allocation2 + $0x339] sm:$0xff] }
 0x45a   :  { %v6469_v33 = vunpack.i.h.bf16 %v6467_v21  ;;  %v6468_v45 = vunpack.i.l.bf16 %v6467_v21  ;;  %v4663_v27 = vpop.f32.mrf.mxu1  ;;  %v2331_v12 = vld [vmem:[#allocation2 + $0x33a] sm:$0xff]  ;;  %v4125_v48 = vsel %vm1059_vm2, %v2074_v62, %v6484_v4  ;;  %v4124_v30 = vsel %vm1059_vm2, %v2073_v58, %v6483_v54 }
 0x45b   :  { %v6492_v36 = vpop.permute.xlu0 %6491  ;;  %v4348_v37 = vpack.c.bf16 %v2331_v12, %v2330_v56  ;;  %v1820_v28 = vld [vmem:[#allocation2 + $0x320] sm:$0xff]  ;;  %v1819_v62 = vld [vmem:[#allocation2 + $0x318] sm:$0xff] }
 0x45c   :  { %v4186_v35 = vsel %vm3934_vm5, %v4122_v11, %v6468_v45  ;;  %v4187_v19 = vsel %vm3934_vm5, %v4123_v47, %v6469_v33  ;;  %v6494_v21 = vunpack.i.h.bf16 %v6492_v36  ;;  %v3931_v33 = vsel %vm1059_vm2, %v1818_v49, %v5729_v17 }
 0x45d   :  { %4849 = vmatmul.mubr.bf16.gmra.mxu1 %v4340_v59  ;;  %v10459_v29 = vpop.f32.mrf.mxu1  ;;  %v6477_v38 = vpop.permute.xlu1 %6476  ;;  %v4250_v55 = vsel %vm3999_vm6, %v4186_v35, %v6473_v10  ;;  %v4251_v1 = vsel %vm3999_vm6, %v4187_v19, %v6474_v53  ;;  %v6493_v59 = vunpack.i.l.bf16 %v6492_v36  ;;  %v3930_v53 = vsel %vm1059_vm2, %v1817_v14, %v5728_v51 }
 0x45e   :  { %v6479_v57 = vunpack.i.h.bf16 %v6477_v38  ;;  %v6478_v18 = vunpack.i.l.bf16 %v6477_v38  ;;  %v4344_v39 = vpack.c.bf16 %v4251_v1, %v4250_v55  ;;  %5511 = vmatmul.mubr.msk.bf16.gmra.mxu0 %vm1059_vm2, %v4339_v44  ;;  %v3995_v15 = vsel %vm3934_vm5, %v3930_v53, %v5878_v52  ;;  %v2332_v55 = vld [vmem:[#allocation2 + $0x34a] sm:$0xff]  ;;  %v2333_v1 = vld [vmem:[#allocation2 + $0x352] sm:$0xff] }
 0x45f   :  { %v4668_v0 = vpop.f32.mrf.mxu1  ;;  %5514 = vmatprep.mubr.msk.bf16.mxu0 %vm1059_vm2, %v4342_v63  ;;  %v6507_v34 = vpop.permute.xlu0 %6506  ;;  %v3996_v8 = vsel %vm3934_vm5, %v3931_v33, %v5879_v61  ;;  %v4351_v41 = vpack.c.bf16 %v2333_v1, %v2332_v55 }
 0x460   :  { %4856 = vmatprep.mubr.bf16.mxu1 %v4344_v39  ;;  %v4058_v25 = vsel %vm3999_vm6, %v3993_v16, %v6478_v18  ;;  %v4059_v31 = vsel %vm3999_vm6, %v3994_v42, %v6479_v57  ;;  %v6509_v19 = vunpack.i.h.bf16 %v6507_v34  ;;  %v6508_v36 = vunpack.i.l.bf16 %v6507_v34  ;;  %v11231_v42 = vld [vmem:[#allocation54_spill] sm:$0xff] }
 0x461   :  { %v10474_v22 = vpop.f32.mrf.mxu1  ;;  %v6487_v20 = vpop.permute.xlu1 %6486  ;;  %v4343_v2 = vpack.c.bf16 %v4059_v31, %v4058_v25  ;;  %v5734_v57 = vunpack.i.h.bf16 %v11230_v23  ;;  %v5733_v16 = vunpack.i.l.bf16 %v11230_v23  ;;  %v5884_v25 = vunpack.i.h.bf16 %v11231_v42  ;;  %v2075_v31 = vld [vmem:[#allocation2 + $0x331] sm:$0xff] }
 0x462   :  { %v6489_v60 = vunpack.i.h.bf16 %v6487_v20  ;;  %v6488_v32 = vunpack.i.l.bf16 %v6487_v20  ;;  %v5883_v58 = vunpack.i.l.bf16 %v11231_v42  ;;  %v4127_v20 = vsel %vm1059_vm2, %v2076_v24, %v6509_v19 }
 0x463   :  { %v4671_v9 = vpop.f32.mrf.mxu1  ;;  %v6512_v35 = vpop.permute.xlu0 %6511  ;;  %v3933_v34 = vsel %vm1059_vm2, %v1820_v28, %v5734_v57 }
 0x464   :  { %v4188_v7 = vsel %vm3934_vm5, %v4124_v30, %v6488_v32  ;;  %v4189_v46 = vsel %vm3934_vm5, %v4125_v48, %v6489_v60  ;;  %v6514_v4 = vunpack.i.h.bf16 %v6512_v35  ;;  %v6513_v54 = vunpack.i.l.bf16 %v6512_v35 }
 0x465   :  { %4857 = vmatmul.mubr.bf16.gmra.mxu1 %v4343_v2  ;;  %v10483_v45 = vpop.f32.mrf.mxu1  ;;  %v6497_v13 = vpop.permute.xlu1 %6496  ;;  %v4252_v47 = vsel %vm3999_vm6, %v4188_v7, %v6493_v59  ;;  %v4253_v11 = vsel %vm3999_vm6, %v4189_v46, %v6494_v21  ;;  %v4126_v2 = vsel %vm1059_vm2, %v2075_v31, %v6508_v36  ;;  %v3932_v48 = vsel %vm1059_vm2, %v1819_v62, %v5733_v16 }
 0x466   :  { %v6499_v10 = vunpack.i.h.bf16 %v6497_v13  ;;  %v6498_v27 = vunpack.i.l.bf16 %v6497_v13  ;;  %v4347_v50 = vpack.c.bf16 %v4253_v11, %v4252_v47  ;;  %5515 = vmatmul.mubr.msk.bf16.gmra.mxu0 %vm1059_vm2, %v4345_v43  ;;  %v3997_v9 = vsel %vm3934_vm5, %v3932_v48, %v5883_v58 }
 0x467   :  { %v4676_v44 = vpop.f32.mrf.mxu1  ;;  %5518 = vmatprep.mubr.msk.bf16.mxu0 %vm1059_vm2, %v4348_v37  ;;  %v3998_v49 = vsel %vm3934_vm5, %v3933_v34, %v5884_v25 }
 0x468   :  { %4864 = vmatprep.mubr.bf16.mxu1 %v4347_v50  ;;  %v4060_v38 = vsel %vm3999_vm6, %v3995_v15, %v6498_v27  ;;  %v4061_v63 = vsel %vm3999_vm6, %v3996_v8, %v6499_v10 }
 0x469   :  { %v10495_v18 = vpop.f32.mrf.mxu1  ;;  %v6502_v39 = vpop.permute.xlu1 %6501  ;;  %v4346_v0 = vpack.c.bf16 %v4061_v63, %v4060_v38 }
 0x46a   :  { %v6504_v17 = vunpack.i.h.bf16 %v6502_v39  ;;  %v6503_v51 = vunpack.i.l.bf16 %v6502_v39 }
 0x46b   :  { %v4679_v40 = vpop.f32.mrf.mxu1 }
 0x46c   :  { %v4190_v61 = vsel %vm3934_vm5, %v4126_v2, %v6503_v51  ;;  %v4191_v52 = vsel %vm3934_vm5, %v4127_v20, %v6504_v17 }
 0x46d   :  { %4865 = vmatmul.mubr.bf16.gmra.mxu1 %v4346_v0  ;;  %v10505_v60 = vpop.f32.mrf.mxu1  ;;  %v6517_v32 = vpop.permute.xlu1 %6516  ;;  %v4254_v56 = vsel %vm3999_vm6, %v4190_v61, %v6513_v54  ;;  %v4255_v12 = vsel %vm3999_vm6, %v4191_v52, %v6514_v4 }
 0x46e   :  { %v6519_v30 = vunpack.i.h.bf16 %v6517_v32  ;;  %v6518_v21 = vunpack.i.l.bf16 %v6517_v32  ;;  %v4350_v59 = vpack.c.bf16 %v4255_v12, %v4254_v56  ;;  %5519 = vmatmul.mubr.msk.bf16.gmra.mxu0 %vm1059_vm2, %v4351_v41 }
 0x46f   :  { %v4684_v7 = vpop.f32.mrf.mxu1 }
 0x470   :  { %v4062_v46 = vsel %vm3999_vm6, %v3997_v9, %v6518_v21  ;;  %v4063_v43 = vsel %vm3999_vm6, %v3998_v49, %v6519_v30  ;;  %4872 = vmatprep.mubr.bf16.mxu1 %v4350_v59 }
 0x471   :  { %v4349_v14 = vpack.c.bf16 %v4063_v43, %v4062_v46  ;;  %v10515_v33 = vpop.f32.mrf.mxu1 }
 0x473   :  { %v4687_v13 = vpop.f32.mrf.mxu1 }
 0x475   :  { %4873 = vmatmul.mubr.bf16.gmra.mxu1 %v4349_v14  ;;  %v10517_v37 = vpop.f32.mrf.mxu1 }
 0x477   :  { %v4692_v47 = vpop.f32.mrf.mxu1 }
 0x479   :  { %v10519_v11 = vpop.f32.mrf.mxu1 }
 0x47b   :  { %v4695_v53 = vpop.f32.mrf.mxu1 }
 0x47d   :  { %v10521_v10 = vpop.f32.mrf.mxu1 }
 0x47f   :  { %v4700_v27 = vpop.f32.mrf.mxu1 }
 0x481   :  { %v10523_v50 = vpop.f32.mrf.mxu1 }
 0x483   :  { %v4703_v35 = vpop.f32.mrf.mxu1 }
 0x485   :  { %v10525_v19 = vpop.f32.mrf.mxu1 }
 0x487   :  { %v4708_v36 = vpop.f32.mrf.mxu1 }
 0x489   :  { %v10527_v44 = vpop.f32.mrf.mxu1 }
 0x48b   :  { %v4711_v15 = vpop.f32.mrf.mxu1 }
 0x48d   :  { %v10529_v8 = vpop.f32.mrf.mxu1 }
 0x48f   :  { %v4716_v38 = vpop.f32.mrf.mxu1 }
 0x491   :  { %v10531_v63 = vpop.f32.mrf.mxu1 }
 0x493   :  { %v4719_v55 = vpop.f32.mrf.mxu1  ;;  %v4626_v1 = vpop.f32.mrf.mxu0 }
 0x495   :  { %v10533_v23 = vpop.f32.mrf.mxu1  ;;  %v4628_v57 = vpop.f32.mrf.mxu0 }
 0x497   :  { %v4724_v39 = vpop.f32.mrf.mxu1  ;;  %v4629_v4 = vpop.f32.mrf.mxu0 }
 0x499   :  { %v10535_v54 = vpop.f32.mrf.mxu1  ;;  %v4631_v0 = vpop.f32.mrf.mxu0 }
 0x49b   :  { %v4727_v16 = vpop.f32.mrf.mxu1 }
 0x49d   :  { %v10537_v42 = vpop.f32.mrf.mxu1 }
 0x49f   :  { %v4732_v25 = vpop.f32.mrf.mxu1 }
 0x4a1   :  { %v10539_v31 = vpop.f32.mrf.mxu1 }
 0x4a3   :  { %v4735_v24 = vpop.f32.mrf.mxu1 }
 0x4a4   :  { %v4634_v17 = vpop.f32.mrf.mxu0 }
 0x4a6   :  { %v4636_v51 = vpop.f32.mrf.mxu0 }
 0x4a8   :  { %v4637_v58 = vpop.f32.mrf.mxu0  ;;  %v10541_v20 = vpop.f32.mrf.mxu1 }
 0x4aa   :  { %v4639_v2 = vpop.f32.mrf.mxu0  ;;  %v4740_v40 = vpop.f32.mrf.mxu1 }
 0x4ac   :  { %v10543_v41 = vpop.f32.mrf.mxu1 }
 0x4ae   :  { %v4743_v28 = vpop.f32.mrf.mxu1  ;;  %v4642_v61 = vpop.f32.mrf.mxu0 }
 0x4b0   :  { %v4644_v52 = vpop.f32.mrf.mxu0 }
 0x4b2   :  { %v4645_v62 = vpop.f32.mrf.mxu0 }
 0x4b4   :  { %v4647_v32 = vpop.f32.mrf.mxu0 }
 0x4b5   :  { %v10545_v34 = vpop.f32.mrf.mxu1 }
 0x4b6   :  { %v5460_v12 = vpop.f32.mrf.mxu0 }
 0x4b7   :  { %v4748_v56 = vpop.f32.mrf.mxu1  ;;  %v4924_v48 = vadd.f32 %v5460_v12, %v4634_v17 }
 0x4b8   :  { %v4915_v21 = vpop.f32.mrf.mxu0 }
 0x4b9   :  { %v10547_v30 = vpop.f32.mrf.mxu1  ;;  %5173 = vst.msk [vmem:[%s10880_s7 + $0x10] sm:$0xff] %vm5170_vm7, %v4924_v48  ;;  %v4916_v59 = vadd.f32 %v4915_v21, %v4626_v1 }
 0x4ba   :  { %v5461_v49 = vpop.f32.mrf.mxu0 }
 0x4bb   :  { %v4751_v9 = vpop.f32.mrf.mxu1  ;;  %5171 = vst.msk [vmem:[%s10880_s7] sm:$0xff] %vm5170_vm7, %v4916_v59  ;;  %v4927_v7 = vadd.f32 %v5461_v49, %v4637_v58 }
 0x4bc   :  { %v4918_v43 = vpop.f32.mrf.mxu0 }
 0x4bd   :  { %v10557_v46 = vpop.f32.mrf.mxu1  ;;  %5174 = vst.msk [vmem:[%s10880_s7 + $0x18] sm:$0xff] %vm5170_vm7, %v4927_v7  ;;  %v4919_v14 = vadd.f32 %v4918_v43, %v4629_v4 }
 0x4be   :  { %v5464_v47 = vpop.f32.mrf.mxu0 }
 0x4bf   :  { %v4756_v13 = vpop.f32.mrf.mxu1  ;;  %5172 = vst.msk [vmem:[%s10880_s7 + $0x8] sm:$0xff] %vm5170_vm7, %v4919_v14  ;;  %v4940_v53 = vadd.f32 %v5464_v47, %v10403_v26 }
 0x4c0   :  { %v4931_v35 = vpop.f32.mrf.mxu0 }
 0x4c1   :  { %v10568_v27 = vpop.f32.mrf.mxu1  ;;  %5177 = vst.msk [vmem:[%s10880_s7 + $0x30] sm:$0xff] %vm5170_vm7, %v4940_v53  ;;  %v4932_v36 = vadd.f32 %v4931_v35, %v4642_v61 }
 0x4c2   :  { %v5465_v38 = vpop.f32.mrf.mxu0 }
 0x4c3   :  { %v4759_v15 = vpop.f32.mrf.mxu1  ;;  %5175 = vst.msk [vmem:[%s10880_s7 + $0x20] sm:$0xff] %vm5170_vm7, %v4932_v36  ;;  %v4943_v55 = vadd.f32 %v5465_v38, %v10420_v5 }
 0x4c4   :  { %v4934_v26 = vpop.f32.mrf.mxu0 }
 0x4c5   :  { %v10579_v1 = vpop.f32.mrf.mxu1  ;;  %5178 = vst.msk [vmem:[%s10880_s7 + $0x38] sm:$0xff] %vm5170_vm7, %v4943_v55  ;;  %v4935_v57 = vadd.f32 %v4934_v26, %v4645_v62 }
 0x4c6   :  { %v5468_v4 = vpop.f32.mrf.mxu0 }
 0x4c7   :  { %v4764_v39 = vpop.f32.mrf.mxu1  ;;  %5176 = vst.msk [vmem:[%s10880_s7 + $0x28] sm:$0xff] %vm5170_vm7, %v4935_v57  ;;  %v4956_v0 = vadd.f32 %v5468_v4, %v10459_v29 }
 0x4c8   :  { %v4947_v5 = vpop.f32.mrf.mxu0 }
 0x4c9   :  { %v10590_v16 = vpop.f32.mrf.mxu1  ;;  %5181 = vst.msk [vmem:[%s10880_s7 + $0x50] sm:$0xff] %vm5170_vm7, %v4956_v0  ;;  %v4948_v25 = vadd.f32 %v4947_v5, %v10431_v6 }
 0x4ca   :  { %v5469_v17 = vpop.f32.mrf.mxu0 }
 0x4cb   :  { %v4767_v24 = vpop.f32.mrf.mxu1  ;;  %5179 = vst.msk [vmem:[%s10880_s7 + $0x40] sm:$0xff] %vm5170_vm7, %v4948_v25  ;;  %v4959_v51 = vadd.f32 %v5469_v17, %v10474_v22 }
 0x4cc   :  { %v4950_v58 = vpop.f32.mrf.mxu0 }
 0x4cd   :  { %v10602_v29 = vpop.f32.mrf.mxu1  ;;  %5182 = vst.msk [vmem:[%s10880_s7 + $0x58] sm:$0xff] %vm5170_vm7, %v4959_v51  ;;  %v4951_v2 = vadd.f32 %v4950_v58, %v10448_v3 }
 0x4ce   :  { %v5472_v40 = vpop.f32.mrf.mxu0 }
 0x4cf   :  { %v4772_v6 = vpop.f32.mrf.mxu1  ;;  %5180 = vst.msk [vmem:[%s10880_s7 + $0x48] sm:$0xff] %vm5170_vm7, %v4951_v2  ;;  %v4972_v28 = vadd.f32 %v5472_v40, %v10505_v60 }
 0x4d0   :  { %v4963_v61 = vpop.f32.mrf.mxu0 }
 0x4d1   :  { %v10614_v22 = vpop.f32.mrf.mxu1  ;;  %5185 = vst.msk [vmem:[%s10880_s7 + $0x70] sm:$0xff] %vm5170_vm7, %v4972_v28  ;;  %v4964_v52 = vadd.f32 %v4963_v61, %v10483_v45 }
 0x4d2   :  { %v5473_v62 = vpop.f32.mrf.mxu0 }
 0x4d3   :  { %v4775_v3 = vpop.f32.mrf.mxu1  ;;  %5183 = vst.msk [vmem:[%s10880_s7 + $0x60] sm:$0xff] %vm5170_vm7, %v4964_v52  ;;  %v4975_v32 = vadd.f32 %v5473_v62, %v10515_v33 }
 0x4d4   :  { %v4966_v56 = vpop.f32.mrf.mxu0 }
 0x4d5   :  { %v10626_v60 = vpop.f32.mrf.mxu1  ;;  %5186 = vst.msk [vmem:[%s10880_s7 + $0x78] sm:$0xff] %vm5170_vm7, %v4975_v32  ;;  %v4967_v12 = vadd.f32 %v4966_v56, %v10495_v18 }
 0x4d6   :  { %v5476_v48 = vpop.f32.mrf.mxu0 }
 0x4d7   :  { %v4780_v45 = vpop.f32.mrf.mxu1  ;;  %5184 = vst.msk [vmem:[%s10880_s7 + $0x68] sm:$0xff] %vm5170_vm7, %v4967_v12  ;;  %v4988_v21 = vadd.f32 %v5476_v48, %v10521_v10 }
 0x4d8   :  { %v4979_v59 = vpop.f32.mrf.mxu0 }
 0x4d9   :  { %v10638_v33 = vpop.f32.mrf.mxu1  ;;  %5189 = vst.msk [vmem:[%s10880_s7 + $0x90] sm:$0xff] %vm5170_vm7, %v4988_v21  ;;  %v4980_v9 = vadd.f32 %v4979_v59, %v10517_v37 }
 0x4da   :  { %v5477_v49 = vpop.f32.mrf.mxu0 }
 0x4db   :  { %v4783_v18 = vpop.f32.mrf.mxu1  ;;  %5187 = vst.msk [vmem:[%s10880_s7 + $0x80] sm:$0xff] %vm5170_vm7, %v4980_v9  ;;  %v4991_v7 = vadd.f32 %v5477_v49, %v10523_v50 }
 0x4dc   :  { %v4982_v43 = vpop.f32.mrf.mxu0 }
 0x4dd   :  { %v10650_v10 = vpop.f32.mrf.mxu1  ;;  %5190 = vst.msk [vmem:[%s10880_s7 + $0x98] sm:$0xff] %vm5170_vm7, %v4991_v7  ;;  %v4983_v14 = vadd.f32 %v4982_v43, %v10519_v11 }
 0x4de   :  { %v5480_v13 = vpop.f32.mrf.mxu0 }
 0x4df   :  { %v4788_v37 = vpop.f32.mrf.mxu1  ;;  %5188 = vst.msk [vmem:[%s10880_s7 + $0x88] sm:$0xff] %vm5170_vm7, %v4983_v14  ;;  %v5004_v47 = vadd.f32 %v5480_v13, %v10529_v8 }
 0x4e0   :  { %v4995_v53 = vpop.f32.mrf.mxu0 }
 0x4e1   :  { %v10662_v50 = vpop.f32.mrf.mxu1  ;;  %5193 = vst.msk [vmem:[%s10880_s7 + $0xb0] sm:$0xff] %vm5170_vm7, %v5004_v47  ;;  %v4996_v35 = vadd.f32 %v4995_v53, %v10525_v19 }
 0x4e2   :  { %v5481_v36 = vpop.f32.mrf.mxu0 }
 0x4e3   :  { %v4791_v11 = vpop.f32.mrf.mxu1  ;;  %5191 = vst.msk [vmem:[%s10880_s7 + $0xa0] sm:$0xff] %vm5170_vm7, %v4996_v35  ;;  %v5007_v15 = vadd.f32 %v5481_v36, %v10531_v63 }
 0x4e4   :  { %v4998_v38 = vpop.f32.mrf.mxu0 }
 0x4e5   :  { %v10674_v8 = vpop.f32.mrf.mxu1  ;;  %5194 = vst.msk [vmem:[%s10880_s7 + $0xb8] sm:$0xff] %vm5170_vm7, %v5007_v15  ;;  %v4999_v55 = vadd.f32 %v4998_v38, %v10527_v44 }
 0x4e6   :  { %v5484_v26 = vpop.f32.mrf.mxu0 }
 0x4e7   :  { %v4796_v19 = vpop.f32.mrf.mxu1  ;;  %5192 = vst.msk [vmem:[%s10880_s7 + $0xa8] sm:$0xff] %vm5170_vm7, %v4999_v55  ;;  %v5020_v57 = vadd.f32 %v5484_v26, %v10537_v42 }
 0x4e8   :  { %v5011_v39 = vpop.f32.mrf.mxu0 }
 0x4e9   :  { %v10686_v63 = vpop.f32.mrf.mxu1  ;;  %5197 = vst.msk [vmem:[%s10880_s7 + $0xd0] sm:$0xff] %vm5170_vm7, %v5020_v57  ;;  %v5012_v4 = vadd.f32 %v5011_v39, %v10533_v23 }
 0x4ea   :  { %v5485_v0 = vpop.f32.mrf.mxu0 }
 0x4eb   :  { %v4799_v44 = vpop.f32.mrf.mxu1  ;;  %5195 = vst.msk [vmem:[%s10880_s7 + $0xc0] sm:$0xff] %vm5170_vm7, %v5012_v4  ;;  %v5023_v5 = vadd.f32 %v5485_v0, %v10539_v31 }
 0x4ec   :  { %v5014_v25 = vpop.f32.mrf.mxu0 }
 0x4ed   :  { %v10698_v42 = vpop.f32.mrf.mxu1  ;;  %5198 = vst.msk [vmem:[%s10880_s7 + $0xd8] sm:$0xff] %vm5170_vm7, %v5023_v5  ;;  %v5015_v24 = vadd.f32 %v5014_v25, %v10535_v54 }
 0x4ee   :  { %v5488_v17 = vpop.f32.mrf.mxu0 }
 0x4ef   :  { %v4804_v23 = vpop.f32.mrf.mxu1  ;;  %5196 = vst.msk [vmem:[%s10880_s7 + $0xc8] sm:$0xff] %vm5170_vm7, %v5015_v24  ;;  %v5036_v51 = vadd.f32 %v5488_v17, %v10545_v34 }
 0x4f0   :  { %v5027_v58 = vpop.f32.mrf.mxu0 }
 0x4f1   :  { %v10710_v31 = vpop.f32.mrf.mxu1  ;;  %5201 = vst.msk [vmem:[%s10880_s7 + $0xf0] sm:$0xff] %vm5170_vm7, %v5036_v51  ;;  %v5028_v2 = vadd.f32 %v5027_v58, %v10541_v20 }
 0x4f2   :  { %v5489_v6 = vpop.f32.mrf.mxu0 }
 0x4f3   :  { %v4807_v54 = vpop.f32.mrf.mxu1  ;;  %5199 = vst.msk [vmem:[%s10880_s7 + $0xe0] sm:$0xff] %vm5170_vm7, %v5028_v2  ;;  %v5039_v40 = vadd.f32 %v5489_v6, %v10547_v30 }
 0x4f4   :  { %v5030_v28 = vpop.f32.mrf.mxu0 }
 0x4f5   :  { %v4810_v34 = vpop.f32.mrf.mxu1  ;;  %5202 = vst.msk [vmem:[%s10880_s7 + $0xf8] sm:$0xff] %vm5170_vm7, %v5039_v40  ;;  %v5031_v61 = vadd.f32 %v5030_v28, %v10543_v41 }
 0x4f6   :  { %v5492_v20 = vpop.f32.mrf.mxu0 }
 0x4f7   :  { %v4812_v52 = vpop.f32.mrf.mxu1  ;;  %5200 = vst.msk [vmem:[%s10880_s7 + $0xe8] sm:$0xff] %vm5170_vm7, %v5031_v61  ;;  %v5052_v3 = vadd.f32 %v5492_v20, %v10579_v1 }
 0x4f8   :  { %v5043_v30 = vpop.f32.mrf.mxu0 }
 0x4f9   :  { %v4813_v62 = vpop.f32.mrf.mxu1  ;;  %5205 = vst.msk [vmem:[%s10880_s7 + $0x110] sm:$0xff] %vm5170_vm7, %v5052_v3  ;;  %v5044_v32 = vadd.f32 %v5043_v30, %v10557_v46 }
 0x4fa   :  { %v5493_v41 = vpop.f32.mrf.mxu0 }
 0x4fb   :  { %v4815_v56 = vpop.f32.mrf.mxu1  ;;  %5203 = vst.msk [vmem:[%s10880_s7 + $0x100] sm:$0xff] %vm5170_vm7, %v5044_v32  ;;  %v5055_v12 = vadd.f32 %v5493_v41, %v10590_v16 }
 0x4fc   :  { %v5046_v1 = vpop.f32.mrf.mxu0 }
 0x4fd   :  { %v4818_v45 = vpop.f32.mrf.mxu1  ;;  %5206 = vst.msk [vmem:[%s10880_s7 + $0x118] sm:$0xff] %vm5170_vm7, %v5055_v12  ;;  %v5047_v48 = vadd.f32 %v5046_v1, %v10568_v27 }
 0x4fe   :  { %v5496_v46 = vpop.f32.mrf.mxu0 }
 0x4ff   :  { %v4820_v21 = vpop.f32.mrf.mxu1  ;;  %5204 = vst.msk [vmem:[%s10880_s7 + $0x108] sm:$0xff] %vm5170_vm7, %v5047_v48  ;;  %v5068_v59 = vadd.f32 %v5496_v46, %v10626_v60 }
 0x500   :  { %v5059_v16 = vpop.f32.mrf.mxu0 }
 0x501   :  { %v4821_v9 = vpop.f32.mrf.mxu1  ;;  %5209 = vst.msk [vmem:[%s10880_s7 + $0x130] sm:$0xff] %vm5170_vm7, %v5068_v59  ;;  %v5060_v18 = vadd.f32 %v5059_v16, %v10602_v29 }
 0x502   :  { %v5497_v27 = vpop.f32.mrf.mxu0 }
 0x503   :  { %v4823_v49 = vpop.f32.mrf.mxu1  ;;  %5207 = vst.msk [vmem:[%s10880_s7 + $0x120] sm:$0xff] %vm5170_vm7, %v5060_v18  ;;  %v5071_v7 = vadd.f32 %v5497_v27, %v10638_v33 }
 0x504   :  { %v5062_v60 = vpop.f32.mrf.mxu0 }
 0x505   :  { %v4826_v43 = vpop.f32.mrf.mxu1  ;;  %5210 = vst.msk [vmem:[%s10880_s7 + $0x138] sm:$0xff] %vm5170_vm7, %v5071_v7  ;;  %v5063_v14 = vadd.f32 %v5062_v60, %v10614_v22 }
 0x506   :  { %v5500_v29 = vpop.f32.mrf.mxu0 }
 0x507   :  { %v4828_v37 = vpop.f32.mrf.mxu1  ;;  %5208 = vst.msk [vmem:[%s10880_s7 + $0x128] sm:$0xff] %vm5170_vm7, %v5063_v14  ;;  %v5084_v13 = vadd.f32 %v5500_v29, %v10674_v8 }
 0x508   :  { %v5075_v33 = vpop.f32.mrf.mxu0 }
 0x509   :  { %v4829_v47 = vpop.f32.mrf.mxu1  ;;  %5213 = vst.msk [vmem:[%s10880_s7 + $0x150] sm:$0xff] %vm5170_vm7, %v5084_v13  ;;  %v5076_v53 = vadd.f32 %v5075_v33, %v10650_v10 }
 0x50a   :  { %v5501_v22 = vpop.f32.mrf.mxu0 }
 0x50b   :  { %v4831_v35 = vpop.f32.mrf.mxu1  ;;  %5211 = vst.msk [vmem:[%s10880_s7 + $0x140] sm:$0xff] %vm5170_vm7, %v5076_v53  ;;  %v5087_v11 = vadd.f32 %v5501_v22, %v10686_v63 }
 0x50c   :  { %v5078_v15 = vpop.f32.mrf.mxu0 }
 0x50d   :  { %v4834_v36 = vpop.f32.mrf.mxu1  ;;  %5214 = vst.msk [vmem:[%s10880_s7 + $0x158] sm:$0xff] %vm5170_vm7, %v5087_v11  ;;  %v5079_v8 = vadd.f32 %v5078_v15, %v10662_v50 }
 0x50e   :  { %v5504_v10 = vpop.f32.mrf.mxu0 }
 0x50f   :  { %v4836_v38 = vpop.f32.mrf.mxu1  ;;  %5212 = vst.msk [vmem:[%s10880_s7 + $0x148] sm:$0xff] %vm5170_vm7, %v5079_v8  ;;  %v5100_v55 = vadd.f32 %v5504_v10, %v4810_v34 }
 0x510   :  { %v5091_v26 = vpop.f32.mrf.mxu0 }
 0x511   :  { %v4837_v19 = vpop.f32.mrf.mxu1  ;;  %5217 = vst.msk [vmem:[%s10880_s7 + $0x170] sm:$0xff] %vm5170_vm7, %v5100_v55  ;;  %v5092_v57 = vadd.f32 %v5091_v26, %v10698_v42 }
 0x512   :  { %v5505_v39 = vpop.f32.mrf.mxu0 }
 0x513   :  { %v4839_v63 = vpop.f32.mrf.mxu1  ;;  %5215 = vst.msk [vmem:[%s10880_s7 + $0x160] sm:$0xff] %vm5170_vm7, %v5092_v57  ;;  %v5103_v50 = vadd.f32 %v5505_v39, %v4813_v62 }
 0x514   :  { %v5094_v44 = vpop.f32.mrf.mxu0 }
 0x515   :  { %v4842_v4 = vpop.f32.mrf.mxu1  ;;  %5218 = vst.msk [vmem:[%s10880_s7 + $0x178] sm:$0xff] %vm5170_vm7, %v5103_v50  ;;  %v5095_v0 = vadd.f32 %v5094_v44, %v10710_v31 }
 0x516   :  { %v5508_v25 = vpop.f32.mrf.mxu0 }
 0x517   :  { %v4844_v5 = vpop.f32.mrf.mxu1  ;;  %5216 = vst.msk [vmem:[%s10880_s7 + $0x168] sm:$0xff] %vm5170_vm7, %v5095_v0  ;;  %v5116_v42 = vadd.f32 %v5508_v25, %v4826_v43 }
 0x518   :  { %v5107_v23 = vpop.f32.mrf.mxu0 }
 0x519   :  { %v4845_v24 = vpop.f32.mrf.mxu1  ;;  %5221 = vst.msk [vmem:[%s10880_s7 + $0x190] sm:$0xff] %vm5170_vm7, %v5116_v42  ;;  %v5108_v17 = vadd.f32 %v5107_v23, %v4818_v45 }
 0x51a   :  { %v5509_v58 = vpop.f32.mrf.mxu0 }
 0x51b   :  { %v4847_v51 = vpop.f32.mrf.mxu1  ;;  %5219 = vst.msk [vmem:[%s10880_s7 + $0x180] sm:$0xff] %vm5170_vm7, %v5108_v17  ;;  %v5119_v31 = vadd.f32 %v5509_v58, %v4829_v47 }
 0x51c   :  { %v5110_v54 = vpop.f32.mrf.mxu0 }
 0x51d   :  { %v4850_v2 = vpop.f32.mrf.mxu1  ;;  %5222 = vst.msk [vmem:[%s10880_s7 + $0x198] sm:$0xff] %vm5170_vm7, %v5119_v31  ;;  %v5111_v6 = vadd.f32 %v5110_v54, %v4821_v9 }
 0x51e   :  { %v5512_v34 = vpop.f32.mrf.mxu0 }
 0x51f   :  { %v4852_v40 = vpop.f32.mrf.mxu1  ;;  %5220 = vst.msk [vmem:[%s10880_s7 + $0x188] sm:$0xff] %vm5170_vm7, %v5111_v6  ;;  %v5132_v28 = vadd.f32 %v5512_v34, %v4842_v4 }
 0x520   :  { %v5123_v52 = vpop.f32.mrf.mxu0 }
 0x521   :  { %v4853_v61 = vpop.f32.mrf.mxu1  ;;  %5225 = vst.msk [vmem:[%s10880_s7 + $0x1b0] sm:$0xff] %vm5170_vm7, %v5132_v28  ;;  %v5124_v20 = vadd.f32 %v5123_v52, %v4834_v36 }
 0x522   :  { %v5513_v62 = vpop.f32.mrf.mxu0 }
 0x523   :  { %v4855_v3 = vpop.f32.mrf.mxu1  ;;  %5223 = vst.msk [vmem:[%s10880_s7 + $0x1a0] sm:$0xff] %vm5170_vm7, %v5124_v20  ;;  %v5135_v30 = vadd.f32 %v5513_v62, %v4845_v24 }
 0x524   :  { %v5126_v56 = vpop.f32.mrf.mxu0 }
 0x525   :  { %v4858_v32 = vpop.f32.mrf.mxu1  ;;  %5226 = vst.msk [vmem:[%s10880_s7 + $0x1b8] sm:$0xff] %vm5170_vm7, %v5135_v30  ;;  %v5127_v41 = vadd.f32 %v5126_v56, %v4837_v19 }
 0x526   :  { %v5516_v45 = vpop.f32.mrf.mxu0 }
 0x527   :  { %v4860_v12 = vpop.f32.mrf.mxu1  ;;  %5224 = vst.msk [vmem:[%s10880_s7 + $0x1a8] sm:$0xff] %vm5170_vm7, %v5127_v41  ;;  %v5148_v1 = vadd.f32 %v5516_v45, %v4858_v32 }
 0x528   :  { %v5139_v21 = vpop.f32.mrf.mxu0 }
 0x529   :  { %v4861_v48 = vpop.f32.mrf.mxu1  ;;  %5229 = vst.msk [vmem:[%s10880_s7 + $0x1d0] sm:$0xff] %vm5170_vm7, %v5148_v1  ;;  %v5140_v46 = vadd.f32 %v5139_v21, %v4850_v2 }
 0x52a   :  { %v5517_v9 = vpop.f32.mrf.mxu0 }
 0x52b   :  { %v4863_v59 = vpop.f32.mrf.mxu1  ;;  %5227 = vst.msk [vmem:[%s10880_s7 + $0x1c0] sm:$0xff] %vm5170_vm7, %v5140_v46  ;;  %v5151_v16 = vadd.f32 %v5517_v9, %v4861_v48 }
 0x52c   :  { %v5142_v49 = vpop.f32.mrf.mxu0 }
 0x52d   :  { %v4866_v18 = vpop.f32.mrf.mxu1  ;;  %5230 = vst.msk [vmem:[%s10880_s7 + $0x1d8] sm:$0xff] %vm5170_vm7, %v5151_v16  ;;  %v5143_v27 = vadd.f32 %v5142_v49, %v4853_v61 }
 0x52e   :  { %v5520_v43 = vpop.f32.mrf.mxu0 }
 0x52f   :  { %v4868_v7 = vpop.f32.mrf.mxu1  ;;  %5228 = vst.msk [vmem:[%s10880_s7 + $0x1c8] sm:$0xff] %vm5170_vm7, %v5143_v27 }
 0x530   :  { %v5155_v14 = vpop.f32.mrf.mxu0 }
 0x531   :  { %v4869_v60 = vpop.f32.mrf.mxu1  ;;  %v5156_v37 = vadd.f32 %v5155_v14, %v4866_v18 }
 0x532   :  { %v5521_v13 = vpop.f32.mrf.mxu0 }
 0x533   :  { %v4871_v29 = vpop.f32.mrf.mxu1  ;;  %5231 = vst.msk [vmem:[%s10880_s7 + $0x1e0] sm:$0xff] %vm5170_vm7, %v5156_v37 }
 0x534   :  { %v5158_v33 = vpop.f32.mrf.mxu0 }
 0x535   :  { %v4874_v47 = vpop.f32.mrf.mxu1  ;;  %v5159_v35 = vadd.f32 %v5158_v33, %v4869_v60 }
 0x536   :  { %v5164_v53 = vadd.f32 %v5520_v43, %v4874_v47 }
 0x537   :  { %v4876_v22 = vpop.f32.mrf.mxu1  ;;  %5232 = vst.msk [vmem:[%s10880_s7 + $0x1e8] sm:$0xff] %vm5170_vm7, %v5159_v35 }
 0x538   :  { %5233 = vst.msk [vmem:[%s10880_s7 + $0x1f0] sm:$0xff] %vm5170_vm7, %v5164_v53 }
 0x539   :  { %v4877_v11 = vpop.f32.mrf.mxu1 }
 0x53a   :  { %v5167_v36 = vadd.f32 %v5521_v13, %v4877_v11 }
 0x53b   :  { %v4879_v15 = vpop.f32.mrf.mxu1 }
 0x53c   :  { %5234 = vst.msk [vmem:[%s10880_s7 + $0x1f8] sm:$0xff] %vm5170_vm7, %v5167_v36 }

</bundles_post_ra>
